<compile_context>
chip_gen: v7x
topology: tpu7x:2x2x1
jax: 0.10.0
libtpu: 0.0.40
codegen_flags: <defaults>
</compile_context>

<pallas_src>
import jax
import jax.numpy as jnp
import numpy as np
from jax import lax
from jax.experimental import pallas as pl
from jax.experimental.pallas import tpu as pltpu


def _round_up(n, m):
    return (n + m - 1) // m * m


# ---------------------------------------------------------------------------
# Offline parameter / constant preparation (pure layout work, done once)
# ---------------------------------------------------------------------------
def _conv_weight_block(w, bb):
    """PyTorch (Cout, Cin, 3, 3) -> batch-block-diagonal (Cout*bb, 9*Cin*bb) bf16.

    Row r = o*bb + b ; column k = (tap*Cin + ci)*bb + b' with tap = kh*3 + kw.
    Entry = W[o, ci, kh, kw] iff b == b' (so one matmul convolves Bb images)."""
    w = np.asarray(w, np.float32)
    cout, cin = w.shape[:2]
    wt = np.transpose(w, (0, 2, 3, 1)).reshape(cout, 9, cin)      # (o, tap, ci)
    blk = np.zeros((cout, bb, 9, cin, bb), np.float32)
    for b in range(bb):
        blk[:, b, :, :, b] = wt
    return jnp.asarray(blk.reshape(cout * bb, 9 * cin * bb), jnp.bfloat16)


def _bias_vec(b, bb):
    """bias (Cout,) -> per-row bias (Cout*bb, 1) f32, rows ordered (o, b)."""
    return jnp.asarray(np.repeat(np.asarray(b, np.float32), bb)[:, None])


def _border_mask(g, interior, s):
    """(1, s) f32 mask: 1.0 at interior pixels of the padded g x g grid."""
    m = np.zeros((g, g), np.float32)
    m[1:1 + interior, 1:1 + interior] = 1.0
    out = np.zeros((1, s), np.float32)
    out[0, :g * g] = m.reshape(-1)
    return jnp.asarray(out)


def _pool_selector(g_in, s_in, g_out, s_out, n_out):
    """0/1 matrix (s_in, s_out): picks the 2x2 max-pool source lanes out of the
    pair-maxed tile and re-inserts the zero border of the next block's grid."""
    sel = np.zeros((s_in, s_out), np.float32)
    for r in range(n_out):
        for q in range(n_out):
            sel[(2 * r + 1) * g_in + (2 * q + 1), (r + 1) * g_out + (q + 1)] = 1.0
    return jnp.asarray(sel, jnp.bfloat16)


def _classifier_weight(wc, bc, c, g2, s2, p2, n_lanes):
    """Fold the pool-2 lane selection into the Linear weight (per channel).

    wcls[ch*s2 + p, o] = W[o, ch*p2*p2 + r*p2 + q]  with  p = (2r+1)*g2+(2q+1)."""
    wc = np.asarray(wc, np.float32)
    out_dim = wc.shape[0]
    ws = np.zeros((c * s2, n_lanes), np.float32)
    for ch in range(c):
        for r in range(p2):
            for q in range(p2):
                p = (2 * r + 1) * g2 + (2 * q + 1)
                ws[ch * s2 + p, :out_dim] = wc[:, ch * p2 * p2 + r * p2 + q]
    bvec = np.zeros((1, n_lanes), np.float32)
    bvec[0, :out_dim] = np.asarray(bc, np.float32)
    return jnp.asarray(ws, jnp.bfloat16), jnp.asarray(bvec)


# ---------------------------------------------------------------------------
# Fused kernel: conv+relu, conv+relu, pool, conv+relu, conv+relu, pool, linear
# ---------------------------------------------------------------------------
def _make_kernel(*, c, bb, g1, g2, s2, n_lanes):
    def conv3x3_relu(x, w_ref, b_ref, width, mask=None):
        # x: (rows, S) f32 (values already bf16-exact where they should be).
        rows = x.shape[0]
        # Stack the 9 rolled tap copies along sublanes and do ONE MXU matmul.
        # Stack in bf16 when the piece row-count is bf16-tile aligned, else f32
        # (numerically identical: cast is elementwise, rolls don't mix values).
        src = x.astype(jnp.bfloat16) if rows % 16 == 0 else x
        taps = []
        for dy in (-1, 0, 1):
            for dx in (-1, 0, 1):
                off = dy * width + dx
                taps.append(src if off == 0 else jnp.roll(src, -off, axis=1))
        xs = jnp.concatenate(taps, axis=0).astype(jnp.bfloat16)   # (9*rows, S)
        y = jnp.dot(w_ref[...], xs, preferred_element_type=jnp.float32)
        y = jnp.maximum(y + b_ref[...], 0.0)
        # Mask only when the result feeds another conv (padding=1 semantics);
        # pool/classifier reads are interior-only, so no mask needed there.
        return y * mask if mask is not None else y

    def pair_max(y, width):
        # 2x2 window max at every lane: max over {p, p+1, p+width, p+width+1}.
        m = jnp.maximum(y, jnp.roll(y, -1, axis=1))
        return jnp.maximum(m, jnp.roll(m, -width, axis=1))

    def kernel(x_ref, w1a_ref, b1a_ref, w1b_ref, b1b_ref, mask1_ref, sel1_ref,
               w2a_ref, b2a_ref, w2b_ref, b2b_ref, mask2_ref, wcls_ref,
               bcls_ref, o_ref):
        x = x_ref[0].astype(jnp.float32)                    # (Cin*bb, s1)

        # ---- block 1 ----------------------------------------------------
        y = conv3x3_relu(x, w1a_ref, b1a_ref, g1, mask1_ref[...])
        y = conv3x3_relu(y, w1b_ref, b1b_ref, g1)
        h = jnp.dot(pair_max(y, g1).astype(jnp.bfloat16), sel1_ref[...],
                    preferred_element_type=jnp.float32)     # (C*bb, s2)

        # ---- block 2 ----------------------------------------------------
        y = conv3x3_relu(h, w2a_ref, b2a_ref, g2, mask2_ref[...])
        y = conv3x3_relu(y, w2b_ref, b2b_ref, g2)
        m2 = pair_max(y, g2)                                 # (C*bb, s2) f32

        # ---- classifier (pool-2 selection folded into wcls) --------------
        logits = jnp.zeros((bb, n_lanes), jnp.float32)
        for ch in range(c):
            logits = logits + jnp.dot(
                m2[ch * bb:(ch + 1) * bb, :].astype(jnp.bfloat16),
                wcls_ref[ch * s2:(ch + 1) * s2, :],
                preferred_element_type=jnp.float32)
        o_ref[...] = logits + bcls_ref[...]

    return kernel


# ---------------------------------------------------------------------------
# Wrapper: builds constants once, returns a jit-able forward(x) -> logits
# ---------------------------------------------------------------------------
def make_tinyvgg_forward(tp, input_channels, hidden, out_dim, *,
                         batch_tile=8, hw=28):
    assert hw % 4 == 0
    cin, c, bb = input_channels, hidden, batch_tile
    g1 = hw + 2
    s1 = _round_up(g1 * g1, 128)            # 30*30=900 -> 1024
    p1 = hw // 2                            # 14
    g2 = p1 + 2                             # 16
    s2 = _round_up(g2 * g2, 128)            # 256
    p2 = p1 // 2                            # 7
    n_lanes = _round_up(out_dim, 128)       # 128
    assert tp["wc"].shape == (out_dim, hidden * p2 * p2)

    prep = dict(
        w1a=_conv_weight_block(tp["w1a"], bb), b1a=_bias_vec(tp["b1a"], bb),
        w1b=_conv_weight_block(tp["w1b"], bb), b1b=_bias_vec(tp["b1b"], bb),
        w2a=_conv_weight_block(tp["w2a"], bb), b2a=_bias_vec(tp["b2a"], bb),
        w2b=_conv_weight_block(tp["w2b"], bb), b2b=_bias_vec(tp["b2b"], bb),
        mask1=_border_mask(g1, hw, s1), mask2=_border_mask(g2, p1, s2),
        sel1=_pool_selector(g1, s1, g2, s2, p1),
    )
    prep["wcls"], prep["bcls"] = _classifier_weight(
        tp["wc"], tp["bc"], c, g2, s2, p2, n_lanes)

    kernel = _make_kernel(c=c, bb=bb, g1=g1, g2=g2, s2=s2, n_lanes=n_lanes)
    r1, rc = cin * bb, c * bb

    def forward(x):
        B = x.shape[0]
        nsteps = -(-B // bb)
        bpad = nsteps * bb
        # TODO(synk): fold the border/lane zero-padding into the kernel (DMA
        # into a pre-zeroed scratch) to drop these wrapper-side pad ops.
        xp = jnp.pad(x.astype(jnp.float32),
                     ((0, bpad - B), (0, 0), (1, 1), (1, 1)))
        xp = xp.reshape(bpad, cin, g1 * g1)
        xp = jnp.pad(xp, ((0, 0), (0, 0), (0, s1 - g1 * g1)))
        xp = (xp.reshape(nsteps, bb, cin, s1)
                .transpose(0, 2, 1, 3)
                .reshape(nsteps, cin * bb, s1)
                .astype(jnp.bfloat16))

        const = lambda g: (0, 0)
        logits = pl.pallas_call(
            kernel,
            out_shape=jax.ShapeDtypeStruct((bpad, n_lanes), jnp.float32),
            grid=(nsteps,),
            in_specs=[
                pl.BlockSpec((1, r1, s1), lambda g: (g, 0, 0)),
                pl.BlockSpec((rc, 9 * r1), const),
                pl.BlockSpec((rc, 1), const),
                pl.BlockSpec((rc, 9 * rc), const),
                pl.BlockSpec((rc, 1), const),
                pl.BlockSpec((1, s1), const),
                pl.BlockSpec((s1, s2), const),
                pl.BlockSpec((rc, 9 * rc), const),
                pl.BlockSpec((rc, 1), const),
                pl.BlockSpec((rc, 9 * rc), const),
                pl.BlockSpec((rc, 1), const),
                pl.BlockSpec((1, s2), const),
                pl.BlockSpec((c * s2, n_lanes), const),
                pl.BlockSpec((1, n_lanes), const),
            ],
            out_specs=pl.BlockSpec((bb, n_lanes), lambda g: (g, 0)),
            compiler_params=pltpu.CompilerParams(
                dimension_semantics=("parallel",),
                vmem_limit_bytes=32 * 1024 * 1024),
        )(xp, prep["w1a"], prep["b1a"], prep["w1b"], prep["b1b"],
          prep["mask1"], prep["sel1"],
          prep["w2a"], prep["b2a"], prep["w2b"], prep["b2b"],
          prep["mask2"], prep["wcls"], prep["bcls"])
        return logits[:B, :out_dim]

    return forward


# ---------------------------------------------------------------------------
# Pure-JAX reference (PyTorch layouts), mirroring the kernel's bf16 rounding
# points so the comparison is tight.
# ---------------------------------------------------------------------------
def ref_forward(x_nchw, tp):
    q = lambda v: v.astype(jnp.bfloat16).astype(jnp.float32)

    def conv(h, w, b):
        y = lax.conv_general_dilated(
            h, w, (1, 1), ((1, 1), (1, 1)),
            dimension_numbers=("NCHW", "OIHW", "NCHW"),
            precision=lax.Precision.HIGHEST)
        return jax.nn.relu(y + b[None, :, None, None])

    def pool(h):
        return lax.reduce_window(h, -jnp.inf, lax.max,
                                 (1, 1, 2, 2), (1, 1, 2, 2), "VALID")

    h = q(x_nchw)
    h = q(conv(h, tp["w1a"], tp["b1a"]))
    h = q(pool(conv(h, tp["w1b"], tp["b1b"])))
    h = q(conv(h, tp["w2a"], tp["b2a"]))
    h = q(pool(conv(h, tp["w2b"], tp["b2b"])))
    flat = h.reshape(h.shape[0], -1)
    return jnp.dot(flat, tp["wc"].T, precision=lax.Precision.HIGHEST) + tp["bc"]


# ---------------------------------------------------------------------------
if __name__ == "__main__":
    # FashionMNIST-style shapes: the classifier uses hidden*7*7 => 28x28 input.
    B, Cin, H, W = 2, 1, 28, 28
    hidden, out_dim = 8, 10

    key = jax.random.PRNGKey(0)
    keys = jax.random.split(key, 11)

    def rnorm(k, shape, scale=0.05):
        return (scale * jax.random.normal(k, shape)).astype(jnp.float32)

    tp = {
        "w1a": rnorm(keys[0], (hidden, Cin, 3, 3)),    "b1a": rnorm(keys[1], (hidden,)),
        "w1b": rnorm(keys[2], (hidden, hidden, 3, 3)), "b1b": rnorm(keys[3], (hidden,)),
        "w2a": rnorm(keys[4], (hidden, hidden, 3, 3)), "b2a": rnorm(keys[5], (hidden,)),
        "w2b": rnorm(keys[6], (hidden, hidden, 3, 3)), "b2b": rnorm(keys[7], (hidden,)),
        "wc":  rnorm(keys[8], (out_dim, hidden * 7 * 7)),
        "bc":  rnorm(keys[9], (out_dim,)),
    }
    # Quantize weights once to bf16 so kernel (bf16 MXU operands) and the f32
    # reference see identical parameter values; biases stay f32.
    qf = lambda v: v.astype(jnp.bfloat16).astype(jnp.float32)
    tq = {k: (qf(v) if k.startswith("w") else v) for k, v in tp.items()}

    fwd = jax.jit(make_tinyvgg_forward(tq, Cin, hidden, out_dim))
    x = jax.random.normal(keys[10], (B, Cin, H, W), jnp.float32)

    out = jax.block_until_ready(fwd(x))
    assert out.shape == (B, out_dim)

    ref = ref_forward(x, tq)
    np.testing.assert_allclose(np.asarray(out), np.asarray(ref),
                               atol=2.5e-3, rtol=2.5e-2)
    print("KERNEL_OK")
</pallas_src>

<mosaic_0001>
module attributes {stable_mosaic.version = 11 : i64} {
  func.func @kernel(%arg0: i32, %arg1: memref<1x8x1024xbf16, #tpu.memory_space<vmem>>, %arg2: memref<64x72xbf16, #tpu.memory_space<vmem>>, %arg3: memref<64x1xf32, #tpu.memory_space<vmem>>, %arg4: memref<64x576xbf16, #tpu.memory_space<vmem>>, %arg5: memref<64x1xf32, #tpu.memory_space<vmem>>, %arg6: memref<1x1024xf32, #tpu.memory_space<vmem>>, %arg7: memref<1024x256xbf16, #tpu.memory_space<vmem>>, %arg8: memref<64x576xbf16, #tpu.memory_space<vmem>>, %arg9: memref<64x1xf32, #tpu.memory_space<vmem>>, %arg10: memref<64x576xbf16, #tpu.memory_space<vmem>>, %arg11: memref<64x1xf32, #tpu.memory_space<vmem>>, %arg12: memref<1x256xf32, #tpu.memory_space<vmem>>, %arg13: memref<2048x128xbf16, #tpu.memory_space<vmem>>, %arg14: memref<1x128xf32, #tpu.memory_space<vmem>>, %arg15: memref<8x128xf32, #tpu.memory_space<vmem>>) attributes {dimension_semantics = [#tpu.dimension_semantics<parallel>], iteration_bounds = array<i64: 1>, scalar_prefetch = 0 : i64, scratch_operands = 0 : i64, tpu.core_type = #tpu.core_type<tc>, window_params = [{transform_indices = @transform_0, window_bounds = array<i64: 1, 8, 1024>}, {pipeline_mode = #tpu.pipeline_mode<synchronous>, transform_indices = @transform_1, window_bounds = array<i64: 64, 72>}, {pipeline_mode = #tpu.pipeline_mode<synchronous>, transform_indices = @transform_2, window_bounds = array<i64: 64, 1>}, {pipeline_mode = #tpu.pipeline_mode<synchronous>, transform_indices = @transform_3, window_bounds = array<i64: 64, 576>}, {pipeline_mode = #tpu.pipeline_mode<synchronous>, transform_indices = @transform_4, window_bounds = array<i64: 64, 1>}, {pipeline_mode = #tpu.pipeline_mode<synchronous>, transform_indices = @transform_5, window_bounds = array<i64: 1, 1024>}, {pipeline_mode = #tpu.pipeline_mode<synchronous>, transform_indices = @transform_6, window_bounds = array<i64: 1024, 256>}, {pipeline_mode = #tpu.pipeline_mode<synchronous>, transform_indices = @transform_7, window_bounds = array<i64: 64, 576>}, {pipeline_mode = #tpu.pipeline_mode<synchronous>, transform_indices = @transform_8, window_bounds = array<i64: 64, 1>}, {pipeline_mode = #tpu.pipeline_mode<synchronous>, transform_indices = @transform_9, window_bounds = array<i64: 64, 576>}, {pipeline_mode = #tpu.pipeline_mode<synchronous>, transform_indices = @transform_10, window_bounds = array<i64: 64, 1>}, {pipeline_mode = #tpu.pipeline_mode<synchronous>, transform_indices = @transform_11, window_bounds = array<i64: 1, 256>}, {pipeline_mode = #tpu.pipeline_mode<synchronous>, transform_indices = @transform_12, window_bounds = array<i64: 2048, 128>}, {pipeline_mode = #tpu.pipeline_mode<synchronous>, transform_indices = @transform_13, window_bounds = array<i64: 1, 128>}, {transform_indices = @transform_14, window_bounds = array<i64: 8, 128>}]} {
    %c0 = arith.constant 0 : index
    %c0_0 = arith.constant 0 : index
    %c0_1 = arith.constant 0 : index
    %0 = vector.load %arg1[%c0, %c0_0, %c0_1] : memref<1x8x1024xbf16, #tpu.memory_space<vmem>>, vector<1x8x1024xbf16>
    %1 = vector.shape_cast %0 : vector<1x8x1024xbf16> to vector<8x1024xbf16>
    %2 = arith.extf %1 : vector<8x1024xbf16> to vector<8x1024xf32>
    %c0_2 = arith.constant 0 : index
    %c0_3 = arith.constant 0 : index
    %3 = vector.load %arg6[%c0_2, %c0_3] : memref<1x1024xf32, #tpu.memory_space<vmem>>, vector<1x1024xf32>
    %4 = vector.extract_strided_slice %2 {offsets = [0, 993], sizes = [8, 31], strides = [1, 1]} : vector<8x1024xf32> to vector<8x31xf32>
    %5 = vector.extract_strided_slice %2 {offsets = [0, 0], sizes = [8, 993], strides = [1, 1]} : vector<8x1024xf32> to vector<8x993xf32>
    %6 = tpu.concatenate %4, %5 in 1 : vector<8x31xf32>, vector<8x993xf32> -> vector<8x1024xf32>
    %7 = vector.extract_strided_slice %2 {offsets = [0, 994], sizes = [8, 30], strides = [1, 1]} : vector<8x1024xf32> to vector<8x30xf32>
    %8 = vector.extract_strided_slice %2 {offsets = [0, 0], sizes = [8, 994], strides = [1, 1]} : vector<8x1024xf32> to vector<8x994xf32>
    %9 = tpu.concatenate %7, %8 in 1 : vector<8x30xf32>, vector<8x994xf32> -> vector<8x1024xf32>
    %10 = vector.extract_strided_slice %2 {offsets = [0, 995], sizes = [8, 29], strides = [1, 1]} : vector<8x1024xf32> to vector<8x29xf32>
    %11 = vector.extract_strided_slice %2 {offsets = [0, 0], sizes = [8, 995], strides = [1, 1]} : vector<8x1024xf32> to vector<8x995xf32>
    %12 = tpu.concatenate %10, %11 in 1 : vector<8x29xf32>, vector<8x995xf32> -> vector<8x1024xf32>
    %13 = vector.extract_strided_slice %2 {offsets = [0, 1023], sizes = [8, 1], strides = [1, 1]} : vector<8x1024xf32> to vector<8x1xf32>
    %14 = vector.extract_strided_slice %2 {offsets = [0, 0], sizes = [8, 1023], strides = [1, 1]} : vector<8x1024xf32> to vector<8x1023xf32>
    %15 = tpu.concatenate %13, %14 in 1 : vector<8x1xf32>, vector<8x1023xf32> -> vector<8x1024xf32>
    %16 = vector.extract_strided_slice %2 {offsets = [0, 1], sizes = [8, 1023], strides = [1, 1]} : vector<8x1024xf32> to vector<8x1023xf32>
    %17 = vector.extract_strided_slice %2 {offsets = [0, 0], sizes = [8, 1], strides = [1, 1]} : vector<8x1024xf32> to vector<8x1xf32>
    %18 = tpu.concatenate %16, %17 in 1 : vector<8x1023xf32>, vector<8x1xf32> -> vector<8x1024xf32>
    %19 = vector.extract_strided_slice %2 {offsets = [0, 29], sizes = [8, 995], strides = [1, 1]} : vector<8x1024xf32> to vector<8x995xf32>
    %20 = vector.extract_strided_slice %2 {offsets = [0, 0], sizes = [8, 29], strides = [1, 1]} : vector<8x1024xf32> to vector<8x29xf32>
    %21 = tpu.concatenate %19, %20 in 1 : vector<8x995xf32>, vector<8x29xf32> -> vector<8x1024xf32>
    %22 = vector.extract_strided_slice %2 {offsets = [0, 30], sizes = [8, 994], strides = [1, 1]} : vector<8x1024xf32> to vector<8x994xf32>
    %23 = vector.extract_strided_slice %2 {offsets = [0, 0], sizes = [8, 30], strides = [1, 1]} : vector<8x1024xf32> to vector<8x30xf32>
    %24 = tpu.concatenate %22, %23 in 1 : vector<8x994xf32>, vector<8x30xf32> -> vector<8x1024xf32>
    %25 = vector.extract_strided_slice %2 {offsets = [0, 31], sizes = [8, 993], strides = [1, 1]} : vector<8x1024xf32> to vector<8x993xf32>
    %26 = vector.extract_strided_slice %2 {offsets = [0, 0], sizes = [8, 31], strides = [1, 1]} : vector<8x1024xf32> to vector<8x31xf32>
    %27 = tpu.concatenate %25, %26 in 1 : vector<8x993xf32>, vector<8x31xf32> -> vector<8x1024xf32>
    %28 = tpu.concatenate %6, %9, %12, %15, %2, %18, %21, %24, %27 in 0 : vector<8x1024xf32>, vector<8x1024xf32>, vector<8x1024xf32>, vector<8x1024xf32>, vector<8x1024xf32>, vector<8x1024xf32>, vector<8x1024xf32>, vector<8x1024xf32>, vector<8x1024xf32> -> vector<72x1024xf32>
    %29 = arith.truncf %28 : vector<72x1024xf32> to vector<72x1024xbf16>
    %c0_4 = arith.constant 0 : index
    %c0_5 = arith.constant 0 : index
    %30 = vector.load %arg2[%c0_4, %c0_5] : memref<64x72xbf16, #tpu.memory_space<vmem>>, vector<64x72xbf16>
    %cst = arith.constant dense<0.000000e+00> : vector<64x1024xf32>
    %31 = tpu.matmul %30, %29, %cst {dimension_numbers = #tpu.dot_dimension_numbers<[1], [0], [0], [1], [0, 0, 1, 1], [], []>} : vector<64x72xbf16>, vector<72x1024xbf16>, vector<64x1024xf32> -> vector<64x1024xf32>
    %c0_6 = arith.constant 0 : index
    %c0_7 = arith.constant 0 : index
    %32 = vector.load %arg3[%c0_6, %c0_7] : memref<64x1xf32, #tpu.memory_space<vmem>>, vector<64x1xf32>
    %33 = vector.broadcast %32 : vector<64x1xf32> to vector<64x1024xf32>
    %34 = arith.addf %31, %33 : vector<64x1024xf32>
    %cst_8 = arith.constant 0.000000e+00 : f32
    %35 = vector.broadcast %cst_8 : f32 to vector<64x1024xf32>
    %36 = arith.maximumf %34, %35 : vector<64x1024xf32>
    %37 = vector.broadcast %3 : vector<1x1024xf32> to vector<64x1024xf32>
    %38 = arith.mulf %36, %37 : vector<64x1024xf32>
    %39 = arith.truncf %38 : vector<64x1024xf32> to vector<64x1024xbf16>
    %40 = vector.extract_strided_slice %39 {offsets = [0, 993], sizes = [64, 31], strides = [1, 1]} : vector<64x1024xbf16> to vector<64x31xbf16>
    %41 = vector.extract_strided_slice %39 {offsets = [0, 0], sizes = [64, 993], strides = [1, 1]} : vector<64x1024xbf16> to vector<64x993xbf16>
    %42 = tpu.concatenate %40, %41 in 1 : vector<64x31xbf16>, vector<64x993xbf16> -> vector<64x1024xbf16>
    %43 = vector.extract_strided_slice %39 {offsets = [0, 994], sizes = [64, 30], strides = [1, 1]} : vector<64x1024xbf16> to vector<64x30xbf16>
    %44 = vector.extract_strided_slice %39 {offsets = [0, 0], sizes = [64, 994], strides = [1, 1]} : vector<64x1024xbf16> to vector<64x994xbf16>
    %45 = tpu.concatenate %43, %44 in 1 : vector<64x30xbf16>, vector<64x994xbf16> -> vector<64x1024xbf16>
    %46 = vector.extract_strided_slice %39 {offsets = [0, 995], sizes = [64, 29], strides = [1, 1]} : vector<64x1024xbf16> to vector<64x29xbf16>
    %47 = vector.extract_strided_slice %39 {offsets = [0, 0], sizes = [64, 995], strides = [1, 1]} : vector<64x1024xbf16> to vector<64x995xbf16>
    %48 = tpu.concatenate %46, %47 in 1 : vector<64x29xbf16>, vector<64x995xbf16> -> vector<64x1024xbf16>
    %49 = vector.extract_strided_slice %39 {offsets = [0, 1023], sizes = [64, 1], strides = [1, 1]} : vector<64x1024xbf16> to vector<64x1xbf16>
    %50 = vector.extract_strided_slice %39 {offsets = [0, 0], sizes = [64, 1023], strides = [1, 1]} : vector<64x1024xbf16> to vector<64x1023xbf16>
    %51 = tpu.concatenate %49, %50 in 1 : vector<64x1xbf16>, vector<64x1023xbf16> -> vector<64x1024xbf16>
    %52 = vector.extract_strided_slice %39 {offsets = [0, 1], sizes = [64, 1023], strides = [1, 1]} : vector<64x1024xbf16> to vector<64x1023xbf16>
    %53 = vector.extract_strided_slice %39 {offsets = [0, 0], sizes = [64, 1], strides = [1, 1]} : vector<64x1024xbf16> to vector<64x1xbf16>
    %54 = tpu.concatenate %52, %53 in 1 : vector<64x1023xbf16>, vector<64x1xbf16> -> vector<64x1024xbf16>
    %55 = vector.extract_strided_slice %39 {offsets = [0, 29], sizes = [64, 995], strides = [1, 1]} : vector<64x1024xbf16> to vector<64x995xbf16>
    %56 = vector.extract_strided_slice %39 {offsets = [0, 0], sizes = [64, 29], strides = [1, 1]} : vector<64x1024xbf16> to vector<64x29xbf16>
    %57 = tpu.concatenate %55, %56 in 1 : vector<64x995xbf16>, vector<64x29xbf16> -> vector<64x1024xbf16>
    %58 = vector.extract_strided_slice %39 {offsets = [0, 30], sizes = [64, 994], strides = [1, 1]} : vector<64x1024xbf16> to vector<64x994xbf16>
    %59 = vector.extract_strided_slice %39 {offsets = [0, 0], sizes = [64, 30], strides = [1, 1]} : vector<64x1024xbf16> to vector<64x30xbf16>
    %60 = tpu.concatenate %58, %59 in 1 : vector<64x994xbf16>, vector<64x30xbf16> -> vector<64x1024xbf16>
    %61 = vector.extract_strided_slice %39 {offsets = [0, 31], sizes = [64, 993], strides = [1, 1]} : vector<64x1024xbf16> to vector<64x993xbf16>
    %62 = vector.extract_strided_slice %39 {offsets = [0, 0], sizes = [64, 31], strides = [1, 1]} : vector<64x1024xbf16> to vector<64x31xbf16>
    %63 = tpu.concatenate %61, %62 in 1 : vector<64x993xbf16>, vector<64x31xbf16> -> vector<64x1024xbf16>
    %64 = tpu.concatenate %42, %45, %48, %51, %39, %54, %57, %60, %63 in 0 : vector<64x1024xbf16>, vector<64x1024xbf16>, vector<64x1024xbf16>, vector<64x1024xbf16>, vector<64x1024xbf16>, vector<64x1024xbf16>, vector<64x1024xbf16>, vector<64x1024xbf16>, vector<64x1024xbf16> -> vector<576x1024xbf16>
    %c0_9 = arith.constant 0 : index
    %c0_10 = arith.constant 0 : index
    %65 = vector.load %arg4[%c0_9, %c0_10] : memref<64x576xbf16, #tpu.memory_space<vmem>>, vector<64x576xbf16>
    %cst_11 = arith.constant dense<0.000000e+00> : vector<64x1024xf32>
    %66 = tpu.matmul %65, %64, %cst_11 {dimension_numbers = #tpu.dot_dimension_numbers<[1], [0], [0], [1], [0, 0, 1, 1], [], []>} : vector<64x576xbf16>, vector<576x1024xbf16>, vector<64x1024xf32> -> vector<64x1024xf32>
    %c0_12 = arith.constant 0 : index
    %c0_13 = arith.constant 0 : index
    %67 = vector.load %arg5[%c0_12, %c0_13] : memref<64x1xf32, #tpu.memory_space<vmem>>, vector<64x1xf32>
    %68 = vector.broadcast %67 : vector<64x1xf32> to vector<64x1024xf32>
    %69 = arith.addf %66, %68 : vector<64x1024xf32>
    %cst_14 = arith.constant 0.000000e+00 : f32
    %70 = vector.broadcast %cst_14 : f32 to vector<64x1024xf32>
    %71 = arith.maximumf %69, %70 : vector<64x1024xf32>
    %72 = vector.extract_strided_slice %71 {offsets = [0, 1], sizes = [64, 1023], strides = [1, 1]} : vector<64x1024xf32> to vector<64x1023xf32>
    %73 = vector.extract_strided_slice %71 {offsets = [0, 0], sizes = [64, 1], strides = [1, 1]} : vector<64x1024xf32> to vector<64x1xf32>
    %74 = tpu.concatenate %72, %73 in 1 : vector<64x1023xf32>, vector<64x1xf32> -> vector<64x1024xf32>
    %75 = arith.maximumf %71, %74 : vector<64x1024xf32>
    %76 = vector.extract_strided_slice %75 {offsets = [0, 30], sizes = [64, 994], strides = [1, 1]} : vector<64x1024xf32> to vector<64x994xf32>
    %77 = vector.extract_strided_slice %75 {offsets = [0, 0], sizes = [64, 30], strides = [1, 1]} : vector<64x1024xf32> to vector<64x30xf32>
    %78 = tpu.concatenate %76, %77 in 1 : vector<64x994xf32>, vector<64x30xf32> -> vector<64x1024xf32>
    %79 = arith.maximumf %75, %78 : vector<64x1024xf32>
    %80 = arith.truncf %79 : vector<64x1024xf32> to vector<64x1024xbf16>
    %c0_15 = arith.constant 0 : index
    %c0_16 = arith.constant 0 : index
    %81 = vector.load %arg7[%c0_15, %c0_16] : memref<1024x256xbf16, #tpu.memory_space<vmem>>, vector<1024x256xbf16>
    %cst_17 = arith.constant dense<0.000000e+00> : vector<64x256xf32>
    %82 = tpu.matmul %80, %81, %cst_17 {dimension_numbers = #tpu.dot_dimension_numbers<[1], [0], [0], [1], [0, 0, 1, 1], [], []>} : vector<64x1024xbf16>, vector<1024x256xbf16>, vector<64x256xf32> -> vector<64x256xf32>
    %c0_18 = arith.constant 0 : index
    %c0_19 = arith.constant 0 : index
    %83 = vector.load %arg12[%c0_18, %c0_19] : memref<1x256xf32, #tpu.memory_space<vmem>>, vector<1x256xf32>
    %84 = arith.truncf %82 : vector<64x256xf32> to vector<64x256xbf16>
    %85 = vector.extract_strided_slice %84 {offsets = [0, 239], sizes = [64, 17], strides = [1, 1]} : vector<64x256xbf16> to vector<64x17xbf16>
    %86 = vector.extract_strided_slice %84 {offsets = [0, 0], sizes = [64, 239], strides = [1, 1]} : vector<64x256xbf16> to vector<64x239xbf16>
    %87 = tpu.concatenate %85, %86 in 1 : vector<64x17xbf16>, vector<64x239xbf16> -> vector<64x256xbf16>
    %88 = vector.extract_strided_slice %84 {offsets = [0, 240], sizes = [64, 16], strides = [1, 1]} : vector<64x256xbf16> to vector<64x16xbf16>
    %89 = vector.extract_strided_slice %84 {offsets = [0, 0], sizes = [64, 240], strides = [1, 1]} : vector<64x256xbf16> to vector<64x240xbf16>
    %90 = tpu.concatenate %88, %89 in 1 : vector<64x16xbf16>, vector<64x240xbf16> -> vector<64x256xbf16>
    %91 = vector.extract_strided_slice %84 {offsets = [0, 241], sizes = [64, 15], strides = [1, 1]} : vector<64x256xbf16> to vector<64x15xbf16>
    %92 = vector.extract_strided_slice %84 {offsets = [0, 0], sizes = [64, 241], strides = [1, 1]} : vector<64x256xbf16> to vector<64x241xbf16>
    %93 = tpu.concatenate %91, %92 in 1 : vector<64x15xbf16>, vector<64x241xbf16> -> vector<64x256xbf16>
    %94 = vector.extract_strided_slice %84 {offsets = [0, 255], sizes = [64, 1], strides = [1, 1]} : vector<64x256xbf16> to vector<64x1xbf16>
    %95 = vector.extract_strided_slice %84 {offsets = [0, 0], sizes = [64, 255], strides = [1, 1]} : vector<64x256xbf16> to vector<64x255xbf16>
    %96 = tpu.concatenate %94, %95 in 1 : vector<64x1xbf16>, vector<64x255xbf16> -> vector<64x256xbf16>
    %97 = vector.extract_strided_slice %84 {offsets = [0, 1], sizes = [64, 255], strides = [1, 1]} : vector<64x256xbf16> to vector<64x255xbf16>
    %98 = vector.extract_strided_slice %84 {offsets = [0, 0], sizes = [64, 1], strides = [1, 1]} : vector<64x256xbf16> to vector<64x1xbf16>
    %99 = tpu.concatenate %97, %98 in 1 : vector<64x255xbf16>, vector<64x1xbf16> -> vector<64x256xbf16>
    %100 = vector.extract_strided_slice %84 {offsets = [0, 15], sizes = [64, 241], strides = [1, 1]} : vector<64x256xbf16> to vector<64x241xbf16>
    %101 = vector.extract_strided_slice %84 {offsets = [0, 0], sizes = [64, 15], strides = [1, 1]} : vector<64x256xbf16> to vector<64x15xbf16>
    %102 = tpu.concatenate %100, %101 in 1 : vector<64x241xbf16>, vector<64x15xbf16> -> vector<64x256xbf16>
    %103 = vector.extract_strided_slice %84 {offsets = [0, 16], sizes = [64, 240], strides = [1, 1]} : vector<64x256xbf16> to vector<64x240xbf16>
    %104 = vector.extract_strided_slice %84 {offsets = [0, 0], sizes = [64, 16], strides = [1, 1]} : vector<64x256xbf16> to vector<64x16xbf16>
    %105 = tpu.concatenate %103, %104 in 1 : vector<64x240xbf16>, vector<64x16xbf16> -> vector<64x256xbf16>
    %106 = vector.extract_strided_slice %84 {offsets = [0, 17], sizes = [64, 239], strides = [1, 1]} : vector<64x256xbf16> to vector<64x239xbf16>
    %107 = vector.extract_strided_slice %84 {offsets = [0, 0], sizes = [64, 17], strides = [1, 1]} : vector<64x256xbf16> to vector<64x17xbf16>
    %108 = tpu.concatenate %106, %107 in 1 : vector<64x239xbf16>, vector<64x17xbf16> -> vector<64x256xbf16>
    %109 = tpu.concatenate %87, %90, %93, %96, %84, %99, %102, %105, %108 in 0 : vector<64x256xbf16>, vector<64x256xbf16>, vector<64x256xbf16>, vector<64x256xbf16>, vector<64x256xbf16>, vector<64x256xbf16>, vector<64x256xbf16>, vector<64x256xbf16>, vector<64x256xbf16> -> vector<576x256xbf16>
    %c0_20 = arith.constant 0 : index
    %c0_21 = arith.constant 0 : index
    %110 = vector.load %arg8[%c0_20, %c0_21] : memref<64x576xbf16, #tpu.memory_space<vmem>>, vector<64x576xbf16>
    %cst_22 = arith.constant dense<0.000000e+00> : vector<64x256xf32>
    %111 = tpu.matmul %110, %109, %cst_22 {dimension_numbers = #tpu.dot_dimension_numbers<[1], [0], [0], [1], [0, 0, 1, 1], [], []>} : vector<64x576xbf16>, vector<576x256xbf16>, vector<64x256xf32> -> vector<64x256xf32>
    %c0_23 = arith.constant 0 : index
    %c0_24 = arith.constant 0 : index
    %112 = vector.load %arg9[%c0_23, %c0_24] : memref<64x1xf32, #tpu.memory_space<vmem>>, vector<64x1xf32>
    %113 = vector.broadcast %112 : vector<64x1xf32> to vector<64x256xf32>
    %114 = arith.addf %111, %113 : vector<64x256xf32>
    %cst_25 = arith.constant 0.000000e+00 : f32
    %115 = vector.broadcast %cst_25 : f32 to vector<64x256xf32>
    %116 = arith.maximumf %114, %115 : vector<64x256xf32>
    %117 = vector.broadcast %83 : vector<1x256xf32> to vector<64x256xf32>
    %118 = arith.mulf %116, %117 : vector<64x256xf32>
    %119 = arith.truncf %118 : vector<64x256xf32> to vector<64x256xbf16>
    %120 = vector.extract_strided_slice %119 {offsets = [0, 239], sizes = [64, 17], strides = [1, 1]} : vector<64x256xbf16> to vector<64x17xbf16>
    %121 = vector.extract_strided_slice %119 {offsets = [0, 0], sizes = [64, 239], strides = [1, 1]} : vector<64x256xbf16> to vector<64x239xbf16>
    %122 = tpu.concatenate %120, %121 in 1 : vector<64x17xbf16>, vector<64x239xbf16> -> vector<64x256xbf16>
    %123 = vector.extract_strided_slice %119 {offsets = [0, 240], sizes = [64, 16], strides = [1, 1]} : vector<64x256xbf16> to vector<64x16xbf16>
    %124 = vector.extract_strided_slice %119 {offsets = [0, 0], sizes = [64, 240], strides = [1, 1]} : vector<64x256xbf16> to vector<64x240xbf16>
    %125 = tpu.concatenate %123, %124 in 1 : vector<64x16xbf16>, vector<64x240xbf16> -> vector<64x256xbf16>
    %126 = vector.extract_strided_slice %119 {offsets = [0, 241], sizes = [64, 15], strides = [1, 1]} : vector<64x256xbf16> to vector<64x15xbf16>
    %127 = vector.extract_strided_slice %119 {offsets = [0, 0], sizes = [64, 241], strides = [1, 1]} : vector<64x256xbf16> to vector<64x241xbf16>
    %128 = tpu.concatenate %126, %127 in 1 : vector<64x15xbf16>, vector<64x241xbf16> -> vector<64x256xbf16>
    %129 = vector.extract_strided_slice %119 {offsets = [0, 255], sizes = [64, 1], strides = [1, 1]} : vector<64x256xbf16> to vector<64x1xbf16>
    %130 = vector.extract_strided_slice %119 {offsets = [0, 0], sizes = [64, 255], strides = [1, 1]} : vector<64x256xbf16> to vector<64x255xbf16>
    %131 = tpu.concatenate %129, %130 in 1 : vector<64x1xbf16>, vector<64x255xbf16> -> vector<64x256xbf16>
    %132 = vector.extract_strided_slice %119 {offsets = [0, 1], sizes = [64, 255], strides = [1, 1]} : vector<64x256xbf16> to vector<64x255xbf16>
    %133 = vector.extract_strided_slice %119 {offsets = [0, 0], sizes = [64, 1], strides = [1, 1]} : vector<64x256xbf16> to vector<64x1xbf16>
    %134 = tpu.concatenate %132, %133 in 1 : vector<64x255xbf16>, vector<64x1xbf16> -> vector<64x256xbf16>
    %135 = vector.extract_strided_slice %119 {offsets = [0, 15], sizes = [64, 241], strides = [1, 1]} : vector<64x256xbf16> to vector<64x241xbf16>
    %136 = vector.extract_strided_slice %119 {offsets = [0, 0], sizes = [64, 15], strides = [1, 1]} : vector<64x256xbf16> to vector<64x15xbf16>
    %137 = tpu.concatenate %135, %136 in 1 : vector<64x241xbf16>, vector<64x15xbf16> -> vector<64x256xbf16>
    %138 = vector.extract_strided_slice %119 {offsets = [0, 16], sizes = [64, 240], strides = [1, 1]} : vector<64x256xbf16> to vector<64x240xbf16>
    %139 = vector.extract_strided_slice %119 {offsets = [0, 0], sizes = [64, 16], strides = [1, 1]} : vector<64x256xbf16> to vector<64x16xbf16>
    %140 = tpu.concatenate %138, %139 in 1 : vector<64x240xbf16>, vector<64x16xbf16> -> vector<64x256xbf16>
    %141 = vector.extract_strided_slice %119 {offsets = [0, 17], sizes = [64, 239], strides = [1, 1]} : vector<64x256xbf16> to vector<64x239xbf16>
    %142 = vector.extract_strided_slice %119 {offsets = [0, 0], sizes = [64, 17], strides = [1, 1]} : vector<64x256xbf16> to vector<64x17xbf16>
    %143 = tpu.concatenate %141, %142 in 1 : vector<64x239xbf16>, vector<64x17xbf16> -> vector<64x256xbf16>
    %144 = tpu.concatenate %122, %125, %128, %131, %119, %134, %137, %140, %143 in 0 : vector<64x256xbf16>, vector<64x256xbf16>, vector<64x256xbf16>, vector<64x256xbf16>, vector<64x256xbf16>, vector<64x256xbf16>, vector<64x256xbf16>, vector<64x256xbf16>, vector<64x256xbf16> -> vector<576x256xbf16>
    %c0_26 = arith.constant 0 : index
    %c0_27 = arith.constant 0 : index
    %145 = vector.load %arg10[%c0_26, %c0_27] : memref<64x576xbf16, #tpu.memory_space<vmem>>, vector<64x576xbf16>
    %cst_28 = arith.constant dense<0.000000e+00> : vector<64x256xf32>
    %146 = tpu.matmul %145, %144, %cst_28 {dimension_numbers = #tpu.dot_dimension_numbers<[1], [0], [0], [1], [0, 0, 1, 1], [], []>} : vector<64x576xbf16>, vector<576x256xbf16>, vector<64x256xf32> -> vector<64x256xf32>
    %c0_29 = arith.constant 0 : index
    %c0_30 = arith.constant 0 : index
    %147 = vector.load %arg11[%c0_29, %c0_30] : memref<64x1xf32, #tpu.memory_space<vmem>>, vector<64x1xf32>
    %148 = vector.broadcast %147 : vector<64x1xf32> to vector<64x256xf32>
    %149 = arith.addf %146, %148 : vector<64x256xf32>
    %cst_31 = arith.constant 0.000000e+00 : f32
    %150 = vector.broadcast %cst_31 : f32 to vector<64x256xf32>
    %151 = arith.maximumf %149, %150 : vector<64x256xf32>
    %152 = vector.extract_strided_slice %151 {offsets = [0, 1], sizes = [64, 255], strides = [1, 1]} : vector<64x256xf32> to vector<64x255xf32>
    %153 = vector.extract_strided_slice %151 {offsets = [0, 0], sizes = [64, 1], strides = [1, 1]} : vector<64x256xf32> to vector<64x1xf32>
    %154 = tpu.concatenate %152, %153 in 1 : vector<64x255xf32>, vector<64x1xf32> -> vector<64x256xf32>
    %155 = arith.maximumf %151, %154 : vector<64x256xf32>
    %156 = vector.extract_strided_slice %155 {offsets = [0, 16], sizes = [64, 240], strides = [1, 1]} : vector<64x256xf32> to vector<64x240xf32>
    %157 = vector.extract_strided_slice %155 {offsets = [0, 0], sizes = [64, 16], strides = [1, 1]} : vector<64x256xf32> to vector<64x16xf32>
    %158 = tpu.concatenate %156, %157 in 1 : vector<64x240xf32>, vector<64x16xf32> -> vector<64x256xf32>
    %159 = arith.maximumf %155, %158 : vector<64x256xf32>
    %cst_32 = arith.constant 0.000000e+00 : f32
    %160 = vector.broadcast %cst_32 : f32 to vector<8x128xf32>
    %161 = vector.extract_strided_slice %159 {offsets = [0, 0], sizes = [8, 256], strides = [1, 1]} : vector<64x256xf32> to vector<8x256xf32>
    %162 = arith.truncf %161 : vector<8x256xf32> to vector<8x256xbf16>
    %c0_33 = arith.constant 0 : index
    %c0_34 = arith.constant 0 : index
    %163 = vector.load %arg13[%c0_33, %c0_34] : memref<2048x128xbf16, #tpu.memory_space<vmem>>, vector<256x128xbf16>
    %cst_35 = arith.constant dense<0.000000e+00> : vector<8x128xf32>
    %164 = tpu.matmul %162, %163, %cst_35 {dimension_numbers = #tpu.dot_dimension_numbers<[1], [0], [0], [1], [0, 0, 1, 1], [], []>} : vector<8x256xbf16>, vector<256x128xbf16>, vector<8x128xf32> -> vector<8x128xf32>
    %165 = arith.addf %160, %164 : vector<8x128xf32>
    %166 = vector.extract_strided_slice %159 {offsets = [8, 0], sizes = [8, 256], strides = [1, 1]} : vector<64x256xf32> to vector<8x256xf32>
    %167 = arith.truncf %166 : vector<8x256xf32> to vector<8x256xbf16>
    %c256 = arith.constant 256 : index
    %c0_36 = arith.constant 0 : index
    %168 = vector.load %arg13[%c256, %c0_36] : memref<2048x128xbf16, #tpu.memory_space<vmem>>, vector<256x128xbf16>
    %cst_37 = arith.constant dense<0.000000e+00> : vector<8x128xf32>
    %169 = tpu.matmul %167, %168, %cst_37 {dimension_numbers = #tpu.dot_dimension_numbers<[1], [0], [0], [1], [0, 0, 1, 1], [], []>} : vector<8x256xbf16>, vector<256x128xbf16>, vector<8x128xf32> -> vector<8x128xf32>
    %170 = arith.addf %165, %169 : vector<8x128xf32>
    %171 = vector.extract_strided_slice %159 {offsets = [16, 0], sizes = [8, 256], strides = [1, 1]} : vector<64x256xf32> to vector<8x256xf32>
    %172 = arith.truncf %171 : vector<8x256xf32> to vector<8x256xbf16>
    %c512 = arith.constant 512 : index
    %c0_38 = arith.constant 0 : index
    %173 = vector.load %arg13[%c512, %c0_38] : memref<2048x128xbf16, #tpu.memory_space<vmem>>, vector<256x128xbf16>
    %cst_39 = arith.constant dense<0.000000e+00> : vector<8x128xf32>
    %174 = tpu.matmul %172, %173, %cst_39 {dimension_numbers = #tpu.dot_dimension_numbers<[1], [0], [0], [1], [0, 0, 1, 1], [], []>} : vector<8x256xbf16>, vector<256x128xbf16>, vector<8x128xf32> -> vector<8x128xf32>
    %175 = arith.addf %170, %174 : vector<8x128xf32>
    %176 = vector.extract_strided_slice %159 {offsets = [24, 0], sizes = [8, 256], strides = [1, 1]} : vector<64x256xf32> to vector<8x256xf32>
    %177 = arith.truncf %176 : vector<8x256xf32> to vector<8x256xbf16>
    %c768 = arith.constant 768 : index
    %c0_40 = arith.constant 0 : index
    %178 = vector.load %arg13[%c768, %c0_40] : memref<2048x128xbf16, #tpu.memory_space<vmem>>, vector<256x128xbf16>
    %cst_41 = arith.constant dense<0.000000e+00> : vector<8x128xf32>
    %179 = tpu.matmul %177, %178, %cst_41 {dimension_numbers = #tpu.dot_dimension_numbers<[1], [0], [0], [1], [0, 0, 1, 1], [], []>} : vector<8x256xbf16>, vector<256x128xbf16>, vector<8x128xf32> -> vector<8x128xf32>
    %180 = arith.addf %175, %179 : vector<8x128xf32>
    %181 = vector.extract_strided_slice %159 {offsets = [32, 0], sizes = [8, 256], strides = [1, 1]} : vector<64x256xf32> to vector<8x256xf32>
    %182 = arith.truncf %181 : vector<8x256xf32> to vector<8x256xbf16>
    %c1024 = arith.constant 1024 : index
    %c0_42 = arith.constant 0 : index
    %183 = vector.load %arg13[%c1024, %c0_42] : memref<2048x128xbf16, #tpu.memory_space<vmem>>, vector<256x128xbf16>
    %cst_43 = arith.constant dense<0.000000e+00> : vector<8x128xf32>
    %184 = tpu.matmul %182, %183, %cst_43 {dimension_numbers = #tpu.dot_dimension_numbers<[1], [0], [0], [1], [0, 0, 1, 1], [], []>} : vector<8x256xbf16>, vector<256x128xbf16>, vector<8x128xf32> -> vector<8x128xf32>
    %185 = arith.addf %180, %184 : vector<8x128xf32>
    %186 = vector.extract_strided_slice %159 {offsets = [40, 0], sizes = [8, 256], strides = [1, 1]} : vector<64x256xf32> to vector<8x256xf32>
    %187 = arith.truncf %186 : vector<8x256xf32> to vector<8x256xbf16>
    %c1280 = arith.constant 1280 : index
    %c0_44 = arith.constant 0 : index
    %188 = vector.load %arg13[%c1280, %c0_44] : memref<2048x128xbf16, #tpu.memory_space<vmem>>, vector<256x128xbf16>
    %cst_45 = arith.constant dense<0.000000e+00> : vector<8x128xf32>
    %189 = tpu.matmul %187, %188, %cst_45 {dimension_numbers = #tpu.dot_dimension_numbers<[1], [0], [0], [1], [0, 0, 1, 1], [], []>} : vector<8x256xbf16>, vector<256x128xbf16>, vector<8x128xf32> -> vector<8x128xf32>
    %190 = arith.addf %185, %189 : vector<8x128xf32>
    %191 = vector.extract_strided_slice %159 {offsets = [48, 0], sizes = [8, 256], strides = [1, 1]} : vector<64x256xf32> to vector<8x256xf32>
    %192 = arith.truncf %191 : vector<8x256xf32> to vector<8x256xbf16>
    %c1536 = arith.constant 1536 : index
    %c0_46 = arith.constant 0 : index
    %193 = vector.load %arg13[%c1536, %c0_46] : memref<2048x128xbf16, #tpu.memory_space<vmem>>, vector<256x128xbf16>
    %cst_47 = arith.constant dense<0.000000e+00> : vector<8x128xf32>
    %194 = tpu.matmul %192, %193, %cst_47 {dimension_numbers = #tpu.dot_dimension_numbers<[1], [0], [0], [1], [0, 0, 1, 1], [], []>} : vector<8x256xbf16>, vector<256x128xbf16>, vector<8x128xf32> -> vector<8x128xf32>
    %195 = arith.addf %190, %194 : vector<8x128xf32>
    %196 = vector.extract_strided_slice %159 {offsets = [56, 0], sizes = [8, 256], strides = [1, 1]} : vector<64x256xf32> to vector<8x256xf32>
    %197 = arith.truncf %196 : vector<8x256xf32> to vector<8x256xbf16>
    %c1792 = arith.constant 1792 : index
    %c0_48 = arith.constant 0 : index
    %198 = vector.load %arg13[%c1792, %c0_48] : memref<2048x128xbf16, #tpu.memory_space<vmem>>, vector<256x128xbf16>
    %cst_49 = arith.constant dense<0.000000e+00> : vector<8x128xf32>
    %199 = tpu.matmul %197, %198, %cst_49 {dimension_numbers = #tpu.dot_dimension_numbers<[1], [0], [0], [1], [0, 0, 1, 1], [], []>} : vector<8x256xbf16>, vector<256x128xbf16>, vector<8x128xf32> -> vector<8x128xf32>
    %200 = arith.addf %195, %199 : vector<8x128xf32>
    %c0_50 = arith.constant 0 : index
    %c0_51 = arith.constant 0 : index
    %201 = vector.load %arg14[%c0_50, %c0_51] : memref<1x128xf32, #tpu.memory_space<vmem>>, vector<1x128xf32>
    %202 = vector.broadcast %201 : vector<1x128xf32> to vector<8x128xf32>
    %203 = arith.addf %200, %202 : vector<8x128xf32>
    %c0_52 = arith.constant 0 : index
    %c0_53 = arith.constant 0 : index
    %204 = vector.load %arg15[%c0_52, %c0_53] : memref<8x128xf32, #tpu.memory_space<vmem>>, vector<8x128xf32>
    tpu.vector_store %arg15[%c0_52, %c0_53], %203 {strides = array<i32>} : memref<8x128xf32, #tpu.memory_space<vmem>>, vector<8x128xf32>,
    return
  }
  func.func @transform_0(%arg0: i32) -> (i32, i32, i32) {
    %c0_i32 = arith.constant 0 : i32
    %c0_i32_0 = arith.constant 0 : i32
    %c0_i32_1 = arith.constant 0 : i32
    return %arg0, %c0_i32, %c0_i32_0 : i32, i32, i32
  }
  func.func @transform_1(%arg0: i32) -> (i32, i32) {
    %c0_i32 = arith.constant 0 : i32
    %c0_i32_0 = arith.constant 0 : i32
    %c0_i32_1 = arith.constant 0 : i32
    return %c0_i32, %c0_i32_0 : i32, i32
  }
  func.func @transform_2(%arg0: i32) -> (i32, i32) {
    %c0_i32 = arith.constant 0 : i32
    %c0_i32_0 = arith.constant 0 : i32
    %c0_i32_1 = arith.constant 0 : i32
    return %c0_i32, %c0_i32_0 : i32, i32
  }
  func.func @transform_3(%arg0: i32) -> (i32, i32) {
    %c0_i32 = arith.constant 0 : i32
    %c0_i32_0 = arith.constant 0 : i32
    %c0_i32_1 = arith.constant 0 : i32
    return %c0_i32, %c0_i32_0 : i32, i32
  }
  func.func @transform_4(%arg0: i32) -> (i32, i32) {
    %c0_i32 = arith.constant 0 : i32
    %c0_i32_0 = arith.constant 0 : i32
    %c0_i32_1 = arith.constant 0 : i32
    return %c0_i32, %c0_i32_0 : i32, i32
  }
  func.func @transform_5(%arg0: i32) -> (i32, i32) {
    %c0_i32 = arith.constant 0 : i32
    %c0_i32_0 = arith.constant 0 : i32
    %c0_i32_1 = arith.constant 0 : i32
    return %c0_i32, %c0_i32_0 : i32, i32
  }
  func.func @transform_6(%arg0: i32) -> (i32, i32) {
    %c0_i32 = arith.constant 0 : i32
    %c0_i32_0 = arith.constant 0 : i32
    %c0_i32_1 = arith.constant 0 : i32
    return %c0_i32, %c0_i32_0 : i32, i32
  }
  func.func @transform_7(%arg0: i32) -> (i32, i32) {
    %c0_i32 = arith.constant 0 : i32
    %c0_i32_0 = arith.constant 0 : i32
    %c0_i32_1 = arith.constant 0 : i32
    return %c0_i32, %c0_i32_0 : i32, i32
  }
  func.func @transform_8(%arg0: i32) -> (i32, i32) {
    %c0_i32 = arith.constant 0 : i32
    %c0_i32_0 = arith.constant 0 : i32
    %c0_i32_1 = arith.constant 0 : i32
    return %c0_i32, %c0_i32_0 : i32, i32
  }
  func.func @transform_9(%arg0: i32) -> (i32, i32) {
    %c0_i32 = arith.constant 0 : i32
    %c0_i32_0 = arith.constant 0 : i32
    %c0_i32_1 = arith.constant 0 : i32
    return %c0_i32, %c0_i32_0 : i32, i32
  }
  func.func @transform_10(%arg0: i32) -> (i32, i32) {
    %c0_i32 = arith.constant 0 : i32
    %c0_i32_0 = arith.constant 0 : i32
    %c0_i32_1 = arith.constant 0 : i32
    return %c0_i32, %c0_i32_0 : i32, i32
  }
  func.func @transform_11(%arg0: i32) -> (i32, i32) {
    %c0_i32 = arith.constant 0 : i32
    %c0_i32_0 = arith.constant 0 : i32
    %c0_i32_1 = arith.constant 0 : i32
    return %c0_i32, %c0_i32_0 : i32, i32
  }
  func.func @transform_12(%arg0: i32) -> (i32, i32) {
    %c0_i32 = arith.constant 0 : i32
    %c0_i32_0 = arith.constant 0 : i32
    %c0_i32_1 = arith.constant 0 : i32
    return %c0_i32, %c0_i32_0 : i32, i32
  }
  func.func @transform_13(%arg0: i32) -> (i32, i32) {
    %c0_i32 = arith.constant 0 : i32
    %c0_i32_0 = arith.constant 0 : i32
    %c0_i32_1 = arith.constant 0 : i32
    return %c0_i32, %c0_i32_0 : i32, i32
  }
  func.func @transform_14(%arg0: i32) -> (i32, i32) {
    %c0_i32 = arith.constant 0 : i32
    %c0_i32_0 = arith.constant 0 : i32
    return %arg0, %c0_i32 : i32, i32
  }
}

</mosaic_0001>

<bundles_post_ra>
// kernel: forward.1
= control target key start
LH: loop header
LB: loop body
LE: loop exit
PB: predicated region body
PF: predicated region fallthrough
CT: control target
= control target key end

     0   :  { %s10090_s17 = smov 31   ;;  %s10091_s18 = smov 30   ;;  %v15902_v12 = vmov 0   ;;  %vm86_vm0 = vcmask 252928   ;;  %vm120_vm1 = vcmask 244736   ;;  %vm154_vm2 = vcmask 236544   ;;  %s15885_s0 = inlined_call_operand.vmem [shape: bf16[1,8,1024], index: 0, kind: input, shape index: {}]   ;;  %s15886_s1 = inlined_call_operand.vmem [shape: bf16[64,72], index: 1, kind: input, shape index: {}]   ;;  %s15887_s2 = inlined_call_operand.vmem [shape: f32[64,1], index: 2, kind: input, shape index: {}]   ;;  %s15888_s5 = inlined_call_operand.vmem [shape: f32[1,1024], index: 5, kind: input, shape index: {}]   ;;  %s15889_s3 = inlined_call_operand.vmem [shape: bf16[64,576], index: 3, kind: input, shape index: {}]   ;;  %s15890_s4 = inlined_call_operand.vmem [shape: f32[64,1], index: 4, kind: input, shape index: {}]   ;;  %s15891_s6 = inlined_call_operand.vmem [shape: bf16[1024,256], index: 6, kind: input, shape index: {}]   ;;  %s15892_s7 = inlined_call_operand.vmem [shape: bf16[64,576], index: 7, kind: input, shape index: {}]   ;;  %s15893_s8 = inlined_call_operand.vmem [shape: f32[64,1], index: 8, kind: input, shape index: {}]   ;;  %s15894_s11 = inlined_call_operand.vmem [shape: f32[1,256], index: 11, kind: input, shape index: {}]   ;;  %s15895_s9 = inlined_call_operand.vmem [shape: bf16[64,576], index: 9, kind: input, shape index: {}]   ;;  %s15896_s10 = inlined_call_operand.vmem [shape: f32[64,1], index: 10, kind: input, shape index: {}]   ;;  %s15897_s12 = inlined_call_operand.vmem [shape: bf16[2048,128], index: 12, kind: input, shape index: {}]   ;;  %s15898_s13 = inlined_call_operand.vmem [shape: f32[1,128], index: 13, kind: input, shape index: {}]   ;;  %s15899_s14 = inlined_call_operand.vmem [shape: f32[8,128], index: 14, kind: output, shape index: {}]  }
   0x1   :  { %v49_v0 = vld [vmem:[%s15885_s0 + $0x8] sm:$0xff]  ;;  %v48_v1 = vld [vmem:[%s15885_s0] sm:$0xff]  ;;  %v50_v8 = vld [vmem:[%s15885_s0 + $0x10] sm:$0xff]  ;;  %s10092_s21 = smov 29   ;;  %s10093_s22 = smov 1   ;;  %600 = vmatprep.mubr.bf16.mxu1 %v15902_v12  ;;  %527 = vmatprep.mubr.bf16.mxu0 %v15902_v12  ;;  %vm188_vm3 = vcmask 7168  }
   0x2   :  { %v10186_v2 = vunpack.c.l.bf16 %v49_v0  ;;  %v10188_v3 = vunpack.c.h.bf16 %v49_v0  ;;  %v10190_v4 = vunpack.c.l.bf16 %v48_v1  ;;  %v10192_v5 = vunpack.c.h.bf16 %v48_v1  ;;  %s10094_s23 = smov 127   ;;  %s10095_s24 = smov 99   ;;  %v51_v11 = vld [vmem:[%s15885_s0 + $0x18] sm:$0xff]  ;;  %9267 = vset.pattern.permute.xlu1 %v15902_v12  ;;  %9266 = vset.pattern.permute.xlu0 %v15902_v12  ;;  %v389_v19 = vld [vmem:[%s15887_s2] sm:$0xff]  ;;  %v390_v20 = vld [vmem:[%s15887_s2 + $0x8] sm:$0xff] }
   0x3   :  { %v10207_v9 = vunpack.c.l.bf16 %v50_v8  ;;  %s10096_s25 = smov 98   ;;  %v10227_v13 = vunpack.c.l.bf16 %v51_v11  ;;  %v10229_v14 = vunpack.c.h.bf16 %v51_v11  ;;  %s10098_s0 = smov 97   ;;  %v10240_v16 = vunpack.c.h.bf16 %v50_v8  ;;  %v392_v24 = vld [vmem:[%s15887_s2 + $0x18] sm:$0xff]  ;;  %v391_v25 = vld [vmem:[%s15887_s2 + $0x10] sm:$0xff]  ;;  %v394_v36 = vld [vmem:[%s15887_s2 + $0x28] sm:$0xff] }
   0x4   :  { %v9146_v6 = vpack.i.bf16 %v10188_v3, %v10186_v2  ;;  %v9156_v7 = vpack.i.bf16 %v10190_v4, %v10192_v5  ;;  %v9256_v17 = vpack.i.bf16 %v10192_v5, %v10190_v4  ;;  %v393_v37 = vld [vmem:[%s15887_s2 + $0x20] sm:$0xff]  ;;  %v396_v52 = vld [vmem:[%s15887_s2 + $0x38] sm:$0xff]  ;;  %v395_v53 = vld [vmem:[%s15887_s2 + $0x30] sm:$0xff]  ;;  %vm221_vm4 = vcmask 1039360   ;;  %s10100_s29 = smov 16   ;;  %s10101_s30 = smov 15  }
   0x5   :  { %v9186_v10 = vpack.i.bf16 %v10207_v9, %v10188_v3  ;;  %v9206_v15 = vpack.i.bf16 %v10227_v13, %v10229_v14  ;;  %v9261_v18 = vpack.i.bf16 %v10229_v14, %v10227_v13  ;;  %vm255_vm5 = vcmask 809984   ;;  %s10103_s19 = smov 112  }
   0x6   :  { %9147 = vrot.lane.b32.xlu0 %v9146_v6, %s10090_s17  ;;  %9157 = vrot.lane.b32.xlu1 %v9156_v7, %s10090_s17  ;;  %vm289_vm6 = vcmask 801792   ;;  %vm323_vm7 = vcmask 793600   ;;  %vm470_vm8 = vcmask 1043456   ;;  %vm457_vm9 = vcmask 588800  }
   0x7   :  { %vm2288_vm10 = vcmask 523264   ;;  %vm5150_vm11 = vcmask 138240   ;;  %vm5192_vm12 = vcmask 130048   ;;  %vm5234_vm13 = vcmask 121856  }
   0x8   :  { %vm5356_vm14 = vcmask 924672   ;;  %vm5398_vm15 = vcmask 916480  }
   0xa   :  { %9152 = vrot.lane.b32.xlu0 %v9146_v6, %s10091_s18  ;;  %9162 = vrot.lane.b32.xlu1 %v9156_v7, %s10091_s18 }
   0xe   :  { %9167 = vrot.lane.b32.xlu0 %v9146_v6, %s10092_s21  ;;  %9172 = vrot.lane.b32.xlu1 %v9146_v6, %s10093_s22 }
  0x12   :  { %9177 = vrot.lane.b32.xlu0 %v9156_v7, %s10092_s21  ;;  %9182 = vrot.lane.b32.xlu1 %v9156_v7, %s10093_s22 }
  0x16   :  { %9187 = vrot.lane.b32.xlu0 %v9186_v10, %s10094_s23  ;;  %209 = vrot.lane.b32.xlu1 %v10186_v2, %s10094_s23 }
  0x1a   :  { %9192 = vrot.lane.b32.xlu0 %v9186_v10, %s10095_s24  ;;  %9197 = vrot.lane.b32.xlu1 %v9186_v10, %s10096_s25 }
  0x1e   :  { %243 = vrot.lane.b32.xlu0 %v10186_v2, %s10095_s24  ;;  %277 = vrot.lane.b32.xlu1 %v10186_v2, %s10096_s25 }
  0x22   :  { %9202 = vrot.lane.b32.xlu0 %v9146_v6, %s10098_s0  ;;  %315 = vrot.lane.b32.xlu1 %v10207_v9, %s10098_s0 }
  0x26   :  { %9207 = vrot.lane.b32.xlu0 %v9206_v15, %s10090_s17  ;;  %9212 = vrot.lane.b32.xlu1 %v9206_v15, %s10091_s18 }
  0x2a   :  { %82 = vrot.lane.b32.xlu0 %v10240_v16, %s10090_s17  ;;  %116 = vrot.lane.b32.xlu1 %v10240_v16, %s10091_s18 }
  0x2e   :  { %9217 = vrot.lane.b32.xlu0 %v9206_v15, %s10092_s21  ;;  %9222 = vrot.lane.b32.xlu1 %v9206_v15, %s10093_s22 }
  0x32   :  { %150 = vrot.lane.b32.xlu0 %v10240_v16, %s10092_s21  ;;  %184 = vrot.lane.b32.xlu1 %v10240_v16, %s10093_s22 }
  0x36   :  { %9227 = vrot.lane.b32.xlu0 %v9156_v7, %s10094_s23  ;;  %9232 = vrot.lane.b32.xlu1 %v9206_v15, %s10094_s23 }
  0x3a   :  { %9237 = vrot.lane.b32.xlu0 %v9156_v7, %s10095_s24  ;;  %9242 = vrot.lane.b32.xlu1 %v9156_v7, %s10096_s25 }
  0x3e   :  { %9247 = vrot.lane.b32.xlu0 %v9206_v15, %s10095_s24  ;;  %9252 = vrot.lane.b32.xlu1 %v9206_v15, %s10096_s25 }
  0x42   :  { %9257 = vrot.lane.b32.xlu0 %v9256_v17, %s10098_s0  ;;  %9262 = vrot.lane.b32.xlu1 %v9261_v18, %s10098_s0 }
  0x46   :  { %80 = vrot.lane.b32.xlu0 %v10207_v9, %s10090_s17  ;;  %114 = vrot.lane.b32.xlu1 %v10207_v9, %s10091_s18 }
  0x4a   :  { %148 = vrot.lane.b32.xlu0 %v10207_v9, %s10092_s21  ;;  %182 = vrot.lane.b32.xlu1 %v10207_v9, %s10093_s22 }
  0x4e   :  { %215 = vrot.lane.b32.xlu0 %v10240_v16, %s10094_s23  ;;  %249 = vrot.lane.b32.xlu1 %v10240_v16, %s10095_s24 }
  0x52   :  { %283 = vrot.lane.b32.xlu0 %v10240_v16, %s10096_s25  ;;  %317 = vrot.lane.b32.xlu1 %v10240_v16, %s10098_s0 }
  0x56   :  { %399 = vperm.xlu0 %9266, %v389_v19   ;;  %404 = vperm.xlu1 %9267, %v390_v20  }
  0x5a   :  { %414 = vperm.xlu0 %9266, %v392_v24   ;;  %409 = vperm.xlu1 %9267, %v391_v25  }
  0x5e   :  { %424 = vperm.xlu0 %9266, %v394_v36   ;;  %419 = vperm.xlu1 %9267, %v393_v37  }
  0x62   :  { %434 = vperm.xlu0 %9266, %v396_v52   ;;  %429 = vperm.xlu1 %9267, %v395_v53  }
  0x78   :  { %v10286_v21 = vpop.permute.xlu0 %9147  ;;  %v10288_v22 = vpop.permute.xlu1 %9157 }
  0x79   :  { %v9160_v23 = vunpack.i.h.bf16 %v10288_v22  ;;  %v9150_v26 = vunpack.i.h.bf16 %v10286_v21  ;;  %v9149_v27 = vunpack.i.l.bf16 %v10286_v21  ;;  %v9159_v28 = vunpack.i.l.bf16 %v10288_v22 }
  0x7b   :  { %v87_v31 = vsel %vm86_vm0, %v9160_v23, %v9159_v28  ;;  %v89_v38 = vsel %vm86_vm0, %v9149_v27, %v9150_v26  ;;  %v88_v41 = vsel %vm86_vm0, %v9159_v28, %v9149_v27 }
  0x7c   :  { %v10300_v29 = vpop.permute.xlu0 %9152  ;;  %v10302_v30 = vpop.permute.xlu1 %9162 }
  0x7d   :  { %v9155_v32 = vunpack.i.h.bf16 %v10300_v29  ;;  %v9154_v33 = vunpack.i.l.bf16 %v10300_v29  ;;  %v9165_v34 = vunpack.i.h.bf16 %v10302_v30  ;;  %v9164_v35 = vunpack.i.l.bf16 %v10302_v30 }
  0x7f   :  { %v121_v39 = vsel %vm120_vm1, %v9165_v34, %v9164_v35  ;;  %v123_v40 = vsel %vm120_vm1, %v9154_v33, %v9155_v32  ;;  %v122_v42 = vsel %vm120_vm1, %v9164_v35, %v9154_v33 }
  0x80   :  { %v10328_v43 = vpop.permute.xlu0 %9167  ;;  %v10330_v44 = vpop.permute.xlu1 %9172  ;;  %v342_v45 = vpack.c.bf16 %v121_v39, %v87_v31  ;;  %v344_v46 = vpack.c.bf16 %v123_v40, %v89_v38  ;;  %v343_v47 = vpack.c.bf16 %v122_v42, %v88_v41 }
  0x81   :  { %v9170_v48 = vunpack.i.h.bf16 %v10328_v43  ;;  %v9169_v49 = vunpack.i.l.bf16 %v10328_v43  ;;  %v9175_v50 = vunpack.i.h.bf16 %v10330_v44  ;;  %v9174_v51 = vunpack.i.l.bf16 %v10330_v44 }
  0x82   :  { %495 = vmatprep.subr.bf16.mxu0 %v342_v45  ;;  %568 = vmatprep.subr.bf16.mxu1 %v344_v46 }
  0x83   :  { %569 = vmatpush1.bf16.msra.mxu1 %v343_v47  ;;  %v157_v54 = vsel %vm154_vm2, %v9169_v49, %v9170_v48  ;;  %v191_v55 = vsel %vm188_vm3, %v9174_v51, %v9175_v50 }
  0x84   :  { %v10348_v56 = vpop.permute.xlu0 %9177  ;;  %v10350_v57 = vpop.permute.xlu1 %9182  ;;  %v352_v58 = vpack.c.bf16 %v191_v55, %v157_v54 }
  0x85   :  { %v9179_v59 = vunpack.i.l.bf16 %v10348_v56  ;;  %v9184_v60 = vunpack.i.l.bf16 %v10350_v57  ;;  %v9180_v41 = vunpack.i.h.bf16 %v10348_v56  ;;  %v9185_v42 = vunpack.i.h.bf16 %v10350_v57  ;;  %v10409_v57 = vld [vmem:[%s15886_s1] sm:$0xff]  }
  0x86   :  { %570 = vmatprep.subr.bf16.mxu1 %v352_v58 }
  0x87   :  { %v156_v61 = vsel %vm154_vm2, %v9179_v59, %v9169_v49  ;;  %v190_v62 = vsel %vm188_vm3, %v9184_v60, %v9174_v51 }
  0x88   :  { %v10356_v63 = vpop.permute.xlu0 %9187  ;;  %v10358_v0 = vpop.permute.xlu1 %209  ;;  %v351_v1 = vpack.c.bf16 %v190_v62, %v156_v61  ;;  %v155_v61 = vsel %vm154_vm2, %v9180_v41, %v9179_v59  ;;  %v189_v62 = vsel %vm188_vm3, %v9185_v42, %v9184_v60 }
  0x89   :  { %v9190_v6 = vunpack.i.h.bf16 %v10356_v63  ;;  %v9189_v7 = vunpack.i.l.bf16 %v10356_v63 }
  0x8a   :  { %571 = vmatpush1.bf16.msra.mxu1 %v351_v1 }
  0x8b   :  { %v224_v8 = vsel %vm221_vm4, %v10358_v0, %v9189_v7  ;;  %v225_v10 = vsel %vm221_vm4, %v9189_v7, %v9190_v6 }
  0x8c   :  { %v10367_v11 = vpop.permute.xlu0 %9192  ;;  %v10369_v15 = vpop.permute.xlu1 %9197  ;;  %v360_v17 = vpack.c.bf16 %v225_v10, %v10188_v3  ;;  %v359_v18 = vpack.c.bf16 %v224_v8, %v10186_v2 }
  0x8d   :  { %v9195_v19 = vunpack.i.h.bf16 %v10367_v11  ;;  %v9194_v20 = vunpack.i.l.bf16 %v10367_v11  ;;  %v9200_v24 = vunpack.i.h.bf16 %v10369_v15  ;;  %v9199_v25 = vunpack.i.l.bf16 %v10369_v15 }
  0x8e   :  { %572 = vmatprep.subr.bf16.mxu1 %v360_v17  ;;  %v852_v11 = vlaneseq }
  0x8f   :  { %573 = vmatpush1.bf16.msra.mxu1 %v359_v18  ;;  %v259_v27 = vsel %vm255_vm5, %v9194_v20, %v9195_v19  ;;  %v293_v2 = vsel %vm289_vm6, %v9199_v25, %v9200_v24 }
  0x90   :  { %v10383_v3 = vpop.permute.xlu0 %243  ;;  %v10385_v28 = vpop.permute.xlu1 %277  ;;  %v368_v31 = vpack.c.bf16 %v293_v2, %v259_v27 }
  0x91   :  { %v258_v33 = vsel %vm255_vm5, %v10383_v3, %v9194_v20  ;;  %v292_v35 = vsel %vm289_vm6, %v10385_v28, %v9199_v25 }
  0x92   :  { %574 = vmatprep.subr.bf16.mxu1 %v368_v31  ;;  %v367_v36 = vpack.c.bf16 %v292_v35, %v258_v33  ;;  %v10435_v35 = vld [vmem:[%s15886_s1 + $0x8] sm:$0xff]  }
  0x94   :  { %v10391_v37 = vpop.permute.xlu0 %9202  ;;  %v10393_v38 = vpop.permute.xlu1 %315  ;;  %575 = vmatpush1.bf16.msra.mxu1 %v367_v36 }
  0x95   :  { %v9205_v39 = vunpack.i.h.bf16 %v10391_v37  ;;  %v9204_v40 = vunpack.i.l.bf16 %v10391_v37 }
  0x97   :  { %v327_v45 = vsel %vm323_vm7, %v9205_v39, %v10393_v38  ;;  %v326_v46 = vsel %vm323_vm7, %v9204_v40, %v9205_v39 }
  0x98   :  { %v376_v47 = vpack.c.bf16 %v327_v45, %v327_v45  ;;  %v9208_v49 = vpop.permute.xlu0 %9207  ;;  %v9213_v51 = vpop.permute.xlu1 %9212  ;;  %v375_v52 = vpack.c.bf16 %v326_v46, %v326_v46 }
  0x99   :  { %v9210_v53 = vunpack.i.h.bf16 %v9208_v49  ;;  %v9209_v54 = vunpack.i.l.bf16 %v9208_v49  ;;  %v9215_v55 = vunpack.i.h.bf16 %v9213_v51  ;;  %v9214_v58 = vunpack.i.l.bf16 %v9213_v51 }
  0x9a   :  { %8263 = vmatprep.subr.msk.bf16.mxu1 %vm470_vm8, %v376_v47  ;;  %v478_v56 = vsel %vm470_vm8, %v375_v52, 0 }
  0x9b   :  { %577 = vmatpush1.bf16.msra.mxu1 %v478_v56  ;;  %v102_v1 = vsel %vm86_vm0, %v9209_v54, %v9160_v23  ;;  %v136_v7 = vsel %vm120_vm1, %v9214_v58, %v9165_v34  ;;  %v93_v8 = vsel %vm86_vm0, %v9210_v53, %v9209_v54  ;;  %v127_v10 = vsel %vm120_vm1, %v9215_v55, %v9214_v58 }
  0x9c   :  { %v10421_v17 = vpop.permute.xlu0 %82  ;;  %v10423_v18 = vpop.permute.xlu1 %116  ;;  %v341_v59 = vpack.c.bf16 %v136_v7, %v102_v1  ;;  %v348_v20 = vpack.c.bf16 %v127_v10, %v93_v8  ;;  %v350_v23 = vpack.c.bf16 %v189_v62, %v155_v61  ;;  %v10459_v1 = vld [vmem:[%s15886_s1 + $0x10] sm:$0xff]  }
  0x9d   :  { %v92_v60 = vsel %vm86_vm0, %v10421_v17, %v9210_v53  ;;  %v126_v22 = vsel %vm120_vm1, %v10423_v18, %v9215_v55 }
  0x9e   :  { %v347_v30 = vpack.c.bf16 %v126_v22, %v92_v60  ;;  %496 = vmatpush1.bf16.msra.mxu0 %v341_v59  ;;  %8264 = vmatmul.mubr.msk.bf16.vlgmr.msra.gmra.mrb[0].mxu1 %vm457_vm9, %v10409_v57 }
  0x9f   :  { %714 = vmatprep.subr.bf16.mxu1 %v348_v20  ;;  %497 = vmatprep.subr.bf16.mxu0 %v350_v23 }
  0xa0   :  { %v9218_v34 = vpop.permute.xlu0 %9217  ;;  %v9223_v25 = vpop.permute.xlu1 %9222  ;;  %715 = vmatpush1.bf16.msra.mxu1 %v347_v30  ;;  %610 = vmatprep.mubr.bf16.mxu1 %v15902_v12 }
  0xa1   :  { %v9220_v27 = vunpack.i.h.bf16 %v9218_v34  ;;  %v9219_v2 = vunpack.i.l.bf16 %v9218_v34  ;;  %v9225_v31 = vunpack.i.h.bf16 %v9223_v25  ;;  %v9224_v33 = vunpack.i.l.bf16 %v9223_v25 }
  0xa3   :  { %v170_v36 = vsel %vm154_vm2, %v9219_v2, %v9180_v41  ;;  %v204_v39 = vsel %vm188_vm3, %v9224_v33, %v9185_v42  ;;  %v161_v45 = vsel %vm154_vm2, %v9220_v27, %v9219_v2  ;;  %v195_v46 = vsel %vm188_vm3, %v9225_v31, %v9224_v33 }
  0xa4   :  { %v10441_v47 = vpop.permute.xlu0 %150  ;;  %v10443_v49 = vpop.permute.xlu1 %184  ;;  %v349_v51 = vpack.c.bf16 %v204_v39, %v170_v36  ;;  %v356_v52 = vpack.c.bf16 %v195_v46, %v161_v45 }
  0xa5   :  { %v160_v53 = vsel %vm154_vm2, %v10441_v47, %v9220_v27  ;;  %v194_v54 = vsel %vm188_vm3, %v10443_v49, %v9225_v31 }
  0xa6   :  { %v355_v55 = vpack.c.bf16 %v194_v54, %v160_v53  ;;  %498 = vmatpush1.bf16.msra.mxu0 %v349_v51  ;;  %8265 = vmatmul.mubr.msk.bf16.gmra.mrb[4].mxu1 %vm457_vm9, %v10435_v35  ;;  %v10492_v51 = vld [vmem:[%s15886_s1 + $0x18] sm:$0xff]   ;;  %s10102_s1 = smov 113  }
  0xa7   :  { %716 = vmatprep.subr.bf16.mxu1 %v356_v52  ;;  %620 = vmatprep.mubr.bf16.mxu1 %v15902_v12 }
  0xa8   :  { %v9228_v41 = vpop.permute.xlu0 %9227  ;;  %v10452_v42 = vpop.permute.xlu1 %9232  ;;  %717 = vmatpush1.bf16.msra.mxu1 %v355_v55 }
  0xa9   :  { %v9230_v58 = vunpack.i.h.bf16 %v9228_v41  ;;  %v9229_v56 = vunpack.i.l.bf16 %v9228_v41  ;;  %v9235_v61 = vunpack.i.h.bf16 %v10452_v42  ;;  %v9234_v62 = vunpack.i.l.bf16 %v10452_v42 }
  0xab   :  { %v228_v7 = vsel %vm221_vm4, %v9235_v61, %v9234_v62  ;;  %v223_v8 = vsel %vm221_vm4, %v9229_v56, %v10358_v0  ;;  %v238_v10 = vsel %vm221_vm4, %v9234_v62, %v9230_v58  ;;  %v222_v59 = vsel %vm221_vm4, %v9230_v58, %v9229_v56 }
  0xac   :  { %v9238_v20 = vpop.permute.xlu0 %9237  ;;  %v9243_v60 = vpop.permute.xlu1 %9242  ;;  %v358_v22 = vpack.c.bf16 %v223_v8, %v10192_v5  ;;  %v364_v23 = vpack.c.bf16 %v238_v10, %v10229_v14  ;;  %v357_v30 = vpack.c.bf16 %v222_v59, %v10190_v4  ;;  %v363_v34 = vpack.c.bf16 %v228_v7, %v10227_v13 }
  0xad   :  { %v9240_v25 = vunpack.i.h.bf16 %v9238_v20  ;;  %v9239_v27 = vunpack.i.l.bf16 %v9238_v20  ;;  %v9245_v2 = vunpack.i.h.bf16 %v9243_v60  ;;  %v9244_v31 = vunpack.i.l.bf16 %v9243_v60 }
  0xae   :  { %499 = vmatprep.subr.bf16.mxu0 %v358_v22  ;;  %8266 = vmatmul.mubr.msk.bf16.gmra.mrb[8].mxu1 %vm457_vm9, %v10459_v1 }
  0xaf   :  { %718 = vmatprep.subr.bf16.mxu1 %v364_v23  ;;  %500 = vmatpush1.bf16.msra.mxu0 %v357_v30  ;;  %v257_v0 = vsel %vm255_vm5, %v9239_v27, %v10383_v3  ;;  %v291_v5 = vsel %vm289_vm6, %v9244_v31, %v10385_v28  ;;  %v256_v4 = vsel %vm255_vm5, %v9240_v25, %v9239_v27 }
  0xb0   :  { %v10479_v14 = vpop.permute.xlu0 %9247  ;;  %v10481_v13 = vpop.permute.xlu1 %9252  ;;  %v366_v33 = vpack.c.bf16 %v291_v5, %v257_v0  ;;  %719 = vmatpush1.bf16.msra.mxu1 %v363_v34  ;;  %v290_v36 = vsel %vm289_vm6, %v9245_v2, %v9244_v31  ;;  %630 = vmatprep.mubr.bf16.mxu1 %v15902_v12 }
  0xb1   :  { %v9250_v39 = vunpack.i.h.bf16 %v10479_v14  ;;  %v9249_v45 = vunpack.i.l.bf16 %v10479_v14  ;;  %v9255_v3 = vunpack.i.h.bf16 %v10481_v13  ;;  %v9254_v28 = vunpack.i.l.bf16 %v10481_v13  ;;  %v10600_v13 = vld [vmem:[%s15888_s5] sm:$0xff] }
  0xb2   :  { %501 = vmatprep.subr.bf16.mxu0 %v366_v33  ;;  %v365_v46 = vpack.c.bf16 %v290_v36, %v256_v4 }
  0xb3   :  { %v262_v52 = vsel %vm255_vm5, %v9250_v39, %v9249_v45  ;;  %v296_v53 = vsel %vm289_vm6, %v9255_v3, %v9254_v28  ;;  %v272_v54 = vsel %vm255_vm5, %v9249_v45, %v9240_v25  ;;  %v306_v55 = vsel %vm289_vm6, %v9254_v28, %v9245_v2 }
  0xb4   :  { %502 = vmatpush1.bf16.msra.mxu0 %v365_v46  ;;  %v9258_v41 = vpop.permute.xlu0 %9257  ;;  %v9263_v58 = vpop.permute.xlu1 %9262  ;;  %v372_v56 = vpack.c.bf16 %v306_v55, %v272_v54  ;;  %v371_v62 = vpack.c.bf16 %v296_v53, %v262_v52 }
  0xb5   :  { %v9260_v7 = vunpack.i.h.bf16 %v9258_v41  ;;  %v9259_v8 = vunpack.i.l.bf16 %v9258_v41  ;;  %v9265_v10 = vunpack.i.h.bf16 %v9263_v58  ;;  %v9264_v59 = vunpack.i.l.bf16 %v9263_v58 }
  0xb6   :  { %8267 = vmatmul.mubr.msk.bf16.gmra.mrb[12].mxu1 %vm457_vm9, %v10492_v51  ;;  %720 = vmatprep.subr.bf16.mxu1 %v372_v56 }
  0xb7   :  { %721 = vmatpush1.bf16.msra.mxu1 %v371_v62  ;;  %v325_v20 = vsel %vm323_vm7, %v9260_v7, %v9204_v40  ;;  %v340_v60 = vsel %vm323_vm7, %v9265_v10, %v9259_v8  ;;  %v324_v22 = vsel %vm323_vm7, %v9259_v8, %v9260_v7  ;;  %v330_v23 = vsel %vm323_vm7, %v9264_v59, %v9265_v10 }
  0xb8   :  { %v81_v30 = vpop.permute.xlu0 %80  ;;  %v115_v34 = vpop.permute.xlu1 %114  ;;  %v374_v25 = vpack.c.bf16 %v325_v20, %v325_v20  ;;  %v380_v27 = vpack.c.bf16 %v340_v60, %v340_v60  ;;  %v373_v2 = vpack.c.bf16 %v324_v22, %v324_v22  ;;  %v379_v31 = vpack.c.bf16 %v330_v23, %v330_v23  ;;  %746 = vmatprep.mubr.bf16.mxu1 %v15902_v12 }
  0xb9   :  { %v90_v37 = vsel %vm86_vm0, %v9150_v26, %v81_v30  ;;  %v91_v40 = vsel %vm86_vm0, %v81_v30, %v10421_v17  ;;  %v125_v0 = vsel %vm120_vm1, %v115_v34, %v10423_v18  ;;  %v124_v5 = vsel %vm120_vm1, %v9155_v32, %v115_v34 }
  0xba   :  { %8258 = vmatprep.subr.msk.bf16.mxu0 %vm470_vm8, %v374_v25  ;;  %8273 = vmatprep.subr.msk.bf16.mxu1 %vm470_vm8, %v380_v27  ;;  %v472_v4 = vsel %vm470_vm8, %v373_v2, 0  ;;  %v490_v21 = vsel %vm470_vm8, %v379_v31, 0  ;;  %v346_v33 = vpack.c.bf16 %v125_v0, %v91_v40  ;;  %v345_v36 = vpack.c.bf16 %v124_v5, %v90_v37 }
  0xbb   :  { %504 = vmatpush1.bf16.msra.mxu0 %v472_v4  ;;  %723 = vmatpush1.bf16.msra.mxu1 %v490_v21 }
  0xbc   :  { %v149_v26 = vpop.permute.xlu0 %148  ;;  %v183_v17 = vpop.permute.xlu1 %182  ;;  %641 = vmatprep.subr.bf16.mxu0 %v346_v33 }
  0xbd   :  { %v159_v29 = vsel %vm154_vm2, %v149_v26, %v10441_v47  ;;  %v193_v32 = vsel %vm188_vm3, %v183_v17, %v10443_v49  ;;  %v158_v18 = vsel %vm154_vm2, %v9170_v48, %v149_v26  ;;  %v192_v45 = vsel %vm188_vm3, %v9175_v50, %v183_v17 }
  0xbe   :  { %8259 = vmatmul.mubr.msk.bf16.vlgmr.msra.gmra.mrb[0].mxu0 %vm457_vm9, %v10409_v57  ;;  %8274 = vmatmul.mubr.msk.bf16.vlgmr.msra.gmra.mrb[16].mxu1 %vm457_vm9, %v10409_v57  ;;  %v354_v28 = vpack.c.bf16 %v193_v32, %v159_v29  ;;  %v353_v43 = vpack.c.bf16 %v192_v45, %v158_v18 }
  0xbf   :  { %642 = vmatpush1.bf16.msra.mxu0 %v345_v36  ;;  %537 = vmatprep.mubr.bf16.mxu0 %v15902_v12 }
  0xc0   :  { %v216_v47 = vpop.permute.xlu0 %215  ;;  %v250_v49 = vpop.permute.xlu1 %249  ;;  %643 = vmatprep.subr.bf16.mxu0 %v354_v28  ;;  %756 = vmatprep.mubr.bf16.mxu1 %v15902_v12 }
  0xc1   :  { %v227_v44 = vsel %vm221_vm4, %v216_v47, %v9235_v61  ;;  %v226_v48 = vsel %vm221_vm4, %v9190_v6, %v216_v47  ;;  %v261_v63 = vsel %vm255_vm5, %v250_v49, %v9250_v39  ;;  %v260_v61 = vsel %vm255_vm5, %v9195_v19, %v250_v49 }
  0xc2   :  { %v362_v50 = vpack.c.bf16 %v227_v44, %v10240_v16  ;;  %v361_v53 = vpack.c.bf16 %v226_v48, %v10207_v9  ;;  %v10594_v19 = vshrl.u32 %v852_v11, 7 }
  0xc3   :  { %644 = vmatpush1.bf16.msra.mxu0 %v353_v43 }
  0xc4   :  { %v284_v46 = vpop.permute.xlu0 %283  ;;  %v318_v52 = vpop.permute.xlu1 %317  ;;  %645 = vmatprep.subr.bf16.mxu0 %v362_v50  ;;  %16170 = vst [vmem:[#allocation2_spill] sm:$0xff] %v10594_v19  ;;  %v862_v58 = vsub.s32 2, %v10594_v19  ;;  %v866_v56 = vsub.s32 3, %v10594_v19 }
  0xc5   :  { %v295_v54 = vsel %vm289_vm6, %v284_v46, %v9255_v3  ;;  %v329_v42 = vsel %vm323_vm7, %v318_v52, %v9264_v59  ;;  %v294_v16 = vsel %vm289_vm6, %v9200_v24, %v284_v46  ;;  %v328_v9 = vsel %vm323_vm7, %v10393_v38, %v318_v52 }
  0xc6   :  { %8260 = vmatmul.mubr.msk.bf16.gmra.mrb[4].mxu0 %vm457_vm9, %v10435_v35  ;;  %8275 = vmatmul.mubr.msk.bf16.gmra.mrb[20].mxu1 %vm457_vm9, %v10435_v35  ;;  %v370_v6 = vpack.c.bf16 %v295_v54, %v261_v63  ;;  %v378_v15 = vpack.c.bf16 %v329_v42, %v329_v42  ;;  %v369_v24 = vpack.c.bf16 %v294_v16, %v260_v61  ;;  %v870_v3 = vsub.s32 4, %v10594_v19 }
  0xc7   :  { %646 = vmatpush1.bf16.msra.mxu0 %v361_v53  ;;  %547 = vmatprep.mubr.bf16.mxu0 %v15902_v12  ;;  %v377_v14 = vpack.c.bf16 %v328_v9, %v328_v9  ;;  %v10624_v59 = vrot.slane %v10600_v13, %v862_v58  ;;  %v10628_v22 = vrot.slane %v10600_v13, %v866_v56 }
  0xc8   :  { %766 = vmatprep.mubr.bf16.mxu1 %v15902_v12  ;;  %647 = vmatprep.subr.bf16.mxu0 %v370_v6  ;;  %v10612_v55 = vrot.slane %v10600_v13, %v870_v3 }
  0xc9   :  { %v484_v38 = vsel %vm470_vm8, %v377_v14, 0 }
  0xcb   :  { %648 = vmatpush1.bf16.msra.mxu0 %v369_v24 }
  0xcc   :  { %8268 = vmatprep.subr.msk.bf16.mxu0 %vm470_vm8, %v378_v15 }
  0xce   :  { %8261 = vmatmul.mubr.msk.bf16.gmra.mrb[8].mxu0 %vm457_vm9, %v10459_v1  ;;  %8276 = vmatmul.mubr.msk.bf16.gmra.mrb[24].mxu1 %vm457_vm9, %v10459_v1 }
  0xcf   :  { %650 = vmatpush1.bf16.msra.mxu0 %v484_v38  ;;  %557 = vmatprep.mubr.bf16.mxu0 %v15902_v12 }
  0xd0   :  { %776 = vmatprep.mubr.bf16.mxu1 %v15902_v12 }
  0xd5   :  { %v10619_v62 = vpop.permute.xlu0 %399  ;;  %v10621_v8 = vpop.permute.xlu1 %404 }
  0xd6   :  { %8262 = vmatmul.mubr.msk.bf16.gmra.mrb[12].mxu0 %vm457_vm9, %v10492_v51  ;;  %8277 = vmatmul.mubr.msk.bf16.gmra.mrb[28].mxu1 %vm457_vm9, %v10492_v51 }
  0xd7   :  { %673 = vmatprep.mubr.bf16.mxu0 %v15902_v12 }
  0xd9   :  { %v10637_v33 = vpop.permute.xlu1 %409  ;;  %v10644_v18 = vpop.permute.xlu0 %414 }
  0xdd   :  { %v10657_v63 = vpop.permute.xlu1 %419  ;;  %v10664_v24 = vpop.permute.xlu0 %424 }
  0xde   :  { %8269 = vmatmul.mubr.msk.bf16.vlgmr.msra.gmra.mrb[16].mxu0 %vm457_vm9, %v10409_v57  ;;  %v878_v57 = vsub.s32 6, %v10594_v19 }
  0xdf   :  { %683 = vmatprep.mubr.bf16.mxu0 %v15902_v12 }
  0xe6   :  { %8270 = vmatmul.mubr.msk.bf16.gmra.mrb[20].mxu0 %vm457_vm9, %v10435_v35  ;;  %v10603_v35 = vrot.slane %v10600_v13, %v878_v57 }
  0xe7   :  { %693 = vmatprep.mubr.bf16.mxu0 %v15902_v12 }
  0xee   :  { %8271 = vmatmul.mubr.msk.bf16.gmra.mrb[24].mxu0 %vm457_vm9, %v10459_v1  ;;  %v882_v1 = vsub.s32 7, %v10594_v19 }
  0xef   :  { %703 = vmatprep.mubr.bf16.mxu0 %v15902_v12 }
  0xf0   :  { %v10607_v39 = vrot.slane %v10600_v13, %v882_v1 }
  0xf6   :  { %8272 = vmatmul.mubr.msk.bf16.gmra.mrb[28].mxu0 %vm457_vm9, %v10492_v51  ;;  %v874_v51 = vsub.s32 5, %v10594_v19 }
  0xf8   :  { %v10615_v41 = vrot.slane %v10600_v13, %v874_v51 }
 0x171   :  { %v602_v7 = vpop.f32.mrb[0].mxu1 }
 0x172   :  { %v604_v10 = vpop.f32.mrb[1].mxu1  ;;  %v603_v20 = vadd.f32 %v602_v7, %v10619_v62 }
 0x173   :  { %v606_v60 = vpop.f32.mrb[2].mxu1  ;;  %v605_v23 = vadd.f32 %v604_v10, %v10619_v62  ;;  %v10673_v10 = vpop.permute.xlu1 %429 }
 0x174   :  { %v608_v30 = vpop.f32.mrb[3].mxu1  ;;  %v789_v34 = vmax.f32 %v603_v20, 0.0  ;;  %v607_v25 = vadd.f32 %v606_v60, %v10621_v8 }
 0x175   :  { %v790_v27 = vmax.f32 %v605_v23, 0.0  ;;  %v609_v2 = vadd.f32 %v608_v30, %v10621_v8  ;;  %v10677_v30 = vpop.permute.xlu0 %434 }
 0x176   :  { %v894_v31 = vmul.f32 %v10624_v59, %v789_v34  ;;  %v797_v37 = vmax.f32 %v607_v25, 0.0 }
 0x177   :  { %v895_v40 = vmul.f32 %v10628_v22, %v790_v27  ;;  %v798_v0 = vmax.f32 %v609_v2, 0.0 }
 0x178   :  { %v902_v5 = vmul.f32 %v10624_v59, %v797_v37 }
 0x179   :  { %v612_v4 = vpop.f32.mrb[4].mxu1  ;;  %v903_v21 = vmul.f32 %v10628_v22, %v798_v0 }
 0x17a   :  { %v614_v26 = vpop.f32.mrb[5].mxu1  ;;  %v10639_v17 = vpack.c.bf16 %v902_v5, %v894_v31  ;;  %v613_v36 = vadd.f32 %v612_v4, %v10637_v33 }
 0x17b   :  { %v10642_v29 = vpack.c.bf16 %v903_v21, %v895_v40  ;;  %v616_v32 = vpop.f32.mrb[6].mxu1  ;;  %v615_v45 = vadd.f32 %v614_v26, %v10637_v33  ;;  %v15901_v26 = vsub.s32 0, %v10594_v19 }
 0x17c   :  { %16171 = vst [vmem:[#allocation3_spill] sm:$0xff] %v10639_v17  ;;  %v618_v28 = vpop.f32.mrb[7].mxu1  ;;  %v617_v47 = vadd.f32 %v616_v32, %v10644_v18  ;;  %v805_v49 = vmax.f32 %v613_v36, 0.0  ;;  %1572 = vrot.lane.b32.xlu0 %v10639_v17, %s10094_s23 }
 0x17d   :  { %v619_v43 = vadd.f32 %v618_v28, %v10644_v18  ;;  %v806_v44 = vmax.f32 %v615_v45, 0.0  ;;  %v15900_v45 = vsub.s32 1, %v10594_v19 }
 0x17e   :  { %v813_v48 = vmax.f32 %v617_v47, 0.0  ;;  %v910_v50 = vmul.f32 %v10624_v59, %v805_v49 }
 0x17f   :  { %v814_v46 = vmax.f32 %v619_v43, 0.0  ;;  %v911_v52 = vmul.f32 %v10628_v22, %v806_v44 }
 0x180   :  { %v918_v53 = vmul.f32 %v10624_v59, %v813_v48  ;;  %1709 = vrot.lane.b32.xlu0 %v10639_v17, %s10095_s24 }
 0x181   :  { %v622_v54 = vpop.f32.mrb[8].mxu1  ;;  %v919_v42 = vmul.f32 %v10628_v22, %v814_v46 }
 0x182   :  { %v624_v16 = vpop.f32.mrb[9].mxu1  ;;  %v10659_v9 = vpack.c.bf16 %v918_v53, %v910_v50  ;;  %v623_v6 = vadd.f32 %v622_v54, %v10657_v63 }
 0x183   :  { %v10662_v61 = vpack.c.bf16 %v919_v42, %v911_v52  ;;  %v626_v15 = vpop.f32.mrb[10].mxu1  ;;  %v625_v14 = vadd.f32 %v624_v16, %v10657_v63  ;;  %v10698_v52 = vrot.slane %v10600_v13, %v15901_v26 }
 0x184   :  { %v628_v38 = vpop.f32.mrb[11].mxu1  ;;  %v627_v11 = vadd.f32 %v626_v15, %v10664_v24  ;;  %v821_v57 = vmax.f32 %v623_v6, 0.0  ;;  %1846 = vrot.lane.b32.xlu0 %v10639_v17, %s10096_s25 }
 0x185   :  { %v629_v1 = vadd.f32 %v628_v38, %v10664_v24  ;;  %v822_v3 = vmax.f32 %v625_v14, 0.0 }
 0x186   :  { %v829_v51 = vmax.f32 %v627_v11, 0.0  ;;  %v926_v58 = vmul.f32 %v10624_v59, %v821_v57 }
 0x187   :  { %v830_v56 = vmax.f32 %v629_v1, 0.0  ;;  %v927_v7 = vmul.f32 %v10628_v22, %v822_v3 }
 0x188   :  { %v934_v20 = vmul.f32 %v10624_v59, %v829_v51 }
 0x189   :  { %v632_v60 = vpop.f32.mrb[12].mxu1  ;;  %v935_v23 = vmul.f32 %v10628_v22, %v830_v56 }
 0x18a   :  { %v634_v34 = vpop.f32.mrb[13].mxu1  ;;  %v10679_v25 = vpack.c.bf16 %v934_v20, %v926_v58  ;;  %v633_v27 = vadd.f32 %v632_v60, %v10673_v10 }
 0x18b   :  { %v10682_v2 = vpack.c.bf16 %v935_v23, %v927_v7  ;;  %v636_v31 = vpop.f32.mrb[14].mxu1  ;;  %v635_v37 = vadd.f32 %v634_v34, %v10673_v10 }
 0x18c   :  { %16172 = vst [vmem:[#allocation4_spill] sm:$0xff] %v10679_v25  ;;  %v638_v40 = vpop.f32.mrb[15].mxu1  ;;  %v637_v0 = vadd.f32 %v636_v31, %v10677_v30  ;;  %v837_v5 = vmax.f32 %v633_v27, 0.0 }
 0x18d   :  { %v639_v4 = vadd.f32 %v638_v40, %v10677_v30  ;;  %v838_v21 = vmax.f32 %v635_v37, 0.0 }
 0x18e   :  { %v845_v36 = vmax.f32 %v637_v0, 0.0  ;;  %v942_v32 = vmul.f32 %v10624_v59, %v837_v5 }
 0x18f   :  { %v846_v28 = vmax.f32 %v639_v4, 0.0  ;;  %v943_v47 = vmul.f32 %v10628_v22, %v838_v21 }
 0x190   :  { %v950_v49 = vmul.f32 %v10624_v59, %v845_v36  ;;  %v10706_v59 = vrot.slane %v10600_v13, %v15900_v45 }
 0x191   :  { %v748_v43 = vpop.f32.mrb[16].mxu1  ;;  %v529_v44 = vpop.f32.mrb[0].mxu0  ;;  %v951_v48 = vmul.f32 %v10628_v22, %v846_v28 }
 0x192   :  { %v749_v50 = vadd.f32 %v748_v43, %v10619_v62  ;;  %v530_v46 = vadd.f32 %v529_v44, %v10619_v62  ;;  %v531_v53 = vpop.f32.mrb[1].mxu0  ;;  %v750_v54 = vpop.f32.mrb[17].mxu1  ;;  %v10700_v42 = vpack.c.bf16 %v950_v49, %v942_v32 }
 0x193   :  { %v532_v16 = vadd.f32 %v531_v53, %v10619_v62  ;;  %v751_v22 = vadd.f32 %v750_v54, %v10619_v62  ;;  %v10709_v6 = vpack.c.bf16 %v951_v48, %v943_v47  ;;  %v533_v15 = vpop.f32.mrb[2].mxu0  ;;  %v752_v14 = vpop.f32.mrb[18].mxu1 }
 0x194   :  { %v793_v38 = vmax.f32 %v749_v50, 0.0  ;;  %v787_v11 = vmax.f32 %v530_v46, 0.0  ;;  %v534_v57 = vadd.f32 %v533_v15, %v10621_v8  ;;  %v753_v1 = vadd.f32 %v752_v14, %v10621_v8  ;;  %v535_v3 = vpop.f32.mrb[3].mxu0  ;;  %v754_v51 = vpop.f32.mrb[19].mxu1 }
 0x195   :  { %v788_v58 = vmax.f32 %v532_v16, 0.0  ;;  %v794_v56 = vmax.f32 %v751_v22, 0.0  ;;  %v536_v7 = vadd.f32 %v535_v3, %v10621_v8  ;;  %v755_v13 = vadd.f32 %v754_v51, %v10621_v8 }
 0x196   :  { %v898_v20 = vmul.f32 %v10603_v35, %v793_v38  ;;  %v795_v60 = vmax.f32 %v534_v57, 0.0  ;;  %v801_v23 = vmax.f32 %v753_v1, 0.0  ;;  %v892_v37 = vmul.f32 %v10698_v52, %v787_v11 }
 0x197   :  { %v899_v34 = vmul.f32 %v10607_v39, %v794_v56  ;;  %v796_v27 = vmax.f32 %v536_v7, 0.0  ;;  %v802_v31 = vmax.f32 %v755_v13, 0.0  ;;  %v893_v5 = vmul.f32 %v10706_v59, %v788_v58 }
 0x198   :  { %v900_v40 = vmul.f32 %v10698_v52, %v795_v60  ;;  %v906_v0 = vmul.f32 %v10603_v35, %v801_v23 }
 0x199   :  { %v901_v4 = vmul.f32 %v10706_v59, %v796_v27  ;;  %v907_v21 = vmul.f32 %v10607_v39, %v802_v31  ;;  %v758_v36 = vpop.f32.mrb[20].mxu1  ;;  %v539_v32 = vpop.f32.mrb[4].mxu0 }
 0x19a   :  { %v10723_v28 = vpack.c.bf16 %v900_v40, %v892_v37  ;;  %v10725_v47 = vpack.c.bf16 %v906_v0, %v898_v20  ;;  %v759_v49 = vadd.f32 %v758_v36, %v10637_v33  ;;  %v540_v43 = vadd.f32 %v539_v32, %v10637_v33  ;;  %v541_v44 = vpop.f32.mrb[5].mxu0  ;;  %v760_v48 = vpop.f32.mrb[21].mxu1 }
 0x19b   :  { %v10729_v50 = vpack.c.bf16 %v901_v4, %v893_v5  ;;  %v10731_v46 = vpack.c.bf16 %v907_v21, %v899_v34  ;;  %v542_v53 = vadd.f32 %v541_v44, %v10637_v33  ;;  %v761_v54 = vadd.f32 %v760_v48, %v10637_v33  ;;  %v543_v16 = vpop.f32.mrb[6].mxu0  ;;  %v762_v22 = vpop.f32.mrb[22].mxu1 }
 0x19c   :  { %16173 = vst [vmem:[#allocation5_spill] sm:$0xff] %v10723_v28  ;;  %16174 = vst [vmem:[#allocation6_spill] sm:$0xff] %v10725_v47  ;;  %v809_v15 = vmax.f32 %v759_v49, 0.0  ;;  %v803_v14 = vmax.f32 %v540_v43, 0.0  ;;  %v544_v38 = vadd.f32 %v543_v16, %v10644_v18  ;;  %v763_v11 = vadd.f32 %v762_v22, %v10644_v18  ;;  %v545_v57 = vpop.f32.mrb[7].mxu0  ;;  %v764_v1 = vpop.f32.mrb[23].mxu1  ;;  %1028 = vrot.lane.b32.xlu1 %v10723_v28, %s10090_s17 }
 0x19d   :  { %16175 = vst [vmem:[#allocation7_spill] sm:$0xff] %v10729_v50  ;;  %16176 = vst [vmem:[#allocation8_spill] sm:$0xff] %v10731_v46  ;;  %v804_v3 = vmax.f32 %v542_v53, 0.0  ;;  %v810_v51 = vmax.f32 %v761_v54, 0.0  ;;  %v546_v58 = vadd.f32 %v545_v57, %v10644_v18  ;;  %v765_v56 = vadd.f32 %v764_v1, %v10644_v18  ;;  %1030 = vrot.lane.b32.xlu0 %v10729_v50, %s10090_s17 }
 0x19e   :  { %v914_v7 = vmul.f32 %v10603_v35, %v809_v15  ;;  %v811_v13 = vmax.f32 %v544_v38, 0.0  ;;  %v817_v20 = vmax.f32 %v763_v11, 0.0  ;;  %v908_v31 = vmul.f32 %v10698_v52, %v803_v14 }
 0x19f   :  { %v909_v60 = vmul.f32 %v10706_v59, %v804_v3  ;;  %v915_v23 = vmul.f32 %v10607_v39, %v810_v51  ;;  %v812_v34 = vmax.f32 %v546_v58, 0.0  ;;  %v818_v27 = vmax.f32 %v765_v56, 0.0 }
 0x1a0   :  { %v916_v37 = vmul.f32 %v10698_v52, %v811_v13  ;;  %v922_v40 = vmul.f32 %v10603_v35, %v817_v20  ;;  %1165 = vrot.lane.b32.xlu1 %v10723_v28, %s10091_s18 }
 0x1a1   :  { %v917_v0 = vmul.f32 %v10706_v59, %v812_v34  ;;  %v923_v5 = vmul.f32 %v10607_v39, %v818_v27  ;;  %v549_v4 = vpop.f32.mrb[8].mxu0  ;;  %v768_v21 = vpop.f32.mrb[24].mxu1  ;;  %1167 = vrot.lane.b32.xlu0 %v10729_v50, %s10091_s18 }
 0x1a2   :  { %v10755_v36 = vpack.c.bf16 %v916_v37, %v908_v31  ;;  %v10757_v32 = vpack.c.bf16 %v922_v40, %v914_v7  ;;  %v550_v49 = vadd.f32 %v549_v4, %v10657_v63  ;;  %v769_v43 = vadd.f32 %v768_v21, %v10657_v63  ;;  %v551_v44 = vpop.f32.mrb[9].mxu0  ;;  %v770_v48 = vpop.f32.mrb[25].mxu1 }
 0x1a3   :  { %v10761_v53 = vpack.c.bf16 %v917_v0, %v909_v60  ;;  %v10763_v54 = vpack.c.bf16 %v923_v5, %v915_v23  ;;  %v552_v16 = vadd.f32 %v551_v44, %v10657_v63  ;;  %v771_v22 = vadd.f32 %v770_v48, %v10657_v63  ;;  %v553_v15 = vpop.f32.mrb[10].mxu0  ;;  %v772_v14 = vpop.f32.mrb[26].mxu1 }
 0x1a4   :  { %16177 = vst [vmem:[#allocation9_spill] sm:$0xff] %v10755_v36  ;;  %16178 = vst [vmem:[#allocation10_spill] sm:$0xff] %v10757_v32  ;;  %v819_v38 = vmax.f32 %v550_v49, 0.0  ;;  %v825_v11 = vmax.f32 %v769_v43, 0.0  ;;  %v554_v57 = vadd.f32 %v553_v15, %v10664_v24  ;;  %v773_v1 = vadd.f32 %v772_v14, %v10664_v24  ;;  %v555_v3 = vpop.f32.mrb[11].mxu0  ;;  %v774_v51 = vpop.f32.mrb[27].mxu1  ;;  %1302 = vrot.lane.b32.xlu1 %v10723_v28, %s10092_s21 }
 0x1a5   :  { %16179 = vst [vmem:[#allocation11_spill] sm:$0xff] %v10761_v53  ;;  %16180 = vst [vmem:[#allocation12_spill] sm:$0xff] %v10763_v54  ;;  %v820_v58 = vmax.f32 %v552_v16, 0.0  ;;  %v826_v56 = vmax.f32 %v771_v22, 0.0  ;;  %v556_v7 = vadd.f32 %v555_v3, %v10664_v24  ;;  %v775_v13 = vadd.f32 %v774_v51, %v10664_v24  ;;  %1304 = vrot.lane.b32.xlu0 %v10729_v50, %s10092_s21 }
 0x1a6   :  { %v924_v20 = vmul.f32 %v10698_v52, %v819_v38  ;;  %v930_v60 = vmul.f32 %v10603_v35, %v825_v11  ;;  %v827_v23 = vmax.f32 %v554_v57, 0.0  ;;  %v833_v34 = vmax.f32 %v773_v1, 0.0 }
 0x1a7   :  { %v925_v27 = vmul.f32 %v10706_v59, %v820_v58  ;;  %v931_v31 = vmul.f32 %v10607_v39, %v826_v56  ;;  %v828_v37 = vmax.f32 %v556_v7, 0.0  ;;  %v834_v40 = vmax.f32 %v775_v13, 0.0 }
 0x1a8   :  { %v932_v0 = vmul.f32 %v10698_v52, %v827_v23  ;;  %v938_v5 = vmul.f32 %v10603_v35, %v833_v34  ;;  %1439 = vrot.lane.b32.xlu1 %v10723_v28, %s10093_s22 }
 0x1a9   :  { %v933_v4 = vmul.f32 %v10706_v59, %v828_v37  ;;  %v939_v21 = vmul.f32 %v10607_v39, %v834_v40  ;;  %v559_v49 = vpop.f32.mrb[12].mxu0  ;;  %v778_v43 = vpop.f32.mrb[28].mxu1  ;;  %1441 = vrot.lane.b32.xlu0 %v10729_v50, %s10093_s22 }
 0x1aa   :  { %v10787_v44 = vpack.c.bf16 %v932_v0, %v924_v20  ;;  %v10789_v48 = vpack.c.bf16 %v938_v5, %v930_v60  ;;  %v560_v16 = vadd.f32 %v559_v49, %v10673_v10  ;;  %v779_v22 = vadd.f32 %v778_v43, %v10673_v10  ;;  %v561_v15 = vpop.f32.mrb[13].mxu0  ;;  %v780_v14 = vpop.f32.mrb[29].mxu1 }
 0x1ab   :  { %v10793_v38 = vpack.c.bf16 %v933_v4, %v925_v27  ;;  %v10795_v11 = vpack.c.bf16 %v939_v21, %v931_v31  ;;  %v562_v57 = vadd.f32 %v561_v15, %v10673_v10  ;;  %v781_v1 = vadd.f32 %v780_v14, %v10673_v10  ;;  %v563_v3 = vpop.f32.mrb[14].mxu0  ;;  %v782_v51 = vpop.f32.mrb[30].mxu1 }
 0x1ac   :  { %16181 = vst [vmem:[#allocation13_spill] sm:$0xff] %v10789_v48  ;;  %v835_v58 = vmax.f32 %v560_v16, 0.0  ;;  %v841_v56 = vmax.f32 %v779_v22, 0.0  ;;  %v564_v7 = vadd.f32 %v563_v3, %v10677_v30  ;;  %v783_v13 = vadd.f32 %v782_v51, %v10677_v30  ;;  %v565_v20 = vpop.f32.mrb[15].mxu0  ;;  %v784_v60 = vpop.f32.mrb[31].mxu1  ;;  %1032 = vrot.lane.b32.xlu1 %v10639_v17, %s10090_s17 }
 0x1ad   :  { %16182 = vst [vmem:[#allocation14_spill] sm:$0xff] %v10793_v38  ;;  %16183 = vst [vmem:[#allocation15_spill] sm:$0xff] %v10795_v11  ;;  %v836_v23 = vmax.f32 %v562_v57, 0.0  ;;  %v842_v34 = vmax.f32 %v781_v1, 0.0  ;;  %v566_v27 = vadd.f32 %v565_v20, %v10677_v30  ;;  %v785_v31 = vadd.f32 %v784_v60, %v10677_v30  ;;  %1034 = vrot.lane.b32.xlu0 %v10642_v29, %s10090_s17 }
 0x1ae   :  { %v940_v37 = vmul.f32 %v10698_v52, %v835_v58  ;;  %v946_v40 = vmul.f32 %v10603_v35, %v841_v56  ;;  %v843_v0 = vmax.f32 %v564_v7, 0.0  ;;  %v849_v5 = vmax.f32 %v783_v13, 0.0 }
 0x1af   :  { %v941_v4 = vmul.f32 %v10706_v59, %v836_v23  ;;  %v947_v21 = vmul.f32 %v10607_v39, %v842_v34  ;;  %v844_v49 = vmax.f32 %v566_v27, 0.0  ;;  %v850_v43 = vmax.f32 %v785_v31, 0.0 }
 0x1b0   :  { %v948_v16 = vmul.f32 %v10698_v52, %v843_v0  ;;  %v954_v22 = vmul.f32 %v10603_v35, %v849_v5  ;;  %1169 = vrot.lane.b32.xlu1 %v10639_v17, %s10091_s18 }
 0x1b1   :  { %v949_v15 = vmul.f32 %v10706_v59, %v844_v49  ;;  %v955_v14 = vmul.f32 %v10607_v39, %v850_v43  ;;  %v675_v57 = vpop.f32.mrb[16].mxu0  ;;  %1171 = vrot.lane.b32.xlu0 %v10642_v29, %s10091_s18 }
 0x1b2   :  { %v10819_v1 = vpack.c.bf16 %v948_v16, %v940_v37  ;;  %v10821_v3 = vpack.c.bf16 %v954_v22, %v946_v40  ;;  %v676_v51 = vadd.f32 %v675_v57, %v10619_v62  ;;  %v677_v52 = vpop.f32.mrb[17].mxu0 }
 0x1b3   :  { %v10824_v58 = vpack.c.bf16 %v949_v15, %v941_v4  ;;  %v10826_v35 = vpack.c.bf16 %v955_v14, %v947_v21  ;;  %v678_v56 = vadd.f32 %v677_v52, %v10619_v62  ;;  %v679_v59 = vpop.f32.mrb[18].mxu0 }
 0x1b4   :  { %16184 = vst [vmem:[#allocation16_spill] sm:$0xff] %v10819_v1  ;;  %16185 = vst [vmem:[#allocation17_spill] sm:$0xff] %v10821_v3  ;;  %v791_v7 = vmax.f32 %v676_v51, 0.0  ;;  %v680_v39 = vadd.f32 %v679_v59, %v10621_v8  ;;  %v681_v13 = vpop.f32.mrb[19].mxu0  ;;  %1568 = vrot.lane.b32.xlu1 %v10723_v28, %s10094_s23 }
 0x1b5   :  { %16186 = vst [vmem:[#allocation18_spill] sm:$0xff] %v10824_v58  ;;  %16187 = vst [vmem:[#allocation19_spill] sm:$0xff] %v10826_v35  ;;  %v792_v20 = vmax.f32 %v678_v56, 0.0  ;;  %v682_v60 = vadd.f32 %v681_v13, %v10621_v8  ;;  %1308 = vrot.lane.b32.xlu0 %v10642_v29, %s10092_s21 }
 0x1b6   :  { %v896_v23 = vmul.f32 %v10612_v55, %v791_v7  ;;  %v799_v34 = vmax.f32 %v680_v39, 0.0 }
 0x1b7   :  { %v897_v27 = vmul.f32 %v10615_v41, %v792_v20  ;;  %v800_v62 = vmax.f32 %v682_v60, 0.0 }
 0x1b8   :  { %v904_v31 = vmul.f32 %v10612_v55, %v799_v34  ;;  %1306 = vrot.lane.b32.xlu1 %v10639_v17, %s10092_s21 }
 0x1b9   :  { %v905_v37 = vmul.f32 %v10615_v41, %v800_v62  ;;  %v685_v40 = vpop.f32.mrb[20].mxu0  ;;  %1445 = vrot.lane.b32.xlu0 %v10642_v29, %s10093_s22 }
 0x1ba   :  { %v10843_v8 = vpack.c.bf16 %v904_v31, %v896_v23  ;;  %v686_v0 = vadd.f32 %v685_v40, %v10637_v33  ;;  %v687_v5 = vpop.f32.mrb[21].mxu0 }
 0x1bb   :  { %v10846_v4 = vpack.c.bf16 %v905_v37, %v897_v27  ;;  %v688_v21 = vadd.f32 %v687_v5, %v10637_v33  ;;  %v689_v49 = vpop.f32.mrb[22].mxu0 }
 0x1bc   :  { %v807_v43 = vmax.f32 %v686_v0, 0.0  ;;  %v690_v16 = vadd.f32 %v689_v49, %v10644_v18  ;;  %v691_v22 = vpop.f32.mrb[23].mxu0  ;;  %1705 = vrot.lane.b32.xlu1 %v10723_v28, %s10095_s24 }
 0x1bd   :  { %v808_v15 = vmax.f32 %v688_v21, 0.0  ;;  %v692_v14 = vadd.f32 %v691_v22, %v10644_v18  ;;  %1042 = vrot.lane.b32.xlu0 %v10755_v36, %s10090_s17 }
 0x1be   :  { %v912_v57 = vmul.f32 %v10612_v55, %v807_v43  ;;  %v815_v51 = vmax.f32 %v690_v16, 0.0 }
 0x1bf   :  { %v913_v52 = vmul.f32 %v10615_v41, %v808_v15  ;;  %v816_v33 = vmax.f32 %v692_v14, 0.0 }
 0x1c0   :  { %v920_v56 = vmul.f32 %v10612_v55, %v815_v51  ;;  %1443 = vrot.lane.b32.xlu1 %v10639_v17, %s10093_s22 }
 0x1c1   :  { %v921_v59 = vmul.f32 %v10615_v41, %v816_v33  ;;  %v695_v7 = vpop.f32.mrb[24].mxu0  ;;  %1179 = vrot.lane.b32.xlu0 %v10755_v36, %s10091_s18 }
 0x1c2   :  { %v10863_v18 = vpack.c.bf16 %v920_v56, %v912_v57  ;;  %v696_v39 = vadd.f32 %v695_v7, %v10657_v63  ;;  %v697_v13 = vpop.f32.mrb[25].mxu0 }
 0x1c3   :  { %v10866_v20 = vpack.c.bf16 %v921_v59, %v913_v52  ;;  %v698_v60 = vadd.f32 %v697_v13, %v10657_v63  ;;  %v699_v23 = vpop.f32.mrb[26].mxu0 }
 0x1c4   :  { %16188 = vst [vmem:[#allocation20_spill] sm:$0xff] %v10863_v18  ;;  %v823_v34 = vmax.f32 %v696_v39, 0.0  ;;  %v700_v27 = vadd.f32 %v699_v23, %v10664_v24  ;;  %v701_v62 = vpop.f32.mrb[27].mxu0  ;;  %1570 = vrot.lane.b32.xlu1 %v10729_v50, %s10094_s23 }
 0x1c5   :  { %v824_v31 = vmax.f32 %v698_v60, 0.0  ;;  %v702_v37 = vadd.f32 %v701_v62, %v10664_v24  ;;  %1316 = vrot.lane.b32.xlu0 %v10755_v36, %s10092_s21 }
 0x1c6   :  { %v928_v40 = vmul.f32 %v10612_v55, %v823_v34  ;;  %v831_v0 = vmax.f32 %v700_v27, 0.0 }
 0x1c7   :  { %v929_v5 = vmul.f32 %v10615_v41, %v824_v31  ;;  %v832_v63 = vmax.f32 %v702_v37, 0.0 }
 0x1c8   :  { %v936_v21 = vmul.f32 %v10612_v55, %v831_v0  ;;  %1707 = vrot.lane.b32.xlu1 %v10729_v50, %s10095_s24 }
 0x1c9   :  { %v937_v49 = vmul.f32 %v10615_v41, %v832_v63  ;;  %v705_v43 = vpop.f32.mrb[28].mxu0  ;;  %1453 = vrot.lane.b32.xlu0 %v10755_v36, %s10093_s22 }
 0x1ca   :  { %v10883_v24 = vpack.c.bf16 %v936_v21, %v928_v40  ;;  %v706_v16 = vadd.f32 %v705_v43, %v10673_v10  ;;  %v707_v22 = vpop.f32.mrb[29].mxu0 }
 0x1cb   :  { %v10886_v15 = vpack.c.bf16 %v937_v49, %v929_v5  ;;  %v708_v14 = vadd.f32 %v707_v22, %v10673_v10  ;;  %v709_v57 = vpop.f32.mrb[30].mxu0 }
 0x1cc   :  { %16189 = vst [vmem:[#allocation21_spill] sm:$0xff] %v10883_v24  ;;  %v839_v51 = vmax.f32 %v706_v16, 0.0  ;;  %v710_v52 = vadd.f32 %v709_v57, %v10677_v30  ;;  %v711_v33 = vpop.f32.mrb[31].mxu0  ;;  %1844 = vrot.lane.b32.xlu1 %v10729_v50, %s10096_s25 }
 0x1cd   :  { %v840_v56 = vmax.f32 %v708_v14, 0.0  ;;  %v712_v59 = vadd.f32 %v711_v33, %v10677_v30  ;;  %1183 = vrot.lane.b32.xlu0 %v10659_v9, %s10091_s18 }
 0x1ce   :  { %v944_v7 = vmul.f32 %v10612_v55, %v839_v51  ;;  %v847_v39 = vmax.f32 %v710_v52, 0.0 }
 0x1cf   :  { %v945_v13 = vmul.f32 %v10615_v41, %v840_v56  ;;  %v848_v10 = vmax.f32 %v712_v59, 0.0 }
 0x1d0   :  { %v952_v60 = vmul.f32 %v10612_v55, %v847_v39  ;;  %1046 = vrot.lane.b32.xlu1 %v10659_v9, %s10090_s17 }
 0x1d1   :  { %v953_v23 = vmul.f32 %v10615_v41, %v848_v10  ;;  %1584 = vrot.lane.b32.xlu0 %v10755_v36, %s10094_s23 }
 0x1d2   :  { %v10903_v30 = vpack.c.bf16 %v952_v60, %v944_v7 }
 0x1d3   :  { %v10905_v34 = vpack.c.bf16 %v953_v23, %v945_v13 }
 0x1d4   :  { %16190 = vst [vmem:[#allocation22_spill] sm:$0xff] %v10903_v30  ;;  %1588 = vrot.lane.b32.xlu1 %v10659_v9, %s10094_s23 }
 0x1d5   :  { %1320 = vrot.lane.b32.xlu0 %v10659_v9, %s10092_s21 }
 0x1d8   :  { %1725 = vrot.lane.b32.xlu1 %v10659_v9, %s10095_s24 }
 0x1d9   :  { %1721 = vrot.lane.b32.xlu0 %v10755_v36, %s10095_s24 }
 0x1dc   :  { %1044 = vrot.lane.b32.xlu1 %v10761_v53, %s10090_s17 }
 0x1dd   :  { %1048 = vrot.lane.b32.xlu0 %v10662_v61, %s10090_s17 }
 0x1e0   :  { %1181 = vrot.lane.b32.xlu1 %v10761_v53, %s10091_s18 }
 0x1e1   :  { %1586 = vrot.lane.b32.xlu0 %v10761_v53, %s10094_s23 }
 0x1e4   :  { %1318 = vrot.lane.b32.xlu1 %v10761_v53, %s10092_s21 }
 0x1e5   :  { %1723 = vrot.lane.b32.xlu0 %v10761_v53, %s10095_s24 }
 0x1e8   :  { %1455 = vrot.lane.b32.xlu1 %v10761_v53, %s10093_s22 }
 0x1e9   :  { %1604 = vrot.lane.b32.xlu0 %v10679_v25, %s10094_s23 }
 0x1ec   :  { %1185 = vrot.lane.b32.xlu1 %v10662_v61, %s10091_s18 }
 0x1ed   :  { %1741 = vrot.lane.b32.xlu0 %v10679_v25, %s10095_s24 }
 0x1ee   :  { %v10951_v55 = vpop.permute.xlu0 %1572 }
 0x1ef   :  { %16191 = vst [vmem:[#allocation23_spill] sm:$0xff] %v10951_v55 }
 0x1f0   :  { %1322 = vrot.lane.b32.xlu1 %v10662_v61, %s10092_s21 }
 0x1f1   :  { %1058 = vrot.lane.b32.xlu0 %v10793_v38, %s10090_s17 }
 0x1f2   :  { %v10957_v41 = vpop.permute.xlu0 %1709 }
 0x1f3   :  { %16192 = vst [vmem:[#allocation24_spill] sm:$0xff] %v10957_v41 }
 0x1f4   :  { %1056 = vrot.lane.b32.xlu1 %v10787_v44, %s10090_s17 }
 0x1f5   :  { %1195 = vrot.lane.b32.xlu0 %v10793_v38, %s10091_s18 }
 0x1f6   :  { %v10967_v27 = vpop.permute.xlu0 %1846 }
 0x1f7   :  { %16193 = vst [vmem:[#allocation25_spill] sm:$0xff] %v10967_v27 }
 0x1f8   :  { %1193 = vrot.lane.b32.xlu1 %v10787_v44, %s10091_s18 }
 0x1f9   :  { %1332 = vrot.lane.b32.xlu0 %v10793_v38, %s10092_s21 }
 0x1fc   :  { %1330 = vrot.lane.b32.xlu1 %v10787_v44, %s10092_s21 }
 0x1fd   :  { %1469 = vrot.lane.b32.xlu0 %v10793_v38, %s10093_s22 }
 0x200   :  { %1467 = vrot.lane.b32.xlu1 %v10787_v44, %s10093_s22 }
 0x201   :  { %1062 = vrot.lane.b32.xlu0 %v10682_v2, %s10090_s17 }
 0x204   :  { %1060 = vrot.lane.b32.xlu1 %v10679_v25, %s10090_s17 }
 0x205   :  { %1199 = vrot.lane.b32.xlu0 %v10682_v2, %s10091_s18 }
 0x208   :  { %1197 = vrot.lane.b32.xlu1 %v10679_v25, %s10091_s18 }
 0x209   :  { %1336 = vrot.lane.b32.xlu0 %v10682_v2, %s10092_s21 }
 0x20c   :  { %1600 = vrot.lane.b32.xlu1 %v10787_v44, %s10094_s23 }
 0x20d   :  { %1070 = vrot.lane.b32.xlu0 %v10819_v1, %s10090_s17 }
 0x20e   :  { %v10973_v62 = vpop.permute.xlu1 %1028 }
 0x20f   :  { %v1031_v31 = vpop.permute.xlu0 %1030 }
 0x210   :  { %1334 = vrot.lane.b32.xlu1 %v10679_v25, %s10092_s21  ;;  %v1085_v37 = vsel %vm86_vm0, %v10973_v62, %v1031_v31 }
 0x211   :  { %1207 = vrot.lane.b32.xlu0 %v10819_v1, %s10091_s18  ;;  %2301 = vmatprep.subr.bf16.mxu0 %v1085_v37 }
 0x212   :  { %v10981_v40 = vpop.permute.xlu1 %1165 }
 0x213   :  { %v10983_v0 = vpop.permute.xlu0 %1167 }
 0x214   :  { %1737 = vrot.lane.b32.xlu1 %v10787_v44, %s10095_s24 }
 0x215   :  { %1344 = vrot.lane.b32.xlu0 %v10819_v1, %s10092_s21 }
 0x216   :  { %v10989_v5 = vpop.permute.xlu1 %1302 }
 0x217   :  { %v10991_v63 = vpop.permute.xlu0 %1304 }
 0x218   :  { %1602 = vrot.lane.b32.xlu1 %v10793_v38, %s10094_s23 }
 0x219   :  { %1481 = vrot.lane.b32.xlu0 %v10819_v1, %s10093_s22 }
 0x21a   :  { %v10997_v21 = vpop.permute.xlu1 %1439 }
 0x21b   :  { %v10999_v49 = vpop.permute.xlu0 %1441 }
 0x21c   :  { %1739 = vrot.lane.b32.xlu1 %v10793_v38, %s10095_s24 }
 0x21d   :  { %1211 = vrot.lane.b32.xlu0 %v10700_v42, %s10091_s18 }
 0x21e   :  { %v1033_v43 = vpop.permute.xlu1 %1032 }
 0x21f   :  { %v11005_v16 = vpop.permute.xlu0 %1034  ;;  %v1086_v14 = vsel %vm86_vm0, %v1031_v31, %v1033_v43 }
 0x220   :  { %16194 = vst [vmem:[#allocation26_spill] sm:$0xff] %v11005_v16  ;;  %1074 = vrot.lane.b32.xlu1 %v10700_v42, %s10090_s17  ;;  %v1087_v22 = vsel %vm86_vm0, %v1033_v43, %v11005_v16 }
 0x221   :  { %1616 = vrot.lane.b32.xlu0 %v10819_v1, %s10094_s23  ;;  %2520 = vmatprep.subr.bf16.mxu1 %v1087_v22 }
 0x222   :  { %2521 = vmatpush1.bf16.msra.mxu1 %v1086_v14  ;;  %v11014_v57 = vpop.permute.xlu1 %1169 }
 0x223   :  { %v11016_v51 = vpop.permute.xlu0 %1171 }
 0x224   :  { %16195 = vst [vmem:[#allocation27_spill] sm:$0xff] %v11016_v51  ;;  %1620 = vrot.lane.b32.xlu1 %v10700_v42, %s10094_s23 }
 0x225   :  { %1348 = vrot.lane.b32.xlu0 %v10700_v42, %s10092_s21 }
 0x226   :  { %v11022_v52 = vpop.permute.xlu1 %1568 }
 0x227   :  { %16196 = vst [vmem:[#allocation28_spill] sm:$0xff] %v11022_v52  ;;  %v11024_v33 = vpop.permute.xlu0 %1308  ;;  %v9674_v52 = vld [vmem:[%s15889_s3 + $0x4] ss:$20 sps:$4 sm:$0xff]  }
 0x228   :  { %16197 = vst [vmem:[#allocation29_spill] sm:$0xff] %v11024_v33  ;;  %1757 = vrot.lane.b32.xlu1 %v10700_v42, %s10095_s24  ;;  %2552 = vmatprep.mubr.bf16.mxu1 %v9674_v52 }
 0x229   :  { %1753 = vrot.lane.b32.xlu0 %v10819_v1, %s10095_s24  ;;  %2333 = vmatprep.mubr.bf16.mxu0 %v9674_v52 }
 0x22a   :  { %v11030_v56 = vpop.permute.xlu1 %1306 }
 0x22b   :  { %v11032_v59 = vpop.permute.xlu0 %1445 }
 0x22c   :  { %1072 = vrot.lane.b32.xlu1 %v10824_v58, %s10090_s17 }
 0x22d   :  { %1076 = vrot.lane.b32.xlu0 %v10709_v6, %s10090_s17 }
 0x22e   :  { %v11038_v7 = vpop.permute.xlu1 %1705 }
 0x22f   :  { %16198 = vst [vmem:[#allocation30_spill] sm:$0xff] %v11038_v7  ;;  %v11040_v39 = vpop.permute.xlu0 %1042 }
 0x230   :  { %1209 = vrot.lane.b32.xlu1 %v10824_v58, %s10091_s18 }
 0x231   :  { %1618 = vrot.lane.b32.xlu0 %v10824_v58, %s10094_s23 }
 0x232   :  { %v11046_v13 = vpop.permute.xlu1 %1443 }
 0x233   :  { %v11048_v10 = vpop.permute.xlu0 %1179 }
 0x234   :  { %1346 = vrot.lane.b32.xlu1 %v10824_v58, %s10092_s21 }
 0x235   :  { %1755 = vrot.lane.b32.xlu0 %v10824_v58, %s10095_s24 }
 0x236   :  { %v11054_v60 = vpop.permute.xlu1 %1570 }
 0x237   :  { %16199 = vst [vmem:[#allocation31_spill] sm:$0xff] %v11054_v60  ;;  %v11056_v23 = vpop.permute.xlu0 %1316 }
 0x238   :  { %1483 = vrot.lane.b32.xlu1 %v10824_v58, %s10093_s22 }
 0x239   :  { %994 = vrot.lane.b32.xlu0 %v10763_v54, %s10090_s17 }
 0x23a   :  { %v11062_v31 = vpop.permute.xlu1 %1707 }
 0x23b   :  { %16200 = vst [vmem:[#allocation32_spill] sm:$0xff] %v11062_v31  ;;  %v11064_v37 = vpop.permute.xlu0 %1453 }
 0x23c   :  { %16201 = vst [vmem:[#allocation33_spill] sm:$0xff] %v11064_v37  ;;  %1213 = vrot.lane.b32.xlu1 %v10709_v6, %s10091_s18 }
 0x23d   :  { %1159 = vrot.lane.b32.xlu0 %v10763_v54, %s10091_s18 }
 0x23e   :  { %v11070_v43 = vpop.permute.xlu1 %1844 }
 0x23f   :  { %16202 = vst [vmem:[#allocation34_spill] sm:$0xff] %v11070_v43  ;;  %v11072_v22 = vpop.permute.xlu0 %1183 }
 0x240   :  { %1350 = vrot.lane.b32.xlu1 %v10709_v6, %s10092_s21 }
 0x241   :  { %1296 = vrot.lane.b32.xlu0 %v10763_v54, %s10092_s21 }
 0x242   :  { %v1047_v14 = vpop.permute.xlu1 %1046 }
 0x243   :  { %v11078_v45 = vpop.permute.xlu0 %1584 }
 0x244   :  { %16203 = vst [vmem:[#allocation35_spill] sm:$0xff] %v11078_v45  ;;  %992 = vrot.lane.b32.xlu1 %v10731_v46, %s10090_s17 }
 0x245   :  { %1433 = vrot.lane.b32.xlu0 %v10763_v54, %s10093_s22 }
 0x246   :  { %v11084_v26 = vpop.permute.xlu1 %1588 }
 0x247   :  { %16204 = vst [vmem:[#allocation36_spill] sm:$0xff] %v11084_v26  ;;  %v11086_v12 = vpop.permute.xlu0 %1320 }
 0x248   :  { %1157 = vrot.lane.b32.xlu1 %v10731_v46, %s10091_s18 }
 0x249   :  { %1457 = vrot.lane.b32.xlu0 %v10659_v9, %s10093_s22 }
 0x24a   :  { %v11092_v19 = vpop.permute.xlu1 %1725 }
 0x24b   :  { %16205 = vst [vmem:[#allocation37_spill] sm:$0xff] %v11092_v19  ;;  %v11094_v16 = vpop.permute.xlu0 %1721 }
 0x24c   :  { %16206 = vst [vmem:[#allocation38_spill] sm:$0xff] %v11094_v16  ;;  %1294 = vrot.lane.b32.xlu1 %v10731_v46, %s10092_s21 }
 0x24d   :  { %998 = vrot.lane.b32.xlu0 %v10826_v35, %s10090_s17 }
 0x24e   :  { %v11100_v54 = vpop.permute.xlu1 %1044 }
 0x24f   :  { %v11102_v43 = vpop.permute.xlu0 %1048  ;;  %v1093_v16 = vsel %vm86_vm0, %v11100_v54, %v1047_v14 }
 0x250   :  { %16207 = vst [vmem:[#allocation39_spill] sm:$0xff] %v11102_v43  ;;  %1431 = vrot.lane.b32.xlu1 %v10731_v46, %s10093_s22  ;;  %v1094_v27 = vsel %vm86_vm0, %v1047_v14, %v11102_v43 }
 0x251   :  { %1860 = vrot.lane.b32.xlu0 %v10761_v53, %s10096_s25  ;;  %2522 = vmatprep.subr.bf16.mxu1 %v1094_v27 }
 0x252   :  { %2523 = vmatpush1.bf16.msra.mxu1 %v1093_v16  ;;  %v11112_v19 = vpop.permute.xlu1 %1181 }
 0x253   :  { %v11114_v7 = vpop.permute.xlu0 %1586 }
 0x254   :  { %16208 = vst [vmem:[#allocation40_spill] sm:$0xff] %v11114_v7  ;;  %996 = vrot.lane.b32.xlu1 %v10795_v11, %s10090_s17 }
 0x255   :  { %1858 = vrot.lane.b32.xlu0 %v10755_v36, %s10096_s25 }
 0x256   :  { %v11120_v46 = vpop.permute.xlu1 %1318 }
 0x257   :  { %v11122_v43 = vpop.permute.xlu0 %1723 }
 0x258   :  { %16209 = vst [vmem:[#allocation41_spill] sm:$0xff] %v11122_v43  ;;  %1842 = vrot.lane.b32.xlu1 %v10723_v28, %s10096_s25 }
 0x259   :  { %1473 = vrot.lane.b32.xlu0 %v10682_v2, %s10093_s22 }
 0x25a   :  { %v11128_v27 = vpop.permute.xlu1 %1455 }
 0x25b   :  { %v11130_v16 = vpop.permute.xlu0 %1604 }
 0x25c   :  { %16210 = vst [vmem:[#allocation42_spill] sm:$0xff] %v11130_v16  ;;  %1459 = vrot.lane.b32.xlu1 %v10662_v61, %s10093_s22 }
 0x25d   :  { %1163 = vrot.lane.b32.xlu0 %v10826_v35, %s10091_s18 }
 0x25e   :  { %v11136_v14 = vpop.permute.xlu1 %1185 }
 0x25f   :  { %16211 = vst [vmem:[#allocation43_spill] sm:$0xff] %v11136_v14  ;;  %v11138_v48 = vpop.permute.xlu0 %1741 }
 0x260   :  { %16212 = vst [vmem:[#allocation44_spill] sm:$0xff] %v11138_v48  ;;  %1161 = vrot.lane.b32.xlu1 %v10795_v11, %s10091_s18 }
 0x261   :  { %1878 = vrot.lane.b32.xlu0 %v10679_v25, %s10096_s25 }
 0x262   :  { %v11144_v43 = vpop.permute.xlu1 %1322 }
 0x263   :  { %v11146_v31 = vpop.permute.xlu0 %1058 }
 0x264   :  { %1298 = vrot.lane.b32.xlu1 %v10795_v11, %s10092_s21 }
 0x265   :  { %1485 = vrot.lane.b32.xlu0 %v10700_v42, %s10093_s22 }
 0x266   :  { %v11152_v41 = vpop.permute.xlu1 %1056 }
 0x267   :  { %v11154_v47 = vpop.permute.xlu0 %1195 }
 0x268   :  { %1435 = vrot.lane.b32.xlu1 %v10795_v11, %s10093_s22 }
 0x269   :  { %1892 = vrot.lane.b32.xlu0 %v10824_v58, %s10096_s25 }
 0x26a   :  { %v11160_v48 = vpop.permute.xlu1 %1193 }
 0x26b   :  { %v11162_v3 = vpop.permute.xlu0 %1332 }
 0x26c   :  { %1862 = vrot.lane.b32.xlu1 %v10659_v9, %s10096_s25 }
 0x26d   :  { %1300 = vrot.lane.b32.xlu0 %v10826_v35, %s10092_s21 }
 0x26e   :  { %v11168_v45 = vpop.permute.xlu1 %1330 }
 0x26f   :  { %v11170_v7 = vpop.permute.xlu0 %1469 }
 0x270   :  { %1471 = vrot.lane.b32.xlu1 %v10679_v25, %s10093_s22 }
 0x271   :  { %1890 = vrot.lane.b32.xlu0 %v10819_v1, %s10096_s25 }
 0x272   :  { %v11176_v11 = vpop.permute.xlu1 %1467 }
 0x273   :  { %16213 = vst [vmem:[#allocation45_spill] sm:$0xff] %v11176_v11  ;;  %v11178_v32 = vpop.permute.xlu0 %1062 }
 0x274   :  { %16214 = vst [vmem:[#allocation46_spill] sm:$0xff] %v11178_v32  ;;  %1876 = vrot.lane.b32.xlu1 %v10793_v38, %s10096_s25 }
 0x275   :  { %1983 = vrot.lane.b32.xlu0 %v10639_v17, %s10098_s0 }
 0x276   :  { %v1061_v16 = vpop.permute.xlu1 %1060 }
 0x277   :  { %v11187_v60 = vpop.permute.xlu0 %1199  ;;  %v1101_v26 = vsel %vm86_vm0, %v1061_v16, %v11178_v32  ;;  %v1100_v55 = vsel %vm86_vm0, %v11146_v31, %v1061_v16 }
 0x278   :  { %16215 = vst [vmem:[#allocation47_spill] sm:$0xff] %v11187_v60  ;;  %1874 = vrot.lane.b32.xlu1 %v10787_v44, %s10096_s25  ;;  %2524 = vmatprep.subr.bf16.mxu1 %v1101_v26 }
 0x279   :  { %1576 = vrot.lane.b32.xlu0 %v10843_v8, %s10094_s23  ;;  %2525 = vmatpush1.bf16.msra.mxu1 %v1100_v55 }
 0x27a   :  { %v11197_v17 = vpop.permute.xlu1 %1197 }
 0x27b   :  { %v11199_v11 = vpop.permute.xlu0 %1336 }
 0x27c   :  { %1487 = vrot.lane.b32.xlu1 %v10709_v6, %s10093_s22 }
 0x27d   :  { %1437 = vrot.lane.b32.xlu0 %v10826_v35, %s10093_s22 }
 0x27e   :  { %v11205_v16 = vpop.permute.xlu1 %1600 }
 0x27f   :  { %16216 = vst [vmem:[#allocation48_spill] sm:$0xff] %v11205_v16  ;;  %v11207_v52 = vpop.permute.xlu0 %1070 }
 0x280   :  { %1894 = vrot.lane.b32.xlu1 %v10700_v42, %s10096_s25 }
 0x281   :  { %1997 = vrot.lane.b32.xlu0 %v10761_v53, %s10098_s0 }
 0x282   :  { %v11213_v26 = vpop.permute.xlu1 %1334 }
 0x283   :  { %v11215_v55 = vpop.permute.xlu0 %1207 }
 0x284   :  { %1981 = vrot.lane.b32.xlu1 %v10729_v50, %s10098_s0 }
 0x285   :  { %1590 = vrot.lane.b32.xlu0 %v10662_v61, %s10094_s23 }
 0x286   :  { %v11221_v35 = vpop.permute.xlu1 %1737 }
 0x287   :  { %16217 = vst [vmem:[#allocation49_spill] sm:$0xff] %v11221_v35  ;;  %v11223_v32 = vpop.permute.xlu0 %1344 }
 0x288   :  { %1574 = vrot.lane.b32.xlu1 %v10642_v29, %s10094_s23 }
 0x289   :  { %1995 = vrot.lane.b32.xlu0 %v10755_v36, %s10098_s0 }
 0x28a   :  { %v11229_v16 = vpop.permute.xlu1 %1602 }
 0x28b   :  { %16218 = vst [vmem:[#allocation50_spill] sm:$0xff] %v11229_v16  ;;  %v11231_v53 = vpop.permute.xlu0 %1481 }
 0x28c   :  { %1979 = vrot.lane.b32.xlu1 %v10723_v28, %s10098_s0 }
 0x28d   :  { %2015 = vrot.lane.b32.xlu0 %v10679_v25, %s10098_s0 }
 0x28e   :  { %v11237_v50 = vpop.permute.xlu1 %1739 }
 0x28f   :  { %16219 = vst [vmem:[#allocation51_spill] sm:$0xff] %v11237_v50  ;;  %v1212_v35 = vpop.permute.xlu0 %1211 }
 0x290   :  { %1999 = vrot.lane.b32.xlu1 %v10659_v9, %s10098_s0 }
 0x291   :  { %1608 = vrot.lane.b32.xlu0 %v10883_v24, %s10094_s23 }
 0x292   :  { %v1075_v36 = vpop.permute.xlu1 %1074 }
 0x293   :  { %v11243_v37 = vpop.permute.xlu0 %1616 }
 0x294   :  { %16220 = vst [vmem:[#allocation52_spill] sm:$0xff] %v11243_v37  ;;  %1592 = vrot.lane.b32.xlu1 %v10863_v18, %s10094_s23 }
 0x295   :  { %2029 = vrot.lane.b32.xlu0 %v10824_v58, %s10098_s0 }
 0x296   :  { %v11249_v16 = vpop.permute.xlu1 %1620 }
 0x297   :  { %16221 = vst [vmem:[#allocation53_spill] sm:$0xff] %v11249_v16  ;;  %v11251_v28 = vpop.permute.xlu0 %1348 }
 0x298   :  { %2013 = vrot.lane.b32.xlu1 %v10793_v38, %s10098_s0 }
 0x299   :  { %1622 = vrot.lane.b32.xlu0 %v10709_v6, %s10094_s23 }
 0x29a   :  { %v11257_v50 = vpop.permute.xlu1 %1757 }
 0x29b   :  { %16222 = vst [vmem:[#allocation54_spill] sm:$0xff] %v11257_v50  ;;  %v11259_v25 = vpop.permute.xlu0 %1753 }
 0x29c   :  { %16223 = vst [vmem:[#allocation55_spill] sm:$0xff] %v11259_v25  ;;  %1606 = vrot.lane.b32.xlu1 %v10682_v2, %s10094_s23 }
 0x29d   :  { %2027 = vrot.lane.b32.xlu0 %v10819_v1, %s10098_s0  ;;  %v1224_v1 = vsel %vm120_vm1, %v11014_v57, %v11016_v51 }
 0x29e   :  { %v11265_v37 = vpop.permute.xlu1 %1072 }
 0x29f   :  { %v11267_v16 = vpop.permute.xlu0 %1076  ;;  %v1107_v25 = vsel %vm86_vm0, %v11265_v37, %v1075_v36 }
 0x2a0   :  { %16224 = vst [vmem:[#allocation56_spill] sm:$0xff] %v11267_v16  ;;  %2011 = vrot.lane.b32.xlu1 %v10787_v44, %s10098_s0  ;;  %v1108_v58 = vsel %vm86_vm0, %v1075_v36, %v11267_v16  ;;  %v1223_v36 = vsel %vm120_vm1, %v10983_v0, %v11014_v57 }
 0x2a1   :  { %1038 = vrot.lane.b32.xlu0 %v10846_v4, %s10090_s17  ;;  %2526 = vmatprep.subr.bf16.mxu1 %v1108_v58  ;;  %v1231_v58 = vsel %vm120_vm1, %v11072_v22, %v11136_v14 }
 0x2a2   :  { %2527 = vmatpush1.bf16.msra.mxu1 %v1107_v25  ;;  %v11277_v50 = vpop.permute.xlu1 %1209 }
 0x2a3   :  { %v11282_v38 = vpop.permute.xlu0 %1618  ;;  %2528 = vmatprep.subr.bf16.mxu1 %v1224_v1  ;;  %v1230_v1 = vsel %vm120_vm1, %v11112_v19, %v11072_v22  ;;  %v1237_v22 = vsel %vm120_vm1, %v11154_v47, %v11197_v17 }
 0x2a4   :  { %2031 = vrot.lane.b32.xlu1 %v10700_v42, %s10098_s0 }
 0x2a5   :  { %1713 = vrot.lane.b32.xlu0 %v10843_v8, %s10095_s24 }
 0x2a6   :  { %2529 = vmatpush1.bf16.msra.mxu1 %v1223_v36  ;;  %v11291_v25 = vpop.permute.xlu1 %1346  ;;  %v1238_v36 = vsel %vm120_vm1, %v11197_v17, %v11187_v60 }
 0x2a7   :  { %v11296_v51 = vpop.permute.xlu0 %1755  ;;  %2530 = vmatprep.subr.bf16.mxu1 %v1231_v58 }
 0x2a8   :  { %1624 = vrot.lane.b32.xlu1 %v10903_v30, %s10094_s23 }
 0x2a9   :  { %1052 = vrot.lane.b32.xlu0 %v10866_v20, %s10090_s17 }
 0x2aa   :  { %2531 = vmatpush1.bf16.msra.mxu1 %v1230_v1  ;;  %v11305_v57 = vpop.permute.xlu1 %1483 }
 0x2ab   :  { %v11310_v14 = vpop.permute.xlu0 %994  ;;  %2532 = vmatprep.subr.bf16.mxu1 %v1238_v36  ;;  %v1244_v36 = vsel %vm120_vm1, %v11277_v50, %v1212_v35 }
 0x2ac   :  { %1036 = vrot.lane.b32.xlu1 %v10843_v8, %s10090_s17 }
 0x2ad   :  { %1729 = vrot.lane.b32.xlu0 %v10863_v18, %s10095_s24 }
 0x2ae   :  { %2533 = vmatpush1.bf16.msra.mxu1 %v1237_v22  ;;  %v11319_v58 = vpop.permute.xlu1 %1213  ;;  %v1361_v22 = vsel %vm154_vm2, %v11030_v56, %v11024_v33 }
 0x2af   :  { %v11321_v1 = vpop.permute.xlu0 %1159  ;;  %v1245_v60 = vsel %vm120_vm1, %v1212_v35, %v11319_v58  ;;  %v1360_v35 = vsel %vm154_vm2, %v10991_v63, %v11030_v56  ;;  %v1092_v56 = vsel %vm86_vm0, %v11040_v39, %v11100_v54  ;;  %v1147_v54 = vsel %vm86_vm0, %v11310_v14, %v11040_v39 }
 0x2b0   :  { %16225 = vst [vmem:[#allocation57_spill] sm:$0xff] %v11321_v1  ;;  %1711 = vrot.lane.b32.xlu1 %v10642_v29, %s10095_s24  ;;  %2534 = vmatprep.subr.bf16.mxu1 %v1245_v60 }
 0x2b1   :  { %1066 = vrot.lane.b32.xlu0 %v10886_v15, %s10090_s17 }
 0x2b2   :  { %2535 = vmatpush1.bf16.msra.mxu1 %v1244_v36  ;;  %v11331_v17 = vpop.permute.xlu1 %1350  ;;  %v1368_v36 = vsel %vm154_vm2, %v11086_v12, %v11144_v43 }
 0x2b3   :  { %v11336_v16 = vpop.permute.xlu0 %1296  ;;  %2536 = vmatprep.subr.bf16.mxu1 %v1361_v22  ;;  %v1382_v39 = vsel %vm154_vm2, %v11251_v28, %v11331_v17 }
 0x2b4   :  { %16226 = vst [vmem:[#allocation58_spill] sm:$0xff] %v11336_v16  ;;  %1050 = vrot.lane.b32.xlu1 %v10863_v18, %s10090_s17 }
 0x2b5   :  { %1745 = vrot.lane.b32.xlu0 %v10883_v24, %s10095_s24 }
 0x2b6   :  { %2537 = vmatpush1.bf16.msra.mxu1 %v1360_v35  ;;  %v11345_v60 = vpop.permute.xlu1 %992  ;;  %v1367_v35 = vsel %vm154_vm2, %v11120_v46, %v11086_v12  ;;  %v1099_v12 = vsel %vm86_vm0, %v11152_v41, %v11146_v31  ;;  %v1381_v31 = vsel %vm154_vm2, %v11291_v25, %v11251_v28  ;;  %v1497_v28 = vsel %vm188_vm3, %v10999_v49, %v11046_v13 }
 0x2b7   :  { %v11350_v33 = vpop.permute.xlu0 %1433  ;;  %2538 = vmatprep.subr.bf16.mxu1 %v1368_v36  ;;  %v1143_v22 = vsel %vm86_vm0, %v11345_v60, %v10973_v62  ;;  %v1375_v62 = vsel %vm154_vm2, %v11213_v26, %v11199_v11 }
 0x2b8   :  { %16227 = vst [vmem:[#allocation59_spill] sm:$0xff] %v11350_v33  ;;  %1727 = vrot.lane.b32.xlu1 %v10662_v61, %s10095_s24  ;;  %2302 = vmatpush1.bf16.msra.mxu0 %v1143_v22 }
 0x2b9   :  { %1761 = vrot.lane.b32.xlu0 %v10903_v30, %s10095_s24  ;;  %2303 = vmatprep.subr.bf16.mxu0 %v1092_v56  ;;  %v1374_v56 = vsel %vm154_vm2, %v11162_v3, %v11213_v26 }
 0x2ba   :  { %2539 = vmatpush1.bf16.msra.mxu1 %v1367_v35  ;;  %v11365_v36 = vpop.permute.xlu1 %1157 }
 0x2bb   :  { %v1458_v22 = vpop.permute.xlu0 %1457  ;;  %2540 = vmatprep.subr.bf16.mxu1 %v1375_v62 }
 0x2bc   :  { %1064 = vrot.lane.b32.xlu1 %v10883_v24, %s10090_s17  ;;  %2304 = vmatpush1.bf16.msra.mxu0 %v1147_v54  ;;  %v1498_v54 = vsel %vm188_vm3, %v11046_v13, %v11032_v59 }
 0x2bd   :  { %1175 = vrot.lane.b32.xlu0 %v10846_v4, %s10091_s18  ;;  %2305 = vmatprep.subr.bf16.mxu0 %v1099_v12 }
 0x2be   :  { %2541 = vmatpush1.bf16.msra.mxu1 %v1374_v56  ;;  %v11383_v35 = vpop.permute.xlu1 %1294 }
 0x2bf   :  { %16228 = vst [vmem:[#allocation60_spill] sm:$0xff] %v11383_v35  ;;  %v11388_v62 = vpop.permute.xlu0 %998  ;;  %2542 = vmatprep.subr.bf16.mxu1 %v1382_v39 }
 0x2c0   :  { %16229 = vst [vmem:[#allocation61_spill] sm:$0xff] %v11388_v62  ;;  %1743 = vrot.lane.b32.xlu1 %v10682_v2, %s10095_s24 }
 0x2c1   :  { %1850 = vrot.lane.b32.xlu0 %v10843_v8, %s10096_s25 }
 0x2c2   :  { %2543 = vmatpush1.bf16.msra.mxu1 %v1381_v31  ;;  %v11397_v26 = vpop.permute.xlu1 %1431 }
 0x2c3   :  { %16230 = vst [vmem:[#allocation62_spill] sm:$0xff] %v11397_v26  ;;  %v11402_v12 = vpop.permute.xlu0 %1860  ;;  %2544 = vmatprep.subr.bf16.mxu1 %v1498_v54  ;;  %v1106_v54 = vsel %vm86_vm0, %v11207_v52, %v11265_v37  ;;  %v1222_v37 = vsel %vm120_vm1, %v10981_v40, %v10983_v0  ;;  %v1229_v0 = vsel %vm120_vm1, %v11048_v10, %v11112_v19 }
 0x2c4   :  { %1078 = vrot.lane.b32.xlu1 %v10903_v30, %s10090_s17  ;;  %v1236_v19 = vsel %vm120_vm1, %v11160_v48, %v11154_v47 }
 0x2c5   :  { %1189 = vrot.lane.b32.xlu0 %v10866_v20, %s10091_s18 }
 0x2c6   :  { %2545 = vmatpush1.bf16.msra.mxu1 %v1497_v28  ;;  %v11411_v56 = vpop.permute.xlu1 %996 }
 0x2c7   :  { %v11413_v39 = vpop.permute.xlu0 %1858  ;;  %v1151_v31 = vsel %vm86_vm0, %v11411_v56, %v11152_v41  ;;  %v1155_v41 = vsel %vm86_vm0, %v11388_v62, %v11207_v52  ;;  %v1280_v52 = vsel %vm120_vm1, %v11365_v36, %v10981_v40 }
 0x2c8   :  { %16231 = vst [vmem:[#allocation63_spill] sm:$0xff] %v11413_v39  ;;  %1759 = vrot.lane.b32.xlu1 %v10709_v6, %s10095_s24  ;;  %2306 = vmatpush1.bf16.msra.mxu0 %v1151_v31 }
 0x2c9   :  { %1866 = vrot.lane.b32.xlu0 %v10863_v18, %s10096_s25  ;;  %2307 = vmatprep.subr.bf16.mxu0 %v1106_v54 }
 0x2ca   :  { %v11425_v13 = vpop.permute.xlu1 %1842 }
 0x2cb   :  { %16232 = vst [vmem:[#allocation64_spill] sm:$0xff] %v11425_v13  ;;  %v11427_v28 = vpop.permute.xlu0 %1473 }
 0x2cc   :  { %1173 = vrot.lane.b32.xlu1 %v10843_v8, %s10091_s18  ;;  %2308 = vmatpush1.bf16.msra.mxu0 %v1155_v41  ;;  %v1504_v41 = vsel %vm188_vm3, %v11128_v27, %v1458_v22 }
 0x2cd   :  { %1203 = vrot.lane.b32.xlu0 %v10886_v15, %s10091_s18  ;;  %2309 = vmatprep.subr.bf16.mxu0 %v1222_v37 }
 0x2ce   :  { %v11439_v31 = vpop.permute.xlu1 %1459 }
 0x2cf   :  { %v11441_v54 = vpop.permute.xlu0 %1163  ;;  %v1505_v62 = vsel %vm188_vm3, %v1458_v22, %v11439_v31 }
 0x2d0   :  { %16233 = vst [vmem:[#allocation65_spill] sm:$0xff] %v11441_v54  ;;  %1848 = vrot.lane.b32.xlu1 %v10642_v29, %s10096_s25  ;;  %2310 = vmatpush1.bf16.msra.mxu0 %v1280_v52 }
 0x2d1   :  { %2546 = vmatprep.subr.bf16.mxu1 %v1505_v62  ;;  %1080 = vrot.lane.b32.xlu0 %v10905_v34, %s10090_s17  ;;  %v1284_v62 = vsel %vm120_vm1, %v11321_v1, %v11048_v10  ;;  %v1243_v10 = vsel %vm120_vm1, %v11215_v55, %v11277_v50  ;;  %v1359_v50 = vsel %vm154_vm2, %v10989_v5, %v10991_v63 }
 0x2d2   :  { %2311 = vmatprep.subr.bf16.mxu0 %v1229_v0  ;;  %2547 = vmatpush1.bf16.msra.mxu1 %v1504_v41  ;;  %v11457_v40 = vpop.permute.xlu1 %1161  ;;  %v1366_v63 = vsel %vm154_vm2, %v11056_v23, %v11120_v46  ;;  %v1373_v46 = vsel %vm154_vm2, %v11168_v45, %v11162_v3 }
 0x2d3   :  { %16234 = vst [vmem:[#allocation66_spill] sm:$0xff] %v11457_v40  ;;  %v11459_v37 = vpop.permute.xlu0 %1878  ;;  %v1288_v0 = vsel %vm120_vm1, %v11457_v40, %v11160_v48  ;;  %v1292_v48 = vsel %vm120_vm1, %v11441_v54, %v11215_v55  ;;  %v1417_v55 = vsel %vm154_vm2, %v11383_v35, %v10989_v5 }
 0x2d4   :  { %1187 = vrot.lane.b32.xlu1 %v10863_v18, %s10091_s18  ;;  %2312 = vmatpush1.bf16.msra.mxu0 %v1284_v62 }
 0x2d5   :  { %1882 = vrot.lane.b32.xlu0 %v10883_v24, %s10096_s25  ;;  %2313 = vmatprep.subr.bf16.mxu0 %v1236_v19 }
 0x2d6   :  { %v11471_v22 = vpop.permute.xlu1 %1298 }
 0x2d7   :  { %16235 = vst [vmem:[#allocation67_spill] sm:$0xff] %v11471_v22  ;;  %v1486_v52 = vpop.permute.xlu0 %1485 }
 0x2d8   :  { %1864 = vrot.lane.b32.xlu1 %v10662_v61, %s10096_s25  ;;  %2314 = vmatpush1.bf16.msra.mxu0 %v1288_v0 }
 0x2d9   :  { %1217 = vrot.lane.b32.xlu0 %v10905_v34, %s10091_s18  ;;  %2315 = vmatprep.subr.bf16.mxu0 %v1243_v10 }
 0x2da   :  { %v11483_v47 = vpop.permute.xlu1 %1435 }
 0x2db   :  { %16236 = vst [vmem:[#allocation68_spill] sm:$0xff] %v11483_v47  ;;  %v11485_v41 = vpop.permute.xlu0 %1892 }
 0x2dc   :  { %1201 = vrot.lane.b32.xlu1 %v10883_v24, %s10091_s18  ;;  %2316 = vmatpush1.bf16.msra.mxu0 %v1292_v48  ;;  %v1421_v48 = vsel %vm154_vm2, %v11336_v16, %v11056_v23 }
 0x2dd   :  { %1898 = vrot.lane.b32.xlu0 %v10903_v30, %s10096_s25  ;;  %2317 = vmatprep.subr.bf16.mxu0 %v1359_v50 }
 0x2de   :  { %v11497_v62 = vpop.permute.xlu1 %1862 }
 0x2df   :  { %v11499_v19 = vpop.permute.xlu0 %1300 }
 0x2e0   :  { %16237 = vst [vmem:[#allocation69_spill] sm:$0xff] %v11499_v19  ;;  %1880 = vrot.lane.b32.xlu1 %v10682_v2, %s10096_s25  ;;  %2318 = vmatpush1.bf16.msra.mxu0 %v1417_v55 }
 0x2e1   :  { %1312 = vrot.lane.b32.xlu0 %v10846_v4, %s10092_s21  ;;  %2319 = vmatprep.subr.bf16.mxu0 %v1366_v63  ;;  %v1425_v63 = vsel %vm154_vm2, %v11471_v22, %v11168_v45  ;;  %v1429_v45 = vsel %vm154_vm2, %v11499_v19, %v11223_v32 }
 0x2e2   :  { %v1472_v0 = vpop.permute.xlu1 %1471 }
 0x2e3   :  { %v11511_v10 = vpop.permute.xlu0 %1890  ;;  %v1512_v5 = vsel %vm188_vm3, %v1472_v0, %v11427_v28  ;;  %v1511_v50 = vsel %vm188_vm3, %v11170_v7, %v1472_v0  ;;  %v1380_v0 = vsel %vm154_vm2, %v11223_v32, %v11291_v25  ;;  %v1496_v25 = vsel %vm188_vm3, %v10997_v21, %v10999_v49  ;;  %v16242_v49 = vld [vmem:[#allocation33_spill] sm:$0xff] }
 0x2e4   :  { %16238 = vst [vmem:[#allocation70_spill] sm:$0xff] %v11511_v10  ;;  %1215 = vrot.lane.b32.xlu1 %v10903_v30, %s10091_s18  ;;  %2320 = vmatpush1.bf16.msra.mxu0 %v1421_v48  ;;  %v1554_v32 = vsel %vm188_vm3, %v11397_v26, %v10997_v21 }
 0x2e5   :  { %2548 = vmatprep.subr.bf16.mxu1 %v1512_v5  ;;  %1326 = vrot.lane.b32.xlu0 %v10866_v20, %s10092_s21 }
 0x2e6   :  { %2321 = vmatprep.subr.bf16.mxu0 %v1373_v46  ;;  %2549 = vmatpush1.bf16.msra.mxu1 %v1511_v50  ;;  %v11527_v23 = vpop.permute.xlu1 %1876 }
 0x2e7   :  { %v11529_v55 = vpop.permute.xlu0 %1983 }
 0x2e8   :  { %1896 = vrot.lane.b32.xlu1 %v10709_v6, %s10096_s25  ;;  %2322 = vmatpush1.bf16.msra.mxu0 %v1425_v63  ;;  %v1503_v63 = vsel %vm188_vm3, %v16242_v49, %v11128_v27  ;;  %v1558_v27 = vsel %vm188_vm3, %v11350_v33, %v16242_v49 }
 0x2e9   :  { %1340 = vrot.lane.b32.xlu0 %v10886_v15, %s10092_s21  ;;  %2323 = vmatprep.subr.bf16.mxu0 %v1380_v0  ;;  %v1518_v0 = vsel %vm188_vm3, %v11305_v57, %v1486_v52 }
 0x2ea   :  { %v11541_v3 = vpop.permute.xlu1 %1874 }
 0x2eb   :  { %16239 = vst [vmem:[#allocation71_spill] sm:$0xff] %v11541_v3  ;;  %v11543_v48 = vpop.permute.xlu0 %1576 }
 0x2ec   :  { %16240 = vst [vmem:[#allocation72_spill] sm:$0xff] %v11543_v48  ;;  %1310 = vrot.lane.b32.xlu1 %v10843_v8, %s10092_s21  ;;  %2324 = vmatpush1.bf16.msra.mxu0 %v1429_v45  ;;  %v11578_v45 = vld [vmem:[%s15889_s3] ss:$20 sps:$4 sm:$0xff]  }
 0x2ed   :  { %1354 = vrot.lane.b32.xlu0 %v10905_v34, %s10092_s21  ;;  %2325 = vmatprep.subr.bf16.mxu0 %v1496_v25 }
 0x2ee   :  { %v11555_v5 = vpop.permute.xlu1 %1487 }
 0x2ef   :  { %v11557_v50 = vpop.permute.xlu0 %1437  ;;  %v1519_v46 = vsel %vm188_vm3, %v1486_v52, %v11555_v5  ;;  %v16243_v52 = vld [vmem:[#allocation45_spill] sm:$0xff] }
 0x2f0   :  { %16241 = vst [vmem:[#allocation73_spill] sm:$0xff] %v11557_v50  ;;  %1324 = vrot.lane.b32.xlu1 %v10863_v18, %s10092_s21  ;;  %2326 = vmatpush1.bf16.msra.mxu0 %v1554_v32  ;;  %v1510_v32 = vsel %vm188_vm3, %v16243_v52, %v11170_v7  ;;  %v1562_v7 = vsel %vm188_vm3, %v11483_v47, %v16243_v52 }
 0x2f1   :  { %2550 = vmatprep.subr.bf16.mxu1 %v1519_v46  ;;  %1449 = vrot.lane.b32.xlu0 %v10846_v4, %s10093_s22  ;;  %v11596_v46 = vld [vmem:[%s15889_s3 + $0x2c] ss:$20 sps:$4 sm:$0xff]   ;;  %v1566_v52 = vsel %vm188_vm3, %v11557_v50, %v11231_v53 }
 0x2f2   :  { %2327 = vmatprep.subr.bf16.mxu0 %v1503_v63  ;;  %2551 = vmatpush1.bf16.msra.mxu1 %v1518_v0  ;;  %v11573_v21 = vpop.permute.xlu1 %1894  ;;  %16244 = vst [vmem:[#allocation33_spill] sm:$0xff] %v11596_v46  ;;  %v16245_v63 = vld [vmem:[#allocation3_spill] sm:$0xff] }
 0x2f3   :  { %2593 = vmatprep.subr.bf16.mxu1 %v10642_v29  ;;  %v11581_v25 = vpop.permute.xlu0 %1997 }
 0x2f4   :  { %1338 = vrot.lane.b32.xlu1 %v10883_v24, %s10092_s21  ;;  %2328 = vmatpush1.bf16.msra.mxu0 %v1558_v27  ;;  %v1517_v27 = vsel %vm188_vm3, %v11231_v53, %v11305_v57  ;;  %v16249_v57 = vld [vmem:[#allocation7_spill] sm:$0xff]  ;;  %v16251_v53 = vld [vmem:[#allocation4_spill] sm:$0xff] }
 0x2f5   :  { %1987 = vrot.lane.b32.xlu0 %v10843_v8, %s10098_s0  ;;  %2329 = vmatprep.subr.bf16.mxu0 %v1510_v32 }
 0x2f6   :  { %2553 = vmatmul.mubr.bf16.vlgmr.msra.gmra.mrb[32].mxu1 %v11578_v45  ;;  %v11599_v49 = vpop.permute.xlu1 %1981 }
 0x2f7   :  { %2594 = vmatpush1.bf16.msra.mxu1 %v16245_v63  ;;  %v1591_v0 = vpop.permute.xlu0 %1590  ;;  %2562 = vmatprep.mubr.bf16.mxu1 %v11596_v46 }
 0x2f8   :  { %2595 = vmatprep.subr.bf16.mxu1 %v10662_v61  ;;  %1352 = vrot.lane.b32.xlu1 %v10903_v30, %s10092_s21 }
 0x2f9   :  { %2330 = vmatpush1.bf16.msra.mxu0 %v1562_v7  ;;  %1463 = vrot.lane.b32.xlu0 %v10866_v20, %s10093_s22  ;;  %v11626_v7 = vld [vmem:[%s15889_s3 + $0x28] ss:$20 sps:$4 sm:$0xff]  }
 0x2fa   :  { %2331 = vmatprep.subr.bf16.mxu0 %v1517_v27  ;;  %v1575_v32 = vpop.permute.xlu1 %1574  ;;  %16247 = vst [vmem:[#allocation3_spill] sm:$0xff] %v11626_v7 }
 0x2fb   :  { %2596 = vmatpush1.bf16.msra.mxu1 %v10659_v9  ;;  %v11615_v63 = vpop.permute.xlu0 %1995  ;;  %v11633_v9 = vld [vmem:[%s15889_s3 + $0x54] ss:$20 sps:$4 sm:$0xff]   ;;  %v1636_v47 = vsel %vm221_vm4, %v1575_v32, %v11543_v48 }
 0x2fc   :  { %16246 = vst [vmem:[#allocation45_spill] sm:$0xff] %v11615_v63  ;;  %2597 = vmatprep.subr.bf16.mxu1 %v10682_v2  ;;  %1447 = vrot.lane.b32.xlu1 %v10843_v8, %s10093_s22  ;;  %16248 = vst [vmem:[#allocation74_spill] sm:$0xff] %v11633_v9 }
 0x2fd   :  { %2332 = vmatpush1.bf16.msra.mxu0 %v1566_v52  ;;  %2003 = vrot.lane.b32.xlu0 %v10863_v18, %s10098_s0  ;;  %v16252_v52 = vld [vmem:[#allocation5_spill] sm:$0xff] }
 0x2fe   :  { %2374 = vmatprep.subr.bf16.mxu0 %v16249_v57  ;;  %v11636_v27 = vpop.permute.xlu1 %1979  ;;  %2563 = vmatmul.mubr.bf16.gmra.mrb[36].mxu1 %v11626_v7 }
 0x2ff   :  { %16250 = vst [vmem:[#allocation7_spill] sm:$0xff] %v11636_v27  ;;  %2598 = vmatpush1.bf16.msra.mxu1 %v16251_v53  ;;  %v11640_v50 = vpop.permute.xlu0 %2015  ;;  %2572 = vmatprep.mubr.bf16.mxu1 %v11633_v9  ;;  %v16253_v53 = vld [vmem:[#allocation11_spill] sm:$0xff] }
 0x300   :  { %2599 = vmatprep.subr.bf16.mxu1 %v10709_v6  ;;  %1985 = vrot.lane.b32.xlu1 %v10642_v29, %s10098_s0  ;;  %v11664_v29 = vld [vmem:[%s15889_s3 + $0x50] ss:$20 sps:$4 sm:$0xff]  }
 0x301   :  { %2334 = vmatmul.mubr.bf16.vlgmr.msra.gmra.mrb[32].mxu0 %v11578_v45  ;;  %1477 = vrot.lane.b32.xlu0 %v10886_v15, %s10093_s22  ;;  %16255 = vst [vmem:[#allocation5_spill] sm:$0xff] %v11664_v29 }
 0x302   :  { %2375 = vmatpush1.bf16.msra.mxu0 %v16252_v52  ;;  %v11650_v57 = vpop.permute.xlu1 %1999  ;;  %2343 = vmatprep.mubr.bf16.mxu0 %v11596_v46  ;;  %v16256_v52 = vld [vmem:[#allocation9_spill] sm:$0xff] }
 0x303   :  { %2376 = vmatprep.subr.bf16.mxu0 %v16253_v53  ;;  %2600 = vmatpush1.bf16.msra.mxu1 %v10700_v42  ;;  %v11657_v33 = vpop.permute.xlu0 %1608  ;;  %v16257_v42 = vld [vmem:[#allocation23_spill] sm:$0xff] }
 0x304   :  { %16254 = vst [vmem:[#allocation4_spill] sm:$0xff] %v11657_v33  ;;  %2601 = vmatprep.subr.bf16.mxu1 %v1636_v47  ;;  %1461 = vrot.lane.b32.xlu1 %v10863_v18, %s10093_s22  ;;  %v1635_v53 = vsel %vm221_vm4, %v16257_v42, %v1575_v32  ;;  %v16259_v47 = vld [vmem:[#allocation14_spill] sm:$0xff]  ;;  %v16260_v32 = vld [vmem:[#allocation36_spill] sm:$0xff] }
 0x305   :  { %2019 = vrot.lane.b32.xlu0 %v10883_v24, %s10098_s0 }
 0x306   :  { %2377 = vmatpush1.bf16.msra.mxu0 %v16256_v52  ;;  %v11671_v26 = vpop.permute.xlu1 %1592  ;;  %2573 = vmatmul.mubr.bf16.gmra.mrb[40].mxu1 %v11664_v29  ;;  %v1642_v52 = vsel %vm221_vm4, %v16260_v32, %v1591_v0 }
 0x307   :  { %16258 = vst [vmem:[#allocation11_spill] sm:$0xff] %v11671_v26  ;;  %2378 = vmatprep.subr.bf16.mxu0 %v16259_v47  ;;  %2602 = vmatpush1.bf16.msra.mxu1 %v1635_v53  ;;  %v11675_v19 = vpop.permute.xlu0 %2029  ;;  %v1643_v22 = vsel %vm221_vm4, %v1591_v0, %v11671_v26  ;;  %v11693_v47 = vld [vmem:[%s15889_s3 + $0x7c] ss:$20 sps:$4 sm:$0xff]   ;;  %v11709_v0 = vld [vmem:[%s15889_s3 + $0xc] ss:$20 sps:$4 sm:$0xff]  }
 0x308   :  { %2001 = vrot.lane.b32.xlu1 %v10662_v61, %s10098_s0  ;;  %2603 = vmatprep.subr.bf16.mxu1 %v1643_v22  ;;  %16261 = vst [vmem:[#allocation9_spill] sm:$0xff] %v11693_v47  ;;  %v16262_v61 = vld [vmem:[#allocation18_spill] sm:$0xff]  ;;  %16264 = vst [vmem:[#allocation14_spill] sm:$0xff] %v11709_v0 }
 0x309   :  { %1491 = vrot.lane.b32.xlu0 %v10905_v34, %s10093_s22  ;;  %2344 = vmatmul.mubr.bf16.gmra.mrb[36].mxu0 %v11626_v7 }
 0x30a   :  { %2379 = vmatpush1.bf16.msra.mxu0 %v10787_v44  ;;  %v11687_v53 = vpop.permute.xlu1 %2013  ;;  %2353 = vmatprep.mubr.bf16.mxu0 %v11633_v9  ;;  %v11701_v44 = vld [vmem:[%s15889_s3 + $0x78] ss:$20 sps:$4 sm:$0xff]   ;;  %v16268_v9 = vld [vmem:[#allocation42_spill] sm:$0xff] }
 0x30b   :  { %2380 = vmatprep.subr.bf16.mxu0 %v16262_v61  ;;  %2604 = vmatpush1.bf16.msra.mxu1 %v1642_v52  ;;  %v1623_v22 = vpop.permute.xlu0 %1622  ;;  %16263 = vst [vmem:[#allocation23_spill] sm:$0xff] %v11701_v44  ;;  %v16265_v52 = vld [vmem:[#allocation16_spill] sm:$0xff]  ;;  %v16266_v61 = vld [vmem:[#allocation31_spill] sm:$0xff] }
 0x30c   :  { %1475 = vrot.lane.b32.xlu1 %v10883_v24, %s10093_s22  ;;  %2582 = vmatprep.mubr.bf16.mxu1 %v11693_v47  ;;  %v1634_v26 = vsel %vm221_vm4, %v16266_v61, %v16257_v42  ;;  %v16269_v42 = vld [vmem:[#allocation28_spill] sm:$0xff] }
 0x30d   :  { %2035 = vrot.lane.b32.xlu0 %v10903_v30, %s10098_s0 }
 0x30e   :  { %2381 = vmatpush1.bf16.msra.mxu0 %v16265_v52  ;;  %v1607_v16 = vpop.permute.xlu1 %1606  ;;  %2583 = vmatmul.mubr.bf16.gmra.mrb[44].mxu1 %v11701_v44  ;;  %v1633_v52 = vsel %vm221_vm4, %v16269_v42, %v16266_v61  ;;  %v16277_v42 = vld [vmem:[#allocation48_spill] sm:$0xff] }
 0x30f   :  { %2382 = vmatprep.subr.bf16.mxu0 %v1634_v26  ;;  %v11716_v48 = vpop.permute.xlu0 %2027  ;;  %v1650_v35 = vsel %vm221_vm4, %v1607_v16, %v11657_v33  ;;  %v1649_v54 = vsel %vm221_vm4, %v16268_v9, %v1607_v16  ;;  %2625 = vmatprep.mubr.bf16.mxu1 %v11709_v0  ;;  %v16270_v26 = vld [vmem:[#allocation10_spill] sm:$0xff]  ;;  %v16271_v33 = vld [vmem:[#allocation40_spill] sm:$0xff] }
 0x310   :  { %16267 = vst [vmem:[#allocation36_spill] sm:$0xff] %v11716_v48  ;;  %2017 = vrot.lane.b32.xlu1 %v10682_v2, %s10098_s0  ;;  %2605 = vmatprep.subr.bf16.mxu1 %v1650_v35  ;;  %v1641_v24 = vsel %vm221_vm4, %v16271_v33, %v16260_v32  ;;  %v16273_v2 = vld [vmem:[#allocation35_spill] sm:$0xff]  ;;  %v16275_v32 = vld [vmem:[#allocation50_spill] sm:$0xff] }
 0x311   :  { %1054 = vrot.lane.b32.xlu0 %v16270_v26, %s10090_s17  ;;  %2606 = vmatpush1.bf16.msra.mxu1 %v1649_v54  ;;  %v1640_v35 = vsel %vm221_vm4, %v16273_v2, %v16271_v33  ;;  %v16274_v54 = vld [vmem:[#allocation17_spill] sm:$0xff]  ;;  %v1647_v33 = vsel %vm221_vm4, %v16277_v42, %v16275_v32  ;;  %v16281_v42 = vld [vmem:[#allocation52_spill] sm:$0xff] }
 0x312   :  { %2383 = vmatpush1.bf16.msra.mxu0 %v1633_v52  ;;  %v11733_v16 = vpop.permute.xlu1 %2011 }
 0x313   :  { %16272 = vst [vmem:[#allocation18_spill] sm:$0xff] %v11733_v16  ;;  %2384 = vmatprep.subr.bf16.mxu0 %v1641_v24  ;;  %v11735_v7 = vpop.permute.xlu0 %1038  ;;  %2354 = vmatmul.mubr.bf16.gmra.mrb[40].mxu0 %v11664_v29  ;;  %v1648_v24 = vsel %vm221_vm4, %v16275_v32, %v16268_v9  ;;  %v16280_v32 = vld [vmem:[#allocation6_spill] sm:$0xff] }
 0x314   :  { %1489 = vrot.lane.b32.xlu1 %v10903_v30, %s10093_s22  ;;  %2363 = vmatprep.mubr.bf16.mxu0 %v11693_v47  ;;  %v1654_v47 = vsel %vm221_vm4, %v16281_v42, %v11282_v38 }
 0x315   :  { %1082 = vrot.lane.b32.xlu0 %v16274_v54, %s10090_s17 }
 0x316   :  { %2385 = vmatpush1.bf16.msra.mxu0 %v1640_v35  ;;  %v11749_v61 = vpop.permute.xlu1 %2031  ;;  %v16278_v35 = vld [vmem:[#allocation53_spill] sm:$0xff] }
 0x317   :  { %2386 = vmatprep.subr.bf16.mxu0 %v1648_v24  ;;  %v11751_v52 = vpop.permute.xlu0 %1713  ;;  %v1655_v9 = vsel %vm221_vm4, %v11282_v38, %v16278_v35  ;;  %v16286_v38 = vld [vmem:[#allocation30_spill] sm:$0xff] }
 0x318   :  { %16276 = vst [vmem:[#allocation16_spill] sm:$0xff] %v11751_v52  ;;  %2033 = vrot.lane.b32.xlu1 %v10709_v6, %s10098_s0 }
 0x319   :  { %1578 = vrot.lane.b32.xlu0 %v10846_v4, %s10094_s23 }
 0x31a   :  { %2387 = vmatpush1.bf16.msra.mxu0 %v1647_v33  ;;  %v11763_v2 = vpop.permute.xlu1 %1624  ;;  %v1656_v33 = vsel %vm221_vm4, %v16278_v35, %v1623_v22 }
 0x31b   :  { %16279 = vst [vmem:[#allocation31_spill] sm:$0xff] %v11763_v2  ;;  %2388 = vmatprep.subr.bf16.mxu0 %v1655_v9  ;;  %v11765_v24 = vpop.permute.xlu0 %1052  ;;  %v1657_v6 = vsel %vm221_vm4, %v1623_v22, %v11763_v2  ;;  %2364 = vmatmul.mubr.bf16.gmra.mrb[44].mxu0 %v11701_v44  ;;  %v16282_v9 = vld [vmem:[#allocation24_spill] sm:$0xff]  ;;  %v16285_v22 = vld [vmem:[#allocation13_spill] sm:$0xff] }
 0x31c   :  { %1040 = vrot.lane.b32.xlu1 %v16280_v32, %s10090_s17  ;;  %2607 = vmatprep.subr.bf16.mxu1 %v1657_v6  ;;  %v16283_v2 = vld [vmem:[#allocation32_spill] sm:$0xff] }
 0x31d   :  { %1191 = vrot.lane.b32.xlu0 %v16270_v26, %s10091_s18  ;;  %2608 = vmatpush1.bf16.msra.mxu1 %v1656_v33  ;;  %v1771_v44 = vsel %vm255_vm5, %v16283_v2, %v16282_v9  ;;  %v1770_v35 = vsel %vm255_vm5, %v16286_v38, %v16283_v2  ;;  %v16288_v33 = vld [vmem:[#allocation41_spill] sm:$0xff]  ;;  %v16289_v2 = vld [vmem:[#allocation38_spill] sm:$0xff]  ;;  %v16291_v38 = vld [vmem:[#allocation51_spill] sm:$0xff] }
 0x31e   :  { %2389 = vmatpush1.bf16.msra.mxu0 %v1654_v47  ;;  %v11782_v29 = vpop.permute.xlu1 %1036  ;;  %2406 = vmatprep.mubr.bf16.mxu0 %v11709_v0  ;;  %v16287_v47 = vld [vmem:[#allocation37_spill] sm:$0xff] }
 0x31f   :  { %2390 = vmatprep.subr.bf16.mxu0 %v1771_v44  ;;  %v11785_v6 = vpop.permute.xlu0 %1729  ;;  %v1778_v42 = vsel %vm255_vm5, %v16288_v33, %v16287_v47 }
 0x320   :  { %16284 = vst [vmem:[#allocation42_spill] sm:$0xff] %v11785_v6  ;;  %1068 = vrot.lane.b32.xlu1 %v16285_v22, %s10090_s17 }
 0x321   :  { %1596 = vrot.lane.b32.xlu0 %v16270_v26, %s10094_s23 }
 0x322   :  { %2391 = vmatpush1.bf16.msra.mxu0 %v1770_v35  ;;  %v1712_v30 = vpop.permute.xlu1 %1711  ;;  %v1777_v35 = vsel %vm255_vm5, %v16289_v2, %v16288_v33 }
 0x323   :  { %2392 = vmatprep.subr.bf16.mxu0 %v1778_v42  ;;  %v11797_v44 = vpop.permute.xlu0 %1066  ;;  %v1773_v0 = vsel %vm255_vm5, %v1712_v30, %v11751_v52  ;;  %v1772_v40 = vsel %vm255_vm5, %v16282_v9, %v1712_v30  ;;  %v16290_v42 = vld [vmem:[#allocation44_spill] sm:$0xff] }
 0x324   :  { %1177 = vrot.lane.b32.xlu1 %v16280_v32, %s10091_s18  ;;  %2609 = vmatprep.subr.bf16.mxu1 %v1773_v0  ;;  %v1785_v52 = vsel %vm255_vm5, %v16291_v38, %v16290_v42  ;;  %v16293_v0 = vld [vmem:[#allocation49_spill] sm:$0xff] }
 0x325   :  { %1610 = vrot.lane.b32.xlu0 %v10886_v15, %s10094_s23  ;;  %2610 = vmatpush1.bf16.msra.mxu1 %v1772_v40  ;;  %v1784_v9 = vsel %vm255_vm5, %v16293_v0, %v16291_v38  ;;  %v16294_v40 = vld [vmem:[#allocation54_spill] sm:$0xff]  ;;  %v16296_v38 = vld [vmem:[#allocation55_spill] sm:$0xff] }
 0x326   :  { %2393 = vmatpush1.bf16.msra.mxu0 %v1777_v35  ;;  %v11813_v18 = vpop.permute.xlu1 %1050  ;;  %v1792_v33 = vsel %vm255_vm5, %v11296_v51, %v16294_v40  ;;  %v16298_v0 = vld [vmem:[#allocation34_spill] sm:$0xff] }
 0x327   :  { %2394 = vmatprep.subr.bf16.mxu0 %v1785_v52  ;;  %v11815_v30 = vpop.permute.xlu0 %1745 }
 0x328   :  { %16292 = vst [vmem:[#allocation40_spill] sm:$0xff] %v11815_v30  ;;  %1580 = vrot.lane.b32.xlu1 %v16280_v32, %s10094_s23 }
 0x329   :  { %1219 = vrot.lane.b32.xlu0 %v16274_v54, %s10091_s18 }
 0x32a   :  { %2395 = vmatpush1.bf16.msra.mxu0 %v1784_v9  ;;  %v1728_v35 = vpop.permute.xlu1 %1727  ;;  %v1791_v9 = vsel %vm255_vm5, %v16296_v38, %v11296_v51  ;;  %v1907_v51 = vsel %vm289_vm6, %v11425_v13, %v16298_v0  ;;  %v12045_v38 = vld [vmem:[%s15889_s3 + $0x10] ss:$20 sps:$4 sm:$0xff]  }
 0x32b   :  { %2396 = vmatprep.subr.bf16.mxu0 %v1792_v33  ;;  %v11827_v52 = vpop.permute.xlu0 %1761  ;;  %v1780_v2 = vsel %vm255_vm5, %v1728_v35, %v11785_v6  ;;  %v1779_v46 = vsel %vm255_vm5, %v16287_v47, %v1728_v35  ;;  %v16297_v33 = vld [vmem:[#allocation25_spill] sm:$0xff] }
 0x32c   :  { %16295 = vst [vmem:[#allocation50_spill] sm:$0xff] %v11827_v52  ;;  %1594 = vrot.lane.b32.xlu1 %v10866_v20, %s10094_s23  ;;  %2611 = vmatprep.subr.bf16.mxu1 %v1780_v2  ;;  %v1908_v6 = vsel %vm289_vm6, %v16298_v0, %v16297_v33  ;;  %v1914_v0 = vsel %vm289_vm6, %v11413_v39, %v11402_v12 }
 0x32d   :  { %1628 = vrot.lane.b32.xlu0 %v16274_v54, %s10094_s23  ;;  %2612 = vmatpush1.bf16.msra.mxu1 %v1779_v46  ;;  %v1915_v46 = vsel %vm289_vm6, %v11402_v12, %v11497_v62  ;;  %v1921_v12 = vsel %vm289_vm6, %v11541_v3, %v11527_v23 }
 0x32e   :  { %2397 = vmatpush1.bf16.msra.mxu0 %v1791_v9  ;;  %v11843_v1 = vpop.permute.xlu1 %1064 }
 0x32f   :  { %2398 = vmatprep.subr.bf16.mxu0 %v1908_v6  ;;  %v11845_v47 = vpop.permute.xlu0 %1175 }
 0x330   :  { %1205 = vrot.lane.b32.xlu1 %v16285_v22, %s10091_s18 }
 0x331   :  { %1715 = vrot.lane.b32.xlu0 %v10846_v4, %s10095_s24 }
 0x332   :  { %2399 = vmatpush1.bf16.msra.mxu0 %v1907_v51  ;;  %v1744_v2 = vpop.permute.xlu1 %1743  ;;  %v1922_v51 = vsel %vm289_vm6, %v11527_v23, %v11459_v37  ;;  %v1928_v23 = vsel %vm289_vm6, %v11511_v10, %v11485_v41 }
 0x333   :  { %2400 = vmatprep.subr.bf16.mxu0 %v1915_v46  ;;  %v11857_v6 = vpop.permute.xlu0 %1850  ;;  %v1787_v35 = vsel %vm255_vm5, %v1744_v2, %v11815_v30  ;;  %v1786_v9 = vsel %vm255_vm5, %v16290_v42, %v1744_v2  ;;  %v1929_v2 = vsel %vm289_vm6, %v11485_v41, %v11573_v21  ;;  %v11913_v41 = vld [vmem:[%s15889_s3 + $0x34] ss:$20 sps:$4 sm:$0xff]  }
 0x334   :  { %16299 = vst [vmem:[#allocation53_spill] sm:$0xff] %v11857_v6  ;;  %1612 = vrot.lane.b32.xlu1 %v16285_v22, %s10094_s23  ;;  %2613 = vmatprep.subr.bf16.mxu1 %v1787_v35  ;;  %16302 = vst [vmem:[#allocation13_spill] sm:$0xff] %v11913_v41 }
 0x335   :  { %1328 = vrot.lane.b32.xlu0 %v16270_v26, %s10092_s21  ;;  %2614 = vmatpush1.bf16.msra.mxu1 %v1786_v9 }
 0x336   :  { %2401 = vmatpush1.bf16.msra.mxu0 %v1914_v0  ;;  %v11873_v46 = vpop.permute.xlu1 %1078 }
 0x337   :  { %2402 = vmatprep.subr.bf16.mxu0 %v1922_v51  ;;  %v11875_v42 = vpop.permute.xlu0 %1189 }
 0x338   :  { %1626 = vrot.lane.b32.xlu1 %v10905_v34, %s10094_s23 }
 0x339   :  { %1733 = vrot.lane.b32.xlu0 %v16270_v26, %s10095_s24 }
 0x33a   :  { %2403 = vmatpush1.bf16.msra.mxu0 %v1921_v12  ;;  %v1760_v35 = vpop.permute.xlu1 %1759  ;;  %v11903_v12 = vld [vmem:[%s15889_s3 + $0x8] ss:$20 sps:$4 sm:$0xff]  }
 0x33b   :  { %2404 = vmatprep.subr.bf16.mxu0 %v1929_v2  ;;  %v11887_v9 = vpop.permute.xlu0 %1866  ;;  %v1794_v0 = vsel %vm255_vm5, %v1760_v35, %v11827_v52  ;;  %v1793_v51 = vsel %vm255_vm5, %v16294_v40, %v1760_v35  ;;  %16301 = vst [vmem:[#allocation32_spill] sm:$0xff] %v11903_v12  ;;  %v2045_v40 = vsel %vm323_vm7, %v11599_v49, %v11529_v55  ;;  %v16315_v52 = vld [vmem:[#allocation8_spill] sm:$0xff] }
 0x33c   :  { %16300 = vst [vmem:[#allocation24_spill] sm:$0xff] %v11887_v9  ;;  %1314 = vrot.lane.b32.xlu1 %v16280_v32, %s10092_s21  ;;  %2615 = vmatprep.subr.bf16.mxu1 %v1794_v0  ;;  %v2044_v0 = vsel %vm323_vm7, %v11636_v27, %v11599_v49 }
 0x33d   :  { %1747 = vrot.lane.b32.xlu0 %v10886_v15, %s10095_s24  ;;  %2616 = vmatpush1.bf16.msra.mxu1 %v1793_v51  ;;  %v2052_v51 = vsel %vm323_vm7, %v11581_v25, %v11650_v57 }
 0x33e   :  { %2405 = vmatpush1.bf16.msra.mxu0 %v1928_v23  ;;  %v11908_v2 = vpop.permute.xlu1 %1173 }
 0x33f   :  { %2447 = vmatprep.subr.bf16.mxu0 %v2045_v40  ;;  %v11915_v35 = vpop.permute.xlu0 %1203 }
 0x340   :  { %1717 = vrot.lane.b32.xlu1 %v16280_v32, %s10095_s24 }
 0x341   :  { %2407 = vmatmul.mubr.bf16.vlgmr.msra.gmra.mrb[32].mxu0 %v11903_v12  ;;  %1356 = vrot.lane.b32.xlu0 %v16274_v54, %s10092_s21 }
 0x342   :  { %2448 = vmatpush1.bf16.msra.mxu0 %v2044_v0  ;;  %v1849_v23 = vpop.permute.xlu1 %1848  ;;  %2416 = vmatprep.mubr.bf16.mxu0 %v11913_v41  ;;  %v2051_v0 = vsel %vm323_vm7, %v11615_v63, %v11581_v25 }
 0x343   :  { %2449 = vmatprep.subr.bf16.mxu0 %v2052_v51  ;;  %v11929_v40 = vpop.permute.xlu0 %1080  ;;  %v1910_v10 = vsel %vm289_vm6, %v1849_v23, %v11857_v6  ;;  %v1909_v49 = vsel %vm289_vm6, %v16297_v33, %v1849_v23  ;;  %v11945_v51 = vld [vmem:[%s15889_s3 + $0x30] ss:$20 sps:$4 sm:$0xff]   ;;  %v2059_v33 = vsel %vm323_vm7, %v11687_v53, %v11640_v50 }
 0x344   :  { %1731 = vrot.lane.b32.xlu1 %v10866_v20, %s10095_s24  ;;  %2617 = vmatprep.subr.bf16.mxu1 %v1910_v10  ;;  %16303 = vst [vmem:[#allocation37_spill] sm:$0xff] %v11945_v51  ;;  %v11955_v10 = vld [vmem:[%s15889_s3 + $0x5c] ss:$20 sps:$4 sm:$0xff]  }
 0x345   :  { %1765 = vrot.lane.b32.xlu0 %v16274_v54, %s10095_s24  ;;  %2618 = vmatpush1.bf16.msra.mxu1 %v1909_v49  ;;  %16304 = vst [vmem:[#allocation41_spill] sm:$0xff] %v11955_v10  ;;  %v2058_v49 = vsel %vm323_vm7, %v11733_v16, %v11687_v53  ;;  %v12020_v16 = vld [vmem:[%s15889_s3 + $0x80] ss:$20 sps:$4 sm:$0xff]  }
 0x346   :  { %2450 = vmatpush1.bf16.msra.mxu0 %v2051_v0  ;;  %v11950_v23 = vpop.permute.xlu1 %1187  ;;  %v2066_v0 = vsel %vm323_vm7, %v11675_v19, %v11749_v61  ;;  %16309 = vst [vmem:[#allocation34_spill] sm:$0xff] %v12020_v16 }
 0x347   :  { %2451 = vmatprep.subr.bf16.mxu0 %v2059_v33  ;;  %v11957_v25 = vpop.permute.xlu0 %1882 }
 0x348   :  { %16305 = vst [vmem:[#allocation44_spill] sm:$0xff] %v11957_v25  ;;  %1342 = vrot.lane.b32.xlu1 %v16285_v22, %s10092_s21 }
 0x349   :  { %2417 = vmatmul.mubr.bf16.gmra.mrb[36].mxu0 %v11945_v51  ;;  %1852 = vrot.lane.b32.xlu0 %v10846_v4, %s10096_s25 }
 0x34a   :  { %2452 = vmatpush1.bf16.msra.mxu0 %v2058_v49  ;;  %v1865_v33 = vpop.permute.xlu1 %1864  ;;  %2426 = vmatprep.mubr.bf16.mxu0 %v11955_v10  ;;  %v2065_v49 = vsel %vm323_vm7, %v11716_v48, %v11675_v19  ;;  %v11997_v19 = vld [vmem:[%s15889_s3 + $0x84] ss:$20 sps:$4 sm:$0xff]  }
 0x34b   :  { %2453 = vmatprep.subr.bf16.mxu0 %v2066_v0  ;;  %v11971_v63 = vpop.permute.xlu0 %1217  ;;  %v1917_v27 = vsel %vm289_vm6, %v1865_v33, %v11887_v9  ;;  %v1916_v53 = vsel %vm289_vm6, %v11497_v62, %v1865_v33  ;;  %v11987_v0 = vld [vmem:[%s15889_s3 + $0x58] ss:$20 sps:$4 sm:$0xff]   ;;  %v1089_v62 = vsel %vm86_vm0, %v11782_v29, %v11735_v7  ;;  %16307 = vst [vmem:[#allocation54_spill] sm:$0xff] %v11997_v19 }
 0x34c   :  { %1749 = vrot.lane.b32.xlu1 %v16285_v22, %s10095_s24  ;;  %2619 = vmatprep.subr.bf16.mxu1 %v1917_v27  ;;  %16306 = vst [vmem:[#allocation51_spill] sm:$0xff] %v11987_v0  ;;  %v12080_v9 = vld [vmem:[%s15889_s3 + $0x38] ss:$20 sps:$4 sm:$0xff]  }
 0x34d   :  { %1465 = vrot.lane.b32.xlu0 %v16270_v26, %s10093_s22  ;;  %2620 = vmatpush1.bf16.msra.mxu1 %v1916_v53 }
 0x34e   :  { %2454 = vmatpush1.bf16.msra.mxu0 %v2065_v49  ;;  %v11992_v33 = vpop.permute.xlu1 %1201 }
 0x34f   :  { %2739 = vmatprep.subr.bf16.mxu0 %v1089_v62  ;;  %v11999_v27 = vpop.permute.xlu0 %1898 }
 0x350   :  { %16308 = vst [vmem:[#allocation25_spill] sm:$0xff] %v11999_v27  ;;  %1763 = vrot.lane.b32.xlu1 %v10905_v34, %s10095_s24 }
 0x351   :  { %2427 = vmatmul.mubr.bf16.gmra.mrb[40].mxu0 %v11987_v0  ;;  %1870 = vrot.lane.b32.xlu0 %v16270_v26, %s10096_s25 }
 0x352   :  { %v1881_v53 = vpop.permute.xlu1 %1880  ;;  %2436 = vmatprep.mubr.bf16.mxu0 %v11997_v19 }
 0x353   :  { %v12007_v49 = vpop.permute.xlu0 %1312  ;;  %v1924_v48 = vsel %vm289_vm6, %v1881_v53, %v11957_v25  ;;  %v1923_v62 = vsel %vm289_vm6, %v11459_v37, %v1881_v53 }
 0x354   :  { %1451 = vrot.lane.b32.xlu1 %v16280_v32, %s10093_s22  ;;  %2621 = vmatprep.subr.bf16.mxu1 %v1924_v48  ;;  %v16310_v48 = vmov 0  }
 0x355   :  { %1884 = vrot.lane.b32.xlu0 %v10886_v15, %s10096_s25  ;;  %2622 = vmatpush1.bf16.msra.mxu1 %v1923_v62 }
 0x356   :  { %v12022_v3 = vpop.permute.xlu1 %1215 }
 0x357   :  { %v12024_v39 = vpop.permute.xlu0 %1326 }
 0x358   :  { %1854 = vrot.lane.b32.xlu1 %v16280_v32, %s10096_s25 }
 0x359   :  { %2437 = vmatmul.mubr.bf16.gmra.mrb[44].mxu0 %v12020_v16  ;;  %1493 = vrot.lane.b32.xlu0 %v16274_v54, %s10093_s22 }
 0x35a   :  { %v1897_v37 = vpop.permute.xlu1 %1896  ;;  %2479 = vmatprep.mubr.bf16.mxu0 %v16310_v48 }
 0x35b   :  { %v12032_v53 = vpop.permute.xlu0 %1340  ;;  %v1931_v62 = vsel %vm289_vm6, %v1897_v37, %v11999_v27  ;;  %v1930_v13 = vsel %vm289_vm6, %v11573_v21, %v1897_v37  ;;  %v1096_v37 = vsel %vm86_vm0, %v11813_v18, %v11765_v24 }
 0x35c   :  { %1868 = vrot.lane.b32.xlu1 %v10866_v20, %s10096_s25  ;;  %2623 = vmatprep.subr.bf16.mxu1 %v1931_v62 }
 0x35d   :  { %1902 = vrot.lane.b32.xlu0 %v16274_v54, %s10096_s25  ;;  %2624 = vmatpush1.bf16.msra.mxu1 %v1930_v13  ;;  %v16311_v13 = vld [vmem:[#allocation26_spill] sm:$0xff] }
 0x35e   :  { %v12047_v25 = vpop.permute.xlu1 %1310  ;;  %v1088_v21 = vsel %vm86_vm0, %v16311_v13, %v11782_v29  ;;  %v16312_v29 = vld [vmem:[#allocation39_spill] sm:$0xff] }
 0x35f   :  { %v12049_v27 = vpop.permute.xlu0 %1354  ;;  %v1095_v13 = vsel %vm86_vm0, %v16312_v29, %v11813_v18  ;;  %v16314_v18 = vld [vmem:[#allocation46_spill] sm:$0xff] }
 0x360   :  { %1479 = vrot.lane.b32.xlu1 %v16285_v22, %s10093_s22  ;;  %2626 = vmatmul.mubr.bf16.vlgmr.msra.gmra.mrb[32].mxu1 %v11903_v12  ;;  %v1102_v29 = vsel %vm86_vm0, %v16314_v18, %v11843_v1 }
 0x361   :  { %8298 = vmatmul.mubr.msk.bf16.vlgmr.msra.gmra.mrb[32].mxu0 %vm2288_vm10, %v12045_v38  ;;  %1989 = vrot.lane.b32.xlu0 %v10846_v4, %s10098_s0 }
 0x362   :  { %2740 = vmatpush1.bf16.msra.mxu0 %v1088_v21  ;;  %v12064_v62 = vpop.permute.xlu1 %1324  ;;  %2489 = vmatprep.mubr.bf16.mxu0 %v16310_v48  ;;  %v16313_v21 = vld [vmem:[#allocation12_spill] sm:$0xff] }
 0x363   :  { %2741 = vmatprep.subr.bf16.mxu0 %v1096_v37  ;;  %v12067_v12 = vpop.permute.xlu0 %1449  ;;  %2635 = vmatprep.mubr.bf16.mxu1 %v11913_v41  ;;  %v1103_v37 = vsel %vm86_vm0, %v11843_v1, %v11797_v44  ;;  %v16316_v1 = vld [vmem:[#allocation56_spill] sm:$0xff] }
 0x364   :  { %1886 = vrot.lane.b32.xlu1 %v16285_v22, %s10096_s25  ;;  %v1109_v18 = vsel %vm86_vm0, %v16316_v1, %v11873_v46 }
 0x365   :  { %1598 = vrot.lane.b32.xlu0 %v16313_v21, %s10094_s23 }
 0x366   :  { %2742 = vmatpush1.bf16.msra.mxu0 %v1095_v13  ;;  %v12085_v41 = vpop.permute.xlu1 %1338  ;;  %v1110_v13 = vsel %vm86_vm0, %v11873_v46, %v11929_v40  ;;  %v16317_v46 = vld [vmem:[#allocation27_spill] sm:$0xff] }
 0x367   :  { %2743 = vmatprep.subr.bf16.mxu0 %v1103_v37  ;;  %v12087_v6 = vpop.permute.xlu0 %1987  ;;  %v1225_v1 = vsel %vm120_vm1, %v16317_v46, %v11908_v2  ;;  %v16319_v46 = vld [vmem:[#allocation43_spill] sm:$0xff] }
 0x368   :  { %1900 = vrot.lane.b32.xlu1 %v10905_v34, %s10096_s25  ;;  %2636 = vmatmul.mubr.bf16.gmra.mrb[36].mxu1 %v11945_v51 }
 0x369   :  { %8299 = vmatmul.mubr.msk.bf16.gmra.mrb[36].mxu0 %vm2288_vm10, %v12080_v9  ;;  %2007 = vrot.lane.b32.xlu0 %v16270_v26, %s10098_s0 }
 0x36a   :  { %2744 = vmatpush1.bf16.msra.mxu0 %v1102_v29  ;;  %v12102_v37 = vpop.permute.xlu1 %1352  ;;  %2499 = vmatprep.mubr.bf16.mxu0 %v16310_v48  ;;  %v12118_v29 = vld [vmem:[%s15889_s3 + $0x60] ss:$20 sps:$4 sm:$0xff]  }
 0x36b   :  { %2745 = vmatprep.subr.bf16.mxu0 %v1110_v13  ;;  %v12105_v51 = vpop.permute.xlu0 %1463  ;;  %2645 = vmatprep.mubr.bf16.mxu1 %v11955_v10  ;;  %v1226_v13 = vsel %vm120_vm1, %v11908_v2, %v11845_v47 }
 0x36c   :  { %1582 = vrot.lane.b32.xlu1 %v16315_v52, %s10094_s23 }
 0x36d   :  { %2021 = vrot.lane.b32.xlu0 %v10886_v15, %s10098_s0 }
 0x36e   :  { %2746 = vmatpush1.bf16.msra.mxu0 %v1109_v18  ;;  %v12123_v10 = vpop.permute.xlu1 %1447  ;;  %v16318_v18 = vld [vmem:[#allocation19_spill] sm:$0xff] }
 0x36f   :  { %2747 = vmatprep.subr.bf16.mxu0 %v1226_v13  ;;  %v12125_v26 = vpop.permute.xlu0 %2003  ;;  %v1233_v13 = vsel %vm120_vm1, %v11950_v23, %v11875_v42 }
 0x370   :  { %1991 = vrot.lane.b32.xlu1 %v16280_v32, %s10098_s0  ;;  %2646 = vmatmul.mubr.bf16.gmra.mrb[40].mxu1 %v11987_v0 }
 0x371   :  { %8300 = vmatmul.mubr.msk.bf16.gmra.mrb[40].mxu0 %vm2288_vm10, %v12118_v29  ;;  %1630 = vrot.lane.b32.xlu0 %v16318_v18, %s10094_s23 }
 0x372   :  { %2748 = vmatpush1.bf16.msra.mxu0 %v1225_v1  ;;  %v1986_v30 = vpop.permute.xlu1 %1985  ;;  %2509 = vmatprep.mubr.bf16.mxu0 %v16310_v48  ;;  %v1232_v1 = vsel %vm120_vm1, %v16319_v46, %v11950_v23  ;;  %v16320_v23 = vld [vmem:[#allocation15_spill] sm:$0xff] }
 0x373   :  { %2749 = vmatprep.subr.bf16.mxu0 %v1233_v13  ;;  %v12141_v0 = vpop.permute.xlu0 %1477  ;;  %v2047_v32 = vsel %vm323_vm7, %v1986_v30, %v12087_v6  ;;  %v2046_v2 = vsel %vm323_vm7, %v11529_v55, %v1986_v30  ;;  %2655 = vmatprep.mubr.bf16.mxu1 %v11997_v19  ;;  %v12158_v13 = vld [vmem:[%s15889_s3 + $0x88] ss:$20 sps:$4 sm:$0xff]   ;;  %v1240_v55 = vsel %vm120_vm1, %v11992_v33, %v11915_v35 }
 0x374   :  { %2005 = vrot.lane.b32.xlu1 %v10866_v20, %s10098_s0  ;;  %2666 = vmatprep.subr.bf16.mxu1 %v2047_v32 }
 0x375   :  { %2039 = vrot.lane.b32.xlu0 %v16274_v54, %s10098_s0  ;;  %2667 = vmatpush1.bf16.msra.mxu1 %v2046_v2  ;;  %v16321_v2 = vld [vmem:[#allocation47_spill] sm:$0xff] }
 0x376   :  { %2750 = vmatpush1.bf16.msra.mxu0 %v1232_v1  ;;  %v12163_v30 = vpop.permute.xlu1 %1461  ;;  %v1239_v46 = vsel %vm120_vm1, %v16321_v2, %v11992_v33  ;;  %v1247_v1 = vsel %vm120_vm1, %v12022_v3, %v11971_v63  ;;  %v12190_v2 = vld [vmem:[%s15889_s3 + $0x4] ss:$20 sps:$4 sm:$0xff]  }
 0x377   :  { %2751 = vmatprep.subr.bf16.mxu0 %v1240_v55  ;;  %v12165_v32 = vpop.permute.xlu0 %2019 }
 0x378   :  { %1614 = vrot.lane.b32.xlu1 %v16320_v23, %s10094_s23  ;;  %2656 = vmatmul.mubr.bf16.gmra.mrb[44].mxu1 %v12020_v16 }
 0x379   :  { %8301 = vmatmul.mubr.msk.bf16.gmra.mrb[44].mxu0 %vm2288_vm10, %v12158_v13  ;;  %1735 = vrot.lane.b32.xlu0 %v16313_v21, %s10095_s24 }
 0x37a   :  { %2752 = vmatpush1.bf16.msra.mxu0 %v1239_v46  ;;  %v2002_v55 = vpop.permute.xlu1 %2001  ;;  %2698 = vmatprep.mubr.bf16.mxu1 %v16310_v48  ;;  %v1246_v46 = vsel %vm120_vm1, %v11319_v58, %v12022_v3  ;;  %v1370_v3 = vsel %vm154_vm2, %v12064_v62, %v12024_v39 }
 0x37b   :  { %2753 = vmatprep.subr.bf16.mxu0 %v1247_v1  ;;  %v12181_v16 = vpop.permute.xlu0 %1491  ;;  %v2054_v19 = vsel %vm323_vm7, %v2002_v55, %v12125_v26  ;;  %v2053_v33 = vsel %vm323_vm7, %v11650_v57, %v2002_v55  ;;  %2771 = vmatprep.mubr.bf16.mxu0 %v12190_v2  ;;  %v1363_v57 = vsel %vm154_vm2, %v12047_v25, %v12007_v49 }
 0x37c   :  { %2023 = vrot.lane.b32.xlu1 %v16285_v22, %s10098_s0  ;;  %2668 = vmatprep.subr.bf16.mxu1 %v2054_v19  ;;  %v16322_v19 = vld [vmem:[#allocation29_spill] sm:$0xff] }
 0x37d   :  { %1767 = vrot.lane.b32.xlu0 %v16318_v18, %s10095_s24  ;;  %2669 = vmatpush1.bf16.msra.mxu1 %v2053_v33  ;;  %v1362_v58 = vsel %vm154_vm2, %v16322_v19, %v12047_v25  ;;  %v1369_v25 = vsel %vm154_vm2, %v11144_v43, %v12064_v62  ;;  %v1377_v19 = vsel %vm154_vm2, %v12085_v41, %v12032_v53 }
 0x37e   :  { %2754 = vmatpush1.bf16.msra.mxu0 %v1246_v46  ;;  %v12203_v1 = vpop.permute.xlu1 %1475  ;;  %v1376_v43 = vsel %vm154_vm2, %v11199_v11, %v12085_v41  ;;  %v1383_v11 = vsel %vm154_vm2, %v11331_v17, %v12102_v37  ;;  %v1500_v41 = vsel %vm188_vm3, %v12123_v10, %v12067_v12 }
 0x37f   :  { %2755 = vmatprep.subr.bf16.mxu0 %v1363_v57  ;;  %v12205_v55 = vpop.permute.xlu0 %2035 }
 0x380   :  { %2037 = vrot.lane.b32.xlu1 %v10905_v34, %s10098_s0 }
 0x381   :  { %1872 = vrot.lane.b32.xlu0 %v16313_v21, %s10096_s25 }
 0x382   :  { %2756 = vmatpush1.bf16.msra.mxu0 %v1362_v58  ;;  %v2018_v33 = vpop.permute.xlu1 %2017 }
 0x383   :  { %2757 = vmatprep.subr.bf16.mxu0 %v1370_v3  ;;  %v1055_v46 = vpop.permute.xlu0 %1054  ;;  %v2061_v57 = vsel %vm323_vm7, %v2018_v33, %v12165_v32  ;;  %v2060_v54 = vsel %vm323_vm7, %v11640_v50, %v2018_v33 }
 0x384   :  { %1719 = vrot.lane.b32.xlu1 %v16315_v52, %s10095_s24  ;;  %2670 = vmatprep.subr.bf16.mxu1 %v2061_v57 }
 0x385   :  { %1904 = vrot.lane.b32.xlu0 %v16318_v18, %s10096_s25  ;;  %2671 = vmatpush1.bf16.msra.mxu1 %v2060_v54  ;;  %v1384_v54 = vsel %vm154_vm2, %v12102_v37, %v12049_v27 }
 0x386   :  { %2758 = vmatpush1.bf16.msra.mxu0 %v1369_v25  ;;  %v12231_v58 = vpop.permute.xlu1 %1489 }
 0x387   :  { %2759 = vmatprep.subr.bf16.mxu0 %v1377_v19  ;;  %v12233_v50 = vpop.permute.xlu0 %1082 }
 0x388   :  { %1751 = vrot.lane.b32.xlu1 %v16320_v23, %s10095_s24 }
 0x389   :  { %2009 = vrot.lane.b32.xlu0 %v16313_v21, %s10098_s0 }
 0x38a   :  { %2760 = vmatpush1.bf16.msra.mxu0 %v1376_v43  ;;  %v2034_v62 = vpop.permute.xlu1 %2033  ;;  %v1499_v43 = vsel %vm188_vm3, %v11032_v59, %v12123_v10  ;;  %v1506_v59 = vsel %vm188_vm3, %v11439_v31, %v12163_v30  ;;  %v1514_v10 = vsel %vm188_vm3, %v12203_v1, %v12141_v0 }
 0x38b   :  { %2761 = vmatprep.subr.bf16.mxu0 %v1384_v54  ;;  %v12245_v3 = vpop.permute.xlu0 %1578  ;;  %v2068_v33 = vsel %vm323_vm7, %v2034_v62, %v12205_v55  ;;  %v2067_v57 = vsel %vm323_vm7, %v11749_v61, %v2034_v62  ;;  %v2141_v61 = vld [vmem:[%s15890_s4 + $0x8] sm:$0xff]  ;;  %v2143_v62 = vld [vmem:[%s15890_s4 + $0x18] sm:$0xff] }
 0x38c   :  { %1856 = vrot.lane.b32.xlu1 %v16315_v52, %s10096_s25  ;;  %2672 = vmatprep.subr.bf16.mxu1 %v2068_v33 }
 0x38d   :  { %2041 = vrot.lane.b32.xlu0 %v16318_v18, %s10098_s0  ;;  %2673 = vmatpush1.bf16.msra.mxu1 %v2067_v57 }
 0x38e   :  { %2762 = vmatpush1.bf16.msra.mxu0 %v1383_v11  ;;  %v1041_v25 = vpop.permute.xlu1 %1040 }
 0x38f   :  { %2763 = vmatprep.subr.bf16.mxu0 %v1500_v41  ;;  %v12264_v19 = vpop.permute.xlu0 %1191  ;;  %v1091_v17 = vsel %vm86_vm0, %v1041_v25, %v11345_v60  ;;  %v1090_v37 = vsel %vm86_vm0, %v11735_v7, %v1041_v25  ;;  %v1507_v60 = vsel %vm188_vm3, %v12163_v30, %v12105_v51  ;;  %v1098_v7 = vsel %vm86_vm0, %v1055_v46, %v11310_v14  ;;  %v2145_v41 = vld [vmem:[%s15890_s4 + $0x28] sm:$0xff]  ;;  %v2140_v30 = vld [vmem:[%s15890_s4] sm:$0xff]  ;;  %v16323_v25 = vld [vmem:[#allocation61_spill] sm:$0xff] }
 0x390   :  { %1888 = vrot.lane.b32.xlu1 %v16320_v23, %s10096_s25  ;;  %8302 = vmatmul.mubr.msk.bf16.vlgmr.msra.gmra.mrb[32].mxu1 %vm2288_vm10, %v12045_v38  ;;  %v1097_v14 = vsel %vm86_vm0, %v11765_v24, %v1055_v46  ;;  %v1513_v24 = vsel %vm188_vm3, %v11427_v28, %v12203_v1  ;;  %v1521_v46 = vsel %vm188_vm3, %v12231_v58, %v12181_v16 }
 0x391   :  { %2958 = vmatprep.subr.bf16.mxu1 %v1091_v17  ;;  %2155 = vperm.xlu0 %9266, %v2141_v61   ;;  %v1112_v28 = vsel %vm86_vm0, %v12233_v50, %v16323_v25  ;;  %v1520_v17 = vsel %vm188_vm3, %v11555_v5, %v12231_v58 }
 0x392   :  { %2764 = vmatpush1.bf16.msra.mxu0 %v1499_v43  ;;  %2959 = vmatpush1.bf16.msra.mxu1 %v1090_v37  ;;  %v1069_v54 = vpop.permute.xlu1 %1068  ;;  %v1111_v37 = vsel %vm86_vm0, %v11929_v40, %v12233_v50  ;;  %v2142_v43 = vld [vmem:[%s15890_s4 + $0x10] sm:$0xff] }
 0x393   :  { %2765 = vmatprep.subr.bf16.mxu0 %v1507_v60  ;;  %2960 = vmatprep.subr.bf16.mxu1 %v1098_v7  ;;  %v12285_v33 = vpop.permute.xlu0 %1596  ;;  %v1105_v57 = vsel %vm86_vm0, %v1069_v54, %v11411_v56  ;;  %v1104_v56 = vsel %vm86_vm0, %v11797_v44, %v1069_v54  ;;  %v2147_v44 = vld [vmem:[%s15890_s4 + $0x38] sm:$0xff]  ;;  %v1234_v54 = vsel %vm120_vm1, %v11875_v42, %v12264_v19  ;;  %vm5440_vm0 = vcmask 908288  }
 0x394   :  { %1993 = vrot.lane.b32.xlu1 %v16315_v52, %s10098_s0  ;;  %2708 = vmatprep.mubr.bf16.mxu1 %v16310_v48 }
 0x395   :  { %2165 = vperm.xlu0 %9266, %v2143_v62   ;;  %v16326_v62 = vld [vmem:[#allocation20_spill] sm:$0xff] }
 0x396   :  { %2766 = vmatpush1.bf16.msra.mxu0 %v1506_v59  ;;  %2961 = vmatpush1.bf16.msra.mxu1 %v1097_v14  ;;  %v1178_v11 = vpop.permute.xlu1 %1177  ;;  %v16327_v59 = vld [vmem:[#allocation66_spill] sm:$0xff] }
 0x397   :  { %2767 = vmatprep.subr.bf16.mxu0 %v1514_v10  ;;  %2962 = vmatprep.subr.bf16.mxu1 %v1105_v57  ;;  %v12303_v31 = vpop.permute.xlu0 %1610  ;;  %v1228_v60 = vsel %vm120_vm1, %v1178_v11, %v11365_v36  ;;  %v1227_v40 = vsel %vm120_vm1, %v11845_v47, %v1178_v11  ;;  %v2144_v36 = vld [vmem:[%s15890_s4 + $0x20] sm:$0xff]  ;;  %v16325_v47 = vld [vmem:[#allocation33_spill] sm:$0xff] }
 0x398   :  { %2025 = vrot.lane.b32.xlu1 %v16320_v23, %s10098_s0  ;;  %8303 = vmatmul.mubr.msk.bf16.gmra.mrb[36].mxu1 %vm2288_vm10, %v12080_v9  ;;  %v16329_v57 = vld [vmem:[#allocation21_spill] sm:$0xff] }
 0x399   :  { %2175 = vperm.xlu0 %9266, %v2145_v41   ;;  %2718 = vmatprep.mubr.bf16.mxu1 %v16310_v48  ;;  %v16330_v11 = vld [vmem:[#allocation65_spill] sm:$0xff] }
 0x39a   :  { %2768 = vmatpush1.bf16.msra.mxu0 %v1513_v24  ;;  %2963 = vmatpush1.bf16.msra.mxu1 %v1104_v56  ;;  %v12324_v1 = vpop.permute.xlu1 %1580  ;;  %v16331_v56 = vld [vmem:[#allocation74_spill] sm:$0xff] }
 0x39b   :  { %2769 = vmatprep.subr.bf16.mxu0 %v1521_v46  ;;  %2964 = vmatprep.subr.bf16.mxu1 %v1112_v28  ;;  %v1220_v61 = vpop.permute.xlu0 %1219  ;;  %v16333_v28 = vld [vmem:[#allocation60_spill] sm:$0xff] }
 0x39c   :  { %2150 = vperm.xlu1 %9267, %v2140_v30   ;;  %v1249_v41 = vsel %vm120_vm1, %v1220_v61, %v16330_v11  ;;  %v16332_v30 = vld [vmem:[#allocation22_spill] sm:$0xff]  ;;  %v16343_v11 = vld [vmem:[#allocation31_spill] sm:$0xff] }
 0x39d   :  { %2185 = vperm.xlu0 %9266, %v2147_v44  }
 0x39e   :  { %2770 = vmatpush1.bf16.msra.mxu0 %v1520_v17  ;;  %2965 = vmatpush1.bf16.msra.mxu1 %v1111_v37  ;;  %v12340_v7 = vpop.permute.xlu1 %1594  ;;  %v16334_v17 = vld [vmem:[#allocation72_spill] sm:$0xff] }
 0x39f   :  { %2812 = vmatprep.subr.bf16.mxu0 %v10846_v4  ;;  %2966 = vmatprep.subr.bf16.mxu1 %v1228_v60  ;;  %v12343_v5 = vpop.permute.xlu0 %1628  ;;  %v16324_v4 = vld [vmem:[#allocation57_spill] sm:$0xff]  ;;  %v1645_v37 = vsel %vm221_vm4, %v12340_v7, %v12285_v33 }
 0x3a0   :  { %2160 = vperm.xlu1 %9267, %v2142_v43   ;;  %8304 = vmatmul.mubr.msk.bf16.gmra.mrb[40].mxu1 %vm2288_vm10, %v12118_v29  ;;  %v1235_v58 = vsel %vm120_vm1, %v12264_v19, %v16324_v4  ;;  %v16328_v19 = vld [vmem:[#allocation3_spill] sm:$0xff]  ;;  %v16336_v43 = vld [vmem:[#allocation58_spill] sm:$0xff] }
 0x3a1   :  { %2772 = vmatmul.mubr.bf16.vlgmr.msra.gmra.mrb[48].mxu0 %v11578_v45  ;;  %2728 = vmatprep.mubr.bf16.mxu1 %v16310_v48 }
 0x3a2   :  { %2813 = vmatpush1.bf16.msra.mxu0 %v10843_v8  ;;  %2967 = vmatpush1.bf16.msra.mxu1 %v1227_v40  ;;  %v1206_v50 = vpop.permute.xlu1 %1205  ;;  %v2146_v8 = vld [vmem:[%s15890_s4 + $0x30] sm:$0xff]  ;;  %s10104_s4 = smov 111  }
 0x3a3   :  { %2814 = vmatprep.subr.bf16.mxu0 %v10866_v20  ;;  %2968 = vmatprep.subr.bf16.mxu1 %v1235_v58  ;;  %v12359_v45 = vpop.permute.xlu0 %1715  ;;  %v1242_v20 = vsel %vm120_vm1, %v1206_v50, %v16327_v59  ;;  %v1241_v42 = vsel %vm120_vm1, %v11915_v35, %v1206_v50  ;;  %v1248_v35 = vsel %vm120_vm1, %v11971_v63, %v1220_v61  ;;  %v16335_v61 = vld [vmem:[#allocation5_spill] sm:$0xff]  ;;  %v16340_v59 = vld [vmem:[#allocation23_spill] sm:$0xff] }
 0x3a4   :  { %2170 = vperm.xlu1 %9267, %v2144_v36   ;;  %2781 = vmatprep.mubr.bf16.mxu0 %v16325_v47  ;;  %v1637_v63 = vsel %vm221_vm4, %v16334_v17, %v12245_v3  ;;  %v16337_v36 = vld [vmem:[#allocation9_spill] sm:$0xff]  ;;  %v16346_v17 = vld [vmem:[#allocation42_spill] sm:$0xff] }
 0x3a6   :  { %2815 = vmatpush1.bf16.msra.mxu0 %v16326_v62  ;;  %2969 = vmatpush1.bf16.msra.mxu1 %v1234_v54  ;;  %v12371_v14 = vpop.permute.xlu1 %1612 }
 0x3a7   :  { %2816 = vmatprep.subr.bf16.mxu0 %v10886_v15  ;;  %2970 = vmatprep.subr.bf16.mxu1 %v1242_v20  ;;  %v1329_v10 = vpop.permute.xlu0 %1328  ;;  %v1652_v50 = vsel %vm221_vm4, %v12303_v31, %v12371_v14  ;;  %v16341_v20 = vld [vmem:[#allocation14_spill] sm:$0xff] }
 0x3a8   :  { %2180 = vperm.xlu1 %9267, %v2146_v8   ;;  %8305 = vmatmul.mubr.msk.bf16.gmra.mrb[44].mxu1 %vm2288_vm10, %v12158_v13  ;;  %v1372_v60 = vsel %vm154_vm2, %v1329_v10, %v16336_v43  ;;  %v1371_v58 = vsel %vm154_vm2, %v12024_v39, %v1329_v10  ;;  %v16339_v8 = vld [vmem:[#allocation4_spill] sm:$0xff] }
 0x3a9   :  { %2782 = vmatmul.mubr.bf16.gmra.mrb[52].mxu0 %v16328_v19  ;;  %2990 = vmatprep.mubr.bf16.mxu1 %v12190_v2  ;;  %v1638_v2 = vsel %vm221_vm4, %v12245_v3, %v12324_v1  ;;  %v16338_v3 = vld [vmem:[#allocation11_spill] sm:$0xff]  ;;  %v1651_v62 = vsel %vm221_vm4, %v16339_v8, %v12303_v31 }
 0x3aa   :  { %2817 = vmatpush1.bf16.msra.mxu0 %v16329_v57  ;;  %2971 = vmatpush1.bf16.msra.mxu1 %v1241_v42  ;;  %v1627_v15 = vpop.permute.xlu1 %1626  ;;  %v1644_v4 = vsel %vm221_vm4, %v16338_v3, %v12340_v7  ;;  %v16342_v42 = vld [vmem:[#allocation67_spill] sm:$0xff] }
 0x3ab   :  { %2818 = vmatprep.subr.bf16.mxu0 %v10905_v34  ;;  %2972 = vmatprep.subr.bf16.mxu1 %v1249_v41  ;;  %v12384_v24 = vpop.permute.xlu0 %1733  ;;  %v1659_v39 = vsel %vm221_vm4, %v1627_v15, %v12343_v5  ;;  %v1658_v31 = vsel %vm221_vm4, %v16343_v11, %v1627_v15  ;;  %v16344_v41 = vld [vmem:[#allocation69_spill] sm:$0xff]  ;;  %v16349_v3 = vld [vmem:[#allocation59_spill] sm:$0xff] }
 0x3ac   :  { %2791 = vmatprep.mubr.bf16.mxu0 %v16331_v56 }
 0x3ae   :  { %2819 = vmatpush1.bf16.msra.mxu0 %v16332_v30  ;;  %2973 = vmatpush1.bf16.msra.mxu1 %v1248_v35  ;;  %v1315_v46 = vpop.permute.xlu1 %1314 }
 0x3af   :  { %2820 = vmatprep.subr.bf16.mxu0 %v1638_v2  ;;  %v1748_v25 = vpop.permute.xlu0 %1747  ;;  %v1365_v34 = vsel %vm154_vm2, %v1315_v46, %v16333_v28  ;;  %v1364_v44 = vsel %vm154_vm2, %v12007_v49, %v1315_v46  ;;  %v16345_v46 = vld [vmem:[#allocation16_spill] sm:$0xff] }
 0x3b0   :  { %2974 = vmatprep.subr.bf16.mxu1 %v1365_v34  ;;  %v1774_v15 = vsel %vm255_vm5, %v16345_v46, %v12359_v45  ;;  %v16355_v46 = vld [vmem:[#allocation44_spill] sm:$0xff] }
 0x3b1   :  { %2792 = vmatmul.mubr.bf16.gmra.mrb[56].mxu0 %v16335_v61 }
 0x3b2   :  { %2821 = vmatpush1.bf16.msra.mxu0 %v1637_v63  ;;  %2975 = vmatpush1.bf16.msra.mxu1 %v1364_v44  ;;  %v12406_v40 = vpop.permute.xlu1 %1717 }
 0x3b3   :  { %2822 = vmatprep.subr.bf16.mxu0 %v1645_v37  ;;  %2976 = vmatprep.subr.bf16.mxu1 %v1372_v60  ;;  %v1357_v49 = vpop.permute.xlu0 %1356  ;;  %v1775_v35 = vsel %vm255_vm5, %v12359_v45, %v12406_v40  ;;  %v16347_v45 = vld [vmem:[#allocation62_spill] sm:$0xff] }
 0x3b4   :  { %2801 = vmatprep.mubr.bf16.mxu0 %v16337_v36  ;;  %v1386_v56 = vsel %vm154_vm2, %v1357_v49, %v16344_v41  ;;  %v16353_v41 = vld [vmem:[#allocation24_spill] sm:$0xff] }
 0x3b6   :  { %2823 = vmatpush1.bf16.msra.mxu0 %v1644_v4  ;;  %2977 = vmatpush1.bf16.msra.mxu1 %v1371_v58  ;;  %v1732_v47 = vpop.permute.xlu1 %1731 }
 0x3b7   :  { %2824 = vmatprep.subr.bf16.mxu0 %v1652_v50  ;;  %v12417_v54 = vpop.permute.xlu0 %1765  ;;  %v1782_v28 = vsel %vm255_vm5, %v1732_v47, %v12384_v24  ;;  %v1781_v63 = vsel %vm255_vm5, %v16346_v17, %v1732_v47 }
 0x3b9   :  { %2802 = vmatmul.mubr.bf16.gmra.mrb[60].mxu0 %v16340_v59 }
 0x3ba   :  { %2825 = vmatpush1.bf16.msra.mxu0 %v1651_v62  ;;  %v1343_v7 = vpop.permute.xlu1 %1342  ;;  %2844 = vmatprep.mubr.bf16.mxu0 %v16341_v20  ;;  %v16351_v20 = vld [vmem:[#allocation53_spill] sm:$0xff] }
 0x3bb   :  { %2826 = vmatprep.subr.bf16.mxu0 %v1659_v39  ;;  %v1853_v10 = vpop.permute.xlu0 %1852  ;;  %v1379_v19 = vsel %vm154_vm2, %v1343_v7, %v16342_v42  ;;  %v1378_v57 = vsel %vm154_vm2, %v12032_v53, %v1343_v7  ;;  %v1385_v53 = vsel %vm154_vm2, %v12049_v27, %v1357_v49  ;;  %v16348_v49 = vld [vmem:[#allocation40_spill] sm:$0xff] }
 0x3bc   :  { %2978 = vmatprep.subr.bf16.mxu1 %v1379_v19  ;;  %v1788_v36 = vsel %vm255_vm5, %v16348_v49, %v1748_v25  ;;  %v1911_v42 = vsel %vm289_vm6, %v16351_v20, %v1853_v10 }
 0x3bd   :  { %2979 = vmatpush1.bf16.msra.mxu1 %v1378_v57  ;;  %v16352_v57 = vld [vmem:[#allocation68_spill] sm:$0xff] }
 0x3be   :  { %2827 = vmatpush1.bf16.msra.mxu0 %v1658_v31  ;;  %2980 = vmatprep.subr.bf16.mxu1 %v1386_v56  ;;  %v12437_v30 = vpop.permute.xlu1 %1749 }
 0x3bf   :  { %2828 = vmatprep.subr.bf16.mxu0 %v1775_v35  ;;  %v1466_v2 = vpop.permute.xlu0 %1465  ;;  %v1789_v27 = vsel %vm255_vm5, %v1748_v25, %v12437_v30  ;;  %v16350_v25 = vld [vmem:[#allocation50_spill] sm:$0xff]  ;;  %v16354_v35 = vld [vmem:[#allocation73_spill] sm:$0xff] }
 0x3c0   :  { %v1509_v4 = vsel %vm188_vm3, %v1466_v2, %v16349_v3  ;;  %v1508_v8 = vsel %vm188_vm3, %v12105_v51, %v1466_v2 }
 0x3c1   :  { %2981 = vmatpush1.bf16.msra.mxu1 %v1385_v53 }
 0x3c2   :  { %2829 = vmatpush1.bf16.msra.mxu0 %v1774_v15  ;;  %v1764_v34 = vpop.permute.xlu1 %1763 }
 0x3c3   :  { %2830 = vmatprep.subr.bf16.mxu0 %v1782_v28  ;;  %v12446_v44 = vpop.permute.xlu0 %1870  ;;  %v1796_v58 = vsel %vm255_vm5, %v1764_v34, %v12417_v54  ;;  %v1795_v62 = vsel %vm255_vm5, %v16350_v25, %v1764_v34  ;;  %v16362_v25 = vld [vmem:[#allocation17_spill] sm:$0xff] }
 0x3c6   :  { %2831 = vmatpush1.bf16.msra.mxu0 %v1781_v63  ;;  %v1452_v61 = vpop.permute.xlu1 %1451  ;;  %v16356_v63 = vld [vmem:[#allocation25_spill] sm:$0xff] }
 0x3c7   :  { %2832 = vmatprep.subr.bf16.mxu0 %v1789_v27  ;;  %v1885_v37 = vpop.permute.xlu0 %1884  ;;  %v1502_v43 = vsel %vm188_vm3, %v1452_v61, %v16347_v45  ;;  %v1501_v60 = vsel %vm188_vm3, %v12067_v12, %v1452_v61  ;;  %v16357_v61 = vld [vmem:[#allocation6_spill] sm:$0xff] }
 0x3c8   :  { %2982 = vmatprep.subr.bf16.mxu1 %v1502_v43  ;;  %v1925_v15 = vsel %vm289_vm6, %v16355_v46, %v1885_v37  ;;  %v16358_v43 = vld [vmem:[#allocation32_spill] sm:$0xff]  ;;  %v16368_v46 = vld [vmem:[#allocation54_spill] sm:$0xff] }
 0x3c9   :  { %2983 = vmatpush1.bf16.msra.mxu1 %v1501_v60  ;;  %v16359_v60 = vld [vmem:[#allocation10_spill] sm:$0xff] }
 0x3ca   :  { %2833 = vmatpush1.bf16.msra.mxu0 %v1788_v36  ;;  %2984 = vmatprep.subr.bf16.mxu1 %v1509_v4  ;;  %v12462_v50 = vpop.permute.xlu1 %1854  ;;  %v16360_v36 = vld [vmem:[#allocation13_spill] sm:$0xff] }
 0x3cb   :  { %2834 = vmatprep.subr.bf16.mxu0 %v1796_v58  ;;  %v1494_v47 = vpop.permute.xlu0 %1493  ;;  %v1912_v12 = vsel %vm289_vm6, %v1853_v10, %v12462_v50  ;;  %v10079_v4 = vld [vmem:[%s15889_s3 + $0x28] ss:$20 sps:$4 sm:$0xff]  }
 0x3cc   :  { %v1523_v2 = vsel %vm188_vm3, %v1494_v47, %v16354_v35 }
 0x3cd   :  { %2985 = vmatpush1.bf16.msra.mxu1 %v1508_v8  ;;  %v16361_v8 = vld [vmem:[#allocation37_spill] sm:$0xff] }
 0x3ce   :  { %2835 = vmatpush1.bf16.msra.mxu0 %v1795_v62  ;;  %v1869_v59 = vpop.permute.xlu1 %1868 }
 0x3cf   :  { %2836 = vmatprep.subr.bf16.mxu0 %v1912_v12  ;;  %v12470_v39 = vpop.permute.xlu0 %1902  ;;  %v1919_v7 = vsel %vm289_vm6, %v1869_v59, %v12446_v44  ;;  %v1918_v56 = vsel %vm289_vm6, %v16353_v41, %v1869_v59  ;;  %v16364_v59 = vld [vmem:[#allocation41_spill] sm:$0xff] }
 0x3d2   :  { %2837 = vmatpush1.bf16.msra.mxu0 %v1911_v42  ;;  %v1480_v19 = vpop.permute.xlu1 %1479  ;;  %v16365_v42 = vld [vmem:[#allocation35_spill] sm:$0xff] }
 0x3d3   :  { %2838 = vmatprep.subr.bf16.mxu0 %v1919_v7  ;;  %v1516_v51 = vsel %vm188_vm3, %v1480_v19, %v16352_v57  ;;  %v1515_v11 = vsel %vm188_vm3, %v12141_v0, %v1480_v19  ;;  %v1990_v31 = vpop.permute.xlu0 %1989  ;;  %v1522_v0 = vsel %vm188_vm3, %v12181_v16, %v1494_v47  ;;  %v10077_v16 = vld [vmem:[%s15889_s3] ss:$20 sps:$4 sm:$0xff]   ;;  %v10082_v57 = vld [vmem:[%s15889_s3 + $0x7c] ss:$20 sps:$4 sm:$0xff]  }
 0x3d4   :  { %2986 = vmatprep.subr.bf16.mxu1 %v1516_v51  ;;  %v10080_v47 = vld [vmem:[%s15889_s3 + $0x54] ss:$20 sps:$4 sm:$0xff]  }
 0x3d5   :  { %2987 = vmatpush1.bf16.msra.mxu1 %v1515_v11 }
 0x3d6   :  { %2839 = vmatpush1.bf16.msra.mxu0 %v1918_v56  ;;  %2988 = vmatprep.subr.bf16.mxu1 %v1523_v2  ;;  %v12484_v10 = vpop.permute.xlu1 %1886  ;;  %v16367_v56 = vld [vmem:[#allocation48_spill] sm:$0xff] }
 0x3d7   :  { %v1926_v53 = vsel %vm289_vm6, %v1885_v37, %v12484_v10  ;;  %v1599_v28 = vpop.permute.xlu0 %1598  ;;  %v10078_v37 = vld [vmem:[%s15889_s3 + $0x2c] ss:$20 sps:$4 sm:$0xff]  }
 0x3d8   :  { %2840 = vmatprep.subr.bf16.mxu0 %v1926_v53  ;;  %v1695_v19 = vsel %vm221_vm4, %v1599_v28, %v16365_v42  ;;  %v1646_v11 = vsel %vm221_vm4, %v12285_v33, %v1599_v28  ;;  %v16369_v28 = vld [vmem:[#allocation52_spill] sm:$0xff]  ;;  %v16379_v42 = vld [vmem:[#allocation7_spill] sm:$0xff] }
 0x3d9   :  { %2989 = vmatpush1.bf16.msra.mxu1 %v1522_v0 }
 0x3da   :  { %2841 = vmatpush1.bf16.msra.mxu0 %v1925_v15  ;;  %3031 = vmatprep.subr.bf16.mxu1 %v16315_v52  ;;  %v1901_v34 = vpop.permute.xlu1 %1900  ;;  %v10083_v15 = vld [vmem:[%s15889_s3 + $0x78] ss:$20 sps:$4 sm:$0xff]  }
 0x3db   :  { %v1933_v17 = vsel %vm289_vm6, %v1901_v34, %v12470_v39  ;;  %v1932_v27 = vsel %vm289_vm6, %v16356_v63, %v1901_v34  ;;  %v12505_v45 = vpop.permute.xlu0 %2007  ;;  %v16370_v63 = vld [vmem:[#allocation34_spill] sm:$0xff] }
 0x3dc   :  { %2842 = vmatprep.subr.bf16.mxu0 %v1933_v17  ;;  %2991 = vmatmul.mubr.bf16.vlgmr.msra.gmra.mrb[48].mxu1 %v10077_v16  ;;  %v10084_v17 = vld [vmem:[%s15889_s3 + $0xc] ss:$20 sps:$4 sm:$0xff]  }
 0x3dd   :  { %3032 = vmatpush1.bf16.msra.mxu1 %v16357_v61  ;;  %3000 = vmatprep.mubr.bf16.mxu1 %v10078_v37 }
 0x3de   :  { %2843 = vmatpush1.bf16.msra.mxu0 %v1932_v27  ;;  %3033 = vmatprep.subr.bf16.mxu1 %v16313_v21  ;;  %v1583_v52 = vpop.permute.xlu1 %1582  ;;  %v2048_v21 = vsel %vm323_vm7, %v12087_v6, %v1990_v31  ;;  %v16371_v27 = vld [vmem:[#allocation30_spill] sm:$0xff] }
 0x3df   :  { %v1639_v20 = vsel %vm221_vm4, %v12324_v1, %v1583_v52 }
 0x3e1   :  { %2845 = vmatmul.mubr.bf16.vlgmr.msra.gmra.mrb[48].mxu0 %v16358_v43  ;;  %3034 = vmatpush1.bf16.msra.mxu1 %v16359_v60 }
 0x3e2   :  { %3035 = vmatprep.subr.bf16.mxu1 %v16320_v23  ;;  %v12510_v49 = vpop.permute.xlu1 %1991  ;;  %2854 = vmatprep.mubr.bf16.mxu0 %v16360_v36  ;;  %v2022_v23 = vpop.permute.xlu0 %2021  ;;  %v16373_v36 = vld [vmem:[#allocation49_spill] sm:$0xff] }
 0x3e3   :  { %v2049_v3 = vsel %vm323_vm7, %v1990_v31, %v12510_v49  ;;  %v16366_v31 = vld [vmem:[#allocation51_spill] sm:$0xff]  ;;  %v2062_v41 = vsel %vm323_vm7, %v12165_v32, %v2022_v23 }
 0x3e4   :  { %2885 = vmatprep.subr.bf16.mxu0 %v2049_v3  ;;  %3001 = vmatmul.mubr.bf16.gmra.mrb[52].mxu1 %v10079_v4  ;;  %v16374_v4 = vld [vmem:[#allocation55_spill] sm:$0xff] }
 0x3e5   :  { %2886 = vmatpush1.bf16.msra.mxu0 %v2048_v21  ;;  %3036 = vmatpush1.bf16.msra.mxu1 %v16285_v22  ;;  %v16363_v22 = vld [vmem:[#allocation28_spill] sm:$0xff] }
 0x3e6   :  { %3037 = vmatprep.subr.bf16.mxu1 %v16318_v18  ;;  %v2006_v58 = vpop.permute.xlu1 %2005  ;;  %3010 = vmatprep.mubr.bf16.mxu1 %v10080_v47  ;;  %v1691_v18 = vsel %vm221_vm4, %v1583_v52, %v16363_v22  ;;  %v1631_v7 = vpop.permute.xlu0 %1630  ;;  %v16372_v52 = vld [vmem:[#allocation38_spill] sm:$0xff]  ;;  %v16375_v47 = vld [vmem:[#allocation64_spill] sm:$0xff] }
 0x3e7   :  { %v2056_v6 = vsel %vm323_vm7, %v2006_v58, %v12505_v45  ;;  %v2055_v12 = vsel %vm323_vm7, %v12125_v26, %v2006_v58  ;;  %v10081_v26 = vld [vmem:[%s15889_s3 + $0x50] ss:$20 sps:$4 sm:$0xff]   ;;  %v1703_v34 = vsel %vm221_vm4, %v1631_v7, %v16369_v28 }
 0x3e8   :  { %2887 = vmatprep.subr.bf16.mxu0 %v2056_v6 }
 0x3e9   :  { %2855 = vmatmul.mubr.bf16.gmra.mrb[52].mxu0 %v16361_v8  ;;  %3038 = vmatpush1.bf16.msra.mxu1 %v16362_v25  ;;  %v16376_v8 = vld [vmem:[#allocation63_spill] sm:$0xff] }
 0x3ea   :  { %2888 = vmatpush1.bf16.msra.mxu0 %v2055_v12  ;;  %3039 = vmatprep.subr.bf16.mxu1 %v1691_v18  ;;  %v1615_v62 = vpop.permute.xlu1 %1614  ;;  %v12555_v2 = vpop.permute.xlu0 %2039  ;;  %v16377_v18 = vld [vmem:[#allocation71_spill] sm:$0xff] }
 0x3eb   :  { %2864 = vmatprep.mubr.bf16.mxu0 %v16364_v59  ;;  %v1699_v35 = vsel %vm221_vm4, %v1615_v62, %v16367_v56  ;;  %v1653_v32 = vsel %vm221_vm4, %v12371_v14, %v1615_v62  ;;  %v1660_v14 = vsel %vm221_vm4, %v12343_v5, %v1631_v7  ;;  %v16378_v7 = vld [vmem:[#allocation70_spill] sm:$0xff] }
 0x3ec   :  { %3011 = vmatmul.mubr.bf16.gmra.mrb[56].mxu1 %v10081_v26 }
 0x3ed   :  { %3040 = vmatpush1.bf16.msra.mxu1 %v1639_v20  ;;  %3020 = vmatprep.mubr.bf16.mxu1 %v10082_v57 }
 0x3ee   :  { %3041 = vmatprep.subr.bf16.mxu1 %v1695_v19  ;;  %v12544_v51 = vpop.permute.xlu1 %2023  ;;  %v1736_v61 = vpop.permute.xlu0 %1735 }
 0x3ef   :  { %v2063_v1 = vsel %vm323_vm7, %v2022_v23, %v12544_v51  ;;  %v1832_v43 = vsel %vm255_vm5, %v1736_v61, %v16372_v52  ;;  %v1783_v5 = vsel %vm255_vm5, %v12384_v24, %v1736_v61 }
 0x3f0   :  { %2889 = vmatprep.subr.bf16.mxu0 %v2063_v1 }
 0x3f1   :  { %2865 = vmatmul.mubr.bf16.gmra.mrb[56].mxu0 %v16366_v31  ;;  %3042 = vmatpush1.bf16.msra.mxu1 %v1646_v11  ;;  %v16380_v11 = vld [vmem:[#allocation45_spill] sm:$0xff]  ;;  %v10086_v31 = vld [vmem:[%s15889_s3 + $0x34] ss:$20 sps:$4 sm:$0xff]  }
 0x3f2   :  { %2890 = vmatpush1.bf16.msra.mxu0 %v2062_v41  ;;  %3043 = vmatprep.subr.bf16.mxu1 %v1699_v35  ;;  %v2038_v53 = vpop.permute.xlu1 %2037  ;;  %v1768_v21 = vpop.permute.xlu0 %1767  ;;  %v16381_v35 = vld [vmem:[#allocation18_spill] sm:$0xff] }
 0x3f3   :  { %v2070_v0 = vsel %vm323_vm7, %v2038_v53, %v12555_v2  ;;  %v2069_v33 = vsel %vm323_vm7, %v12205_v55, %v2038_v53  ;;  %2874 = vmatprep.mubr.bf16.mxu0 %v16368_v46  ;;  %v1840_v23 = vsel %vm255_vm5, %v1768_v21, %v16374_v4  ;;  %v1797_v24 = vsel %vm255_vm5, %v12417_v54, %v1768_v21 }
 0x3f4   :  { %2891 = vmatprep.subr.bf16.mxu0 %v2070_v0  ;;  %3021 = vmatmul.mubr.bf16.gmra.mrb[60].mxu1 %v10083_v15 }
 0x3f5   :  { %3044 = vmatpush1.bf16.msra.mxu1 %v1653_v32  ;;  %3063 = vmatprep.mubr.bf16.mxu1 %v10084_v17  ;;  %v16382_v32 = vld [vmem:[#allocation36_spill] sm:$0xff] }
 0x3f6   :  { %2892 = vmatpush1.bf16.msra.mxu0 %v2069_v33  ;;  %3045 = vmatprep.subr.bf16.mxu1 %v1703_v34  ;;  %v1720_v55 = vpop.permute.xlu1 %1719  ;;  %v1873_v12 = vpop.permute.xlu0 %1872  ;;  %v10089_v34 = vld [vmem:[%s15889_s3 + $0x58] ss:$20 sps:$4 sm:$0xff]  }
 0x3f7   :  { %v1828_v16 = vsel %vm255_vm5, %v1720_v55, %v16371_v27  ;;  %v1776_v37 = vsel %vm255_vm5, %v12406_v40, %v1720_v55  ;;  %v1969_v25 = vsel %vm289_vm6, %v1873_v12, %v16376_v8  ;;  %v1920_v54 = vsel %vm289_vm6, %v12446_v44, %v1873_v12 }
 0x3f9   :  { %2875 = vmatmul.mubr.bf16.gmra.mrb[60].mxu0 %v16370_v63  ;;  %3046 = vmatpush1.bf16.msra.mxu1 %v1660_v14 }
 0x3fa   :  { %3047 = vmatprep.subr.bf16.mxu1 %v1828_v16  ;;  %2917 = vmatprep.mubr.bf16.mxu0 %v16310_v48  ;;  %v1752_v60 = vpop.permute.xlu1 %1751  ;;  %v1905_v59 = vpop.permute.xlu0 %1904 }
 0x3fb   :  { %v1836_v3 = vsel %vm255_vm5, %v1752_v60, %v16373_v36  ;;  %v1790_v40 = vsel %vm255_vm5, %v12437_v30, %v1752_v60  ;;  %v1977_v20 = vsel %vm289_vm6, %v1905_v59, %v16378_v7  ;;  %v1934_v44 = vsel %vm289_vm6, %v12470_v39, %v1905_v59 }
 0x3fd   :  { %3048 = vmatpush1.bf16.msra.mxu1 %v1776_v37 }
 0x3fe   :  { %3049 = vmatprep.subr.bf16.mxu1 %v1832_v43  ;;  %v1857_v58 = vpop.permute.xlu1 %1856  ;;  %v2010_v57 = vpop.permute.xlu0 %2009 }
 0x3ff   :  { %v1965_v6 = vsel %vm289_vm6, %v1857_v58, %v16375_v47  ;;  %v1913_v30 = vsel %vm289_vm6, %v12462_v50, %v1857_v58  ;;  %v2106_v39 = vsel %vm323_vm7, %v2010_v57, %v16380_v11  ;;  %v2057_v56 = vsel %vm323_vm7, %v12505_v45, %v2010_v57  ;;  %v10088_v45 = vld [vmem:[%s15889_s3 + $0x5c] ss:$20 sps:$4 sm:$0xff]  }
 0x401   :  { %8306 = vmatmul.mubr.msk.bf16.vlgmr.msra.gmra.mrb[48].mxu0 %vm2288_vm10, %v12045_v38  ;;  %3050 = vmatpush1.bf16.msra.mxu1 %v1783_v5 }
 0x402   :  { %3051 = vmatprep.subr.bf16.mxu1 %v1836_v3  ;;  %2927 = vmatprep.mubr.bf16.mxu0 %v16310_v48  ;;  %v1889_v22 = vpop.permute.xlu1 %1888  ;;  %v2042_v0 = vpop.permute.xlu0 %2041 }
 0x403   :  { %v1973_v62 = vsel %vm289_vm6, %v1889_v22, %v16377_v18  ;;  %v1927_v50 = vsel %vm289_vm6, %v12484_v10, %v1889_v22  ;;  %v10085_v10 = vld [vmem:[%s15889_s3 + $0x8] ss:$20 sps:$4 sm:$0xff]   ;;  %v2114_v15 = vsel %vm323_vm7, %v2042_v0, %v16382_v32  ;;  %v2071_v28 = vsel %vm323_vm7, %v12555_v2, %v2042_v0 }
 0x405   :  { %3052 = vmatpush1.bf16.msra.mxu1 %v1790_v40 }
 0x406   :  { %3053 = vmatprep.subr.bf16.mxu1 %v1840_v23  ;;  %v1994_v26 = vpop.permute.xlu1 %1993 }
 0x407   :  { %v2102_v19 = vsel %vm323_vm7, %v1994_v26, %v16379_v42  ;;  %v2050_v1 = vsel %vm323_vm7, %v12510_v49, %v1994_v26  ;;  %v10087_v49 = vld [vmem:[%s15889_s3 + $0x30] ss:$20 sps:$4 sm:$0xff]  }
 0x409   :  { %8307 = vmatmul.mubr.msk.bf16.gmra.mrb[52].mxu0 %vm2288_vm10, %v12080_v9  ;;  %3054 = vmatpush1.bf16.msra.mxu1 %v1797_v24 }
 0x40a   :  { %3055 = vmatprep.subr.bf16.mxu1 %v1965_v6  ;;  %2937 = vmatprep.mubr.bf16.mxu0 %v16310_v48  ;;  %v2026_v41 = vpop.permute.xlu1 %2025 }
 0x40b   :  { %v2110_v53 = vsel %vm323_vm7, %v2026_v41, %v16381_v35  ;;  %v2064_v33 = vsel %vm323_vm7, %v12544_v51, %v2026_v41 }
 0x40d   :  { %3056 = vmatpush1.bf16.msra.mxu1 %v1913_v30 }
 0x40e   :  { %3057 = vmatprep.subr.bf16.mxu1 %v1969_v25 }
 0x410   :  { %v12682_v36 = vpop.permute.xlu0 %2155 }
 0x411   :  { %8308 = vmatmul.mubr.msk.bf16.gmra.mrb[56].mxu0 %vm2288_vm10, %v12118_v29  ;;  %3058 = vmatpush1.bf16.msra.mxu1 %v1920_v54 }
 0x412   :  { %3059 = vmatprep.subr.bf16.mxu1 %v1973_v62  ;;  %2947 = vmatprep.mubr.bf16.mxu0 %v16310_v48 }
 0x414   :  { %v12712_v54 = vpop.permute.xlu0 %2165 }
 0x415   :  { %3060 = vmatpush1.bf16.msra.mxu1 %v1927_v50 }
 0x416   :  { %3061 = vmatprep.subr.bf16.mxu1 %v1977_v20 }
 0x419   :  { %8309 = vmatmul.mubr.msk.bf16.gmra.mrb[60].mxu0 %vm2288_vm10, %v12158_v13  ;;  %3062 = vmatpush1.bf16.msra.mxu1 %v1934_v44 }
 0x41a   :  { %3104 = vmatprep.subr.bf16.mxu1 %v2102_v19 }
 0x41c   :  { %3064 = vmatmul.mubr.bf16.vlgmr.msra.gmra.mrb[48].mxu1 %v10085_v10 }
 0x41d   :  { %3105 = vmatpush1.bf16.msra.mxu1 %v2050_v1  ;;  %3073 = vmatprep.mubr.bf16.mxu1 %v10086_v31 }
 0x41e   :  { %3106 = vmatprep.subr.bf16.mxu1 %v2106_v39 }
 0x421   :  { %3107 = vmatpush1.bf16.msra.mxu1 %v2057_v56 }
 0x422   :  { %3108 = vmatprep.subr.bf16.mxu1 %v2110_v53 }
 0x424   :  { %3074 = vmatmul.mubr.bf16.gmra.mrb[52].mxu1 %v10087_v49  ;;  %v12760_v49 = vpop.permute.xlu0 %2175 }
 0x425   :  { %3109 = vmatpush1.bf16.msra.mxu1 %v2064_v33  ;;  %3083 = vmatprep.mubr.bf16.mxu1 %v10088_v45 }
 0x426   :  { %3110 = vmatprep.subr.bf16.mxu1 %v2114_v15 }
 0x429   :  { %3111 = vmatpush1.bf16.msra.mxu1 %v2071_v28 }
 0x42c   :  { %3084 = vmatmul.mubr.bf16.gmra.mrb[56].mxu1 %v10089_v34 }
 0x42d   :  { %3093 = vmatprep.mubr.bf16.mxu1 %v16368_v46 }
 0x434   :  { %v2481_v51 = vpop.f32.mrb[32].mxu0  ;;  %3094 = vmatmul.mubr.bf16.gmra.mrb[60].mxu1 %v16370_v63 }
 0x435   :  { %v2483_v17 = vpop.f32.mrb[33].mxu0  ;;  %3136 = vmatprep.mubr.bf16.mxu1 %v16310_v48 }
 0x436   :  { %v2485_v55 = vpop.f32.mrb[34].mxu0 }
 0x437   :  { %v2487_v14 = vpop.f32.mrb[35].mxu0  ;;  %v12694_v23 = vadd.f32 %v2485_v55, %v12682_v36 }
 0x439   :  { %v16042_v59 = vmax.f32 %v12694_v23, 0.0 }
 0x43c   :  { %v2491_v27 = vpop.f32.mrb[36].mxu0  ;;  %8310 = vmatmul.mubr.msk.bf16.vlgmr.msra.gmra.mrb[48].mxu1 %vm2288_vm10, %v12045_v38 }
 0x43d   :  { %v12655_v2 = vpop.f32.mrb[37].mxu0  ;;  %3146 = vmatprep.mubr.bf16.mxu1 %v16310_v48 }
 0x43e   :  { %v2495_v16 = vpop.f32.mrb[38].mxu0 }
 0x43f   :  { %v2497_v61 = vpop.f32.mrb[39].mxu0  ;;  %v12721_v50 = vadd.f32 %v2495_v16, %v12712_v54 }
 0x440   :  { %v12754_v53 = vadd.f32 %v2497_v61, %v12712_v54 }
 0x441   :  { %v16035_v11 = vmax.f32 %v12721_v50, 0.0 }
 0x444   :  { %v12658_v37 = vpop.f32.mrb[40].mxu0  ;;  %8311 = vmatmul.mubr.msk.bf16.gmra.mrb[52].mxu1 %vm2288_vm10, %v12080_v9  ;;  %v12680_v9 = vpop.permute.xlu1 %2150 }
 0x445   :  { %v12662_v46 = vpop.f32.mrb[41].mxu0  ;;  %3156 = vmatprep.mubr.bf16.mxu1 %v16310_v48  ;;  %v12685_v3 = vadd.f32 %v2483_v17, %v12680_v9  ;;  %v12705_v30 = vadd.f32 %v2481_v51, %v12680_v9  ;;  %v16039_v51 = vmax.f32 %v12754_v53, 0.0 }
 0x446   :  { %v2505_v63 = vpop.f32.mrb[42].mxu0 }
 0x447   :  { %v12665_v52 = vpop.f32.mrb[43].mxu0  ;;  %v3178_v24 = vmax.f32 %v12685_v3, 0.0  ;;  %v16041_v44 = vmax.f32 %v12705_v30, 0.0  ;;  %v12768_v15 = vadd.f32 %v2505_v63, %v12760_v49 }
 0x448   :  { %v12728_v26 = vpop.permute.xlu1 %2160 }
 0x449   :  { %v12733_v42 = vadd.f32 %v2491_v27, %v12728_v26  ;;  %v9283_v1 = vpack.i.bf16 %v16042_v59, %v16041_v44  ;;  %v16020_v16 = vmax.f32 %v12768_v15, 0.0  ;;  %v9747_v59 = vld [vmem:[%s15891_s6 + $0xf4] ss:$8 sps:$4 sm:$0xff]  }
 0x44b   :  { %v16036_v35 = vmax.f32 %v12733_v42, 0.0 }
 0x44c   :  { %v12667_v43 = vpop.f32.mrb[44].mxu0  ;;  %8312 = vmatmul.mubr.msk.bf16.gmra.mrb[56].mxu1 %vm2288_vm10, %v12118_v29  ;;  %v12688_v29 = vadd.f32 %v2487_v14, %v12682_v36  ;;  %v12772_v34 = vpop.permute.xlu1 %2170 }
 0x44d   :  { %v12671_v38 = vpop.f32.mrb[45].mxu0  ;;  %3166 = vmatprep.mubr.bf16.mxu1 %v16310_v48  ;;  %v9308_v32 = vpack.i.bf16 %v16035_v11, %v16036_v35  ;;  %v12777_v17 = vadd.f32 %v12658_v37, %v12772_v34  ;;  %v9742_v11 = vld [vmem:[%s15891_s6 + $0xe0] ss:$8 sps:$4 sm:$0xff]  }
 0x44e   :  { %v12674_v60 = vpop.f32.mrb[46].mxu0  ;;  %v16045_v8 = vmax.f32 %v12688_v29, 0.0 }
 0x44f   :  { %v12676_v5 = vpop.f32.mrb[47].mxu0 }
 0x454   :  { %8313 = vmatmul.mubr.msk.bf16.gmra.mrb[60].mxu1 %vm2288_vm10, %v12158_v13 }
 0x463   :  { %v2700_v21 = vpop.f32.mrb[32].mxu1 }
 0x464   :  { %v12691_v40 = vadd.f32 %v2700_v21, %v12680_v9  ;;  %v2702_v4 = vpop.f32.mrb[33].mxu1 }
 0x465   :  { %v12697_v13 = vadd.f32 %v2702_v4, %v12680_v9  ;;  %v2704_v58 = vpop.f32.mrb[34].mxu1 }
 0x466   :  { %v3179_v47 = vmax.f32 %v12691_v40, 0.0  ;;  %v12702_v6 = vadd.f32 %v2704_v58, %v12682_v36  ;;  %v2706_v12 = vpop.f32.mrb[35].mxu1  ;;  %v16022_v58 = vmax.f32 %v12777_v17, 0.0 }
 0x467   :  { %v16019_v25 = vmax.f32 %v12697_v13, 0.0  ;;  %v12710_v22 = vadd.f32 %v2706_v12, %v12682_v36  ;;  %v12799_v12 = vadd.f32 %v12665_v52, %v12760_v49 }
 0x468   :  { %v9268_v18 = vpack.i.bf16 %v3179_v47, %v3178_v24  ;;  %v16043_v62 = vmax.f32 %v12702_v6, 0.0  ;;  %v9323_v52 = vpack.i.bf16 %v16020_v16, %v16022_v58  ;;  %v12870_v58 = vadd.f32 %v12662_v46, %v12772_v34 }
 0x469   :  { %16383 = vst [vmem:[#allocation26_spill] sm:$0xff] %v12710_v22  ;;  %v9278_v7 = vpack.i.bf16 %v16045_v8, %v16019_v25  ;;  %v16017_v20 = vmax.f32 %v12710_v22, 0.0  ;;  %v16394_v8 = vmax.f32 %v12702_v6, 0.0 }
 0x46a   :  { %9269 = vrot.lane.b32.xlu1 %v9268_v18, %s10094_s23 }
 0x46b   :  { %v9273_v19 = vpack.i.bf16 %v16017_v20, %v16043_v62  ;;  %v2710_v57 = vpop.f32.mrb[36].mxu1  ;;  %9279 = vrot.lane.b32.xlu0 %v9278_v7, %s10094_s23 }
 0x46c   :  { %v2712_v10 = vpop.f32.mrb[37].mxu1  ;;  %v12802_v18 = vadd.f32 %v2710_v57, %v12728_v26 }
 0x46d   :  { %v12746_v39 = vadd.f32 %v2712_v10, %v12728_v26  ;;  %v2714_v31 = vpop.f32.mrb[38].mxu1  ;;  %v12812_v10 = vadd.f32 %v12655_v2, %v12728_v26 }
 0x46e   :  { %v12749_v41 = vadd.f32 %v2714_v31, %v12712_v54  ;;  %v2716_v56 = vpop.f32.mrb[39].mxu1  ;;  %9274 = vrot.lane.b32.xlu1 %v9273_v19, %s10094_s23  ;;  %v12808_v19 = vpop.permute.xlu0 %2185 }
 0x46f   :  { %16384 = vst [vmem:[#allocation39_spill] sm:$0xff] %v12746_v39  ;;  %v12757_v0 = vadd.f32 %v2716_v56, %v12712_v54  ;;  %9284 = vrot.lane.b32.xlu0 %v9283_v1, %s10094_s23  ;;  %v16016_v45 = vmax.f32 %v12746_v39, 0.0  ;;  %v12815_v31 = vpop.permute.xlu1 %2180  ;;  %v12823_v57 = vadd.f32 %v12674_v60, %v12808_v19  ;;  %v12854_v16 = vadd.f32 %v12676_v5, %v12808_v19 }
 0x470   :  { %v16040_v33 = vmax.f32 %v12749_v41, 0.0  ;;  %v12829_v2 = vadd.f32 %v12667_v43, %v12815_v31  ;;  %v16410_v39 = vmax.f32 %v12754_v53, 0.0 }
 0x471   :  { %16385 = vst [vmem:[#allocation12_spill] sm:$0xff] %v12757_v0  ;;  %v16015_v28 = vmax.f32 %v12757_v0, 0.0  ;;  %v9313_v61 = vpack.i.bf16 %v16039_v51, %v16016_v45 }
 0x473   :  { %v9288_v55 = vpack.i.bf16 %v16015_v28, %v16040_v33  ;;  %v2720_v14 = vpop.f32.mrb[40].mxu1  ;;  %9309 = vrot.lane.b32.xlu0 %v9308_v32, %s10094_s23  ;;  %v16025_v28 = vmax.f32 %v12823_v57, 0.0 }
 0x474   :  { %v2722_v27 = vpop.f32.mrb[41].mxu1 }
 0x475   :  { %v12790_v63 = vadd.f32 %v2722_v27, %v12772_v34  ;;  %v2724_v37 = vpop.f32.mrb[42].mxu1  ;;  %9289 = vrot.lane.b32.xlu1 %v9288_v55, %s10094_s23  ;;  %v16024_v55 = vmax.f32 %v12799_v12, 0.0  ;;  %v16038_v27 = vmax.f32 %v12802_v18, 0.0 }
 0x476   :  { %v12794_v21 = vadd.f32 %v2724_v37, %v12760_v49  ;;  %v2726_v4 = vpop.f32.mrb[43].mxu1 }
 0x477   :  { %16386 = vst [vmem:[#allocation46_spill] sm:$0xff] %v12790_v63  ;;  %v12805_v7 = vadd.f32 %v2726_v4, %v12760_v49  ;;  %9314 = vrot.lane.b32.xlu0 %v9313_v61, %s10094_s23  ;;  %v16021_v56 = vmax.f32 %v12790_v63, 0.0  ;;  %v16037_v4 = vmax.f32 %v12812_v10, 0.0 }
 0x478   :  { %v16023_v1 = vmax.f32 %v12794_v21, 0.0 }
 0x479   :  { %16387 = vst [vmem:[#allocation8_spill] sm:$0xff] %v12805_v7  ;;  %v16018_v32 = vmax.f32 %v12805_v7, 0.0  ;;  %v9328_v43 = vpack.i.bf16 %v16024_v55, %v16021_v56  ;;  %v9298_v56 = vpack.i.bf16 %v16038_v27, %v16037_v4 }
 0x47b   :  { %v9293_v61 = vpack.i.bf16 %v16018_v32, %v16023_v1  ;;  %v2730_v37 = vpop.f32.mrb[44].mxu1  ;;  %9324 = vrot.lane.b32.xlu0 %v9323_v52, %s10094_s23  ;;  %v16026_v32 = vmax.f32 %v12829_v2, 0.0 }
 0x47c   :  { %v2732_v60 = vpop.f32.mrb[45].mxu1  ;;  %v12882_v55 = vadd.f32 %v2730_v37, %v12815_v31 }
 0x47d   :  { %v12845_v45 = vadd.f32 %v2732_v60, %v12815_v31  ;;  %v2734_v20 = vpop.f32.mrb[46].mxu1  ;;  %9294 = vrot.lane.b32.xlu1 %v9293_v61, %s10094_s23  ;;  %v12861_v60 = vadd.f32 %v2720_v14, %v12772_v34  ;;  %v9338_v5 = vpack.i.bf16 %v16025_v28, %v16026_v32  ;;  %v16033_v28 = vmax.f32 %v12870_v58, 0.0 }
 0x47e   :  { %v12850_v52 = vadd.f32 %v2734_v20, %v12808_v19  ;;  %v2736_v25 = vpop.f32.mrb[47].mxu1  ;;  %v12892_v32 = vadd.f32 %v12671_v38, %v12815_v31 }
 0x47f   :  { %16388 = vst [vmem:[#allocation56_spill] sm:$0xff] %v12845_v45  ;;  %v12864_v61 = vadd.f32 %v2736_v25, %v12808_v19  ;;  %9329 = vrot.lane.b32.xlu0 %v9328_v43, %s10094_s23  ;;  %v16028_v1 = vmax.f32 %v12845_v45, 0.0  ;;  %v16030_v25 = vmax.f32 %v12854_v16, 0.0  ;;  %v16034_v43 = vmax.f32 %v12861_v60, 0.0 }
 0x480   :  { %v16029_v20 = vmax.f32 %v12850_v52, 0.0 }
 0x481   :  { %16389 = vst [vmem:[#allocation27_spill] sm:$0xff] %v12864_v61  ;;  %v16027_v14 = vmax.f32 %v12864_v61, 0.0  ;;  %9299 = vrot.lane.b32.xlu1 %v9298_v56, %s10094_s23  ;;  %v9343_v56 = vpack.i.bf16 %v16030_v25, %v16028_v1  ;;  %v9318_v37 = vpack.i.bf16 %v16034_v43, %v16033_v28  ;;  %v9700_v1 = vld [vmem:[%s15891_s6] ss:$8 sps:$4 sm:$0xff]   ;;  %v9720_v25 = vld [vmem:[%s15891_s6 + $0x64] ss:$8 sps:$4 sm:$0xff]  }
 0x483   :  { %v9303_v46 = vpack.i.bf16 %v16027_v14, %v16029_v20  ;;  %9339 = vrot.lane.b32.xlu0 %v9338_v5, %s10094_s23  ;;  %v16032_v5 = vmax.f32 %v12882_v55, 0.0  ;;  %v16031_v14 = vmax.f32 %v12892_v32, 0.0  ;;  %v9706_v20 = vld [vmem:[%s15891_s6 + $0x20] ss:$8 sps:$4 sm:$0xff]  }
 0x485   :  { %9304 = vrot.lane.b32.xlu1 %v9303_v46, %s10094_s23  ;;  %v9333_v38 = vpack.i.bf16 %v16032_v5, %v16031_v14  ;;  %v9702_v46 = vld [vmem:[%s15891_s6 + $0x4] ss:$8 sps:$4 sm:$0xff]   ;;  %v9739_v5 = vld [vmem:[%s15891_s6 + $0xd0] ss:$8 sps:$4 sm:$0xff]  }
 0x486   :  { %4825 = vmatprep.subr.bf16.mxu0 %v9702_v46  ;;  %v9711_v46 = vld [vmem:[%s15891_s6 + $0x34] ss:$8 sps:$4 sm:$0xff]   ;;  %v9726_v14 = vld [vmem:[%s15891_s6 + $0x84] ss:$8 sps:$4 sm:$0xff]  }
 0x487   :  { %9344 = vrot.lane.b32.xlu0 %v9343_v56, %s10094_s23  ;;  %4826 = vmatpush1.bf16.msra.mxu0 %v9700_v1  ;;  %v9705_v56 = vld [vmem:[%s15891_s6 + $0x14] ss:$8 sps:$4 sm:$0xff]   ;;  %v9709_v1 = vld [vmem:[%s15891_s6 + $0x30] ss:$8 sps:$4 sm:$0xff]  }
 0x488   :  { %4827 = vmatprep.subr.bf16.mxu0 %v9705_v56  ;;  %v9714_v56 = vld [vmem:[%s15891_s6 + $0x44] ss:$8 sps:$4 sm:$0xff]  }
 0x489   :  { %9319 = vrot.lane.b32.xlu1 %v9318_v37, %s10094_s23  ;;  %v9703_v37 = vld [vmem:[%s15891_s6 + $0x10] ss:$8 sps:$4 sm:$0xff]  }
 0x48b   :  { %4828 = vmatpush1.bf16.msra.mxu0 %v9703_v37  ;;  %v9712_v37 = vld [vmem:[%s15891_s6 + $0x40] ss:$8 sps:$4 sm:$0xff]  }
 0x48d   :  { %9334 = vrot.lane.b32.xlu1 %v9333_v38, %s10094_s23  ;;  %v9708_v38 = vld [vmem:[%s15891_s6 + $0x24] ss:$8 sps:$4 sm:$0xff]  }
 0x48e   :  { %4829 = vmatprep.subr.bf16.mxu0 %v9708_v38  ;;  %v9715_v38 = vld [vmem:[%s15891_s6 + $0x50] ss:$8 sps:$4 sm:$0xff]  }
 0x48f   :  { %4830 = vmatpush1.bf16.msra.mxu0 %v9706_v20  ;;  %v9717_v20 = vld [vmem:[%s15891_s6 + $0x54] ss:$8 sps:$4 sm:$0xff]  }
 0x490   :  { %4831 = vmatprep.subr.bf16.mxu0 %v9711_v46  ;;  %v9723_v46 = vld [vmem:[%s15891_s6 + $0x74] ss:$8 sps:$4 sm:$0xff]  }
 0x493   :  { %4832 = vmatpush1.bf16.msra.mxu0 %v9709_v1  ;;  %v9718_v1 = vld [vmem:[%s15891_s6 + $0x60] ss:$8 sps:$4 sm:$0xff]  }
 0x494   :  { %4833 = vmatprep.subr.bf16.mxu0 %v9714_v56  ;;  %v9721_v56 = vld [vmem:[%s15891_s6 + $0x70] ss:$8 sps:$4 sm:$0xff]  }
 0x497   :  { %4834 = vmatpush1.bf16.msra.mxu0 %v9712_v37  ;;  %v9724_v37 = vld [vmem:[%s15891_s6 + $0x80] ss:$8 sps:$4 sm:$0xff]  }
 0x498   :  { %4835 = vmatprep.subr.bf16.mxu0 %v9717_v20  ;;  %v9729_v20 = vld [vmem:[%s15891_s6 + $0x94] ss:$8 sps:$4 sm:$0xff]  }
 0x49b   :  { %4836 = vmatpush1.bf16.msra.mxu0 %v9715_v38  ;;  %v9732_v38 = vld [vmem:[%s15891_s6 + $0xa4] ss:$8 sps:$4 sm:$0xff]  }
 0x49c   :  { %4837 = vmatprep.subr.bf16.mxu0 %v9720_v25  ;;  %v9727_v25 = vld [vmem:[%s15891_s6 + $0x90] ss:$8 sps:$4 sm:$0xff]  }
 0x49f   :  { %4838 = vmatpush1.bf16.msra.mxu0 %v9718_v1  ;;  %v9730_v1 = vld [vmem:[%s15891_s6 + $0xa0] ss:$8 sps:$4 sm:$0xff]  }
 0x4a0   :  { %4839 = vmatprep.subr.bf16.mxu0 %v9723_v46  ;;  %v9735_v46 = vld [vmem:[%s15891_s6 + $0xb4] ss:$8 sps:$4 sm:$0xff]  }
 0x4a3   :  { %4840 = vmatpush1.bf16.msra.mxu0 %v9721_v56  ;;  %v9738_v56 = vld [vmem:[%s15891_s6 + $0xc4] ss:$8 sps:$4 sm:$0xff]  }
 0x4a4   :  { %4841 = vmatprep.subr.bf16.mxu0 %v9726_v14  ;;  %v9733_v14 = vld [vmem:[%s15891_s6 + $0xb0] ss:$8 sps:$4 sm:$0xff]  }
 0x4a7   :  { %4842 = vmatpush1.bf16.msra.mxu0 %v9724_v37  ;;  %v9736_v37 = vld [vmem:[%s15891_s6 + $0xc0] ss:$8 sps:$4 sm:$0xff]  }
 0x4a8   :  { %4843 = vmatprep.subr.bf16.mxu0 %v9729_v20  ;;  %v9741_v20 = vld [vmem:[%s15891_s6 + $0xd4] ss:$8 sps:$4 sm:$0xff]  }
 0x4ab   :  { %4844 = vmatpush1.bf16.msra.mxu0 %v9727_v25 }
 0x4ac   :  { %4845 = vmatprep.subr.bf16.mxu0 %v9732_v38 }
 0x4af   :  { %4846 = vmatpush1.bf16.msra.mxu0 %v9730_v1 }
 0x4b0   :  { %4847 = vmatprep.subr.bf16.mxu0 %v9735_v46 }
 0x4b3   :  { %4848 = vmatpush1.bf16.msra.mxu0 %v9733_v14  ;;  %v9744_v14 = vld [vmem:[%s15891_s6 + $0xe4] ss:$8 sps:$4 sm:$0xff]  }
 0x4b4   :  { %4849 = vmatprep.subr.bf16.mxu0 %v9738_v56 }
 0x4b7   :  { %4850 = vmatpush1.bf16.msra.mxu0 %v9736_v37 }
 0x4b8   :  { %4851 = vmatprep.subr.bf16.mxu0 %v9741_v20 }
 0x4bb   :  { %4852 = vmatpush1.bf16.msra.mxu0 %v9739_v5 }
 0x4bc   :  { %4853 = vmatprep.subr.bf16.mxu0 %v9744_v14 }
 0x4bf   :  { %4854 = vmatpush1.bf16.msra.mxu0 %v9742_v11 }
 0x4c0   :  { %4855 = vmatprep.subr.bf16.mxu0 %v9747_v59 }
 0x4d4   :  { %v2919_v25 = vpop.f32.mrb[48].mxu0 }
 0x4d5   :  { %v2921_v38 = vpop.f32.mrb[49].mxu0 }
 0x4d6   :  { %v2923_v28 = vpop.f32.mrb[50].mxu0  ;;  %v13044_v40 = vadd.f32 %v2921_v38, %v12680_v9 }
 0x4d7   :  { %v2925_v43 = vpop.f32.mrb[51].mxu0 }
 0x4d8   :  { %16392 = vst [vmem:[#allocation15_spill] sm:$0xff] %v13044_v40 }
 0x4dc   :  { %v12996_v1 = vpop.f32.mrb[52].mxu0  ;;  %v9270_v46 = vpop.permute.xlu1 %9269 }
 0x4dd   :  { %v13004_v56 = vpop.f32.mrb[53].mxu0  ;;  %v9272_v35 = vunpack.i.h.bf16 %v9270_v46  ;;  %v9271_v4 = vunpack.i.l.bf16 %v9270_v46  ;;  %v13006_v27 = vpop.permute.xlu0 %9279 }
 0x4de   :  { %v13008_v37 = vpop.f32.mrb[54].mxu0  ;;  %v16044_v5 = vunpack.i.l.bf16 %v13006_v27  ;;  %v9282_v14 = vunpack.i.h.bf16 %v13006_v27 }
 0x4df   :  { %v3434_v20 = vsel %vm221_vm4, %v9271_v4, %v9272_v35  ;;  %v13012_v51 = vpop.f32.mrb[55].mxu0 }
 0x4e0   :  { %v13016_v33 = vmax.f32 %v3178_v24, %v3434_v20  ;;  %v3435_v46 = vsel %vm221_vm4, %v9272_v35, %v16044_v5  ;;  %v13021_v44 = vpop.permute.xlu1 %9274  ;;  %v9745_v35 = vld [vmem:[%s15891_s6 + $0xf0] ss:$8 sps:$4 sm:$0xff]   ;;  %v13039_v20 = vadd.f32 %v2919_v25, %v12680_v9  ;;  %v16393_v25 = vmax.f32 %v12688_v29, 0.0 }
 0x4e1   :  { %v13029_v62 = vmax.f32 %v3179_v47, %v3435_v46  ;;  %v16049_v3 = vunpack.i.h.bf16 %v13021_v44  ;;  %v9276_v24 = vunpack.i.l.bf16 %v13021_v44  ;;  %v13033_v11 = vpop.permute.xlu0 %9284  ;;  %4856 = vmatpush1.bf16.msra.mxu0 %v9745_v35  ;;  %v16398_v29 = vmax.f32 %v12694_v23, 0.0 }
 0x4e2   :  { %16391 = vst [vmem:[#allocation43_spill] sm:$0xff] %v13033_v11  ;;  %v16050_v5 = vunpack.i.h.bf16 %v13033_v11  ;;  %v16399_v6 = vunpack.i.l.bf16 %v13033_v11  ;;  %v16404_v11 = vmax.f32 %v13039_v20, 0.0 }
 0x4e3   :  { %16390 = vst [vmem:[#allocation19_spill] sm:$0xff] %v13029_v62  ;;  %v3441_v47 = vsel %vm221_vm4, %v9282_v14, %v9276_v24  ;;  %v3442_v46 = vsel %vm221_vm4, %v9276_v24, %v16049_v3  ;;  %v9348_v48 = vpack.i.bf16 %v13029_v62, %v13016_v33  ;;  %v13066_v24 = vadd.f32 %v2923_v28, %v12682_v36 }
 0x4e4   :  { %v13054_v61 = vmax.f32 %v16393_v25, %v3441_v47  ;;  %v13058_v59 = vmax.f32 %v16394_v8, %v3442_v46  ;;  %v3440_v38 = vsel %vm221_vm4, %v16050_v5, %v9282_v14  ;;  %v13063_v45 = vpop.f32.mrb[56].mxu0  ;;  %v13069_v3 = vadd.f32 %v2925_v43, %v12682_v36 }
 0x4e5   :  { %16396 = vst [vmem:[#allocation29_spill] sm:$0xff] %v13066_v24  ;;  %v13073_v35 = vmax.f32 %v16398_v29, %v3440_v38  ;;  %v3433_v8 = vsel %vm221_vm4, %v16399_v6, %v9271_v4  ;;  %v13078_v47 = vpop.f32.mrb[57].mxu0  ;;  %v13080_v46 = vpop.permute.xlu0 %9309  ;;  %9349 = vrot.lane.b32.xlu1 %v9348_v48, %s10096_s25  ;;  %v16401_v28 = vmax.f32 %v12705_v30, 0.0  ;;  %v16406_v62 = vmax.f32 %v13066_v24, 0.0 }
 0x4e6   :  { %16395 = vst [vmem:[#allocation47_spill] sm:$0xff] %v13058_v59  ;;  %16397 = vst [vmem:[#allocation61_spill] sm:$0xff] %v13069_v3  ;;  %v13087_v43 = vpop.f32.mrb[58].mxu0  ;;  %v9353_v4 = vpack.i.bf16 %v13058_v59, %v13054_v61  ;;  %v16405_v59 = vmax.f32 %v13044_v40, 0.0  ;;  %v16407_v63 = vmax.f32 %v13069_v3, 0.0 }
 0x4e7   :  { %16400 = vst [vmem:[#allocation57_spill] sm:$0xff] %v13080_v46  ;;  %v13085_v14 = vmax.f32 %v16401_v28, %v3433_v8  ;;  %v13091_v38 = vpop.f32.mrb[59].mxu0  ;;  %v13093_v29 = vpop.permute.xlu1 %9289 }
 0x4e8   :  { %16402 = vst [vmem:[#allocation33_spill] sm:$0xff] %v13093_v29  ;;  %v16057_v6 = vunpack.i.h.bf16 %v13093_v29  ;;  %v9291_v48 = vunpack.i.l.bf16 %v13093_v29  ;;  %9354 = vrot.lane.b32.xlu0 %v9353_v4, %s10096_s25  ;;  %v9363_v30 = vpack.i.bf16 %v16405_v59, %v16404_v11  ;;  %v9368_v7 = vpack.i.bf16 %v16407_v63, %v16406_v62 }
 0x4e9   :  { %v13102_v28 = vpop.permute.xlu0 %9314  ;;  %v9358_v5 = vpack.i.bf16 %v13073_v35, %v13085_v14 }
 0x4ea   :  { %16403 = vst [vmem:[#allocation20_spill] sm:$0xff] %v13102_v28  ;;  %v3456_v25 = vsel %vm221_vm4, %v9291_v48, %v16057_v6  ;;  %v9317_v23 = vunpack.i.h.bf16 %v13102_v28  ;;  %v16408_v6 = vmax.f32 %v12749_v41, 0.0  ;;  %v16067_v63 = vunpack.i.l.bf16 %v13102_v28 }
 0x4eb   :  { %9359 = vrot.lane.b32.xlu1 %v9358_v5, %s10096_s25 }
 0x4ec   :  { %v3455_v4 = vsel %vm221_vm4, %v9317_v23, %v9291_v48  ;;  %v13116_v8 = vpop.f32.mrb[60].mxu0  ;;  %v13124_v0 = vmax.f32 %v16408_v6, %v3456_v25  ;;  %9364 = vrot.lane.b32.xlu0 %v9363_v30, %s10094_s23  ;;  %v16068_v6 = vunpack.i.l.bf16 %v13080_v46 }
 0x4ed   :  { %v13128_v29 = vmax.f32 %v16410_v39, %v3455_v4  ;;  %v13130_v11 = vpop.f32.mrb[61].mxu0  ;;  %v13133_v5 = vpop.permute.xlu0 %9324 }
 0x4ee   :  { %16409 = vst [vmem:[#allocation66_spill] sm:$0xff] %v13124_v0  ;;  %16412 = vst [vmem:[#allocation21_spill] sm:$0xff] %v13133_v5  ;;  %v13135_v59 = vpop.f32.mrb[62].mxu0 }
 0x4ef   :  { %16411 = vst [vmem:[#allocation3_spill] sm:$0xff] %v13128_v29  ;;  %9369 = vrot.lane.b32.xlu1 %v9368_v7, %s10094_s23  ;;  %v13138_v48 = vpop.f32.mrb[63].mxu0  ;;  %v13140_v62 = vpop.permute.xlu1 %9294  ;;  %v9378_v41 = vpack.i.bf16 %v13124_v0, %v13128_v29  ;;  %v16415_v0 = vmax.f32 %v12802_v18, 0.0 }
 0x4f0   :  { %16413 = vst [vmem:[#allocation65_spill] sm:$0xff] %v13140_v62 }
 0x4f1   :  { %v13144_v53 = vpop.permute.xlu0 %9329 }
 0x4f2   :  { %16414 = vst [vmem:[#allocation74_spill] sm:$0xff] %v13144_v53  ;;  %v9332_v3 = vunpack.i.h.bf16 %v13144_v53 }
 0x4f3   :  { %9379 = vrot.lane.b32.xlu1 %v9378_v41, %s10096_s25  ;;  %v9300_v39 = vpop.permute.xlu1 %9299 }
 0x4f4   :  { %v9302_v25 = vunpack.i.h.bf16 %v9300_v39  ;;  %v9301_v30 = vunpack.i.l.bf16 %v9300_v39  ;;  %v16417_v39 = vmax.f32 %v12812_v10, 0.0  ;;  %v13183_v10 = vadd.f32 %v12996_v1, %v12728_v26 }
 0x4f5   :  { %v13168_v28 = vpop.permute.xlu0 %9339  ;;  %v13198_v1 = vadd.f32 %v13008_v37, %v12712_v54 }
 0x4f6   :  { %v3449_v4 = vsel %vm221_vm4, %v9302_v25, %v16067_v63  ;;  %v3447_v41 = vsel %vm221_vm4, %v16068_v6, %v9301_v30  ;;  %v3448_v29 = vsel %vm221_vm4, %v9301_v30, %v9302_v25  ;;  %16418 = vst [vmem:[#allocation60_spill] sm:$0xff] %v13168_v28  ;;  %v16419_v63 = vunpack.i.h.bf16 %v13080_v46 }
 0x4f7   :  { %v13156_v40 = vmax.f32 %v16415_v0, %v3449_v4  ;;  %v13162_v24 = vpop.permute.xlu1 %9304  ;;  %v13166_v7 = vmax.f32 %v16417_v39, %v3448_v29  ;;  %v16073_v0 = vunpack.i.h.bf16 %v13140_v62  ;;  %v9296_v4 = vunpack.i.l.bf16 %v13140_v62 }
 0x4f8   :  { %v3454_v18 = vsel %vm221_vm4, %v16419_v63, %v9317_v23  ;;  %v16420_v6 = vmax.f32 %v12733_v42, 0.0  ;;  %v13187_v29 = vadd.f32 %v13004_v56, %v12728_v26  ;;  %v16422_v30 = vmax.f32 %v12721_v50, 0.0 }
 0x4f9   :  { %16416 = vst [vmem:[#allocation22_spill] sm:$0xff] %v13156_v40  ;;  %v9373_v25 = vpack.i.bf16 %v13156_v40, %v13166_v7  ;;  %v3469_v23 = vsel %vm221_vm4, %v9332_v3, %v9296_v4  ;;  %v13202_v56 = vadd.f32 %v13012_v51, %v12712_v54  ;;  %v3470_v50 = vsel %vm221_vm4, %v9296_v4, %v16073_v0  ;;  %v13211_v42 = vpop.permute.xlu0 %9344 }
 0x4fa   :  { %v13177_v22 = vmax.f32 %v16420_v6, %v3447_v41  ;;  %16421 = vst [vmem:[#allocation72_spill] sm:$0xff] %v13187_v29  ;;  %v13192_v39 = vmax.f32 %v16422_v30, %v3454_v18  ;;  %v16425_v18 = vmax.f32 %v12799_v12, 0.0  ;;  %v16093_v46 = vmax.f32 %v13183_v10, 0.0 }
 0x4fb   :  { %v9320_v63 = vpop.permute.xlu1 %9319  ;;  %9374 = vrot.lane.b32.xlu0 %v9373_v25, %s10096_s25  ;;  %16424 = vst [vmem:[#allocation58_spill] sm:$0xff] %v13202_v56  ;;  %v16426_v25 = vunpack.i.l.bf16 %v13144_v53  ;;  %v16427_v4 = vmax.f32 %v12861_v60, 0.0  ;;  %v16081_v40 = vmax.f32 %v13198_v1, 0.0  ;;  %v16079_v60 = vmax.f32 %v13202_v56, 0.0 }
 0x4fc   :  { %16423 = vst [vmem:[#allocation5_spill] sm:$0xff] %v13192_v39  ;;  %v9322_v6 = vunpack.i.h.bf16 %v9320_v63  ;;  %v9321_v41 = vunpack.i.l.bf16 %v9320_v63  ;;  %v13209_v30 = vmax.f32 %v16425_v18, %v3469_v23  ;;  %v9383_v51 = vpack.i.bf16 %v13192_v39, %v13177_v22 }
 0x4fd   :  { %v16429_v23 = vmax.f32 %v12870_v58, 0.0 }
 0x4fe   :  { %v3463_v63 = vsel %vm221_vm4, %v9322_v6, %v16426_v25  ;;  %v3462_v37 = vsel %vm221_vm4, %v9321_v41, %v9322_v6  ;;  %v16077_v25 = vunpack.i.l.bf16 %v13133_v5  ;;  %v16430_v6 = vmax.f32 %v12794_v21, 0.0 }
 0x4ff   :  { %v13223_v12 = vmax.f32 %v16427_v4, %v3463_v63  ;;  %v13227_v18 = vmax.f32 %v16429_v23, %v3462_v37  ;;  %v9335_v0 = vpop.permute.xlu1 %9334  ;;  %9384 = vrot.lane.b32.xlu0 %v9383_v51, %s10096_s25  ;;  %v16080_v63 = vunpack.i.l.bf16 %v13211_v42  ;;  %v16078_v37 = vunpack.i.h.bf16 %v13133_v5 }
 0x500   :  { %v13232_v53 = vmax.f32 %v16430_v6, %v3470_v50  ;;  %v9337_v62 = vunpack.i.h.bf16 %v9335_v0  ;;  %v9336_v39 = vunpack.i.l.bf16 %v9335_v0  ;;  %v3461_v21 = vsel %vm221_vm4, %v16077_v25, %v9321_v41 }
 0x501   :  { %16428 = vst [vmem:[#allocation9_spill] sm:$0xff] %v13223_v12  ;;  %v9388_v58 = vpack.i.bf16 %v13223_v12, %v13227_v18  ;;  %v13253_v4 = vadd.f32 %v13087_v43, %v12760_v49  ;;  %v13257_v23 = vadd.f32 %v13091_v38, %v12760_v49  ;;  %v3468_v41 = vsel %vm221_vm4, %v16078_v37, %v9332_v3 }
 0x502   :  { %16431 = vst [vmem:[#allocation11_spill] sm:$0xff] %v13232_v53  ;;  %v9393_v0 = vpack.i.bf16 %v13232_v53, %v13209_v30  ;;  %v3477_v50 = vsel %vm221_vm4, %v9337_v62, %v16080_v63  ;;  %v3476_v51 = vsel %vm221_vm4, %v9336_v39, %v9337_v62  ;;  %v16433_v62 = vmax.f32 %v13187_v29, 0.0 }
 0x503   :  { %9389 = vrot.lane.b32.xlu1 %v9388_v58, %s10096_s25  ;;  %16432 = vst [vmem:[#allocation4_spill] sm:$0xff] %v13257_v23  ;;  %v9408_v43 = vpack.i.bf16 %v16079_v60, %v16081_v40  ;;  %v13273_v38 = vadd.f32 %v13063_v45, %v12772_v34  ;;  %v16434_v58 = vmax.f32 %v12777_v17, 0.0  ;;  %v13281_v3 = vadd.f32 %v13078_v47, %v12772_v34 }
 0x504   :  { %9394 = vrot.lane.b32.xlu0 %v9393_v0, %s10096_s25  ;;  %v9398_v6 = vpack.i.bf16 %v16433_v62, %v16093_v46  ;;  %v9347_v0 = vunpack.i.h.bf16 %v13211_v42  ;;  %v16436_v62 = vmax.f32 %v12882_v55, 0.0  ;;  %v16438_v60 = vmax.f32 %v12892_v32, 0.0 }
 0x505   :  { %v13277_v25 = vmax.f32 %v16434_v58, %v3461_v21  ;;  %16435 = vst [vmem:[#allocation23_spill] sm:$0xff] %v13281_v3  ;;  %v16439_v45 = vmax.f32 %v12768_v15, 0.0  ;;  %v16092_v17 = vmax.f32 %v13253_v4, 0.0  ;;  %v16083_v47 = vmax.f32 %v13257_v23, 0.0 }
 0x506   :  { %v13286_v37 = vmax.f32 %v16436_v62, %v3477_v50  ;;  %v13290_v63 = vmax.f32 %v16438_v60, %v3476_v51  ;;  %v16090_v21 = vunpack.i.h.bf16 %v13162_v24  ;;  %v9306_v55 = vunpack.i.l.bf16 %v13162_v24 }
 0x507   :  { %v13294_v40 = vmax.f32 %v16439_v45, %v3468_v41  ;;  %9399 = vrot.lane.b32.xlu1 %v9398_v6, %s10094_s23  ;;  %v16082_v32 = vunpack.i.l.bf16 %v13168_v28  ;;  %v16091_v15 = vmax.f32 %v13273_v38, 0.0  ;;  %v16085_v50 = vmax.f32 %v13281_v3, 0.0 }
 0x508   :  { %16437 = vst [vmem:[#allocation14_spill] sm:$0xff] %v13286_v37  ;;  %9409 = vrot.lane.b32.xlu0 %v9408_v43, %s10094_s23  ;;  %v3483_v51 = vsel %vm221_vm4, %v9347_v0, %v9306_v55  ;;  %v9413_v41 = vpack.i.bf16 %v13286_v37, %v13290_v63  ;;  %v16084_v6 = vunpack.i.h.bf16 %v13168_v28  ;;  %v9423_v58 = vpack.i.bf16 %v16083_v47, %v16092_v17 }
 0x509   :  { %v9403_v60 = vpack.i.bf16 %v13294_v40, %v13277_v25  ;;  %v3475_v43 = vsel %vm221_vm4, %v16082_v32, %v9336_v39  ;;  %v3484_v62 = vsel %vm221_vm4, %v9306_v55, %v16090_v21  ;;  %v13325_v45 = vadd.f32 %v13116_v8, %v12815_v31 }
 0x50a   :  { %v13329_v39 = vadd.f32 %v13130_v11, %v12815_v31  ;;  %v16441_v32 = vmax.f32 %v12854_v16, 0.0  ;;  %v9418_v55 = vpack.i.bf16 %v16085_v50, %v16091_v15  ;;  %v13344_v8 = vadd.f32 %v13135_v59, %v12808_v19 }
 0x50b   :  { %9404 = vrot.lane.b32.xlu1 %v9403_v60, %s10096_s25  ;;  %v3482_v60 = vsel %vm221_vm4, %v16084_v6, %v9347_v0  ;;  %v13348_v11 = vadd.f32 %v13138_v48, %v12808_v19  ;;  %v16445_v16 = vmax.f32 %v12850_v52, 0.0  ;;  %v16447_v6 = vmax.f32 %v12823_v57, 0.0 }
 0x50c   :  { %9414 = vrot.lane.b32.xlu0 %v9413_v41, %s10096_s25  ;;  %16440 = vst [vmem:[#allocation67_spill] sm:$0xff] %v13329_v39  ;;  %v13336_v47 = vmax.f32 %v16441_v32, %v3483_v51  ;;  %16442 = vst [vmem:[#allocation31_spill] sm:$0xff] %v13344_v8  ;;  %v16444_v41 = vmax.f32 %v12829_v2, 0.0  ;;  %v16087_v48 = vmax.f32 %v13325_v45, 0.0  ;;  %v16086_v2 = vmax.f32 %v13329_v39, 0.0 }
 0x50d   :  { %16443 = vst [vmem:[#allocation69_spill] sm:$0xff] %v13348_v11  ;;  %v13356_v32 = vmax.f32 %v16445_v16, %v3484_v62  ;;  %v13361_v50 = vmax.f32 %v16447_v6, %v3482_v60  ;;  %v16089_v62 = vmax.f32 %v13344_v8, 0.0 }
 0x50e   :  { %v13352_v0 = vmax.f32 %v16444_v41, %v3475_v43  ;;  %v16088_v41 = vmax.f32 %v13348_v11, 0.0  ;;  %v9438_v6 = vpack.i.bf16 %v16086_v2, %v16087_v48 }
 0x50f   :  { %16446 = vst [vmem:[#allocation16_spill] sm:$0xff] %v13356_v32  ;;  %v3138_v51 = vpop.f32.mrb[48].mxu1  ;;  %9424 = vrot.lane.b32.xlu1 %v9423_v58, %s10094_s23  ;;  %v9428_v52 = vpack.i.bf16 %v13356_v32, %v13336_v47 }
 0x510   :  { %9419 = vrot.lane.b32.xlu0 %v9418_v55, %s10094_s23  ;;  %v3140_v59 = vpop.f32.mrb[49].mxu1  ;;  %v9433_v57 = vpack.i.bf16 %v13361_v50, %v13352_v0  ;;  %v9443_v60 = vpack.i.bf16 %v16088_v41, %v16089_v62  ;;  %v9750_v55 = vld [vmem:[%s15891_s6 + $0x104] ss:$8 sps:$4 sm:$0xff]   ;;  %v13430_v12 = vadd.f32 %v3138_v51, %v12680_v9 }
 0x511   :  { %v3142_v43 = vpop.f32.mrb[50].mxu1  ;;  %4898 = vmatprep.subr.bf16.mxu0 %v9750_v55  ;;  %v13433_v56 = vadd.f32 %v3140_v59, %v12680_v9 }
 0x512   :  { %v3144_v58 = vpop.f32.mrb[51].mxu1  ;;  %v13448_v9 = vadd.f32 %v3142_v43, %v12682_v36 }
 0x513   :  { %9429 = vrot.lane.b32.xlu1 %v9428_v52, %s10096_s25 }
 0x514   :  { %9434 = vrot.lane.b32.xlu0 %v9433_v57, %s10096_s25 }
 0x517   :  { %v13385_v16 = vpop.f32.mrb[52].mxu1  ;;  %9439 = vrot.lane.b32.xlu1 %v9438_v6, %s10094_s23 }
 0x518   :  { %9444 = vrot.lane.b32.xlu0 %v9443_v60, %s10094_s23  ;;  %v13389_v52 = vpop.f32.mrb[53].mxu1 }
 0x519   :  { %v13391_v57 = vpop.f32.mrb[54].mxu1 }
 0x51a   :  { %v13393_v2 = vpop.f32.mrb[55].mxu1 }
 0x51f   :  { %v13395_v48 = vpop.f32.mrb[56].mxu1 }
 0x520   :  { %v13397_v41 = vpop.f32.mrb[57].mxu1 }
 0x521   :  { %v13399_v62 = vpop.f32.mrb[58].mxu1 }
 0x522   :  { %v13401_v21 = vpop.f32.mrb[59].mxu1 }
 0x527   :  { %v13403_v15 = vpop.f32.mrb[60].mxu1 }
 0x528   :  { %v13405_v6 = vpop.f32.mrb[61].mxu1 }
 0x529   :  { %v13407_v60 = vpop.f32.mrb[62].mxu1 }
 0x52a   :  { %v13409_v17 = vpop.f32.mrb[63].mxu1 }
 0x557   :  { %v13411_v55 = vpop.permute.xlu1 %9349 }
 0x558   :  { %16448 = vst [vmem:[#allocation42_spill] sm:$0xff] %v13411_v55  ;;  %v16108_v46 = vunpack.i.h.bf16 %v13411_v55  ;;  %v9351_v28 = vunpack.i.l.bf16 %v13411_v55 }
 0x55a   :  { %v13415_v5 = vpop.permute.xlu0 %9354  ;;  %v3826_v39 = vsel %vm289_vm6, %v9351_v28, %v16108_v46 }
 0x55b   :  { %16449 = vst [vmem:[#allocation62_spill] sm:$0xff] %v13415_v5  ;;  %v16111_v11 = vunpack.i.h.bf16 %v13415_v5  ;;  %v9356_v32 = vunpack.i.l.bf16 %v13415_v5  ;;  %v3962_v46 = vmax.f32 %v13016_v33, %v3826_v39  ;;  %v16452_v39 = vunpack.i.l.bf16 %v13006_v27 }
 0x55c   :  { %v16454_v27 = vmax.f32 %v12697_v13, 0.0 }
 0x55d   :  { %v13422_v37 = vpop.permute.xlu1 %9359  ;;  %v3833_v53 = vsel %vm289_vm6, %v9356_v32, %v16111_v11 }
 0x55e   :  { %16450 = vst [vmem:[#allocation40_spill] sm:$0xff] %v13422_v37  ;;  %v16113_v23 = vunpack.i.h.bf16 %v13422_v37  ;;  %v13435_v29 = vpop.permute.xlu0 %9364  ;;  %v3970_v55 = vmax.f32 %v13054_v61, %v3833_v53  ;;  %v16451_v5 = vunpack.i.l.bf16 %v13422_v37  ;;  %v16473_v37 = vld [vmem:[#allocation39_spill] sm:$0xff] }
 0x55f   :  { %v16124_v51 = vunpack.i.h.bf16 %v13435_v29  ;;  %v9366_v8 = vunpack.i.l.bf16 %v13435_v29 }
 0x560   :  { %v3832_v3 = vsel %vm289_vm6, %v16113_v23, %v9356_v32  ;;  %v3825_v11 = vsel %vm289_vm6, %v16451_v5, %v9351_v28  ;;  %v4026_v53 = vpack.c.bf16 %v3970_v55, %v3962_v46  ;;  %v16457_v23 = vunpack.i.h.bf16 %v13021_v44 }
 0x561   :  { %v3969_v59 = vmax.f32 %v13073_v35, %v3832_v3  ;;  %v3961_v33 = vmax.f32 %v13085_v14, %v3825_v11  ;;  %v13452_v61 = vpop.permute.xlu1 %9369  ;;  %v3436_v32 = vsel %vm221_vm4, %v16452_v39, %v9366_v8  ;;  %v3437_v28 = vsel %vm221_vm4, %v9366_v8, %v16124_v51  ;;  %v9748_v35 = vld [vmem:[%s15891_s6 + $0x100] ss:$8 sps:$4 sm:$0xff]   ;;  %v9753_v8 = vld [vmem:[%s15891_s6 + $0x114] ss:$8 sps:$4 sm:$0xff]  }
 0x562   :  { %v16118_v5 = vunpack.i.h.bf16 %v13452_v61  ;;  %v9371_v43 = vunpack.i.l.bf16 %v13452_v61  ;;  %v13466_v14 = vadd.f32 %v3144_v58, %v12682_v36  ;;  %v13470_v3 = vmax.f32 %v16454_v27, %v3436_v32  ;;  %4857 = vmatprep.mubr.bf16.mxu0 %v4026_v53  ;;  %v16460_v53 = vld [vmem:[#allocation29_spill] sm:$0xff] }
 0x563   :  { %v4025_v46 = vpack.c.bf16 %v3969_v59, %v3961_v33  ;;  %v16455_v11 = vmax.f32 %v13039_v20, 0.0  ;;  %v16120_v39 = vmax.f32 %v13430_v12, 0.0  ;;  %v16115_v58 = vmax.f32 %v13433_v56, 0.0  ;;  %v16458_v20 = vld [vmem:[#allocation26_spill] sm:$0xff] }
 0x564   :  { %16453 = vst [vmem:[#allocation59_spill] sm:$0xff] %v13466_v14  ;;  %v3443_v36 = vsel %vm221_vm4, %v16457_v23, %v9371_v43  ;;  %v3444_v13 = vsel %vm221_vm4, %v9371_v43, %v16118_v5  ;;  %v16459_v59 = vmax.f32 %v16458_v20, 0.0  ;;  %v16461_v32 = vmax.f32 %v16460_v53, 0.0  ;;  %v9751_v23 = vld [vmem:[%s15891_s6 + $0x110] ss:$8 sps:$4 sm:$0xff]  }
 0x565   :  { %v13474_v55 = vmax.f32 %v16455_v11, %v3437_v28  ;;  %4858 = vmatmul.mubr.bf16.vlgmr.msra.gmra.mrb[64].mxu0 %v4025_v46  ;;  %v16116_v43 = vmax.f32 %v13448_v9, 0.0  ;;  %v16114_v27 = vmax.f32 %v13466_v14, 0.0  ;;  %v9756_v46 = vld [vmem:[%s15891_s6 + $0x124] ss:$8 sps:$4 sm:$0xff]   ;;  %v9759_v53 = vld [vmem:[%s15891_s6 + $0x134] ss:$8 sps:$4 sm:$0xff]  }
 0x566   :  { %v13489_v33 = vmax.f32 %v16459_v59, %v3443_v36  ;;  %v13493_v28 = vmax.f32 %v16461_v32, %v3444_v13  ;;  %4899 = vmatpush1.bf16.msra.mxu0 %v9748_v35  ;;  %v13508_v36 = vpop.permute.xlu1 %9379  ;;  %v9453_v35 = vpack.i.bf16 %v16115_v58, %v16120_v39  ;;  %v9754_v13 = vld [vmem:[%s15891_s6 + $0x120] ss:$8 sps:$4 sm:$0xff]   ;;  %v13559_v39 = vadd.f32 %v13385_v16, %v12728_v26 }
 0x567   :  { %16456 = vst [vmem:[#allocation50_spill] sm:$0xff] %v13474_v55  ;;  %v9448_v44 = vpack.i.bf16 %v13474_v55, %v13470_v3  ;;  %4900 = vmatprep.subr.bf16.mxu0 %v9753_v8  ;;  %v9463_v8 = vpack.i.bf16 %v16114_v27, %v16116_v43  ;;  %v16117_v20 = vunpack.i.h.bf16 %v13508_v36  ;;  %v9381_v59 = vunpack.i.l.bf16 %v13508_v36  ;;  %v16464_v58 = vld [vmem:[#allocation3_spill] sm:$0xff] }
 0x568   :  { %16462 = vst [vmem:[#allocation53_spill] sm:$0xff] %v13493_v28  ;;  %v9458_v11 = vpack.i.bf16 %v13493_v28, %v13489_v33 }
 0x569   :  { %9449 = vrot.lane.b32.xlu1 %v9448_v44, %s10096_s25  ;;  %v9757_v44 = vld [vmem:[%s15891_s6 + $0x130] ss:$8 sps:$4 sm:$0xff]  }
 0x56a   :  { %9459 = vrot.lane.b32.xlu0 %v9458_v11, %s10096_s25  ;;  %4901 = vmatpush1.bf16.msra.mxu0 %v9751_v23 }
 0x56b   :  { %4902 = vmatprep.subr.bf16.mxu0 %v9756_v46  ;;  %v3847_v46 = vsel %vm289_vm6, %v9381_v59, %v16117_v20  ;;  %v9760_v20 = vld [vmem:[%s15891_s6 + $0x140] ss:$8 sps:$4 sm:$0xff]  }
 0x56c   :  { %v3986_v43 = vmax.f32 %v16464_v58, %v3847_v46  ;;  %v13571_v46 = vadd.f32 %v13393_v2, %v12712_v54  ;;  %v16466_v2 = vld [vmem:[#allocation5_spill] sm:$0xff] }
 0x56d   :  { %9454 = vrot.lane.b32.xlu1 %v9453_v35, %s10094_s23  ;;  %v13529_v32 = vpop.permute.xlu0 %9374  ;;  %v9762_v35 = vld [vmem:[%s15891_s6 + $0x144] ss:$8 sps:$4 sm:$0xff]  }
 0x56e   :  { %9464 = vrot.lane.b32.xlu0 %v9463_v8, %s10094_s23  ;;  %4903 = vmatpush1.bf16.msra.mxu0 %v9754_v13  ;;  %v16119_v23 = vunpack.i.h.bf16 %v13529_v32  ;;  %v9376_v11 = vunpack.i.l.bf16 %v13529_v32  ;;  %16465 = vst [vmem:[#allocation24_spill] sm:$0xff] %v13571_v46 }
 0x56f   :  { %4904 = vmatprep.subr.bf16.mxu0 %v9759_v53 }
 0x570   :  { %v3840_v13 = vsel %vm289_vm6, %v9376_v11, %v16119_v23  ;;  %v9765_v23 = vld [vmem:[%s15891_s6 + $0x154] ss:$8 sps:$4 sm:$0xff]  }
 0x571   :  { %v13545_v8 = vpop.permute.xlu0 %9384  ;;  %v3978_v27 = vmax.f32 %v13166_v7, %v3840_v13  ;;  %v13563_v7 = vadd.f32 %v13389_v52, %v12728_v26  ;;  %v13589_v13 = vadd.f32 %v13395_v48, %v12772_v34  ;;  %v9768_v48 = vld [vmem:[%s15891_s6 + $0x164] ss:$8 sps:$4 sm:$0xff]  }
 0x572   :  { %16463 = vst [vmem:[#allocation68_spill] sm:$0xff] %v13545_v8  ;;  %4905 = vmatpush1.bf16.msra.mxu0 %v9757_v44  ;;  %v16121_v53 = vunpack.i.h.bf16 %v13545_v8  ;;  %v16122_v5 = vunpack.i.l.bf16 %v13545_v8  ;;  %v13567_v44 = vadd.f32 %v13391_v57, %v12712_v54 }
 0x573   :  { %4906 = vmatprep.subr.bf16.mxu0 %v9762_v35  ;;  %v4034_v58 = vpack.c.bf16 %v3986_v43, %v3978_v27 }
 0x574   :  { %v3839_v16 = vsel %vm289_vm6, %v16122_v5, %v9376_v11  ;;  %v3846_v26 = vsel %vm289_vm6, %v16121_v53, %v9381_v59  ;;  %v9763_v53 = vld [vmem:[%s15891_s6 + $0x150] ss:$8 sps:$4 sm:$0xff]  }
 0x575   :  { %v13573_v35 = vpop.permute.xlu1 %9389  ;;  %4867 = vmatprep.mubr.bf16.mxu0 %v4034_v58  ;;  %v3977_v54 = vmax.f32 %v13177_v22, %v3839_v16  ;;  %v3985_v27 = vmax.f32 %v16466_v2, %v3846_v26  ;;  %v13620_v58 = vadd.f32 %v13397_v41, %v12772_v34  ;;  %v16470_v2 = vld [vmem:[#allocation33_spill] sm:$0xff] }
 0x576   :  { %v13581_v52 = vpop.permute.xlu0 %9394  ;;  %v16123_v43 = vunpack.i.h.bf16 %v13573_v35  ;;  %v9391_v57 = vunpack.i.l.bf16 %v13573_v35  ;;  %4907 = vmatpush1.bf16.msra.mxu0 %v9760_v20 }
 0x577   :  { %v16125_v11 = vunpack.i.h.bf16 %v13581_v52  ;;  %v9396_v59 = vunpack.i.l.bf16 %v13581_v52  ;;  %4908 = vmatprep.subr.bf16.mxu0 %v9765_v23  ;;  %v4033_v5 = vpack.c.bf16 %v3985_v27, %v3977_v54  ;;  %16467 = vst [vmem:[#allocation73_spill] sm:$0xff] %v13620_v58 }
 0x578   :  { %v3854_v22 = vsel %vm289_vm6, %v9391_v57, %v16123_v43 }
 0x579   :  { %v13605_v26 = vpop.permute.xlu1 %9399  ;;  %v3861_v23 = vsel %vm289_vm6, %v9396_v59, %v16125_v11  ;;  %v3994_v54 = vmax.f32 %v13227_v18, %v3854_v22  ;;  %4868 = vmatmul.mubr.bf16.gmra.mrb[68].mxu0 %v4033_v5  ;;  %v9766_v22 = vld [vmem:[%s15891_s6 + $0x160] ss:$8 sps:$4 sm:$0xff]   ;;  %v13629_v5 = vadd.f32 %v13399_v62, %v12760_v49  ;;  %v16471_v11 = vunpack.i.h.bf16 %v16470_v2 }
 0x57a   :  { %v13612_v27 = vpop.permute.xlu0 %9409  ;;  %v16131_v43 = vunpack.i.h.bf16 %v13605_v26  ;;  %v9401_v51 = vunpack.i.l.bf16 %v13605_v26  ;;  %v4002_v20 = vmax.f32 %v13209_v30, %v3861_v23  ;;  %4909 = vmatpush1.bf16.msra.mxu0 %v9763_v53  ;;  %v16468_v30 = vld [vmem:[#allocation20_spill] sm:$0xff] }
 0x57b   :  { %v9411_v18 = vunpack.i.l.bf16 %v13612_v27  ;;  %v16469_v23 = vunpack.i.l.bf16 %v16468_v30  ;;  %4910 = vmatprep.subr.bf16.mxu0 %v9768_v48  ;;  %v9771_v53 = vld [vmem:[%s15891_s6 + $0x174] ss:$8 sps:$4 sm:$0xff]   ;;  %v16472_v62 = vunpack.i.h.bf16 %v13612_v27 }
 0x57c   :  { %v3451_v34 = vsel %vm221_vm4, %v9401_v51, %v16131_v43  ;;  %v4042_v41 = vpack.c.bf16 %v4002_v20, %v3994_v54  ;;  %v16478_v54 = vld [vmem:[#allocation12_spill] sm:$0xff] }
 0x57d   :  { %v3450_v16 = vsel %vm221_vm4, %v16469_v23, %v9401_v51  ;;  %v3457_v8 = vsel %vm221_vm4, %v16471_v11, %v9411_v18  ;;  %v3458_v30 = vsel %vm221_vm4, %v9411_v18, %v16472_v62  ;;  %v16474_v23 = vmax.f32 %v16473_v37, 0.0  ;;  %v13654_v48 = vpop.permute.xlu1 %9404 }
 0x57e   :  { %v16475_v51 = vmax.f32 %v13183_v10, 0.0  ;;  %16477 = vst [vmem:[#allocation25_spill] sm:$0xff] %v13654_v48  ;;  %v16479_v43 = vmax.f32 %v16478_v54, 0.0  ;;  %v16480_v11 = vmax.f32 %v13198_v1, 0.0  ;;  %v13664_v14 = vpop.permute.xlu0 %9414  ;;  %v16134_v37 = vunpack.i.h.bf16 %v13654_v48  ;;  %4877 = vmatprep.mubr.bf16.mxu0 %v4042_v41  ;;  %4911 = vmatpush1.bf16.msra.mxu0 %v9766_v22  ;;  %v9774_v22 = vld [vmem:[%s15891_s6 + $0x184] ss:$8 sps:$4 sm:$0xff]  }
 0x57f   :  { %v13648_v28 = vmax.f32 %v16474_v23, %v3450_v16  ;;  %v16135_v16 = vunpack.i.l.bf16 %v13654_v48  ;;  %v16138_v10 = vmax.f32 %v13620_v58, 0.0  ;;  %v13671_v18 = vadd.f32 %v13401_v21, %v12760_v49  ;;  %4912 = vmatprep.subr.bf16.mxu0 %v9771_v53 }
 0x580   :  { %v13652_v20 = vmax.f32 %v16475_v51, %v3451_v34  ;;  %v13658_v55 = vmax.f32 %v16479_v43, %v3457_v8  ;;  %v13662_v2 = vmax.f32 %v16480_v11, %v3458_v30  ;;  %v9769_v43 = vld [vmem:[%s15891_s6 + $0x170] ss:$8 sps:$4 sm:$0xff]   ;;  %v9416_v34 = vunpack.i.l.bf16 %v13664_v14 }
 0x581   :  { %v3853_v49 = vsel %vm289_vm6, %v16135_v16, %v9391_v57  ;;  %v3860_v21 = vsel %vm289_vm6, %v16134_v37, %v9396_v59  ;;  %v16482_v62 = vmax.f32 %v13559_v39, 0.0  ;;  %v16483_v30 = vmax.f32 %v13563_v7, 0.0  ;;  %v13695_v51 = vpop.permute.xlu1 %9424 }
 0x582   :  { %16476 = vst [vmem:[#allocation44_spill] sm:$0xff] %v13652_v20  ;;  %16481 = vst [vmem:[#allocation6_spill] sm:$0xff] %v13662_v2  ;;  %v9468_v1 = vpack.i.bf16 %v13652_v20, %v13648_v28  ;;  %v9478_v41 = vpack.i.bf16 %v13662_v2, %v13658_v55  ;;  %v3993_v57 = vmax.f32 %v13277_v25, %v3853_v49  ;;  %v16484_v59 = vmax.f32 %v13567_v44, 0.0  ;;  %v13705_v16 = vpop.permute.xlu0 %9419  ;;  %v16490_v25 = vld [vmem:[#allocation74_spill] sm:$0xff] }
 0x583   :  { %v9473_v23 = vpack.i.bf16 %v16483_v30, %v16482_v62  ;;  %v4001_v54 = vmax.f32 %v13294_v40, %v3860_v21  ;;  %v16485_v53 = vmax.f32 %v13571_v46, 0.0  ;;  %v16140_v8 = vunpack.i.h.bf16 %v13695_v51  ;;  %4913 = vmatpush1.bf16.msra.mxu0 %v9769_v43  ;;  %v9772_v21 = vld [vmem:[%s15891_s6 + $0x180] ss:$8 sps:$4 sm:$0xff]  }
 0x584   :  { %9469 = vrot.lane.b32.xlu1 %v9468_v1, %s10096_s25  ;;  %v9426_v62 = vunpack.i.l.bf16 %v13695_v51  ;;  %9479 = vrot.lane.b32.xlu0 %v9478_v41, %s10096_s25  ;;  %v9421_v40 = vunpack.i.l.bf16 %v13705_v16  ;;  %v16486_v30 = vmax.f32 %v13589_v13, 0.0  ;;  %v16491_v48 = vunpack.i.l.bf16 %v16490_v25  ;;  %v16496_v20 = vld [vmem:[#allocation46_spill] sm:$0xff] }
 0x585   :  { %v9483_v11 = vpack.i.bf16 %v16485_v53, %v16484_v59  ;;  %v4041_v49 = vpack.c.bf16 %v4001_v54, %v3993_v57  ;;  %v16487_v53 = vld [vmem:[#allocation65_spill] sm:$0xff]  ;;  %v16489_v57 = vunpack.i.h.bf16 %v13664_v14  ;;  %4914 = vmatprep.subr.bf16.mxu0 %v9774_v22  ;;  %v13746_v22 = vpop.permute.xlu1 %9429  ;;  %v16497_v25 = vmax.f32 %v16496_v20, 0.0 }
 0x586   :  { %v9493_v59 = vpack.i.bf16 %v16138_v10, %v16486_v30  ;;  %v16488_v37 = vunpack.i.h.bf16 %v16487_v53  ;;  %v3472_v1 = vsel %vm221_vm4, %v9426_v62, %v16140_v8  ;;  %v9777_v54 = vld [vmem:[%s15891_s6 + $0x194] ss:$8 sps:$4 sm:$0xff]   ;;  %v3464_v30 = vsel %vm221_vm4, %v16491_v48, %v9421_v40 }
 0x587   :  { %v3868_v43 = vsel %vm289_vm6, %v9416_v34, %v16489_v57  ;;  %v16492_v53 = vunpack.i.h.bf16 %v13705_v16  ;;  %v16493_v10 = vld [vmem:[#allocation8_spill] sm:$0xff]  ;;  %v16495_v8 = vmax.f32 %v13253_v4, 0.0  ;;  %v13751_v58 = vmax.f32 %v16497_v25, %v3464_v30  ;;  %4878 = vmatmul.mubr.bf16.gmra.mrb[72].mxu0 %v4041_v49 }
 0x588   :  { %v3471_v41 = vsel %vm221_vm4, %v16488_v37, %v9426_v62  ;;  %v16494_v2 = vmax.f32 %v16493_v10, 0.0  ;;  %9474 = vrot.lane.b32.xlu1 %v9473_v23, %s10094_s23  ;;  %v16498_v48 = vmax.f32 %v13273_v38, 0.0  ;;  %v9431_v4 = vunpack.i.l.bf16 %v13746_v22  ;;  %9484 = vrot.lane.b32.xlu0 %v9483_v11, %s10094_s23 }
 0x589   :  { %v3465_v37 = vsel %vm221_vm4, %v9421_v40, %v16492_v53  ;;  %v13744_v57 = vmax.f32 %v16495_v8, %v3472_v1  ;;  %v13757_v40 = vpop.permute.xlu0 %9434  ;;  %v16500_v10 = vmax.f32 %v13629_v5, 0.0  ;;  %v16501_v8 = vmax.f32 %v13671_v18, 0.0  ;;  %4915 = vmatpush1.bf16.msra.mxu0 %v9772_v21  ;;  %v9780_v21 = vld [vmem:[%s15891_s6 + $0x1a4] ss:$8 sps:$4 sm:$0xff]  }
 0x58a   :  { %v13740_v62 = vmax.f32 %v16494_v2, %v3471_v41  ;;  %v13755_v46 = vmax.f32 %v16498_v48, %v3465_v37  ;;  %16499 = vst [vmem:[#allocation32_spill] sm:$0xff] %v13757_v40  ;;  %v16157_v2 = vunpack.i.h.bf16 %v13746_v22  ;;  %v16144_v23 = vunpack.i.h.bf16 %v13757_v40  ;;  %v9775_v41 = vld [vmem:[%s15891_s6 + $0x190] ss:$8 sps:$4 sm:$0xff]   ;;  %4916 = vmatprep.subr.bf16.mxu0 %v9777_v54  ;;  %v13789_v37 = vpop.permute.xlu1 %9439 }
 0x58b   :  { %v9503_v20 = vpack.i.bf16 %v16501_v8, %v16500_v10  ;;  %v16145_v38 = vunpack.i.l.bf16 %v13757_v40  ;;  %v13775_v11 = vadd.f32 %v13403_v15, %v12815_v31  ;;  %v13779_v49 = vadd.f32 %v13405_v6, %v12815_v31 }
 0x58c   :  { %v9498_v1 = vpack.i.bf16 %v13744_v57, %v13740_v62  ;;  %v9488_v30 = vpack.i.bf16 %v13755_v46, %v13751_v58  ;;  %v3875_v53 = vsel %vm289_vm6, %v9431_v4, %v16157_v2  ;;  %v4010_v15 = vmax.f32 %v13290_v63, %v3868_v43 }
 0x58d   :  { %v4018_v25 = vmax.f32 %v13336_v47, %v3875_v53  ;;  %v3867_v31 = vsel %vm289_vm6, %v16145_v38, %v9416_v34  ;;  %v3874_v6 = vsel %vm289_vm6, %v16144_v23, %v9431_v4  ;;  %v13799_v48 = vpop.permute.xlu0 %9444  ;;  %v16155_v54 = vunpack.i.h.bf16 %v13789_v37  ;;  %4917 = vmatpush1.bf16.msra.mxu0 %v9775_v41 }
 0x58e   :  { %v9441_v10 = vunpack.i.l.bf16 %v13789_v37  ;;  %9489 = vrot.lane.b32.xlu1 %v9488_v30, %s10096_s25  ;;  %9499 = vrot.lane.b32.xlu0 %v9498_v1, %s10096_s25  ;;  %v4009_v63 = vmax.f32 %v13352_v0, %v3867_v31  ;;  %v4017_v47 = vmax.f32 %v13361_v50, %v3874_v6  ;;  %v13809_v34 = vadd.f32 %v13407_v60, %v12808_v19  ;;  %v9778_v30 = vld [vmem:[%s15891_s6 + $0x1a0] ss:$8 sps:$4 sm:$0xff]  }
 0x58f   :  { %v16150_v43 = vunpack.i.h.bf16 %v13799_v48  ;;  %v9446_v4 = vunpack.i.l.bf16 %v13799_v48  ;;  %v4050_v8 = vpack.c.bf16 %v4018_v25, %v4010_v15  ;;  %v13815_v53 = vadd.f32 %v13409_v17, %v12808_v19  ;;  %4918 = vmatprep.subr.bf16.mxu0 %v9780_v21  ;;  %v9783_v21 = vld [vmem:[%s15891_s6 + $0x1b4] ss:$8 sps:$4 sm:$0xff]  }
 0x590   :  { %v16502_v1 = vunpack.i.l.bf16 %v13211_v42  ;;  %v3479_v50 = vsel %vm221_vm4, %v9441_v10, %v16155_v54  ;;  %v4049_v60 = vpack.c.bf16 %v4017_v47, %v4009_v63  ;;  %v16503_v41 = vunpack.i.h.bf16 %v13162_v24  ;;  %v16504_v42 = vld [vmem:[#allocation56_spill] sm:$0xff]  ;;  %v16507_v24 = vld [vmem:[#allocation27_spill] sm:$0xff] }
 0x591   :  { %v3486_v19 = vsel %vm221_vm4, %v9446_v4, %v16150_v43  ;;  %v16505_v17 = vmax.f32 %v16504_v42, 0.0  ;;  %v16506_v31 = vmax.f32 %v13325_v45, 0.0  ;;  %4887 = vmatprep.mubr.bf16.mxu0 %v4050_v8  ;;  %v16509_v47 = vld [vmem:[#allocation31_spill] sm:$0xff]  ;;  %v16153_v45 = vmax.f32 %v13775_v11, 0.0  ;;  %4919 = vmatpush1.bf16.msra.mxu0 %v9778_v30  ;;  %v9789_v42 = vld [vmem:[%s15891_s6 + $0x1d4] ss:$8 sps:$4 sm:$0xff]  }
 0x592   :  { %v3478_v0 = vsel %vm221_vm4, %v16502_v1, %v9441_v10  ;;  %v3485_v15 = vsel %vm221_vm4, %v16503_v41, %v9446_v4  ;;  %v16508_v10 = vmax.f32 %v16507_v24, 0.0  ;;  %v16510_v1 = vmax.f32 %v16509_v47, 0.0  ;;  %9494 = vrot.lane.b32.xlu1 %v9493_v59, %s10094_s23  ;;  %9504 = vrot.lane.b32.xlu0 %v9503_v20, %s10094_s23  ;;  %v9781_v59 = vld [vmem:[%s15891_s6 + $0x1b0] ss:$8 sps:$4 sm:$0xff]   ;;  %v9786_v20 = vld [vmem:[%s15891_s6 + $0x1c4] ss:$8 sps:$4 sm:$0xff]  }
 0x593   :  { %v13834_v25 = vmax.f32 %v16505_v17, %v3478_v0  ;;  %v13838_v6 = vmax.f32 %v16506_v31, %v3479_v50  ;;  %4888 = vmatmul.mubr.bf16.gmra.mrb[76].mxu0 %v4049_v60  ;;  %v16147_v0 = vmax.f32 %v13779_v49, 0.0  ;;  %v16149_v50 = vmax.f32 %v13809_v34, 0.0  ;;  %4920 = vmatprep.subr.bf16.mxu0 %v9783_v21  ;;  %v9787_v17 = vld [vmem:[%s15891_s6 + $0x1d0] ss:$8 sps:$4 sm:$0xff]   ;;  %v9792_v31 = vld [vmem:[%s15891_s6 + $0x1e4] ss:$8 sps:$4 sm:$0xff]  }
 0x594   :  { %v13845_v63 = vmax.f32 %v16508_v10, %v3485_v15  ;;  %v13849_v4 = vmax.f32 %v16510_v1, %v3486_v19  ;;  %v16146_v41 = vmax.f32 %v13815_v53, 0.0  ;;  %v9784_v19 = vld [vmem:[%s15891_s6 + $0x1c0] ss:$8 sps:$4 sm:$0xff]   ;;  %v9795_v24 = vld [vmem:[%s15891_s6 + $0x1f4] ss:$8 sps:$4 sm:$0xff]  }
 0x595   :  { %v9508_v8 = vpack.i.bf16 %v13838_v6, %v13834_v25  ;;  %v9513_v60 = vpack.i.bf16 %v16147_v0, %v16153_v45  ;;  %4921 = vmatpush1.bf16.msra.mxu0 %v9781_v59  ;;  %v9790_v21 = vld [vmem:[%s15891_s6 + $0x1e0] ss:$8 sps:$4 sm:$0xff]   ;;  %v9793_v10 = vld [vmem:[%s15891_s6 + $0x1f0] ss:$8 sps:$4 sm:$0xff]   ;;  %v9798_v47 = vld [vmem:[%s15891_s6 + $0x204] ss:$8 sps:$4 sm:$0xff]  }
 0x596   :  { %v9518_v15 = vpack.i.bf16 %v13849_v4, %v13845_v63  ;;  %v9523_v30 = vpack.i.bf16 %v16146_v41, %v16149_v50  ;;  %4922 = vmatprep.subr.bf16.mxu0 %v9786_v20  ;;  %v16511_v20 = vld [vmem:[#allocation42_spill] sm:$0xff]  ;;  %v16516_v0 = vld [vmem:[#allocation47_spill] sm:$0xff]  ;;  %v16530_v54 = vld [vmem:[#allocation72_spill] sm:$0xff] }
 0x597   :  { %9509 = vrot.lane.b32.xlu1 %v9508_v8, %s10096_s25  ;;  %v16518_v50 = vld [vmem:[#allocation15_spill] sm:$0xff] }
 0x598   :  { %9519 = vrot.lane.b32.xlu0 %v9518_v15, %s10096_s25  ;;  %v16519_v43 = vmax.f32 %v16518_v50, 0.0  ;;  %v9801_v50 = vld [vmem:[%s15891_s6 + $0x214] ss:$8 sps:$4 sm:$0xff]  }
 0x599   :  { %4923 = vmatpush1.bf16.msra.mxu0 %v9784_v19 }
 0x59a   :  { %4924 = vmatprep.subr.bf16.mxu0 %v9789_v42 }
 0x59b   :  { %9514 = vrot.lane.b32.xlu1 %v9513_v60, %s10094_s23  ;;  %v16512_v60 = vunpack.i.h.bf16 %v16511_v20 }
 0x59c   :  { %9524 = vrot.lane.b32.xlu0 %v9523_v30, %s10094_s23 }
 0x59d   :  { %4925 = vmatpush1.bf16.msra.mxu0 %v9787_v17 }
 0x59e   :  { %4926 = vmatprep.subr.bf16.mxu0 %v9792_v31  ;;  %v16513_v31 = vld [vmem:[#allocation19_spill] sm:$0xff] }
 0x5a1   :  { %4927 = vmatpush1.bf16.msra.mxu0 %v9790_v21 }
 0x5a2   :  { %4928 = vmatprep.subr.bf16.mxu0 %v9795_v24 }
 0x5a5   :  { %4929 = vmatpush1.bf16.msra.mxu0 %v9793_v10 }
 0x5a6   :  { %4971 = vmatprep.subr.bf16.mxu0 %v9798_v47  ;;  %v16514_v47 = vld [vmem:[#allocation62_spill] sm:$0xff] }
 0x5a7   :  { %v16515_v23 = vunpack.i.h.bf16 %v16514_v47 }
 0x5db   :  { %v13903_v1 = vpop.permute.xlu1 %9449 }
 0x5dc   :  { %v16148_v8 = vunpack.i.h.bf16 %v13903_v1  ;;  %v9451_v15 = vunpack.i.l.bf16 %v13903_v1  ;;  %v13907_v59 = vpop.permute.xlu0 %9459 }
 0x5dd   :  { %v16152_v19 = vunpack.i.h.bf16 %v13907_v59  ;;  %v9461_v42 = vunpack.i.l.bf16 %v13907_v59 }
 0x5de   :  { %v3827_v30 = vsel %vm289_vm6, %v16512_v60, %v9451_v15  ;;  %v3828_v17 = vsel %vm289_vm6, %v9451_v15, %v16148_v8 }
 0x5df   :  { %v3963_v21 = vmax.f32 %v16513_v31, %v3827_v30  ;;  %v13918_v24 = vpop.permute.xlu1 %9454  ;;  %v3964_v10 = vmax.f32 %v13470_v3, %v3828_v17  ;;  %v3834_v20 = vsel %vm289_vm6, %v16515_v23, %v9461_v42  ;;  %v3835_v41 = vsel %vm289_vm6, %v9461_v42, %v16152_v19 }
 0x5e0   :  { %v16162_v60 = vunpack.i.h.bf16 %v13918_v24  ;;  %v9456_v38 = vunpack.i.l.bf16 %v13918_v24  ;;  %v3971_v15 = vmax.f32 %v16516_v0, %v3834_v20  ;;  %v13930_v8 = vpop.permute.xlu0 %9464  ;;  %v3972_v30 = vmax.f32 %v13489_v33, %v3835_v41  ;;  %v9796_v41 = vld [vmem:[%s15891_s6 + $0x200] ss:$8 sps:$4 sm:$0xff]  }
 0x5e1   :  { %v16517_v3 = vunpack.i.h.bf16 %v13435_v29  ;;  %v16156_v31 = vunpack.i.h.bf16 %v13930_v8  ;;  %v16520_v0 = vmax.f32 %v13430_v12, 0.0  ;;  %v9466_v33 = vunpack.i.l.bf16 %v13930_v8 }
 0x5e2   :  { %v3439_v23 = vsel %vm221_vm4, %v9456_v38, %v16162_v60  ;;  %v4027_v47 = vpack.c.bf16 %v3971_v15, %v3963_v21  ;;  %v4028_v29 = vpack.c.bf16 %v3972_v30, %v3964_v10  ;;  %v16522_v10 = vld [vmem:[#allocation61_spill] sm:$0xff] }
 0x5e3   :  { %v3438_v17 = vsel %vm221_vm4, %v16517_v3, %v9456_v38  ;;  %v13946_v20 = vmax.f32 %v16520_v0, %v3439_v23  ;;  %v3446_v21 = vsel %vm221_vm4, %v9466_v33, %v16156_v31  ;;  %v16523_v15 = vmax.f32 %v16522_v10, 0.0  ;;  %v9804_v0 = vld [vmem:[%s15891_s6 + $0x224] ss:$8 sps:$4 sm:$0xff]  }
 0x5e4   :  { %v13942_v42 = vmax.f32 %v16519_v43, %v3438_v17  ;;  %v16521_v43 = vunpack.i.h.bf16 %v13452_v61  ;;  %4930 = vmatprep.mubr.bf16.mxu0 %v4028_v29  ;;  %v16524_v3 = vmax.f32 %v13448_v9, 0.0  ;;  %v9799_v61 = vld [vmem:[%s15891_s6 + $0x210] ss:$8 sps:$4 sm:$0xff]   ;;  %v9802_v9 = vld [vmem:[%s15891_s6 + $0x220] ss:$8 sps:$4 sm:$0xff]   ;;  %v16531_v31 = vmax.f32 %v16530_v54, 0.0 }
 0x5e5   :  { %4931 = vmatmul.mubr.bf16.vlgmr.msra.gmra.mrb[64].mxu0 %v4027_v47  ;;  %v9807_v47 = vld [vmem:[%s15891_s6 + $0x234] ss:$8 sps:$4 sm:$0xff]   ;;  %v9810_v29 = vld [vmem:[%s15891_s6 + $0x244] ss:$8 sps:$4 sm:$0xff]  }
 0x5e6   :  { %v9528_v38 = vpack.i.bf16 %v13946_v20, %v13942_v42  ;;  %v3445_v12 = vsel %vm221_vm4, %v16521_v43, %v9466_v33  ;;  %v13969_v17 = vmax.f32 %v16524_v3, %v3446_v21  ;;  %4972 = vmatpush1.bf16.msra.mxu0 %v9796_v41  ;;  %v9805_v33 = vld [vmem:[%s15891_s6 + $0x230] ss:$8 sps:$4 sm:$0xff]   ;;  %v9808_v41 = vld [vmem:[%s15891_s6 + $0x240] ss:$8 sps:$4 sm:$0xff]  }
 0x5e7   :  { %v13965_v30 = vmax.f32 %v16523_v15, %v3445_v12  ;;  %4973 = vmatprep.subr.bf16.mxu0 %v9801_v50  ;;  %v9813_v50 = vld [vmem:[%s15891_s6 + $0x254] ss:$8 sps:$4 sm:$0xff]  }
 0x5e8   :  { %9529 = vrot.lane.b32.xlu1 %v9528_v38, %s10096_s25 }
 0x5e9   :  { %v9533_v23 = vpack.i.bf16 %v13969_v17, %v13965_v30 }
 0x5ea   :  { %4974 = vmatpush1.bf16.msra.mxu0 %v9799_v61  ;;  %v16525_v61 = vunpack.i.h.bf16 %v13529_v32  ;;  %v16527_v32 = vld [vmem:[#allocation22_spill] sm:$0xff] }
 0x5eb   :  { %9534 = vrot.lane.b32.xlu0 %v9533_v23, %s10096_s25  ;;  %4975 = vmatprep.subr.bf16.mxu0 %v9804_v0  ;;  %v9811_v0 = vld [vmem:[%s15891_s6 + $0x250] ss:$8 sps:$4 sm:$0xff]  }
 0x5ee   :  { %4976 = vmatpush1.bf16.msra.mxu0 %v9802_v9 }
 0x5ef   :  { %4977 = vmatprep.subr.bf16.mxu0 %v9807_v47 }
 0x5f2   :  { %4978 = vmatpush1.bf16.msra.mxu0 %v9805_v33 }
 0x5f3   :  { %4979 = vmatprep.subr.bf16.mxu0 %v9810_v29  ;;  %v16526_v29 = vunpack.i.h.bf16 %v13508_v36 }
 0x5f6   :  { %v13996_v38 = vpop.permute.xlu1 %9469  ;;  %v14003_v21 = vpop.permute.xlu0 %9479  ;;  %4980 = vmatpush1.bf16.msra.mxu0 %v9808_v41  ;;  %v9816_v41 = vld [vmem:[%s15891_s6 + $0x264] ss:$8 sps:$4 sm:$0xff]  }
 0x5f7   :  { %v16151_v43 = vunpack.i.h.bf16 %v13996_v38  ;;  %v9471_v12 = vunpack.i.l.bf16 %v13996_v38  ;;  %v16154_v10 = vunpack.i.h.bf16 %v14003_v21  ;;  %v9481_v15 = vunpack.i.l.bf16 %v14003_v21  ;;  %4981 = vmatprep.subr.bf16.mxu0 %v9813_v50 }
 0x5f8   :  { %v16529_v50 = vunpack.i.h.bf16 %v13605_v26  ;;  %v9814_v26 = vld [vmem:[%s15891_s6 + $0x260] ss:$8 sps:$4 sm:$0xff]  }
 0x5f9   :  { %v3842_v3 = vsel %vm289_vm6, %v9471_v12, %v16151_v43  ;;  %v3841_v23 = vsel %vm289_vm6, %v16525_v61, %v9471_v12  ;;  %v3849_v47 = vsel %vm289_vm6, %v9481_v15, %v16154_v10  ;;  %v3848_v43 = vsel %vm289_vm6, %v16526_v29, %v9481_v15 }
 0x5fa   :  { %v14016_v9 = vpop.permute.xlu1 %9474  ;;  %v3980_v33 = vmax.f32 %v13648_v28, %v3842_v3  ;;  %v3979_v19 = vmax.f32 %v16527_v32, %v3841_v23  ;;  %v14031_v45 = vpop.permute.xlu0 %9484  ;;  %v3988_v10 = vmax.f32 %v13658_v55, %v3849_v47  ;;  %v16528_v28 = vld [vmem:[#allocation66_spill] sm:$0xff]  ;;  %4982 = vmatpush1.bf16.msra.mxu0 %v9811_v0  ;;  %v16532_v55 = vmax.f32 %v13559_v39, 0.0 }
 0x5fb   :  { %v16161_v12 = vunpack.i.h.bf16 %v14016_v9  ;;  %v9476_v61 = vunpack.i.l.bf16 %v14016_v9  ;;  %v3987_v3 = vmax.f32 %v16528_v28, %v3848_v43  ;;  %v16160_v36 = vunpack.i.h.bf16 %v14031_v45  ;;  %4983 = vmatprep.subr.bf16.mxu0 %v9816_v41  ;;  %v16534_v0 = vld [vmem:[#allocation58_spill] sm:$0xff] }
 0x5fc   :  { %v9486_v15 = vunpack.i.l.bf16 %v14031_v45  ;;  %v4036_v32 = vpack.c.bf16 %v3988_v10, %v3980_v33  ;;  %v16533_v47 = vunpack.i.h.bf16 %v13612_v27  ;;  %v16535_v33 = vmax.f32 %v16534_v0, 0.0 }
 0x5fd   :  { %v3452_v23 = vsel %vm221_vm4, %v16529_v50, %v9476_v61  ;;  %v3453_v29 = vsel %vm221_vm4, %v9476_v61, %v16161_v12  ;;  %v4035_v39 = vpack.c.bf16 %v3987_v3, %v3979_v19  ;;  %v16536_v41 = vmax.f32 %v13567_v44, 0.0 }
 0x5fe   :  { %v14045_v2 = vmax.f32 %v16531_v31, %v3452_v23  ;;  %v14049_v43 = vmax.f32 %v16532_v55, %v3453_v29  ;;  %v3459_v28 = vsel %vm221_vm4, %v16533_v47, %v9486_v15  ;;  %v3460_v10 = vsel %vm221_vm4, %v9486_v15, %v16160_v36  ;;  %4940 = vmatprep.mubr.bf16.mxu0 %v4036_v32  ;;  %v9819_v15 = vld [vmem:[%s15891_s6 + $0x274] ss:$8 sps:$4 sm:$0xff]  }
 0x5ff   :  { %v14066_v61 = vmax.f32 %v16535_v33, %v3459_v28  ;;  %v14070_v50 = vmax.f32 %v16536_v41, %v3460_v10  ;;  %4941 = vmatmul.mubr.bf16.gmra.mrb[68].mxu0 %v4035_v39  ;;  %v16537_v55 = vunpack.i.h.bf16 %v13573_v35  ;;  %v9817_v28 = vld [vmem:[%s15891_s6 + $0x270] ss:$8 sps:$4 sm:$0xff]   ;;  %v16538_v33 = vunpack.i.h.bf16 %v13581_v52 }
 0x600   :  { %v14060_v54 = vpop.permute.xlu1 %9489  ;;  %v14062_v31 = vpop.permute.xlu0 %9499  ;;  %v9538_v3 = vpack.i.bf16 %v14049_v43, %v14045_v2  ;;  %4984 = vmatpush1.bf16.msra.mxu0 %v9814_v26  ;;  %v9822_v26 = vld [vmem:[%s15891_s6 + $0x284] ss:$8 sps:$4 sm:$0xff]   ;;  %v16539_v52 = vld [vmem:[#allocation9_spill] sm:$0xff] }
 0x601   :  { %v16159_v27 = vunpack.i.h.bf16 %v14060_v54  ;;  %v9491_v23 = vunpack.i.l.bf16 %v14060_v54  ;;  %v16158_v29 = vunpack.i.h.bf16 %v14062_v31  ;;  %v9501_v19 = vunpack.i.l.bf16 %v14062_v31  ;;  %4985 = vmatprep.subr.bf16.mxu0 %v9819_v15  ;;  %v9820_v15 = vld [vmem:[%s15891_s6 + $0x280] ss:$8 sps:$4 sm:$0xff]  }
 0x602   :  { %v9543_v44 = vpack.i.bf16 %v14070_v50, %v14066_v61  ;;  %9539 = vrot.lane.b32.xlu1 %v9538_v3, %s10096_s25  ;;  %v16541_v3 = vld [vmem:[#allocation11_spill] sm:$0xff] }
 0x603   :  { %v3856_v32 = vsel %vm289_vm6, %v9491_v23, %v16159_v27  ;;  %v3855_v47 = vsel %vm289_vm6, %v16537_v55, %v9491_v23  ;;  %v3863_v0 = vsel %vm289_vm6, %v9501_v19, %v16158_v29  ;;  %v3862_v35 = vsel %vm289_vm6, %v16538_v33, %v9501_v19 }
 0x604   :  { %v14092_v10 = vpop.permute.xlu1 %9494  ;;  %v14095_v39 = vpop.permute.xlu0 %9504  ;;  %9544 = vrot.lane.b32.xlu0 %v9543_v44, %s10096_s25  ;;  %v3996_v29 = vmax.f32 %v13751_v58, %v3856_v32  ;;  %v3995_v27 = vmax.f32 %v16539_v52, %v3855_v47  ;;  %v16540_v19 = vunpack.i.h.bf16 %v13705_v16  ;;  %v4004_v12 = vmax.f32 %v13740_v62, %v3863_v0  ;;  %4986 = vmatpush1.bf16.msra.mxu0 %v9817_v28  ;;  %v16542_v58 = vld [vmem:[#allocation43_spill] sm:$0xff] }
 0x605   :  { %v16163_v41 = vunpack.i.h.bf16 %v14092_v10  ;;  %v9496_v23 = vunpack.i.l.bf16 %v14092_v10  ;;  %v9506_v55 = vunpack.i.l.bf16 %v14095_v39  ;;  %v4003_v60 = vmax.f32 %v16541_v3, %v3862_v35  ;;  %v16545_v47 = vld [vmem:[#allocation23_spill] sm:$0xff]  ;;  %4987 = vmatprep.subr.bf16.mxu0 %v9822_v26  ;;  %v9825_v35 = vld [vmem:[%s15891_s6 + $0x294] ss:$8 sps:$4 sm:$0xff]  }
 0x606   :  { %v16543_v44 = vunpack.i.l.bf16 %v16542_v58  ;;  %v16544_v32 = vunpack.i.h.bf16 %v13918_v24  ;;  %v16546_v52 = vmax.f32 %v16545_v47, 0.0  ;;  %v16549_v24 = vunpack.i.h.bf16 %v13695_v51 }
 0x607   :  { %v3466_v33 = vsel %vm221_vm4, %v16540_v19, %v9496_v23  ;;  %v3467_v36 = vsel %vm221_vm4, %v9496_v23, %v16163_v41  ;;  %v16547_v23 = vmax.f32 %v13589_v13, 0.0  ;;  %v16553_v26 = vmax.f32 %v13629_v5, 0.0  ;;  %v9823_v5 = vld [vmem:[%s15891_s6 + $0x290] ss:$8 sps:$4 sm:$0xff]  }
 0x608   :  { %v3561_v16 = vsel %vm221_vm4, %v16544_v32, %v16543_v44  ;;  %v14131_v19 = vmax.f32 %v16546_v52, %v3466_v33  ;;  %v3473_v3 = vsel %vm221_vm4, %v16549_v24, %v9506_v55  ;;  %v16550_v33 = vunpack.i.h.bf16 %v14095_v39  ;;  %v16551_v32 = vld [vmem:[#allocation4_spill] sm:$0xff]  ;;  %4988 = vmatpush1.bf16.msra.mxu0 %v9820_v15  ;;  %v9828_v15 = vld [vmem:[%s15891_s6 + $0x2a4] ss:$8 sps:$4 sm:$0xff]  }
 0x609   :  { %v14135_v62 = vmax.f32 %v16547_v23, %v3467_v36  ;;  %v14137_v0 = vpop.permute.xlu1 %9509  ;;  %v16552_v47 = vmax.f32 %v16551_v32, 0.0  ;;  %v4044_v41 = vpack.c.bf16 %v4004_v12, %v3996_v29  ;;  %v4043_v40 = vpack.c.bf16 %v4003_v60, %v3995_v27  ;;  %4989 = vmatprep.subr.bf16.mxu0 %v9825_v35 }
 0x60a   :  { %v14139_v28 = vpop.permute.xlu0 %9519  ;;  %v3474_v44 = vsel %vm221_vm4, %v9506_v55, %v16550_v33  ;;  %v16166_v13 = vunpack.i.h.bf16 %v14137_v0  ;;  %v9511_v36 = vunpack.i.l.bf16 %v14137_v0  ;;  %v16555_v27 = vunpack.i.h.bf16 %v13664_v14 }
 0x60b   :  { %16548 = vst [vmem:[#allocation10_spill] sm:$0xff] %v14135_v62  ;;  %v14154_v52 = vmax.f32 %v16552_v47, %v3473_v3  ;;  %v14158_v23 = vmax.f32 %v16553_v26, %v3474_v44  ;;  %v16168_v51 = vunpack.i.h.bf16 %v14139_v28  ;;  %v9521_v24 = vunpack.i.l.bf16 %v14139_v28  ;;  %4950 = vmatprep.mubr.bf16.mxu0 %v4044_v41 }
 0x60c   :  { %v9548_v55 = vpack.i.bf16 %v14135_v62, %v14131_v19  ;;  %v3870_v33 = vsel %vm289_vm6, %v9511_v36, %v16166_v13  ;;  %v3869_v29 = vsel %vm289_vm6, %v16555_v27, %v9511_v36  ;;  %4951 = vmatmul.mubr.bf16.gmra.mrb[72].mxu0 %v4043_v40  ;;  %v16558_v41 = vunpack.i.h.bf16 %v16542_v58 }
 0x60d   :  { %16554 = vst [vmem:[#allocation13_spill] sm:$0xff] %v14158_v23  ;;  %v9515_v3 = vpop.permute.xlu1 %9514  ;;  %v9553_v32 = vpack.i.bf16 %v14158_v23, %v14154_v52  ;;  %v3877_v60 = vsel %vm289_vm6, %v9521_v24, %v16168_v51  ;;  %v4012_v12 = vmax.f32 %v13834_v25, %v3870_v33  ;;  %v16556_v51 = vmax.f32 %v13433_v56, 0.0  ;;  %4990 = vmatpush1.bf16.msra.mxu0 %v9823_v5 }
 0x60e   :  { %v9525_v44 = vpop.permute.xlu0 %9524  ;;  %v9517_v47 = vunpack.i.h.bf16 %v9515_v3  ;;  %v9516_v26 = vunpack.i.l.bf16 %v9515_v3  ;;  %9549 = vrot.lane.b32.xlu1 %v9548_v55, %s10096_s25  ;;  %v4020_v14 = vmax.f32 %v13845_v63, %v3877_v60  ;;  %v16557_v25 = vunpack.i.h.bf16 %v13746_v22  ;;  %v9826_v22 = vld [vmem:[%s15891_s6 + $0x2a0] ss:$8 sps:$4 sm:$0xff]   ;;  %v16562_v63 = vld [vmem:[#allocation57_spill] sm:$0xff]  ;;  %4991 = vmatprep.subr.bf16.mxu0 %v9828_v15 }
 0x60f   :  { %v9527_v13 = vunpack.i.h.bf16 %v9525_v44  ;;  %v9526_v23 = vunpack.i.l.bf16 %v9525_v44  ;;  %v14185_v62 = vmax.f32 %v16556_v51, %v3561_v16  ;;  %9554 = vrot.lane.b32.xlu0 %v9553_v32, %s10096_s25  ;;  %v16559_v36 = vunpack.i.h.bf16 %v13930_v8  ;;  %v16561_v16 = vld [vmem:[#allocation14_spill] sm:$0xff]  ;;  %v16567_v32 = vld [vmem:[#allocation67_spill] sm:$0xff] }
 0x610   :  { %v3876_v35 = vsel %vm289_vm6, %v16557_v25, %v9521_v24  ;;  %v16560_v33 = vunpack.i.h.bf16 %v13789_v37  ;;  %v3481_v40 = vsel %vm221_vm4, %v9516_v26, %v9517_v47  ;;  %v4011_v51 = vmax.f32 %v16561_v16, %v3869_v29 }
 0x611   :  { %v3562_v55 = vsel %vm221_vm4, %v16559_v36, %v16558_v41  ;;  %v16563_v24 = vunpack.i.l.bf16 %v16562_v63  ;;  %v16564_v58 = vunpack.i.h.bf16 %v14016_v9  ;;  %v16565_v3 = vunpack.i.h.bf16 %v16562_v63  ;;  %v9831_v9 = vld [vmem:[%s15891_s6 + $0x2b4] ss:$8 sps:$4 sm:$0xff]   ;;  %4992 = vmatpush1.bf16.msra.mxu0 %v9826_v22 }
 0x612   :  { %v3480_v56 = vsel %vm221_vm4, %v16560_v33, %v9516_v26  ;;  %v16566_v37 = vunpack.i.h.bf16 %v14031_v45  ;;  %v16568_v60 = vmax.f32 %v16567_v32, 0.0  ;;  %v16569_v5 = vmax.f32 %v13775_v11, 0.0  ;;  %v16571_v36 = vld [vmem:[#allocation16_spill] sm:$0xff]  ;;  %v16574_v11 = vld [vmem:[#allocation69_spill] sm:$0xff]  ;;  %4993 = vmatprep.subr.bf16.mxu0 %v9831_v9 }
 0x613   :  { %v3563_v8 = vsel %vm221_vm4, %v16564_v58, %v16563_v24  ;;  %v16570_v26 = vunpack.i.h.bf16 %v13799_v48  ;;  %v3488_v45 = vsel %vm221_vm4, %v9526_v23, %v9527_v13  ;;  %v4052_v41 = vpack.c.bf16 %v4020_v14, %v4012_v12  ;;  %v16585_v22 = vld [vmem:[#allocation60_spill] sm:$0xff] }
 0x614   :  { %v3564_v44 = vsel %vm221_vm4, %v16566_v37, %v16565_v3  ;;  %v14217_v27 = vmax.f32 %v16568_v60, %v3480_v56  ;;  %v14221_v29 = vmax.f32 %v16569_v5, %v3481_v40  ;;  %v4019_v33 = vmax.f32 %v16571_v36, %v3876_v35  ;;  %v16572_v56 = vld [vmem:[#allocation59_spill] sm:$0xff]  ;;  %v16577_v3 = vld [vmem:[#allocation21_spill] sm:$0xff] }
 0x615   :  { %v3487_v25 = vsel %vm221_vm4, %v16570_v26, %v9526_v23  ;;  %v16573_v16 = vmax.f32 %v16572_v56, 0.0  ;;  %v16575_v40 = vmax.f32 %v16574_v11, 0.0  ;;  %v16576_v24 = vmax.f32 %v13809_v34, 0.0  ;;  %4960 = vmatprep.mubr.bf16.mxu0 %v4052_v41  ;;  %v9829_v34 = vld [vmem:[%s15891_s6 + $0x2b0] ss:$8 sps:$4 sm:$0xff]  }
 0x616   :  { %v9558_v48 = vpack.i.bf16 %v14221_v29, %v14217_v27  ;;  %v16578_v23 = vunpack.i.l.bf16 %v16577_v3  ;;  %v16579_v12 = vunpack.i.h.bf16 %v14092_v10  ;;  %v16580_v35 = vunpack.i.h.bf16 %v16577_v3  ;;  %v16583_v10 = vld [vmem:[#allocation24_spill] sm:$0xff]  ;;  %4994 = vmatpush1.bf16.msra.mxu0 %v9829_v34 }
 0x617   :  { %v14233_v63 = vmax.f32 %v16573_v16, %v3562_v55  ;;  %v14237_v15 = vmax.f32 %v16575_v40, %v3487_v25  ;;  %v14241_v58 = vmax.f32 %v16576_v24, %v3488_v45  ;;  %v16581_v55 = vunpack.i.h.bf16 %v14095_v39 }
 0x618   :  { %v3565_v14 = vsel %vm221_vm4, %v16579_v12, %v16578_v23  ;;  %v4051_v32 = vpack.c.bf16 %v4019_v33, %v4011_v51  ;;  %v16582_v60 = vmax.f32 %v13563_v7, 0.0  ;;  %v16584_v26 = vmax.f32 %v16583_v10, 0.0  ;;  %9559 = vrot.lane.b32.xlu1 %v9558_v48, %s10096_s25  ;;  %v9834_v51 = vld [vmem:[%s15891_s6 + $0x2c4] ss:$8 sps:$4 sm:$0xff]   ;;  %v9837_v48 = vld [vmem:[%s15891_s6 + $0x2d4] ss:$8 sps:$4 sm:$0xff]  }
 0x619   :  { %v3566_v37 = vsel %vm221_vm4, %v16581_v55, %v16580_v35  ;;  %v9563_v39 = vpack.i.bf16 %v14241_v58, %v14237_v15  ;;  %v16586_v45 = vunpack.i.l.bf16 %v16585_v22  ;;  %v16590_v56 = vmax.f32 %v13671_v18, 0.0  ;;  %4995 = vmatprep.subr.bf16.mxu0 %v9834_v51  ;;  %v9840_v23 = vld [vmem:[%s15891_s6 + $0x2e4] ss:$8 sps:$4 sm:$0xff]   ;;  %v9838_v12 = vld [vmem:[%s15891_s6 + $0x2e0] ss:$8 sps:$4 sm:$0xff]  }
 0x61a   :  { %v14260_v5 = vmax.f32 %v16582_v60, %v3563_v8  ;;  %v14264_v25 = vmax.f32 %v16584_v26, %v3564_v44  ;;  %v16587_v8 = vunpack.i.h.bf16 %v16585_v22  ;;  %v16588_v44 = vld [vmem:[#allocation73_spill] sm:$0xff]  ;;  %4961 = vmatmul.mubr.bf16.gmra.mrb[76].mxu0 %v4051_v32  ;;  %v9568_v9 = vpack.i.bf16 %v14233_v63, %v14185_v62  ;;  %v9846_v55 = vld [vmem:[%s15891_s6 + $0x304] ss:$8 sps:$4 sm:$0xff]  }
 0x61b   :  { %v3567_v7 = vsel %vm221_vm4, %v9517_v47, %v16586_v45  ;;  %v16589_v36 = vmax.f32 %v16588_v44, 0.0  ;;  %v14284_v16 = vmax.f32 %v16590_v56, %v3566_v37  ;;  %9564 = vrot.lane.b32.xlu0 %v9563_v39, %s10096_s25  ;;  %v9832_v47 = vld [vmem:[%s15891_s6 + $0x2c0] ss:$8 sps:$4 sm:$0xff]   ;;  %v16592_v40 = vmax.f32 %v13815_v53, 0.0  ;;  %v9835_v53 = vld [vmem:[%s15891_s6 + $0x2d0] ss:$8 sps:$4 sm:$0xff]  }
 0x61c   :  { %v3568_v41 = vsel %vm221_vm4, %v9527_v13, %v16587_v8  ;;  %v16591_v13 = vmax.f32 %v13779_v49, 0.0  ;;  %9569 = vrot.lane.b32.xlu1 %v9568_v9, %s10096_s25  ;;  %v9573_v24 = vpack.i.bf16 %v14264_v25, %v14260_v5  ;;  %4996 = vmatpush1.bf16.msra.mxu0 %v9832_v47  ;;  %v9841_v35 = vld [vmem:[%s15891_s6 + $0x2f0] ss:$8 sps:$4 sm:$0xff]   ;;  %v16593_v60 = vunpack.i.h.bf16 %v13903_v1  ;;  %v16594_v45 = vld [vmem:[#allocation50_spill] sm:$0xff] }
 0x61d   :  { %v14280_v33 = vmax.f32 %v16589_v36, %v3565_v14  ;;  %v14298_v18 = vmax.f32 %v16592_v40, %v3568_v41  ;;  %4997 = vmatprep.subr.bf16.mxu0 %v9837_v48  ;;  %v9843_v14 = vld [vmem:[%s15891_s6 + $0x2f4] ss:$8 sps:$4 sm:$0xff]   ;;  %v16595_v41 = vunpack.i.h.bf16 %v13907_v59  ;;  %v9844_v40 = vld [vmem:[%s15891_s6 + $0x300] ss:$8 sps:$4 sm:$0xff]  }
 0x61e   :  { %v14294_v11 = vmax.f32 %v16591_v13, %v3567_v7  ;;  %v16596_v36 = vld [vmem:[#allocation53_spill] sm:$0xff] }
 0x61f   :  { %9574 = vrot.lane.b32.xlu0 %v9573_v24, %s10096_s25  ;;  %v9578_v49 = vpack.i.bf16 %v14284_v16, %v14280_v33  ;;  %v9849_v59 = vld [vmem:[%s15891_s6 + $0x314] ss:$8 sps:$4 sm:$0xff]   ;;  %v9850_v24 = vld [vmem:[%s15891_s6 + $0x320] ss:$8 sps:$4 sm:$0xff]  }
 0x620   :  { %v9583_v3 = vpack.i.bf16 %v14298_v18, %v14294_v11  ;;  %4998 = vmatpush1.bf16.msra.mxu0 %v9835_v53  ;;  %v9855_v48 = vld [vmem:[%s15891_s6 + $0x334] ss:$8 sps:$4 sm:$0xff]   ;;  %v9858_v53 = vld [vmem:[%s15891_s6 + $0x344] ss:$8 sps:$4 sm:$0xff]  }
 0x621   :  { %9579 = vrot.lane.b32.xlu1 %v9578_v49, %s10096_s25  ;;  %4999 = vmatprep.subr.bf16.mxu0 %v9840_v23  ;;  %v9853_v49 = vld [vmem:[%s15891_s6 + $0x330] ss:$8 sps:$4 sm:$0xff]  }
 0x623   :  { %9584 = vrot.lane.b32.xlu0 %v9583_v3, %s10096_s25  ;;  %v9856_v3 = vld [vmem:[%s15891_s6 + $0x340] ss:$8 sps:$4 sm:$0xff]  }
 0x624   :  { %5000 = vmatpush1.bf16.msra.mxu0 %v9838_v12  ;;  %v9861_v12 = vld [vmem:[%s15891_s6 + $0x354] ss:$8 sps:$4 sm:$0xff]  }
 0x625   :  { %5001 = vmatprep.subr.bf16.mxu0 %v9843_v14 }
 0x628   :  { %5002 = vmatpush1.bf16.msra.mxu0 %v9841_v35 }
 0x629   :  { %5044 = vmatprep.subr.bf16.mxu0 %v9846_v55 }
 0x65a   :  { %v14331_v37 = vpop.permute.xlu1 %9529 }
 0x65b   :  { %v9532_v32 = vunpack.i.h.bf16 %v14331_v37  ;;  %v9531_v34 = vunpack.i.l.bf16 %v14331_v37  ;;  %v9879_v37 = vld [vmem:[%s15891_s6 + $0x3b4] ss:$8 sps:$4 sm:$0xff]  }
 0x65d   :  { %v3829_v10 = vsel %vm289_vm6, %v16593_v60, %v9531_v34  ;;  %v3830_v26 = vsel %vm289_vm6, %v9531_v34, %v9532_v32  ;;  %v14341_v39 = vpop.permute.xlu0 %9534 }
 0x65e   :  { %v9537_v51 = vunpack.i.h.bf16 %v14341_v39  ;;  %v9536_v22 = vunpack.i.l.bf16 %v14341_v39  ;;  %v3965_v7 = vmax.f32 %v16594_v45, %v3829_v10  ;;  %v3966_v8 = vmax.f32 %v13942_v42, %v3830_v26  ;;  %v9847_v42 = vld [vmem:[%s15891_s6 + $0x310] ss:$8 sps:$4 sm:$0xff]  }
 0x65f   :  { %v9859_v10 = vld [vmem:[%s15891_s6 + $0x350] ss:$8 sps:$4 sm:$0xff]  }
 0x660   :  { %v3836_v1 = vsel %vm289_vm6, %v16595_v41, %v9536_v22  ;;  %v3837_v44 = vsel %vm289_vm6, %v9536_v22, %v9537_v51  ;;  %v16597_v22 = vunpack.i.h.bf16 %v13996_v38 }
 0x661   :  { %v3973_v56 = vmax.f32 %v16596_v36, %v3836_v1  ;;  %v3974_v9 = vmax.f32 %v13965_v30, %v3837_v44  ;;  %v9852_v30 = vld [vmem:[%s15891_s6 + $0x324] ss:$8 sps:$4 sm:$0xff]   ;;  %v16598_v1 = vunpack.i.h.bf16 %v14003_v21  ;;  %v16599_v36 = vld [vmem:[#allocation44_spill] sm:$0xff] }
 0x663   :  { %v4029_v47 = vpack.c.bf16 %v3973_v56, %v3965_v7  ;;  %v4030_v13 = vpack.c.bf16 %v3974_v9, %v3966_v8  ;;  %v9864_v7 = vld [vmem:[%s15891_s6 + $0x364] ss:$8 sps:$4 sm:$0xff]  }
 0x664   :  { %v16600_v9 = vld [vmem:[#allocation6_spill] sm:$0xff] }
 0x665   :  { %5003 = vmatprep.mubr.bf16.mxu0 %v4030_v13  ;;  %v9862_v13 = vld [vmem:[%s15891_s6 + $0x360] ss:$8 sps:$4 sm:$0xff]  }
 0x666   :  { %5004 = vmatmul.mubr.bf16.vlgmr.msra.gmra.mrb[64].mxu0 %v4029_v47 }
 0x667   :  { %5045 = vmatpush1.bf16.msra.mxu0 %v9844_v40 }
 0x668   :  { %5046 = vmatprep.subr.bf16.mxu0 %v9849_v59 }
 0x66b   :  { %5047 = vmatpush1.bf16.msra.mxu0 %v9847_v42 }
 0x66c   :  { %5048 = vmatprep.subr.bf16.mxu0 %v9852_v30 }
 0x66f   :  { %5049 = vmatpush1.bf16.msra.mxu0 %v9850_v24 }
 0x670   :  { %5050 = vmatprep.subr.bf16.mxu0 %v9855_v48 }
 0x673   :  { %5051 = vmatpush1.bf16.msra.mxu0 %v9853_v49  ;;  %v9865_v49 = vld [vmem:[%s15891_s6 + $0x370] ss:$8 sps:$4 sm:$0xff]  }
 0x674   :  { %5052 = vmatprep.subr.bf16.mxu0 %v9858_v53  ;;  %v14382_v23 = vpop.permute.xlu1 %9539  ;;  %v9870_v53 = vld [vmem:[%s15891_s6 + $0x384] ss:$8 sps:$4 sm:$0xff]  }
 0x675   :  { %v9542_v14 = vunpack.i.h.bf16 %v14382_v23  ;;  %v9541_v35 = vunpack.i.l.bf16 %v14382_v23 }
 0x676   :  { %v14389_v55 = vpop.permute.xlu0 %9544 }
 0x677   :  { %v9547_v34 = vunpack.i.h.bf16 %v14389_v55  ;;  %v9546_v60 = vunpack.i.l.bf16 %v14389_v55  ;;  %5053 = vmatpush1.bf16.msra.mxu0 %v9856_v3  ;;  %v3844_v26 = vsel %vm289_vm6, %v9541_v35, %v9542_v14  ;;  %v3843_v45 = vsel %vm289_vm6, %v16597_v22, %v9541_v35 }
 0x678   :  { %5054 = vmatprep.subr.bf16.mxu0 %v9861_v12  ;;  %v3982_v41 = vmax.f32 %v14045_v2, %v3844_v26  ;;  %v3981_v56 = vmax.f32 %v16599_v36, %v3843_v45  ;;  %v9867_v2 = vld [vmem:[%s15891_s6 + $0x374] ss:$8 sps:$4 sm:$0xff]   ;;  %v16601_v12 = vunpack.i.h.bf16 %v14060_v54  ;;  %v16602_v26 = vunpack.i.h.bf16 %v14062_v31  ;;  %v9868_v54 = vld [vmem:[%s15891_s6 + $0x380] ss:$8 sps:$4 sm:$0xff]  }
 0x679   :  { %v3851_v8 = vsel %vm289_vm6, %v9546_v60, %v9547_v34  ;;  %v3850_v44 = vsel %vm289_vm6, %v16598_v1, %v9546_v60  ;;  %v9873_v31 = vld [vmem:[%s15891_s6 + $0x394] ss:$8 sps:$4 sm:$0xff]  }
 0x67a   :  { %v3990_v38 = vmax.f32 %v14066_v61, %v3851_v8  ;;  %v3989_v47 = vmax.f32 %v16600_v9, %v3850_v44  ;;  %v16603_v9 = vunpack.i.h.bf16 %v14137_v0  ;;  %v16604_v0 = vunpack.i.h.bf16 %v14139_v28 }
 0x67b   :  { %5055 = vmatpush1.bf16.msra.mxu0 %v9859_v10 }
 0x67c   :  { %v4038_v40 = vpack.c.bf16 %v3990_v38, %v3982_v41  ;;  %v4037_v59 = vpack.c.bf16 %v3989_v47, %v3981_v56  ;;  %5056 = vmatprep.subr.bf16.mxu0 %v9864_v7  ;;  %v9871_v56 = vld [vmem:[%s15891_s6 + $0x390] ss:$8 sps:$4 sm:$0xff]  }
 0x67e   :  { %5013 = vmatprep.mubr.bf16.mxu0 %v4038_v40  ;;  %v9876_v40 = vld [vmem:[%s15891_s6 + $0x3a4] ss:$8 sps:$4 sm:$0xff]  }
 0x67f   :  { %5014 = vmatmul.mubr.bf16.gmra.mrb[68].mxu0 %v4037_v59 }
 0x680   :  { %v14421_v21 = vpop.permute.xlu1 %9549  ;;  %5057 = vmatpush1.bf16.msra.mxu0 %v9862_v13 }
 0x681   :  { %v9552_v42 = vunpack.i.h.bf16 %v14421_v21  ;;  %v9551_v61 = vunpack.i.l.bf16 %v14421_v21  ;;  %v14425_v30 = vpop.permute.xlu0 %9554  ;;  %5058 = vmatprep.subr.bf16.mxu0 %v9867_v2 }
 0x682   :  { %v9557_v24 = vunpack.i.h.bf16 %v14425_v30  ;;  %v9556_v48 = vunpack.i.l.bf16 %v14425_v30 }
 0x683   :  { %v3858_v3 = vsel %vm289_vm6, %v9551_v61, %v9552_v42  ;;  %v3857_v35 = vsel %vm289_vm6, %v16601_v12, %v9551_v61 }
 0x684   :  { %v3865_v60 = vsel %vm289_vm6, %v9556_v48, %v9557_v24  ;;  %v3998_v10 = vmax.f32 %v14131_v19, %v3858_v3  ;;  %v3864_v22 = vsel %vm289_vm6, %v16602_v26, %v9556_v48  ;;  %v3997_v45 = vmax.f32 %v13755_v46, %v3857_v35  ;;  %5059 = vmatpush1.bf16.msra.mxu0 %v9865_v49  ;;  %v9874_v35 = vld [vmem:[%s15891_s6 + $0x3a0] ss:$8 sps:$4 sm:$0xff]  }
 0x685   :  { %v4006_v7 = vmax.f32 %v14154_v52, %v3865_v60  ;;  %v4005_v8 = vmax.f32 %v13744_v57, %v3864_v22  ;;  %5060 = vmatprep.subr.bf16.mxu0 %v9870_v53 }
 0x687   :  { %v4046_v1 = vpack.c.bf16 %v4006_v7, %v3998_v10  ;;  %v4045_v19 = vpack.c.bf16 %v4005_v8, %v3997_v45  ;;  %v9877_v45 = vld [vmem:[%s15891_s6 + $0x3b0] ss:$8 sps:$4 sm:$0xff]   ;;  %v9882_v8 = vld [vmem:[%s15891_s6 + $0x3c4] ss:$8 sps:$4 sm:$0xff]  }
 0x688   :  { %5061 = vmatpush1.bf16.msra.mxu0 %v9868_v54 }
 0x689   :  { %5023 = vmatprep.mubr.bf16.mxu0 %v4046_v1  ;;  %5062 = vmatprep.subr.bf16.mxu0 %v9873_v31  ;;  %v9883_v1 = vld [vmem:[%s15891_s6 + $0x3d0] ss:$8 sps:$4 sm:$0xff]  }
 0x68a   :  { %v14454_v41 = vpop.permute.xlu1 %9559  ;;  %5024 = vmatmul.mubr.bf16.gmra.mrb[72].mxu0 %v4045_v19  ;;  %v9888_v19 = vld [vmem:[%s15891_s6 + $0x3e4] ss:$8 sps:$4 sm:$0xff]  }
 0x68b   :  { %v9562_v46 = vunpack.i.h.bf16 %v14454_v41  ;;  %v9561_v52 = vunpack.i.l.bf16 %v14454_v41 }
 0x68c   :  { %5063 = vmatpush1.bf16.msra.mxu0 %v9871_v56  ;;  %v9891_v56 = vld [vmem:[%s15891_s6 + $0x3f4] ss:$8 sps:$4 sm:$0xff]  }
 0x68d   :  { %v14461_v44 = vpop.permute.xlu0 %9564  ;;  %v3872_v38 = vsel %vm289_vm6, %v9561_v52, %v9562_v46  ;;  %v3871_v47 = vsel %vm289_vm6, %v16603_v9, %v9561_v52  ;;  %5064 = vmatprep.subr.bf16.mxu0 %v9876_v40 }
 0x68e   :  { %v9567_v57 = vunpack.i.h.bf16 %v14461_v44  ;;  %v9566_v36 = vunpack.i.l.bf16 %v14461_v44  ;;  %v9570_v13 = vpop.permute.xlu1 %9569  ;;  %v4014_v59 = vmax.f32 %v14217_v27, %v3872_v38  ;;  %v4013_v2 = vmax.f32 %v13838_v6, %v3871_v47  ;;  %v16608_v38 = vld [vmem:[#allocation68_spill] sm:$0xff] }
 0x68f   :  { %v9572_v61 = vunpack.i.h.bf16 %v9570_v13  ;;  %v9571_v48 = vunpack.i.l.bf16 %v9570_v13  ;;  %v16609_v9 = vunpack.i.l.bf16 %v16608_v38  ;;  %v16610_v13 = vunpack.i.h.bf16 %v16608_v38 }
 0x690   :  { %v3879_v49 = vsel %vm289_vm6, %v9566_v36, %v9567_v57  ;;  %v3878_v53 = vsel %vm289_vm6, %v16604_v0, %v9566_v36  ;;  %5065 = vmatpush1.bf16.msra.mxu0 %v9874_v35  ;;  %v9886_v36 = vld [vmem:[%s15891_s6 + $0x3e0] ss:$8 sps:$4 sm:$0xff]  }
 0x691   :  { %v4022_v3 = vmax.f32 %v14237_v15, %v3879_v49  ;;  %v4021_v12 = vmax.f32 %v13849_v4, %v3878_v53  ;;  %v3831_v27 = vsel %vm289_vm6, %v9532_v32, %v9571_v48  ;;  %v3838_v6 = vsel %vm289_vm6, %v9537_v51, %v9572_v61  ;;  %v16605_v32 = vld [vmem:[#allocation40_spill] sm:$0xff]  ;;  %5066 = vmatprep.subr.bf16.mxu0 %v9879_v37  ;;  %v9575_v54 = vpop.permute.xlu0 %9574 }
 0x692   :  { %v3967_v28 = vmax.f32 %v13946_v20, %v3831_v27  ;;  %v3975_v60 = vmax.f32 %v13969_v17, %v3838_v6  ;;  %v16606_v10 = vunpack.i.l.bf16 %v16605_v32  ;;  %v16607_v51 = vunpack.i.h.bf16 %v16605_v32  ;;  %v16611_v27 = vld [vmem:[#allocation25_spill] sm:$0xff] }
 0x693   :  { %v4054_v15 = vpack.c.bf16 %v4022_v3, %v4014_v59  ;;  %v4053_v4 = vpack.c.bf16 %v4021_v12, %v4013_v2  ;;  %v9577_v31 = vunpack.i.h.bf16 %v9575_v54  ;;  %v9576_v52 = vunpack.i.l.bf16 %v9575_v54  ;;  %v9580_v59 = vpop.permute.xlu1 %9579  ;;  %v9889_v2 = vld [vmem:[%s15891_s6 + $0x3f0] ss:$8 sps:$4 sm:$0xff]  }
 0x694   :  { %v3953_v39 = vsel %vm289_vm6, %v9571_v48, %v16606_v10  ;;  %v3954_v26 = vsel %vm289_vm6, %v9572_v61, %v16607_v51  ;;  %v4031_v22 = vpack.c.bf16 %v3975_v60, %v3967_v28  ;;  %5067 = vmatpush1.bf16.msra.mxu0 %v9877_v45  ;;  %v9582_v49 = vunpack.i.h.bf16 %v9580_v59  ;;  %v16617_v51 = vld [vmem:[#allocation10_spill] sm:$0xff] }
 0x695   :  { %5033 = vmatprep.mubr.bf16.mxu0 %v4054_v15  ;;  %v3968_v20 = vmax.f32 %v14185_v62, %v3953_v39  ;;  %v3976_v17 = vmax.f32 %v14233_v63, %v3954_v26  ;;  %v9880_v62 = vld [vmem:[%s15891_s6 + $0x3c0] ss:$8 sps:$4 sm:$0xff]   ;;  %5068 = vmatprep.subr.bf16.mxu0 %v9882_v8  ;;  %v9885_v63 = vld [vmem:[%s15891_s6 + $0x3d4] ss:$8 sps:$4 sm:$0xff]   ;;  %v3955_v47 = vsel %vm289_vm6, %v9576_v52, %v16609_v9  ;;  %v9581_v0 = vunpack.i.l.bf16 %v9580_v59  ;;  %v9585_v28 = vpop.permute.xlu0 %9584  ;;  %s10099_s6 = smov 17  }
 0x696   :  { %5034 = vmatmul.mubr.bf16.gmra.mrb[76].mxu0 %v4053_v4  ;;  %v3956_v40 = vsel %vm289_vm6, %v9577_v31, %v16610_v13  ;;  %v3984_v61 = vmax.f32 %v14260_v5, %v3955_v47  ;;  %v3845_v3 = vsel %vm289_vm6, %v9542_v14, %v9576_v52  ;;  %v3852_v12 = vsel %vm289_vm6, %v9547_v34, %v9577_v31 }
 0x697   :  { %v4032_v7 = vpack.c.bf16 %v3976_v17, %v3968_v20  ;;  %v3992_v48 = vmax.f32 %v14264_v25, %v3956_v40  ;;  %v16612_v6 = vunpack.i.l.bf16 %v16611_v27  ;;  %v16613_v5 = vunpack.i.h.bf16 %v16611_v27 }
 0x698   :  { %5069 = vmatpush1.bf16.msra.mxu0 %v9880_v62  ;;  %v3983_v60 = vmax.f32 %v14049_v43, %v3845_v3  ;;  %v3991_v23 = vmax.f32 %v14070_v50, %v3852_v12  ;;  %v9587_v34 = vunpack.i.h.bf16 %v9585_v28  ;;  %v9586_v15 = vunpack.i.l.bf16 %v9585_v28  ;;  %v16614_v43 = vld [vmem:[#allocation32_spill] sm:$0xff] }
 0x699   :  { %5076 = vmatprep.mubr.bf16.mxu0 %v4032_v7  ;;  %5070 = vmatprep.subr.bf16.mxu0 %v9885_v63  ;;  %v4040_v53 = vpack.c.bf16 %v3992_v48, %v3984_v61  ;;  %v3957_v35 = vsel %vm289_vm6, %v9581_v0, %v16612_v6  ;;  %v3958_v25 = vsel %vm289_vm6, %v9582_v49, %v16613_v5  ;;  %v16615_v39 = vunpack.i.l.bf16 %v16614_v43  ;;  %v9894_v48 = vld [vmem:[%s15892_s7 + $0x4] ss:$20 sps:$4 sm:$0xff]  }
 0x69a   :  { %v4000_v14 = vmax.f32 %v14280_v33, %v3957_v35  ;;  %v4008_v55 = vmax.f32 %v14284_v16, %v3958_v25  ;;  %v4039_v4 = vpack.c.bf16 %v3991_v23, %v3983_v60  ;;  %v3859_v32 = vsel %vm289_vm6, %v9552_v42, %v9581_v0  ;;  %5682 = vmatprep.mubr.bf16.mxu1 %v9894_v48  ;;  %v5491_v23 = vld [vmem:[%s15893_s8 + $0x8] sm:$0xff] }
 0x69b   :  { %v3866_v10 = vsel %vm289_vm6, %v9557_v24, %v9582_v49  ;;  %v3959_v50 = vsel %vm289_vm6, %v9586_v15, %v16615_v39  ;;  %v16616_v33 = vunpack.i.h.bf16 %v16614_v43  ;;  %v3999_v26 = vmax.f32 %v16617_v51, %v3859_v32  ;;  %v5494_v51 = vld [vmem:[%s15893_s8 + $0x20] sm:$0xff] }
 0x69c   :  { %5071 = vmatpush1.bf16.msra.mxu0 %v9883_v1  ;;  %v4048_v37 = vpack.c.bf16 %v4008_v55, %v4000_v14  ;;  %v4016_v42 = vmax.f32 %v14294_v11, %v3959_v50  ;;  %v3873_v17 = vsel %vm289_vm6, %v9562_v46, %v9586_v15  ;;  %v3880_v45 = vsel %vm289_vm6, %v9567_v57, %v9587_v34  ;;  %v5490_v55 = vld [vmem:[%s15893_s8] sm:$0xff] }
 0x69d   :  { %5072 = vmatprep.subr.bf16.mxu0 %v9888_v19  ;;  %v3960_v16 = vsel %vm289_vm6, %v9587_v34, %v16616_v33  ;;  %v4015_v7 = vmax.f32 %v14221_v29, %v3873_v17  ;;  %v4023_v8 = vmax.f32 %v14241_v58, %v3880_v45  ;;  %v5495_v33 = vld [vmem:[%s15893_s8 + $0x28] sm:$0xff] }
 0x69e   :  { %v4024_v30 = vmax.f32 %v14298_v18, %v3960_v16 }
 0x69f   :  { %v4055_v62 = vpack.c.bf16 %v4023_v8, %v4015_v7 }
 0x6a0   :  { %5073 = vmatpush1.bf16.msra.mxu0 %v9886_v36  ;;  %v4056_v24 = vpack.c.bf16 %v4024_v30, %v4016_v42  ;;  %v5497_v42 = vld [vmem:[%s15893_s8 + $0x38] sm:$0xff] }
 0x6a1   :  { %5074 = vmatprep.subr.bf16.mxu0 %v9891_v56 }
 0x6a4   :  { %5075 = vmatpush1.bf16.msra.mxu0 %v9889_v2 }
 0x6a7   :  { %5077 = vmatmul.mubr.bf16.vlgmr.msra.gmra.mrb[64].mxu0 %v4031_v22  ;;  %v16618_v22 = vld [vmem:[#allocation13_spill] sm:$0xff] }
 0x6a8   :  { %5086 = vmatprep.mubr.bf16.mxu0 %v4040_v53  ;;  %v4007_v21 = vmax.f32 %v16618_v22, %v3866_v10  ;;  %v5492_v10 = vld [vmem:[%s15893_s8 + $0x10] sm:$0xff] }
 0x6aa   :  { %v4047_v20 = vpack.c.bf16 %v4007_v21, %v3999_v26 }
 0x6af   :  { %5087 = vmatmul.mubr.bf16.gmra.mrb[68].mxu0 %v4039_v4 }
 0x6b0   :  { %5096 = vmatprep.mubr.bf16.mxu0 %v4048_v37  ;;  %v5493_v37 = vld [vmem:[%s15893_s8 + $0x18] sm:$0xff] }
 0x6b7   :  { %5097 = vmatmul.mubr.bf16.gmra.mrb[72].mxu0 %v4047_v20  ;;  %v5496_v20 = vld [vmem:[%s15893_s8 + $0x30] sm:$0xff] }
 0x6b8   :  { %5106 = vmatprep.mubr.bf16.mxu0 %v4056_v24 }
 0x6bf   :  { %5107 = vmatmul.mubr.bf16.gmra.mrb[76].mxu0 %v4055_v62 }
 0x77a   :  { %v5078_v11 = vpop.f32.mrb[64].mxu0 }
 0x77b   :  { %v5080_v18 = vpop.f32.mrb[65].mxu0 }
 0x77c   :  { %v5082_v63 = vpop.f32.mrb[66].mxu0 }
 0x77d   :  { %v14584_v54 = vpack.c.bf16 %v5082_v63, %v5078_v11  ;;  %v5084_v41 = vpop.f32.mrb[67].mxu0 }
 0x77e   :  { %v14586_v1 = vpack.c.bf16 %v5084_v41, %v5080_v18 }
 0x77f   :  { %5142 = vrot.lane.b32.xlu0 %v14584_v54, %s10099_s6 }
 0x780   :  { %5130 = vrot.lane.b32.xlu1 %v14586_v1, %s10099_s6 }
 0x782   :  { %v5088_v29 = vpop.f32.mrb[68].mxu0 }
 0x783   :  { %v5090_v46 = vpop.f32.mrb[69].mxu0 }
 0x784   :  { %v5092_v58 = vpop.f32.mrb[70].mxu0 }
 0x785   :  { %v14592_v44 = vpack.c.bf16 %v5092_v58, %v5088_v29  ;;  %v5094_v57 = vpop.f32.mrb[71].mxu0 }
 0x786   :  { %v14594_v19 = vpack.c.bf16 %v5094_v57, %v5090_v46 }
 0x787   :  { %5144 = vrot.lane.b32.xlu0 %v14592_v44, %s10099_s6 }
 0x788   :  { %5132 = vrot.lane.b32.xlu1 %v14594_v19, %s10099_s6 }
 0x78a   :  { %v5098_v31 = vpop.f32.mrb[72].mxu0 }
 0x78b   :  { %v5100_v52 = vpop.f32.mrb[73].mxu0 }
 0x78c   :  { %v5102_v36 = vpop.f32.mrb[74].mxu0 }
 0x78d   :  { %v14600_v56 = vpack.c.bf16 %v5102_v36, %v5098_v31  ;;  %v5104_v38 = vpop.f32.mrb[75].mxu0 }
 0x78e   :  { %v14602_v9 = vpack.c.bf16 %v5104_v38, %v5100_v52 }
 0x78f   :  { %5146 = vrot.lane.b32.xlu0 %v14600_v56, %s10099_s6 }
 0x790   :  { %5134 = vrot.lane.b32.xlu1 %v14602_v9, %s10099_s6 }
 0x792   :  { %v5108_v47 = vpop.f32.mrb[76].mxu0 }
 0x793   :  { %v5110_v13 = vpop.f32.mrb[77].mxu0 }
 0x794   :  { %v5112_v40 = vpop.f32.mrb[78].mxu0 }
 0x795   :  { %v14608_v59 = vpack.c.bf16 %v5112_v40, %v5108_v47  ;;  %v5114_v2 = vpop.f32.mrb[79].mxu0 }
 0x796   :  { %v14610_v61 = vpack.c.bf16 %v5114_v2, %v5110_v13 }
 0x797   :  { %5148 = vrot.lane.b32.xlu0 %v14608_v59, %s10099_s6 }
 0x798   :  { %5136 = vrot.lane.b32.xlu1 %v14610_v61, %s10099_s6 }
 0x79b   :  { %5184 = vrot.lane.b32.xlu0 %v14584_v54, %s10100_s29 }
 0x79c   :  { %5176 = vrot.lane.b32.xlu1 %v14586_v1, %s10100_s29 }
 0x79f   :  { %5186 = vrot.lane.b32.xlu0 %v14592_v44, %s10100_s29 }
 0x7a0   :  { %5178 = vrot.lane.b32.xlu1 %v14594_v19, %s10100_s29 }
 0x7a3   :  { %5188 = vrot.lane.b32.xlu0 %v14600_v56, %s10100_s29 }
 0x7a4   :  { %5180 = vrot.lane.b32.xlu1 %v14602_v9, %s10100_s29 }
 0x7a7   :  { %5190 = vrot.lane.b32.xlu0 %v14608_v59, %s10100_s29 }
 0x7a8   :  { %5182 = vrot.lane.b32.xlu1 %v14610_v61, %s10100_s29 }
 0x7ab   :  { %5226 = vrot.lane.b32.xlu0 %v14584_v54, %s10101_s30 }
 0x7ac   :  { %5218 = vrot.lane.b32.xlu1 %v14586_v1, %s10101_s30 }
 0x7af   :  { %5228 = vrot.lane.b32.xlu0 %v14592_v44, %s10101_s30 }
 0x7b0   :  { %5220 = vrot.lane.b32.xlu1 %v14594_v19, %s10101_s30 }
 0x7b3   :  { %5230 = vrot.lane.b32.xlu0 %v14600_v56, %s10101_s30 }
 0x7b4   :  { %5222 = vrot.lane.b32.xlu1 %v14602_v9, %s10101_s30 }
 0x7b7   :  { %5232 = vrot.lane.b32.xlu0 %v14608_v59, %s10101_s30 }
 0x7b8   :  { %5224 = vrot.lane.b32.xlu1 %v14610_v61, %s10101_s30 }
 0x7bb   :  { %5268 = vrot.lane.b32.xlu0 %v14584_v54, %s10093_s22 }
 0x7bc   :  { %5260 = vrot.lane.b32.xlu1 %v14586_v1, %s10093_s22 }
 0x7bf   :  { %5270 = vrot.lane.b32.xlu0 %v14592_v44, %s10093_s22 }
 0x7c0   :  { %5262 = vrot.lane.b32.xlu1 %v14594_v19, %s10093_s22 }
 0x7c3   :  { %5272 = vrot.lane.b32.xlu0 %v14600_v56, %s10093_s22 }
 0x7c4   :  { %5264 = vrot.lane.b32.xlu1 %v14602_v9, %s10093_s22 }
 0x7c7   :  { %5274 = vrot.lane.b32.xlu0 %v14608_v59, %s10093_s22 }
 0x7c8   :  { %5266 = vrot.lane.b32.xlu1 %v14610_v61, %s10093_s22 }
 0x7cb   :  { %5302 = vrot.lane.b32.xlu0 %v14586_v1, %s10094_s23 }
 0x7cc   :  { %5300 = vrot.lane.b32.xlu1 %v14584_v54, %s10094_s23 }
 0x7cf   :  { %5306 = vrot.lane.b32.xlu0 %v14594_v19, %s10094_s23 }
 0x7d0   :  { %5304 = vrot.lane.b32.xlu1 %v14592_v44, %s10094_s23 }
 0x7d3   :  { %5310 = vrot.lane.b32.xlu0 %v14602_v9, %s10094_s23 }
 0x7d4   :  { %5308 = vrot.lane.b32.xlu1 %v14600_v56, %s10094_s23 }
 0x7d7   :  { %5314 = vrot.lane.b32.xlu0 %v14610_v61, %s10094_s23 }
 0x7d8   :  { %5312 = vrot.lane.b32.xlu1 %v14608_v59, %s10094_s23 }
 0x7db   :  { %5342 = vrot.lane.b32.xlu0 %v14586_v1, %s10102_s1 }
 0x7dc   :  { %5340 = vrot.lane.b32.xlu1 %v14584_v54, %s10102_s1 }
 0x7df   :  { %5346 = vrot.lane.b32.xlu0 %v14594_v19, %s10102_s1 }
 0x7e0   :  { %5344 = vrot.lane.b32.xlu1 %v14592_v44, %s10102_s1 }
 0x7e3   :  { %5350 = vrot.lane.b32.xlu0 %v14602_v9, %s10102_s1 }
 0x7e4   :  { %5348 = vrot.lane.b32.xlu1 %v14600_v56, %s10102_s1 }
 0x7e7   :  { %5354 = vrot.lane.b32.xlu0 %v14610_v61, %s10102_s1 }
 0x7e8   :  { %5352 = vrot.lane.b32.xlu1 %v14608_v59, %s10102_s1 }
 0x7eb   :  { %5384 = vrot.lane.b32.xlu0 %v14586_v1, %s10103_s19 }
 0x7ec   :  { %5382 = vrot.lane.b32.xlu1 %v14584_v54, %s10103_s19 }
 0x7ef   :  { %5388 = vrot.lane.b32.xlu0 %v14594_v19, %s10103_s19 }
 0x7f0   :  { %5386 = vrot.lane.b32.xlu1 %v14592_v44, %s10103_s19 }
 0x7f1   :  { %v5143_v49 = vpop.permute.xlu0 %5142 }
 0x7f2   :  { %v5131_v0 = vpop.permute.xlu1 %5130 }
 0x7f3   :  { %5392 = vrot.lane.b32.xlu0 %v14602_v9, %s10103_s19  ;;  %v5151_v53 = vsel %vm5150_vm11, %v5143_v49, %v5131_v0  ;;  %v5162_v3 = vsel %vm5150_vm11, %v5131_v0, %v5143_v49 }
 0x7f4   :  { %5650 = vmatprep.subr.bf16.mxu1 %v5151_v53  ;;  %5390 = vrot.lane.b32.xlu1 %v14600_v56, %s10103_s19 }
 0x7f5   :  { %5651 = vmatpush1.bf16.msra.mxu1 %v5162_v3 }
 0x7f7   :  { %5396 = vrot.lane.b32.xlu0 %v14610_v61, %s10103_s19 }
 0x7f8   :  { %5394 = vrot.lane.b32.xlu1 %v14608_v59, %s10103_s19 }
 0x7f9   :  { %v5145_v12 = vpop.permute.xlu0 %5144 }
 0x7fa   :  { %v5133_v27 = vpop.permute.xlu1 %5132 }
 0x7fb   :  { %5426 = vrot.lane.b32.xlu0 %v14586_v1, %s10104_s4  ;;  %v5152_v6 = vsel %vm5150_vm11, %v5145_v12, %v5133_v27  ;;  %v5166_v35 = vsel %vm5150_vm11, %v5133_v27, %v5145_v12 }
 0x7fc   :  { %5652 = vmatprep.subr.bf16.mxu1 %v5152_v6  ;;  %5424 = vrot.lane.b32.xlu1 %v14584_v54, %s10104_s4 }
 0x7fd   :  { %5653 = vmatpush1.bf16.msra.mxu1 %v5166_v35 }
 0x7ff   :  { %5430 = vrot.lane.b32.xlu0 %v14594_v19, %s10104_s4 }
 0x800   :  { %5428 = vrot.lane.b32.xlu1 %v14592_v44, %s10104_s4 }
 0x801   :  { %v5147_v5 = vpop.permute.xlu0 %5146 }
 0x802   :  { %v5135_v25 = vpop.permute.xlu1 %5134 }
 0x803   :  { %5434 = vrot.lane.b32.xlu0 %v14602_v9, %s10104_s4  ;;  %v5153_v28 = vsel %vm5150_vm11, %v5147_v5, %v5135_v25  ;;  %v5170_v60 = vsel %vm5150_vm11, %v5135_v25, %v5147_v5 }
 0x804   :  { %5654 = vmatprep.subr.bf16.mxu1 %v5153_v28  ;;  %5432 = vrot.lane.b32.xlu1 %v14600_v56, %s10104_s4 }
 0x805   :  { %5655 = vmatpush1.bf16.msra.mxu1 %v5170_v60 }
 0x807   :  { %5438 = vrot.lane.b32.xlu0 %v14610_v61, %s10104_s4 }
 0x808   :  { %5436 = vrot.lane.b32.xlu1 %v14608_v59, %s10104_s4 }
 0x809   :  { %v5149_v14 = vpop.permute.xlu0 %5148 }
 0x80a   :  { %v5137_v34 = vpop.permute.xlu1 %5136 }
 0x80b   :  { %5505 = vperm.xlu0 %9266, %v5491_v23   ;;  %v5154_v15 = vsel %vm5150_vm11, %v5149_v14, %v5137_v34  ;;  %v5174_v4 = vsel %vm5150_vm11, %v5137_v34, %v5149_v14 }
 0x80c   :  { %5500 = vperm.xlu1 %9267, %v5490_v55   ;;  %5656 = vmatprep.subr.bf16.mxu1 %v5154_v15  ;;  %v9892_v15 = vld [vmem:[%s15892_s7] ss:$20 sps:$4 sm:$0xff]  }
 0x80d   :  { %v5185_v32 = vpop.permute.xlu0 %5184  ;;  %5657 = vmatpush1.bf16.msra.mxu1 %v5174_v4 }
 0x80e   :  { %v5177_v43 = vpop.permute.xlu1 %5176 }
 0x80f   :  { %5515 = vperm.xlu0 %9266, %v5493_v37   ;;  %v5193_v39 = vsel %vm5192_vm12, %v5185_v32, %v5177_v43  ;;  %v5204_v50 = vsel %vm5192_vm12, %v5177_v43, %v5185_v32  ;;  %v9895_v37 = vld [vmem:[%s15892_s7 + $0x2c] ss:$20 sps:$4 sm:$0xff]  }
 0x810   :  { %5510 = vperm.xlu1 %9267, %v5492_v10   ;;  %5658 = vmatprep.subr.bf16.mxu1 %v5193_v39  ;;  %v9897_v39 = vld [vmem:[%s15892_s7 + $0x28] ss:$20 sps:$4 sm:$0xff]  }
 0x811   :  { %v5187_v16 = vpop.permute.xlu0 %5186  ;;  %5659 = vmatpush1.bf16.msra.mxu1 %v5204_v50 }
 0x812   :  { %v5179_v26 = vpop.permute.xlu1 %5178 }
 0x813   :  { %5525 = vperm.xlu0 %9266, %v5495_v33   ;;  %v5194_v22 = vsel %vm5192_vm12, %v5187_v16, %v5179_v26  ;;  %v5208_v21 = vsel %vm5192_vm12, %v5179_v26, %v5187_v16  ;;  %v9900_v16 = vld [vmem:[%s15892_s7 + $0x50] ss:$20 sps:$4 sm:$0xff]  }
 0x814   :  { %5520 = vperm.xlu1 %9267, %v5494_v51   ;;  %5660 = vmatprep.subr.bf16.mxu1 %v5194_v22 }
 0x815   :  { %v5189_v30 = vpop.permute.xlu0 %5188  ;;  %5661 = vmatpush1.bf16.msra.mxu1 %v5208_v21 }
 0x816   :  { %v5181_v24 = vpop.permute.xlu1 %5180 }
 0x817   :  { %5535 = vperm.xlu0 %9266, %v5497_v42   ;;  %v5195_v17 = vsel %vm5192_vm12, %v5189_v30, %v5181_v24  ;;  %v5212_v45 = vsel %vm5192_vm12, %v5181_v24, %v5189_v30  ;;  %v9903_v42 = vld [vmem:[%s15892_s7 + $0x78] ss:$20 sps:$4 sm:$0xff]  }
 0x818   :  { %5530 = vperm.xlu1 %9267, %v5496_v20   ;;  %5662 = vmatprep.subr.bf16.mxu1 %v5195_v17  ;;  %v9906_v24 = vld [vmem:[%s15892_s7 + $0xc] ss:$20 sps:$4 sm:$0xff]  }
 0x819   :  { %v5191_v7 = vpop.permute.xlu0 %5190  ;;  %5663 = vmatpush1.bf16.msra.mxu1 %v5212_v45 }
 0x81a   :  { %v5183_v8 = vpop.permute.xlu1 %5182 }
 0x81b   :  { %v5196_v62 = vsel %vm5192_vm12, %v5191_v7, %v5183_v8  ;;  %v5216_v11 = vsel %vm5192_vm12, %v5183_v8, %v5191_v7 }
 0x81c   :  { %5664 = vmatprep.subr.bf16.mxu1 %v5196_v62 }
 0x81d   :  { %v5227_v18 = vpop.permute.xlu0 %5226  ;;  %5665 = vmatpush1.bf16.msra.mxu1 %v5216_v11 }
 0x81e   :  { %v5219_v63 = vpop.permute.xlu1 %5218 }
 0x81f   :  { %v5235_v41 = vsel %vm5234_vm13, %v5227_v18, %v5219_v63  ;;  %v5246_v29 = vsel %vm5234_vm13, %v5219_v63, %v5227_v18 }
 0x820   :  { %5666 = vmatprep.subr.bf16.mxu1 %v5235_v41 }
 0x821   :  { %v5229_v46 = vpop.permute.xlu0 %5228  ;;  %5667 = vmatpush1.bf16.msra.mxu1 %v5246_v29 }
 0x822   :  { %v5221_v58 = vpop.permute.xlu1 %5220 }
 0x823   :  { %v5236_v57 = vsel %vm5234_vm13, %v5229_v46, %v5221_v58  ;;  %v5250_v31 = vsel %vm5234_vm13, %v5221_v58, %v5229_v46 }
 0x824   :  { %5668 = vmatprep.subr.bf16.mxu1 %v5236_v57 }
 0x825   :  { %v5231_v52 = vpop.permute.xlu0 %5230  ;;  %5669 = vmatpush1.bf16.msra.mxu1 %v5250_v31 }
 0x826   :  { %v5223_v36 = vpop.permute.xlu1 %5222 }
 0x827   :  { %v5237_v38 = vsel %vm5234_vm13, %v5231_v52, %v5223_v36  ;;  %v5254_v47 = vsel %vm5234_vm13, %v5223_v36, %v5231_v52 }
 0x828   :  { %5670 = vmatprep.subr.bf16.mxu1 %v5237_v38 }
 0x829   :  { %v5233_v13 = vpop.permute.xlu0 %5232  ;;  %5671 = vmatpush1.bf16.msra.mxu1 %v5254_v47 }
 0x82a   :  { %v5225_v40 = vpop.permute.xlu1 %5224 }
 0x82b   :  { %v5238_v2 = vsel %vm5234_vm13, %v5233_v13, %v5225_v40  ;;  %v5258_v48 = vsel %vm5234_vm13, %v5225_v40, %v5233_v13 }
 0x82c   :  { %5672 = vmatprep.subr.bf16.mxu1 %v5238_v2 }
 0x82d   :  { %v5269_v49 = vpop.permute.xlu0 %5268  ;;  %5673 = vmatpush1.bf16.msra.mxu1 %v5258_v48 }
 0x82e   :  { %v5261_v0 = vpop.permute.xlu1 %5260 }
 0x82f   :  { %v5276_v53 = vsel %vm188_vm3, %v5269_v49, %v5261_v0  ;;  %v5286_v3 = vsel %vm188_vm3, %v5261_v0, %v5269_v49 }
 0x830   :  { %5674 = vmatprep.subr.bf16.mxu1 %v5276_v53 }
 0x831   :  { %v5271_v12 = vpop.permute.xlu0 %5270  ;;  %5675 = vmatpush1.bf16.msra.mxu1 %v5286_v3 }
 0x832   :  { %v5263_v27 = vpop.permute.xlu1 %5262 }
 0x833   :  { %v5277_v6 = vsel %vm188_vm3, %v5271_v12, %v5263_v27  ;;  %v5290_v35 = vsel %vm188_vm3, %v5263_v27, %v5271_v12 }
 0x834   :  { %5676 = vmatprep.subr.bf16.mxu1 %v5277_v6 }
 0x835   :  { %v5273_v5 = vpop.permute.xlu0 %5272  ;;  %5677 = vmatpush1.bf16.msra.mxu1 %v5290_v35 }
 0x836   :  { %v5265_v25 = vpop.permute.xlu1 %5264 }
 0x837   :  { %v5278_v28 = vsel %vm188_vm3, %v5273_v5, %v5265_v25  ;;  %v5294_v60 = vsel %vm188_vm3, %v5265_v25, %v5273_v5 }
 0x838   :  { %5678 = vmatprep.subr.bf16.mxu1 %v5278_v28 }
 0x839   :  { %v5275_v23 = vpop.permute.xlu0 %5274  ;;  %5679 = vmatpush1.bf16.msra.mxu1 %v5294_v60 }
 0x83a   :  { %v5267_v14 = vpop.permute.xlu1 %5266 }
 0x83b   :  { %v5279_v55 = vsel %vm188_vm3, %v5275_v23, %v5267_v14  ;;  %v5298_v34 = vsel %vm188_vm3, %v5267_v14, %v5275_v23  ;;  %v9904_v23 = vld [vmem:[%s15892_s7 + $0x8] ss:$20 sps:$4 sm:$0xff]  }
 0x83c   :  { %5680 = vmatprep.subr.bf16.mxu1 %v5279_v55  ;;  %v9907_v55 = vld [vmem:[%s15892_s7 + $0x34] ss:$20 sps:$4 sm:$0xff]  }
 0x83d   :  { %v5303_v4 = vpop.permute.xlu0 %5302  ;;  %5681 = vmatpush1.bf16.msra.mxu1 %v5298_v34 }
 0x83e   :  { %5723 = vmatprep.subr.bf16.mxu1 %v14586_v1  ;;  %v5301_v32 = vpop.permute.xlu1 %5300  ;;  %v9898_v1 = vld [vmem:[%s15892_s7 + $0x54] ss:$20 sps:$4 sm:$0xff]  }
 0x83f   :  { %v5326_v51 = vsel %vm221_vm4, %v5303_v4, %v5301_v32 }
 0x840   :  { %5683 = vmatmul.mubr.bf16.vlgmr.msra.gmra.mrb[64].mxu1 %v9892_v15 }
 0x841   :  { %v5307_v10 = vpop.permute.xlu0 %5306  ;;  %5724 = vmatpush1.bf16.msra.mxu1 %v14584_v54  ;;  %5692 = vmatprep.mubr.bf16.mxu1 %v9895_v37 }
 0x842   :  { %5725 = vmatprep.subr.bf16.mxu1 %v14594_v19  ;;  %v5305_v43 = vpop.permute.xlu1 %5304 }
 0x843   :  { %v5330_v22 = vsel %vm221_vm4, %v5307_v10, %v5305_v43 }
 0x845   :  { %v5311_v50 = vpop.permute.xlu0 %5310  ;;  %5726 = vmatpush1.bf16.msra.mxu1 %v14592_v44 }
 0x846   :  { %5727 = vmatprep.subr.bf16.mxu1 %v14602_v9  ;;  %v5309_v33 = vpop.permute.xlu1 %5308  ;;  %v9901_v9 = vld [vmem:[%s15892_s7 + $0x7c] ss:$20 sps:$4 sm:$0xff]  }
 0x847   :  { %v5334_v20 = vsel %vm221_vm4, %v5311_v50, %v5309_v33  ;;  %v5318_v45 = vsel %vm221_vm4, %v5309_v33, %v5311_v50 }
 0x848   :  { %5693 = vmatmul.mubr.bf16.gmra.mrb[68].mxu1 %v9897_v39  ;;  %v9910_v39 = vld [vmem:[%s15892_s7 + $0x5c] ss:$20 sps:$4 sm:$0xff]  }
 0x849   :  { %v5315_v54 = vpop.permute.xlu0 %5314  ;;  %5728 = vmatpush1.bf16.msra.mxu1 %v14600_v56  ;;  %5702 = vmatprep.mubr.bf16.mxu1 %v9898_v1  ;;  %v5316_v56 = vsel %vm221_vm4, %v5301_v32, %v5303_v4 }
 0x84a   :  { %5729 = vmatprep.subr.bf16.mxu1 %v14610_v61  ;;  %v5313_v19 = vpop.permute.xlu1 %5312 }
 0x84b   :  { %v5338_v8 = vsel %vm221_vm4, %v5315_v54, %v5313_v19  ;;  %v5319_v11 = vsel %vm221_vm4, %v5313_v19, %v5315_v54 }
 0x84d   :  { %v5343_v44 = vpop.permute.xlu0 %5342  ;;  %5730 = vmatpush1.bf16.msra.mxu1 %v14608_v59  ;;  %v5317_v59 = vsel %vm221_vm4, %v5305_v43, %v5307_v10  ;;  %v9909_v10 = vld [vmem:[%s15892_s7 + $0x30] ss:$20 sps:$4 sm:$0xff]  }
 0x84e   :  { %5731 = vmatprep.subr.bf16.mxu1 %v5326_v51  ;;  %v5341_v26 = vpop.permute.xlu1 %5340  ;;  %v9915_v51 = vld [vmem:[%s15892_s7 + $0x80] ss:$20 sps:$4 sm:$0xff]  }
 0x84f   :  { %v5368_v63 = vsel %vm5356_vm14, %v5343_v44, %v5341_v26  ;;  %v5357_v29 = vsel %vm5356_vm14, %v5341_v26, %v5343_v44  ;;  %v9913_v44 = vld [vmem:[%s15892_s7 + $0x84] ss:$20 sps:$4 sm:$0xff]  }
 0x850   :  { %5703 = vmatmul.mubr.bf16.gmra.mrb[72].mxu1 %v9900_v16  ;;  %v9912_v16 = vld [vmem:[%s15892_s7 + $0x58] ss:$20 sps:$4 sm:$0xff]   ;;  %v9916_v26 = vld [vmem:[%s15892_s7 + $0x10] ss:$20 sps:$4 sm:$0xff]  }
 0x851   :  { %v5347_v61 = vpop.permute.xlu0 %5346  ;;  %5732 = vmatpush1.bf16.msra.mxu1 %v5316_v56  ;;  %5712 = vmatprep.mubr.bf16.mxu1 %v9901_v9  ;;  %v16619_v9 = vmov 0   ;;  %v9917_v56 = vld [vmem:[%s15892_s7 + $0x38] ss:$20 sps:$4 sm:$0xff]  }
 0x852   :  { %5733 = vmatprep.subr.bf16.mxu1 %v5330_v22  ;;  %v5345_v21 = vpop.permute.xlu1 %5344  ;;  %v9919_v22 = vld [vmem:[%s15892_s7 + $0x88] ss:$20 sps:$4 sm:$0xff]  }
 0x853   :  { %v5372_v46 = vsel %vm5356_vm14, %v5347_v61, %v5345_v21  ;;  %v5358_v31 = vsel %vm5356_vm14, %v5345_v21, %v5347_v61  ;;  %v9918_v61 = vld [vmem:[%s15892_s7 + $0x60] ss:$20 sps:$4 sm:$0xff]  }
 0x855   :  { %v5351_v30 = vpop.permute.xlu0 %5350  ;;  %5734 = vmatpush1.bf16.msra.mxu1 %v5317_v59  ;;  %v5117_v59 = vld [vmem:[%s15894_s11] sm:$0x3] }
 0x856   :  { %5735 = vmatprep.subr.bf16.mxu1 %v5334_v20  ;;  %v5349_v17 = vpop.permute.xlu1 %5348 }
 0x857   :  { %v5376_v52 = vsel %vm5356_vm14, %v5351_v30, %v5349_v17  ;;  %v5359_v47 = vsel %vm5356_vm14, %v5349_v17, %v5351_v30 }
 0x858   :  { %5713 = vmatmul.mubr.bf16.gmra.mrb[76].mxu1 %v9903_v42 }
 0x859   :  { %v5355_v7 = vpop.permute.xlu0 %5354  ;;  %5736 = vmatpush1.bf16.msra.mxu1 %v5318_v45  ;;  %5755 = vmatprep.mubr.bf16.mxu1 %v9906_v24 }
 0x85a   :  { %5737 = vmatprep.subr.bf16.mxu1 %v5338_v8  ;;  %v5353_v62 = vpop.permute.xlu1 %5352  ;;  %v16620_v8 = vld [vmem:[#allocation2_spill] sm:$0xff] }
 0x85b   :  { %v5380_v13 = vsel %vm5356_vm14, %v5355_v7, %v5353_v62  ;;  %v5360_v40 = vsel %vm5356_vm14, %v5353_v62, %v5355_v7  ;;  %v16621_v62 = vsub.s32 0, %v16620_v8 }
 0x85d   :  { %v5385_v18 = vpop.permute.xlu0 %5384  ;;  %5738 = vmatpush1.bf16.msra.mxu1 %v5319_v11  ;;  %v14897_v11 = vrot.slane %v5117_v59, %v16621_v62 }
 0x85e   :  { %5739 = vmatprep.subr.bf16.mxu1 %v5368_v63  ;;  %v5383_v41 = vpop.permute.xlu1 %5382 }
 0x85f   :  { %v5410_v2 = vsel %vm5398_vm15, %v5385_v18, %v5383_v41  ;;  %v5399_v0 = vsel %vm5398_vm15, %v5383_v41, %v5385_v18 }
 0x861   :  { %5740 = vmatpush1.bf16.msra.mxu1 %v5357_v29  ;;  %v5389_v58 = vpop.permute.xlu0 %5388  ;;  %v16622_v29 = vsub.s32 1, %v16620_v8 }
 0x862   :  { %5741 = vmatprep.subr.bf16.mxu1 %v5372_v46  ;;  %v5387_v57 = vpop.permute.xlu1 %5386 }
 0x863   :  { %v5414_v53 = vsel %vm5398_vm15, %v5389_v58, %v5387_v57  ;;  %v5400_v27 = vsel %vm5398_vm15, %v5387_v57, %v5389_v58  ;;  %v14901_v46 = vrot.slane %v5117_v59, %v16622_v29 }
 0x865   :  { %5742 = vmatpush1.bf16.msra.mxu1 %v5358_v31  ;;  %v5393_v36 = vpop.permute.xlu0 %5392 }
 0x866   :  { %5743 = vmatprep.subr.bf16.mxu1 %v5376_v52  ;;  %v5391_v38 = vpop.permute.xlu1 %5390 }
 0x867   :  { %v5418_v6 = vsel %vm5398_vm15, %v5393_v36, %v5391_v38  ;;  %v5401_v35 = vsel %vm5398_vm15, %v5391_v38, %v5393_v36 }
 0x869   :  { %5744 = vmatpush1.bf16.msra.mxu1 %v5359_v47  ;;  %v5397_v48 = vpop.permute.xlu0 %5396 }
 0x86a   :  { %5745 = vmatprep.subr.bf16.mxu1 %v5380_v13  ;;  %v5395_v49 = vpop.permute.xlu1 %5394 }
 0x86b   :  { %v5422_v5 = vsel %vm5398_vm15, %v5397_v48, %v5395_v49  ;;  %v5402_v60 = vsel %vm5398_vm15, %v5395_v49, %v5397_v48 }
 0x86d   :  { %5746 = vmatpush1.bf16.msra.mxu1 %v5360_v40  ;;  %v5427_v3 = vpop.permute.xlu0 %5426 }
 0x86e   :  { %5747 = vmatprep.subr.bf16.mxu1 %v5410_v2  ;;  %v5425_v12 = vpop.permute.xlu1 %5424 }
 0x86f   :  { %v5452_v14 = vsel %vm5440_vm0, %v5427_v3, %v5425_v12  ;;  %v5441_v4 = vsel %vm5440_vm0, %v5425_v12, %v5427_v3 }
 0x871   :  { %5748 = vmatpush1.bf16.msra.mxu1 %v5399_v0  ;;  %v5431_v25 = vpop.permute.xlu0 %5430 }
 0x872   :  { %5749 = vmatprep.subr.bf16.mxu1 %v5414_v53  ;;  %v5429_v28 = vpop.permute.xlu1 %5428 }
 0x873   :  { %v5456_v37 = vsel %vm5440_vm0, %v5431_v25, %v5429_v28  ;;  %v5442_v32 = vsel %vm5440_vm0, %v5429_v28, %v5431_v25 }
 0x875   :  { %5750 = vmatpush1.bf16.msra.mxu1 %v5400_v27  ;;  %v5435_v34 = vpop.permute.xlu0 %5434 }
 0x876   :  { %5751 = vmatprep.subr.bf16.mxu1 %v5418_v6  ;;  %v5433_v15 = vpop.permute.xlu1 %5432 }
 0x877   :  { %v5460_v43 = vsel %vm5440_vm0, %v5435_v34, %v5433_v15  ;;  %v5443_v33 = vsel %vm5440_vm0, %v5433_v15, %v5435_v34 }
 0x879   :  { %5752 = vmatpush1.bf16.msra.mxu1 %v5401_v35  ;;  %v5439_v50 = vpop.permute.xlu0 %5438 }
 0x87a   :  { %5753 = vmatprep.subr.bf16.mxu1 %v5422_v5  ;;  %v5437_v1 = vpop.permute.xlu1 %5436 }
 0x87b   :  { %v5464_v54 = vsel %vm5440_vm0, %v5439_v50, %v5437_v1  ;;  %v5444_v19 = vsel %vm5440_vm0, %v5437_v1, %v5439_v50 }
 0x87d   :  { %5754 = vmatpush1.bf16.msra.mxu1 %v5402_v60 }
 0x87e   :  { %5796 = vmatprep.subr.bf16.mxu1 %v5452_v14 }
 0x880   :  { %5756 = vmatmul.mubr.bf16.vlgmr.msra.gmra.mrb[64].mxu1 %v9904_v23 }
 0x881   :  { %5797 = vmatpush1.bf16.msra.mxu1 %v5441_v4  ;;  %5765 = vmatprep.mubr.bf16.mxu1 %v9907_v55 }
 0x882   :  { %5798 = vmatprep.subr.bf16.mxu1 %v5456_v37 }
 0x885   :  { %5799 = vmatpush1.bf16.msra.mxu1 %v5442_v32 }
 0x886   :  { %5800 = vmatprep.subr.bf16.mxu1 %v5460_v43 }
 0x888   :  { %5766 = vmatmul.mubr.bf16.gmra.mrb[68].mxu1 %v9909_v10 }
 0x889   :  { %5801 = vmatpush1.bf16.msra.mxu1 %v5443_v33  ;;  %5775 = vmatprep.mubr.bf16.mxu1 %v9910_v39 }
 0x88a   :  { %5802 = vmatprep.subr.bf16.mxu1 %v5464_v54  ;;  %v5506_v24 = vpop.permute.xlu0 %5505 }
 0x88b   :  { %v5501_v21 = vpop.permute.xlu1 %5500 }
 0x88d   :  { %5803 = vmatpush1.bf16.msra.mxu1 %v5444_v19 }
 0x88e   :  { %v5516_v0 = vpop.permute.xlu0 %5515 }
 0x88f   :  { %v5511_v38 = vpop.permute.xlu1 %5510 }
 0x890   :  { %5776 = vmatmul.mubr.bf16.gmra.mrb[72].mxu1 %v9912_v16 }
 0x891   :  { %5785 = vmatprep.mubr.bf16.mxu1 %v9913_v44 }
 0x892   :  { %v5526_v43 = vpop.permute.xlu0 %5525 }
 0x893   :  { %v5521_v55 = vpop.permute.xlu1 %5520 }
 0x898   :  { %5786 = vmatmul.mubr.bf16.gmra.mrb[76].mxu1 %v9915_v51 }
 0x899   :  { %5828 = vmatprep.mubr.bf16.mxu1 %v16619_v9 }
 0x8a0   :  { %8462 = vmatmul.mubr.msk.bf16.vlgmr.msra.gmra.mrb[64].mxu1 %vm2288_vm10, %v9916_v26 }
 0x8a1   :  { %5838 = vmatprep.mubr.bf16.mxu1 %v16619_v9 }
 0x8a8   :  { %8463 = vmatmul.mubr.msk.bf16.gmra.mrb[68].mxu1 %vm2288_vm10, %v9917_v56 }
 0x8a9   :  { %5848 = vmatprep.mubr.bf16.mxu1 %v16619_v9 }
 0x8b0   :  { %8464 = vmatmul.mubr.msk.bf16.gmra.mrb[72].mxu1 %vm2288_vm10, %v9918_v61 }
 0x8b1   :  { %5858 = vmatprep.mubr.bf16.mxu1 %v16619_v9 }
 0x8b8   :  { %8465 = vmatmul.mubr.msk.bf16.gmra.mrb[76].mxu1 %vm2288_vm10, %v9919_v22  ;;  %v5531_v22 = vpop.permute.xlu1 %5530 }
 0x973   :  { %v5830_v42 = vpop.f32.mrb[64].mxu1 }
 0x974   :  { %v8859_v30 = vadd.f32 %v5830_v42, %v5501_v21  ;;  %v5832_v20 = vpop.f32.mrb[65].mxu1 }
 0x975   :  { %v8860_v17 = vadd.f32 %v5832_v20, %v5501_v21  ;;  %v5834_v45 = vpop.f32.mrb[66].mxu1 }
 0x976   :  { %v5869_v7 = vmax.f32 %v8859_v30, 0.0  ;;  %v8861_v18 = vadd.f32 %v5834_v45, %v5506_v24  ;;  %v5836_v63 = vpop.f32.mrb[67].mxu1 }
 0x977   :  { %v5870_v41 = vmax.f32 %v8860_v17, 0.0  ;;  %v8862_v58 = vadd.f32 %v5836_v63, %v5506_v24  ;;  %v5536_v17 = vpop.permute.xlu0 %5535 }
 0x978   :  { %v5871_v57 = vmax.f32 %v8861_v18, 0.0  ;;  %v5896_v52 = vmul.f32 %v14897_v11, %v5869_v7 }
 0x979   :  { %v5872_v31 = vmax.f32 %v8862_v58, 0.0  ;;  %v5897_v47 = vmul.f32 %v14901_v46, %v5870_v41 }
 0x97a   :  { %v5898_v36 = vmul.f32 %v14897_v11, %v5871_v57 }
 0x97b   :  { %v5899_v13 = vmul.f32 %v14901_v46, %v5872_v31  ;;  %v5840_v40 = vpop.f32.mrb[68].mxu1 }
 0x97c   :  { %v14907_v2 = vpack.c.bf16 %v5898_v36, %v5896_v52  ;;  %v8863_v48 = vadd.f32 %v5840_v40, %v5511_v38  ;;  %v5842_v49 = vpop.f32.mrb[69].mxu1 }
 0x97d   :  { %v14909_v53 = vpack.c.bf16 %v5899_v13, %v5897_v47  ;;  %v8864_v3 = vadd.f32 %v5842_v49, %v5511_v38  ;;  %v5844_v12 = vpop.f32.mrb[70].mxu1 }
 0x97e   :  { %v5873_v27 = vmax.f32 %v8863_v48, 0.0  ;;  %v8865_v6 = vadd.f32 %v5844_v12, %v5516_v0  ;;  %v5846_v35 = vpop.f32.mrb[71].mxu1  ;;  %5936 = vrot.lane.b32.xlu0 %v14907_v2, %s10099_s6 }
 0x97f   :  { %v5874_v5 = vmax.f32 %v8864_v3, 0.0  ;;  %v8866_v25 = vadd.f32 %v5846_v35, %v5516_v0  ;;  %5924 = vrot.lane.b32.xlu1 %v14909_v53, %s10099_s6 }
 0x980   :  { %v5875_v28 = vmax.f32 %v8865_v6, 0.0  ;;  %v5900_v23 = vmul.f32 %v14897_v11, %v5873_v27 }
 0x981   :  { %v5876_v60 = vmax.f32 %v8866_v25, 0.0  ;;  %v5901_v34 = vmul.f32 %v14901_v46, %v5874_v5 }
 0x982   :  { %v5902_v14 = vmul.f32 %v14897_v11, %v5875_v28  ;;  %v6272_v28 = vld [vmem:[%s15896_s10] sm:$0xff] }
 0x983   :  { %v5903_v15 = vmul.f32 %v14901_v46, %v5876_v60  ;;  %v5850_v4 = vpop.f32.mrb[72].mxu1 }
 0x984   :  { %v14919_v37 = vpack.c.bf16 %v5902_v14, %v5900_v23  ;;  %v8867_v32 = vadd.f32 %v5850_v4, %v5521_v55  ;;  %v5852_v10 = vpop.f32.mrb[73].mxu1  ;;  %v6273_v23 = vld [vmem:[%s15896_s10 + $0x8] sm:$0xff] }
 0x985   :  { %v14921_v39 = vpack.c.bf16 %v5903_v15, %v5901_v34  ;;  %v8868_v50 = vadd.f32 %v5852_v10, %v5521_v55  ;;  %v5854_v1 = vpop.f32.mrb[74].mxu1  ;;  %v6275_v15 = vld [vmem:[%s15896_s10 + $0x18] sm:$0xff] }
 0x986   :  { %v5877_v33 = vmax.f32 %v8867_v32, 0.0  ;;  %v8869_v54 = vadd.f32 %v5854_v1, %v5526_v43  ;;  %v5856_v19 = vpop.f32.mrb[75].mxu1  ;;  %5938 = vrot.lane.b32.xlu0 %v14919_v37, %s10099_s6  ;;  %v6274_v32 = vld [vmem:[%s15896_s10 + $0x10] sm:$0xff]  ;;  %v6276_v1 = vld [vmem:[%s15896_s10 + $0x20] sm:$0xff] }
 0x987   :  { %v5878_v16 = vmax.f32 %v8868_v50, 0.0  ;;  %v8870_v44 = vadd.f32 %v5856_v19, %v5526_v43  ;;  %5926 = vrot.lane.b32.xlu1 %v14921_v39, %s10099_s6 }
 0x988   :  { %v5879_v51 = vmax.f32 %v8869_v54, 0.0  ;;  %v5904_v56 = vmul.f32 %v14897_v11, %v5877_v33 }
 0x989   :  { %v5880_v26 = vmax.f32 %v8870_v44, 0.0  ;;  %v5905_v21 = vmul.f32 %v14901_v46, %v5878_v16 }
 0x98a   :  { %v5906_v61 = vmul.f32 %v14897_v11, %v5879_v51 }
 0x98b   :  { %v5907_v59 = vmul.f32 %v14901_v46, %v5880_v26  ;;  %v5860_v42 = vpop.f32.mrb[76].mxu1 }
 0x98c   :  { %v14931_v30 = vpack.c.bf16 %v5906_v61, %v5904_v56  ;;  %v8871_v20 = vadd.f32 %v5860_v42, %v5531_v22  ;;  %v5862_v24 = vpop.f32.mrb[77].mxu1 }
 0x98d   :  { %v14933_v45 = vpack.c.bf16 %v5907_v59, %v5905_v21  ;;  %v8872_v7 = vadd.f32 %v5862_v24, %v5531_v22  ;;  %v5864_v8 = vpop.f32.mrb[78].mxu1 }
 0x98e   :  { %v5881_v62 = vmax.f32 %v8871_v20, 0.0  ;;  %v8873_v18 = vadd.f32 %v5864_v8, %v5536_v17  ;;  %v5866_v63 = vpop.f32.mrb[79].mxu1  ;;  %5940 = vrot.lane.b32.xlu0 %v14931_v30, %s10099_s6 }
 0x98f   :  { %v5882_v41 = vmax.f32 %v8872_v7, 0.0  ;;  %v8874_v29 = vadd.f32 %v5866_v63, %v5536_v17  ;;  %5928 = vrot.lane.b32.xlu1 %v14933_v45, %s10099_s6 }
 0x990   :  { %v5883_v58 = vmax.f32 %v8873_v18, 0.0  ;;  %v5908_v31 = vmul.f32 %v14897_v11, %v5881_v62 }
 0x991   :  { %v5884_v57 = vmax.f32 %v8874_v29, 0.0  ;;  %v5909_v36 = vmul.f32 %v14901_v46, %v5882_v41 }
 0x992   :  { %v5910_v52 = vmul.f32 %v14897_v11, %v5883_v58  ;;  %v9922_v11 = vld [vmem:[%s15895_s9 + $0x4] ss:$20 sps:$4 sm:$0xff]  }
 0x993   :  { %v5911_v38 = vmul.f32 %v14901_v46, %v5884_v57  ;;  %6464 = vmatprep.mubr.bf16.mxu1 %v9922_v11 }
 0x994   :  { %v14943_v47 = vpack.c.bf16 %v5910_v52, %v5908_v31 }
 0x995   :  { %v14945_v13 = vpack.c.bf16 %v5911_v38, %v5909_v36 }
 0x996   :  { %5942 = vrot.lane.b32.xlu0 %v14943_v47, %s10099_s6 }
 0x997   :  { %5930 = vrot.lane.b32.xlu1 %v14945_v13, %s10099_s6 }
 0x99a   :  { %5976 = vrot.lane.b32.xlu0 %v14907_v2, %s10100_s29 }
 0x99b   :  { %5968 = vrot.lane.b32.xlu1 %v14909_v53, %s10100_s29 }
 0x99e   :  { %5978 = vrot.lane.b32.xlu0 %v14919_v37, %s10100_s29 }
 0x99f   :  { %5970 = vrot.lane.b32.xlu1 %v14921_v39, %s10100_s29 }
 0x9a2   :  { %5980 = vrot.lane.b32.xlu0 %v14931_v30, %s10100_s29 }
 0x9a3   :  { %5972 = vrot.lane.b32.xlu1 %v14933_v45, %s10100_s29 }
 0x9a6   :  { %5982 = vrot.lane.b32.xlu0 %v14943_v47, %s10100_s29 }
 0x9a7   :  { %5974 = vrot.lane.b32.xlu1 %v14945_v13, %s10100_s29 }
 0x9aa   :  { %6016 = vrot.lane.b32.xlu0 %v14907_v2, %s10101_s30 }
 0x9ab   :  { %6008 = vrot.lane.b32.xlu1 %v14909_v53, %s10101_s30 }
 0x9ae   :  { %6018 = vrot.lane.b32.xlu0 %v14919_v37, %s10101_s30 }
 0x9af   :  { %6010 = vrot.lane.b32.xlu1 %v14921_v39, %s10101_s30 }
 0x9b2   :  { %6020 = vrot.lane.b32.xlu0 %v14931_v30, %s10101_s30 }
 0x9b3   :  { %6012 = vrot.lane.b32.xlu1 %v14933_v45, %s10101_s30 }
 0x9b6   :  { %6022 = vrot.lane.b32.xlu0 %v14943_v47, %s10101_s30 }
 0x9b7   :  { %6014 = vrot.lane.b32.xlu1 %v14945_v13, %s10101_s30 }
 0x9ba   :  { %6056 = vrot.lane.b32.xlu0 %v14907_v2, %s10093_s22 }
 0x9bb   :  { %6048 = vrot.lane.b32.xlu1 %v14909_v53, %s10093_s22 }
 0x9be   :  { %6058 = vrot.lane.b32.xlu0 %v14919_v37, %s10093_s22 }
 0x9bf   :  { %6050 = vrot.lane.b32.xlu1 %v14921_v39, %s10093_s22 }
 0x9c2   :  { %6060 = vrot.lane.b32.xlu0 %v14931_v30, %s10093_s22 }
 0x9c3   :  { %6052 = vrot.lane.b32.xlu1 %v14933_v45, %s10093_s22 }
 0x9c6   :  { %6062 = vrot.lane.b32.xlu0 %v14943_v47, %s10093_s22 }
 0x9c7   :  { %6054 = vrot.lane.b32.xlu1 %v14945_v13, %s10093_s22 }
 0x9ca   :  { %6090 = vrot.lane.b32.xlu0 %v14909_v53, %s10094_s23 }
 0x9cb   :  { %6088 = vrot.lane.b32.xlu1 %v14907_v2, %s10094_s23 }
 0x9ce   :  { %6094 = vrot.lane.b32.xlu0 %v14921_v39, %s10094_s23 }
 0x9cf   :  { %6092 = vrot.lane.b32.xlu1 %v14919_v37, %s10094_s23 }
 0x9d2   :  { %6098 = vrot.lane.b32.xlu0 %v14933_v45, %s10094_s23 }
 0x9d3   :  { %6096 = vrot.lane.b32.xlu1 %v14931_v30, %s10094_s23 }
 0x9d6   :  { %6102 = vrot.lane.b32.xlu0 %v14945_v13, %s10094_s23 }
 0x9d7   :  { %6100 = vrot.lane.b32.xlu1 %v14943_v47, %s10094_s23 }
 0x9da   :  { %6130 = vrot.lane.b32.xlu0 %v14909_v53, %s10102_s1 }
 0x9db   :  { %6128 = vrot.lane.b32.xlu1 %v14907_v2, %s10102_s1 }
 0x9de   :  { %6134 = vrot.lane.b32.xlu0 %v14921_v39, %s10102_s1 }
 0x9df   :  { %6132 = vrot.lane.b32.xlu1 %v14919_v37, %s10102_s1 }
 0x9e2   :  { %6138 = vrot.lane.b32.xlu0 %v14933_v45, %s10102_s1 }
 0x9e3   :  { %6136 = vrot.lane.b32.xlu1 %v14931_v30, %s10102_s1 }
 0x9e6   :  { %6142 = vrot.lane.b32.xlu0 %v14945_v13, %s10102_s1 }
 0x9e7   :  { %6140 = vrot.lane.b32.xlu1 %v14943_v47, %s10102_s1 }
 0x9ea   :  { %6170 = vrot.lane.b32.xlu0 %v14909_v53, %s10103_s19 }
 0x9eb   :  { %6168 = vrot.lane.b32.xlu1 %v14907_v2, %s10103_s19 }
 0x9ee   :  { %6174 = vrot.lane.b32.xlu0 %v14921_v39, %s10103_s19 }
 0x9ef   :  { %6172 = vrot.lane.b32.xlu1 %v14919_v37, %s10103_s19 }
 0x9f0   :  { %v5937_v46 = vpop.permute.xlu0 %5936 }
 0x9f1   :  { %v5925_v40 = vpop.permute.xlu1 %5924 }
 0x9f2   :  { %v5954_v48 = vsel %vm5150_vm11, %v5925_v40, %v5937_v46  ;;  %6178 = vrot.lane.b32.xlu0 %v14933_v45, %s10103_s19  ;;  %v5944_v49 = vsel %vm5150_vm11, %v5937_v46, %v5925_v40 }
 0x9f3   :  { %6176 = vrot.lane.b32.xlu1 %v14931_v30, %s10103_s19  ;;  %6432 = vmatprep.subr.bf16.mxu1 %v5944_v49 }
 0x9f4   :  { %6433 = vmatpush1.bf16.msra.mxu1 %v5954_v48 }
 0x9f6   :  { %6182 = vrot.lane.b32.xlu0 %v14945_v13, %s10103_s19 }
 0x9f7   :  { %6180 = vrot.lane.b32.xlu1 %v14943_v47, %s10103_s19 }
 0x9f8   :  { %v5939_v0 = vpop.permute.xlu0 %5938 }
 0x9f9   :  { %v5927_v3 = vpop.permute.xlu1 %5926 }
 0x9fa   :  { %v5958_v12 = vsel %vm5150_vm11, %v5927_v3, %v5939_v0  ;;  %6210 = vrot.lane.b32.xlu0 %v14909_v53, %s10104_s4  ;;  %v5945_v27 = vsel %vm5150_vm11, %v5939_v0, %v5927_v3 }
 0x9fb   :  { %6208 = vrot.lane.b32.xlu1 %v14907_v2, %s10104_s4  ;;  %6434 = vmatprep.subr.bf16.mxu1 %v5945_v27 }
 0x9fc   :  { %6435 = vmatpush1.bf16.msra.mxu1 %v5958_v12 }
 0x9fe   :  { %6214 = vrot.lane.b32.xlu0 %v14921_v39, %s10104_s4 }
 0x9ff   :  { %6212 = vrot.lane.b32.xlu1 %v14919_v37, %s10104_s4 }
 0xa00   :  { %v5941_v6 = vpop.permute.xlu0 %5940 }
 0xa01   :  { %v5929_v35 = vpop.permute.xlu1 %5928 }
 0xa02   :  { %v5962_v5 = vsel %vm5150_vm11, %v5929_v35, %v5941_v6  ;;  %6218 = vrot.lane.b32.xlu0 %v14933_v45, %s10104_s4  ;;  %v5946_v25 = vsel %vm5150_vm11, %v5941_v6, %v5929_v35 }
 0xa03   :  { %6216 = vrot.lane.b32.xlu1 %v14931_v30, %s10104_s4  ;;  %6436 = vmatprep.subr.bf16.mxu1 %v5946_v25 }
 0xa04   :  { %6437 = vmatpush1.bf16.msra.mxu1 %v5962_v5 }
 0xa06   :  { %6222 = vrot.lane.b32.xlu0 %v14945_v13, %s10104_s4 }
 0xa07   :  { %6220 = vrot.lane.b32.xlu1 %v14943_v47, %s10104_s4 }
 0xa08   :  { %v5943_v60 = vpop.permute.xlu0 %5942 }
 0xa09   :  { %v5931_v14 = vpop.permute.xlu1 %5930 }
 0xa0a   :  { %v5966_v55 = vsel %vm5150_vm11, %v5931_v14, %v5943_v60  ;;  %6282 = vperm.xlu0 %9266, %v6272_v28   ;;  %v5947_v34 = vsel %vm5150_vm11, %v5943_v60, %v5931_v14 }
 0xa0b   :  { %6287 = vperm.xlu1 %9267, %v6273_v23   ;;  %6438 = vmatprep.subr.bf16.mxu1 %v5947_v34  ;;  %v9920_v23 = vld [vmem:[%s15895_s9] ss:$20 sps:$4 sm:$0xff]  }
 0xa0c   :  { %v5977_v4 = vpop.permute.xlu0 %5976  ;;  %6439 = vmatpush1.bf16.msra.mxu1 %v5966_v55  ;;  %v9923_v55 = vld [vmem:[%s15895_s9 + $0x2c] ss:$20 sps:$4 sm:$0xff]  }
 0xa0d   :  { %v5969_v10 = vpop.permute.xlu1 %5968 }
 0xa0e   :  { %v5994_v43 = vsel %vm5192_vm12, %v5969_v10, %v5977_v4  ;;  %6297 = vperm.xlu0 %9266, %v6275_v15   ;;  %v5984_v50 = vsel %vm5192_vm12, %v5977_v4, %v5969_v10 }
 0xa0f   :  { %6292 = vperm.xlu1 %9267, %v6274_v32   ;;  %6440 = vmatprep.subr.bf16.mxu1 %v5984_v50  ;;  %v9925_v32 = vld [vmem:[%s15895_s9 + $0x28] ss:$20 sps:$4 sm:$0xff]   ;;  %v9928_v50 = vld [vmem:[%s15895_s9 + $0x50] ss:$20 sps:$4 sm:$0xff]  }
 0xa10   :  { %v5979_v33 = vpop.permute.xlu0 %5978  ;;  %6441 = vmatpush1.bf16.msra.mxu1 %v5994_v43 }
 0xa11   :  { %v5971_v54 = vpop.permute.xlu1 %5970 }
 0xa12   :  { %v5998_v19 = vsel %vm5192_vm12, %v5971_v54, %v5979_v33  ;;  %6302 = vperm.xlu0 %9266, %v6276_v1   ;;  %v5985_v16 = vsel %vm5192_vm12, %v5979_v33, %v5971_v54 }
 0xa13   :  { %6442 = vmatprep.subr.bf16.mxu1 %v5985_v16  ;;  %v9931_v16 = vld [vmem:[%s15895_s9 + $0x78] ss:$20 sps:$4 sm:$0xff]  }
 0xa14   :  { %v5981_v44 = vpop.permute.xlu0 %5980  ;;  %6443 = vmatpush1.bf16.msra.mxu1 %v5998_v19 }
 0xa15   :  { %v5973_v51 = vpop.permute.xlu1 %5972 }
 0xa16   :  { %v6002_v26 = vsel %vm5192_vm12, %v5973_v51, %v5981_v44  ;;  %v5986_v56 = vsel %vm5192_vm12, %v5981_v44, %v5973_v51 }
 0xa17   :  { %6444 = vmatprep.subr.bf16.mxu1 %v5986_v56 }
 0xa18   :  { %v5983_v61 = vpop.permute.xlu0 %5982  ;;  %6445 = vmatpush1.bf16.msra.mxu1 %v6002_v26  ;;  %v9934_v26 = vld [vmem:[%s15895_s9 + $0xc] ss:$20 sps:$4 sm:$0xff]  }
 0xa19   :  { %v5975_v22 = vpop.permute.xlu1 %5974 }
 0xa1a   :  { %v6006_v21 = vsel %vm5192_vm12, %v5975_v22, %v5983_v61  ;;  %v5987_v59 = vsel %vm5192_vm12, %v5983_v61, %v5975_v22 }
 0xa1b   :  { %6446 = vmatprep.subr.bf16.mxu1 %v5987_v59 }
 0xa1c   :  { %v6017_v42 = vpop.permute.xlu0 %6016  ;;  %6447 = vmatpush1.bf16.msra.mxu1 %v6006_v21 }
 0xa1d   :  { %v6009_v20 = vpop.permute.xlu1 %6008 }
 0xa1e   :  { %v6034_v24 = vsel %vm5234_vm13, %v6009_v20, %v6017_v42  ;;  %v6024_v17 = vsel %vm5234_vm13, %v6017_v42, %v6009_v20 }
 0xa1f   :  { %6448 = vmatprep.subr.bf16.mxu1 %v6024_v17 }
 0xa20   :  { %v6019_v7 = vpop.permute.xlu0 %6018  ;;  %6449 = vmatpush1.bf16.msra.mxu1 %v6034_v24 }
 0xa21   :  { %v6011_v8 = vpop.permute.xlu1 %6010 }
 0xa22   :  { %v6038_v62 = vsel %vm5234_vm13, %v6011_v8, %v6019_v7  ;;  %v6025_v18 = vsel %vm5234_vm13, %v6019_v7, %v6011_v8 }
 0xa23   :  { %6450 = vmatprep.subr.bf16.mxu1 %v6025_v18 }
 0xa24   :  { %v6021_v63 = vpop.permute.xlu0 %6020  ;;  %6451 = vmatpush1.bf16.msra.mxu1 %v6038_v62 }
 0xa25   :  { %v6013_v41 = vpop.permute.xlu1 %6012 }
 0xa26   :  { %v6042_v29 = vsel %vm5234_vm13, %v6013_v41, %v6021_v63  ;;  %v6026_v58 = vsel %vm5234_vm13, %v6021_v63, %v6013_v41 }
 0xa27   :  { %6452 = vmatprep.subr.bf16.mxu1 %v6026_v58 }
 0xa28   :  { %v6023_v57 = vpop.permute.xlu0 %6022  ;;  %6453 = vmatpush1.bf16.msra.mxu1 %v6042_v29 }
 0xa29   :  { %v6015_v31 = vpop.permute.xlu1 %6014 }
 0xa2a   :  { %v6046_v52 = vsel %vm5234_vm13, %v6015_v31, %v6023_v57  ;;  %v6027_v36 = vsel %vm5234_vm13, %v6023_v57, %v6015_v31 }
 0xa2b   :  { %6454 = vmatprep.subr.bf16.mxu1 %v6027_v36 }
 0xa2c   :  { %v6057_v38 = vpop.permute.xlu0 %6056  ;;  %6455 = vmatpush1.bf16.msra.mxu1 %v6046_v52 }
 0xa2d   :  { %v6049_v11 = vpop.permute.xlu1 %6048 }
 0xa2e   :  { %v6074_v46 = vsel %vm188_vm3, %v6049_v11, %v6057_v38  ;;  %v6064_v40 = vsel %vm188_vm3, %v6057_v38, %v6049_v11 }
 0xa2f   :  { %6456 = vmatprep.subr.bf16.mxu1 %v6064_v40 }
 0xa30   :  { %v6059_v48 = vpop.permute.xlu0 %6058  ;;  %6457 = vmatpush1.bf16.msra.mxu1 %v6074_v46 }
 0xa31   :  { %v6051_v49 = vpop.permute.xlu1 %6050 }
 0xa32   :  { %v6078_v0 = vsel %vm188_vm3, %v6051_v49, %v6059_v48  ;;  %v6065_v3 = vsel %vm188_vm3, %v6059_v48, %v6051_v49 }
 0xa33   :  { %6458 = vmatprep.subr.bf16.mxu1 %v6065_v3 }
 0xa34   :  { %v6061_v12 = vpop.permute.xlu0 %6060  ;;  %6459 = vmatpush1.bf16.msra.mxu1 %v6078_v0 }
 0xa35   :  { %v6053_v27 = vpop.permute.xlu1 %6052 }
 0xa36   :  { %v6082_v6 = vsel %vm188_vm3, %v6053_v27, %v6061_v12  ;;  %v6066_v35 = vsel %vm188_vm3, %v6061_v12, %v6053_v27 }
 0xa37   :  { %6460 = vmatprep.subr.bf16.mxu1 %v6066_v35 }
 0xa38   :  { %v6063_v5 = vpop.permute.xlu0 %6062  ;;  %6461 = vmatpush1.bf16.msra.mxu1 %v6082_v6 }
 0xa39   :  { %v6055_v25 = vpop.permute.xlu1 %6054 }
 0xa3a   :  { %v6086_v28 = vsel %vm188_vm3, %v6055_v25, %v6063_v5  ;;  %v6067_v60 = vsel %vm188_vm3, %v6063_v5, %v6055_v25  ;;  %v9932_v25 = vld [vmem:[%s15895_s9 + $0x8] ss:$20 sps:$4 sm:$0xff]  }
 0xa3b   :  { %6462 = vmatprep.subr.bf16.mxu1 %v6067_v60  ;;  %v9935_v60 = vld [vmem:[%s15895_s9 + $0x34] ss:$20 sps:$4 sm:$0xff]  }
 0xa3c   :  { %v6091_v14 = vpop.permute.xlu0 %6090  ;;  %6463 = vmatpush1.bf16.msra.mxu1 %v6086_v28 }
 0xa3d   :  { %6505 = vmatprep.subr.bf16.mxu1 %v14909_v53  ;;  %v6089_v34 = vpop.permute.xlu1 %6088  ;;  %v9926_v53 = vld [vmem:[%s15895_s9 + $0x54] ss:$20 sps:$4 sm:$0xff]  }
 0xa3e   :  { %v6114_v1 = vsel %vm221_vm4, %v6091_v14, %v6089_v34 }
 0xa3f   :  { %6465 = vmatmul.mubr.bf16.vlgmr.msra.gmra.mrb[80].mxu1 %v9920_v23 }
 0xa40   :  { %v6095_v15 = vpop.permute.xlu0 %6094  ;;  %6506 = vmatpush1.bf16.msra.mxu1 %v14907_v2  ;;  %6474 = vmatprep.mubr.bf16.mxu1 %v9923_v55 }
 0xa41   :  { %6507 = vmatprep.subr.bf16.mxu1 %v14921_v39  ;;  %v6093_v4 = vpop.permute.xlu1 %6092 }
 0xa42   :  { %v6118_v54 = vsel %vm221_vm4, %v6095_v15, %v6093_v4 }
 0xa44   :  { %v6099_v10 = vpop.permute.xlu0 %6098  ;;  %6508 = vmatpush1.bf16.msra.mxu1 %v14919_v37 }
 0xa45   :  { %6509 = vmatprep.subr.bf16.mxu1 %v14933_v45  ;;  %v6097_v43 = vpop.permute.xlu1 %6096  ;;  %v9929_v45 = vld [vmem:[%s15895_s9 + $0x7c] ss:$20 sps:$4 sm:$0xff]  }
 0xa46   :  { %v6122_v51 = vsel %vm221_vm4, %v6099_v10, %v6097_v43  ;;  %v6106_v61 = vsel %vm221_vm4, %v6097_v43, %v6099_v10  ;;  %v9938_v10 = vld [vmem:[%s15895_s9 + $0x5c] ss:$20 sps:$4 sm:$0xff]  }
 0xa47   :  { %6475 = vmatmul.mubr.bf16.gmra.mrb[84].mxu1 %v9925_v32 }
 0xa48   :  { %v6103_v2 = vpop.permute.xlu0 %6102  ;;  %6510 = vmatpush1.bf16.msra.mxu1 %v14931_v30  ;;  %6484 = vmatprep.mubr.bf16.mxu1 %v9926_v53  ;;  %v6104_v30 = vsel %vm221_vm4, %v6089_v34, %v6091_v14 }
 0xa49   :  { %6511 = vmatprep.subr.bf16.mxu1 %v14945_v13  ;;  %v6101_v39 = vpop.permute.xlu1 %6100 }
 0xa4a   :  { %v6126_v21 = vsel %vm221_vm4, %v6103_v2, %v6101_v39  ;;  %v6107_v42 = vsel %vm221_vm4, %v6101_v39, %v6103_v2 }
 0xa4c   :  { %v6131_v37 = vpop.permute.xlu0 %6130  ;;  %6512 = vmatpush1.bf16.msra.mxu1 %v14943_v47  ;;  %v6105_v47 = vsel %vm221_vm4, %v6093_v4, %v6095_v15  ;;  %v9937_v4 = vld [vmem:[%s15895_s9 + $0x30] ss:$20 sps:$4 sm:$0xff]  }
 0xa4d   :  { %6513 = vmatprep.subr.bf16.mxu1 %v6114_v1  ;;  %v6129_v33 = vpop.permute.xlu1 %6128  ;;  %v9941_v1 = vld [vmem:[%s15895_s9 + $0x84] ss:$20 sps:$4 sm:$0xff]  }
 0xa4e   :  { %v6154_v24 = vsel %vm5356_vm14, %v6131_v37, %v6129_v33  ;;  %v6144_v7 = vsel %vm5356_vm14, %v6129_v33, %v6131_v37  ;;  %v9940_v37 = vld [vmem:[%s15895_s9 + $0x58] ss:$20 sps:$4 sm:$0xff]   ;;  %v9944_v33 = vld [vmem:[%s15895_s9 + $0x10] ss:$20 sps:$4 sm:$0xff]  }
 0xa4f   :  { %6485 = vmatmul.mubr.bf16.gmra.mrb[88].mxu1 %v9928_v50 }
 0xa50   :  { %v6135_v13 = vpop.permute.xlu0 %6134  ;;  %6514 = vmatpush1.bf16.msra.mxu1 %v6104_v30  ;;  %6494 = vmatprep.mubr.bf16.mxu1 %v9929_v45  ;;  %v9943_v45 = vld [vmem:[%s15895_s9 + $0x80] ss:$20 sps:$4 sm:$0xff]   ;;  %v9945_v30 = vld [vmem:[%s15895_s9 + $0x38] ss:$20 sps:$4 sm:$0xff]  }
 0xa51   :  { %6515 = vmatprep.subr.bf16.mxu1 %v6118_v54  ;;  %v6133_v19 = vpop.permute.xlu1 %6132  ;;  %v9947_v54 = vld [vmem:[%s15895_s9 + $0x88] ss:$20 sps:$4 sm:$0xff]  }
 0xa52   :  { %v6158_v8 = vsel %vm5356_vm14, %v6135_v13, %v6133_v19  ;;  %v6145_v63 = vsel %vm5356_vm14, %v6133_v19, %v6135_v13  ;;  %v9946_v13 = vld [vmem:[%s15895_s9 + $0x60] ss:$20 sps:$4 sm:$0xff]  }
 0xa54   :  { %v6139_v44 = vpop.permute.xlu0 %6138  ;;  %6516 = vmatpush1.bf16.msra.mxu1 %v6105_v47 }
 0xa55   :  { %6517 = vmatprep.subr.bf16.mxu1 %v6122_v51  ;;  %v6137_v56 = vpop.permute.xlu1 %6136 }
 0xa56   :  { %v6162_v41 = vsel %vm5356_vm14, %v6139_v44, %v6137_v56  ;;  %v6146_v29 = vsel %vm5356_vm14, %v6137_v56, %v6139_v44 }
 0xa57   :  { %6495 = vmatmul.mubr.bf16.gmra.mrb[92].mxu1 %v9931_v16 }
 0xa58   :  { %v6143_v22 = vpop.permute.xlu0 %6142  ;;  %6518 = vmatpush1.bf16.msra.mxu1 %v6106_v61  ;;  %6537 = vmatprep.mubr.bf16.mxu1 %v9934_v26 }
 0xa59   :  { %6519 = vmatprep.subr.bf16.mxu1 %v6126_v21  ;;  %v6141_v59 = vpop.permute.xlu1 %6140 }
 0xa5a   :  { %v6166_v31 = vsel %vm5356_vm14, %v6143_v22, %v6141_v59  ;;  %v6147_v52 = vsel %vm5356_vm14, %v6141_v59, %v6143_v22 }
 0xa5c   :  { %v6171_v20 = vpop.permute.xlu0 %6170  ;;  %6520 = vmatpush1.bf16.msra.mxu1 %v6107_v42 }
 0xa5d   :  { %6521 = vmatprep.subr.bf16.mxu1 %v6154_v24  ;;  %v6169_v17 = vpop.permute.xlu1 %6168 }
 0xa5e   :  { %v6194_v36 = vsel %vm5398_vm15, %v6171_v20, %v6169_v17  ;;  %v6184_v46 = vsel %vm5398_vm15, %v6169_v17, %v6171_v20 }
 0xa60   :  { %6522 = vmatpush1.bf16.msra.mxu1 %v6144_v7  ;;  %v6175_v62 = vpop.permute.xlu0 %6174 }
 0xa61   :  { %6523 = vmatprep.subr.bf16.mxu1 %v6158_v8  ;;  %v6173_v18 = vpop.permute.xlu1 %6172 }
 0xa62   :  { %v6198_v40 = vsel %vm5398_vm15, %v6175_v62, %v6173_v18  ;;  %v6185_v48 = vsel %vm5398_vm15, %v6173_v18, %v6175_v62 }
 0xa64   :  { %6524 = vmatpush1.bf16.msra.mxu1 %v6145_v63  ;;  %v6179_v58 = vpop.permute.xlu0 %6178  ;;  %v6279_v63 = vld [vmem:[%s15896_s10 + $0x38] sm:$0xff] }
 0xa65   :  { %6525 = vmatprep.subr.bf16.mxu1 %v6162_v41  ;;  %v6177_v57 = vpop.permute.xlu1 %6176 }
 0xa66   :  { %v6202_v3 = vsel %vm5398_vm15, %v6179_v58, %v6177_v57  ;;  %v6186_v12 = vsel %vm5398_vm15, %v6177_v57, %v6179_v58 }
 0xa68   :  { %6526 = vmatpush1.bf16.msra.mxu1 %v6146_v29  ;;  %v6183_v38 = vpop.permute.xlu0 %6182 }
 0xa69   :  { %6527 = vmatprep.subr.bf16.mxu1 %v6166_v31  ;;  %v6181_v11 = vpop.permute.xlu1 %6180  ;;  %v6277_v31 = vld [vmem:[%s15896_s10 + $0x28] sm:$0xff] }
 0xa6a   :  { %v6206_v27 = vsel %vm5398_vm15, %v6183_v38, %v6181_v11  ;;  %v6187_v5 = vsel %vm5398_vm15, %v6181_v11, %v6183_v38  ;;  %v6278_v38 = vld [vmem:[%s15896_s10 + $0x30] sm:$0xff] }
 0xa6c   :  { %6528 = vmatpush1.bf16.msra.mxu1 %v6147_v52  ;;  %v6211_v49 = vpop.permute.xlu0 %6210 }
 0xa6d   :  { %6529 = vmatprep.subr.bf16.mxu1 %v6194_v36  ;;  %v6209_v0 = vpop.permute.xlu1 %6208 }
 0xa6e   :  { %v6234_v28 = vsel %vm5440_vm0, %v6211_v49, %v6209_v0  ;;  %v6224_v23 = vsel %vm5440_vm0, %v6209_v0, %v6211_v49 }
 0xa70   :  { %6530 = vmatpush1.bf16.msra.mxu1 %v6184_v46  ;;  %v6215_v6 = vpop.permute.xlu0 %6214 }
 0xa71   :  { %6531 = vmatprep.subr.bf16.mxu1 %v6198_v40  ;;  %v6213_v35 = vpop.permute.xlu1 %6212 }
 0xa72   :  { %v6238_v34 = vsel %vm5440_vm0, %v6215_v6, %v6213_v35  ;;  %v6225_v15 = vsel %vm5440_vm0, %v6213_v35, %v6215_v6  ;;  %v9949_v6 = vld [vmem:[%s15897_s12 + $0x80] sm:$0xff]   ;;  %v9950_v35 = vld [vmem:[%s15897_s12 + $0xc8] sm:$0xff]  }
 0xa74   :  { %6532 = vmatpush1.bf16.msra.mxu1 %v6185_v48  ;;  %v6219_v14 = vpop.permute.xlu0 %6218 }
 0xa75   :  { %6533 = vmatprep.subr.bf16.mxu1 %v6202_v3  ;;  %v6217_v55 = vpop.permute.xlu1 %6216 }
 0xa76   :  { %v6242_v32 = vsel %vm5440_vm0, %v6219_v14, %v6217_v55  ;;  %v6226_v2 = vsel %vm5440_vm0, %v6217_v55, %v6219_v14  ;;  %v9956_v14 = vld [vmem:[%s15897_s12 + $0xe0] sm:$0xff]  }
 0xa77   :  { %v9957_v55 = vld [vmem:[%s15897_s12 + $0xa0] sm:$0xff]  }
 0xa78   :  { %6534 = vmatpush1.bf16.msra.mxu1 %v6186_v12  ;;  %v6223_v53 = vpop.permute.xlu0 %6222 }
 0xa79   :  { %6535 = vmatprep.subr.bf16.mxu1 %v6206_v27  ;;  %v6221_v43 = vpop.permute.xlu1 %6220  ;;  %v9948_v27 = vld [vmem:[%s15897_s12 + $0xc0] sm:$0xff]  }
 0xa7a   :  { %v6246_v39 = vsel %vm5440_vm0, %v6223_v53, %v6221_v43  ;;  %v6227_v50 = vsel %vm5440_vm0, %v6221_v43, %v6223_v53  ;;  %8619 = vmatprep.subr.bf16.mxu0 %v9948_v27  ;;  %v9961_v53 = vld [vmem:[%s15897_s12 + $0xb0] sm:$0xff]  }
 0xa7b   :  { %8620 = vmatpush3.bf16.msra.mxu0 %v9949_v6 }
 0xa7c   :  { %6536 = vmatpush1.bf16.msra.mxu1 %v6187_v5  ;;  %v9951_v5 = vld [vmem:[%s15897_s12 + $0x88] sm:$0xff]   ;;  %8621 = vmatprep.subr.bf16.mxu0 %v9950_v35 }
 0xa7d   :  { %6578 = vmatprep.subr.bf16.mxu1 %v6234_v28  ;;  %v9953_v28 = vld [vmem:[%s15897_s12 + $0x90] sm:$0xff]  }
 0xa7f   :  { %6538 = vmatmul.mubr.bf16.vlgmr.msra.gmra.mrb[80].mxu1 %v9932_v25  ;;  %v9952_v25 = vld [vmem:[%s15897_s12 + $0xd0] sm:$0xff]   ;;  %8622 = vmatpush3.bf16.msra.mxu0 %v9951_v5 }
 0xa80   :  { %6579 = vmatpush1.bf16.msra.mxu1 %v6224_v23  ;;  %6547 = vmatprep.mubr.bf16.mxu1 %v9935_v60  ;;  %v9954_v60 = vld [vmem:[%s15897_s12 + $0xd8] sm:$0xff]  }
 0xa81   :  { %6580 = vmatprep.subr.bf16.mxu1 %v6238_v34  ;;  %8623 = vmatprep.subr.bf16.mxu0 %v9952_v25  ;;  %v9955_v23 = vld [vmem:[%s15897_s12 + $0x98] sm:$0xff]   ;;  %v9958_v34 = vld [vmem:[%s15897_s12 + $0xe8] sm:$0xff]  }
 0xa83   :  { %8624 = vmatpush3.bf16.msra.mxu0 %v9953_v28 }
 0xa84   :  { %6581 = vmatpush1.bf16.msra.mxu1 %v6225_v15  ;;  %8625 = vmatprep.subr.bf16.mxu0 %v9954_v60  ;;  %v9959_v15 = vld [vmem:[%s15897_s12 + $0xa8] sm:$0xff]  }
 0xa85   :  { %6582 = vmatprep.subr.bf16.mxu1 %v6242_v32 }
 0xa87   :  { %6548 = vmatmul.mubr.bf16.gmra.mrb[84].mxu1 %v9937_v4  ;;  %8626 = vmatpush3.bf16.msra.mxu0 %v9955_v23 }
 0xa88   :  { %6583 = vmatpush1.bf16.msra.mxu1 %v6226_v2  ;;  %6557 = vmatprep.mubr.bf16.mxu1 %v9938_v10  ;;  %v9960_v10 = vld [vmem:[%s15897_s12 + $0xf0] sm:$0xff]  }
 0xa89   :  { %6584 = vmatprep.subr.bf16.mxu1 %v6246_v39  ;;  %v6283_v19 = vpop.permute.xlu0 %6282  ;;  %8627 = vmatprep.subr.bf16.mxu0 %v9956_v14  ;;  %v9997_v14 = vld [vmem:[%s15897_s12 + $0x180] sm:$0xff]  }
 0xa8a   :  { %v6288_v51 = vpop.permute.xlu1 %6287 }
 0xa8b   :  { %8628 = vmatpush3.bf16.msra.mxu0 %v9957_v55  ;;  %v9998_v55 = vld [vmem:[%s15897_s12 + $0x1c8] sm:$0xff]  }
 0xa8c   :  { %6585 = vmatpush1.bf16.msra.mxu1 %v6227_v50  ;;  %8629 = vmatprep.subr.bf16.mxu0 %v9958_v34  ;;  %v10000_v34 = vld [vmem:[%s15897_s12 + $0x188] sm:$0xff]  }
 0xa8d   :  { %v6298_v4 = vpop.permute.xlu0 %6297 }
 0xa8e   :  { %v6293_v17 = vpop.permute.xlu1 %6292 }
 0xa8f   :  { %6558 = vmatmul.mubr.bf16.gmra.mrb[88].mxu1 %v9940_v37  ;;  %8630 = vmatpush3.bf16.msra.mxu0 %v9959_v15  ;;  %v10002_v15 = vld [vmem:[%s15897_s12 + $0x1d0] sm:$0xff]  }
 0xa90   :  { %6567 = vmatprep.mubr.bf16.mxu1 %v9941_v1  ;;  %8631 = vmatprep.subr.bf16.mxu0 %v9960_v10  ;;  %v9962_v1 = vld [vmem:[%s15897_s12 + $0xf8] sm:$0xff]  }
 0xa91   :  { %v6303_v32 = vpop.permute.xlu0 %6302  ;;  %v10008_v10 = vld [vmem:[%s15897_s12 + $0x198] sm:$0xff]  }
 0xa93   :  { %8632 = vmatpush3.bf16.msra.mxu0 %v9961_v53  ;;  %v10010_v53 = vld [vmem:[%s15897_s12 + $0x1e0] sm:$0xff]  }
 0xa94   :  { %8633 = vmatprep.subr.bf16.mxu0 %v9962_v1 }
 0xa97   :  { %6568 = vmatmul.mubr.bf16.gmra.mrb[92].mxu1 %v9943_v45 }
 0xa98   :  { %6610 = vmatprep.mubr.bf16.mxu1 %v16619_v9 }
 0xa9f   :  { %8486 = vmatmul.mubr.msk.bf16.vlgmr.msra.gmra.mrb[80].mxu1 %vm2288_vm10, %v9944_v33 }
 0xaa0   :  { %6620 = vmatprep.mubr.bf16.mxu1 %v16619_v9 }
 0xaa7   :  { %8487 = vmatmul.mubr.msk.bf16.gmra.mrb[84].mxu1 %vm2288_vm10, %v9945_v30 }
 0xaa8   :  { %6630 = vmatprep.mubr.bf16.mxu1 %v16619_v9 }
 0xaaf   :  { %8488 = vmatmul.mubr.msk.bf16.gmra.mrb[88].mxu1 %vm2288_vm10, %v9946_v13 }
 0xab0   :  { %6640 = vmatprep.mubr.bf16.mxu1 %v16619_v9 }
 0xab7   :  { %8489 = vmatmul.mubr.msk.bf16.gmra.mrb[92].mxu1 %vm2288_vm10, %v9947_v54  ;;  %v9963_v54 = vld [vmem:[%s15897_s12 + $0xb8] sm:$0xff]  }
 0xab8   :  { %8634 = vmatpush3.bf16.msra.mxu0 %v9963_v54 }
 0xb72   :  { %v6612_v47 = vpop.f32.mrb[80].mxu1 }
 0xb73   :  { %v15218_v16 = vadd.f32 %v6612_v47, %v6283_v19  ;;  %v6614_v44 = vpop.f32.mrb[81].mxu1 }
 0xb74   :  { %v15220_v26 = vadd.f32 %v6614_v44, %v6283_v19  ;;  %v6616_v56 = vpop.f32.mrb[82].mxu1 }
 0xb75   :  { %v6651_v61 = vmax.f32 %v15218_v16, 0.0  ;;  %v15223_v22 = vadd.f32 %v6616_v56, %v6288_v51  ;;  %v6618_v9 = vpop.f32.mrb[83].mxu1 }
 0xb76   :  { %v6652_v21 = vmax.f32 %v15220_v26, 0.0  ;;  %v15226_v59 = vadd.f32 %v6618_v9, %v6288_v51  ;;  %v9964_v51 = vld [vmem:[%s15897_s12 + $0x40] sm:$0xff]  }
 0xb77   :  { %v6653_v42 = vmax.f32 %v15223_v22, 0.0  ;;  %8641 = vmatprep.subr.bf16.mxu0 %v9964_v51 }
 0xb78   :  { %v9593_v20 = vpack.i.bf16 %v6652_v21, %v6651_v61  ;;  %v6654_v24 = vmax.f32 %v15226_v59, 0.0 }
 0xb7a   :  { %v9588_v7 = vpack.i.bf16 %v6654_v24, %v6653_v42  ;;  %v6622_v8 = vpop.f32.mrb[84].mxu1  ;;  %9594 = vrot.lane.b32.xlu0 %v9593_v20, %s10094_s23 }
 0xb7b   :  { %v15239_v62 = vadd.f32 %v6622_v8, %v6293_v17  ;;  %v6624_v18 = vpop.f32.mrb[85].mxu1 }
 0xb7c   :  { %v15244_v41 = vadd.f32 %v6624_v18, %v6293_v17  ;;  %v6626_v29 = vpop.f32.mrb[86].mxu1  ;;  %9589 = vrot.lane.b32.xlu1 %v9588_v7, %s10094_s23 }
 0xb7d   :  { %v6655_v58 = vmax.f32 %v15239_v62, 0.0  ;;  %v6628_v57 = vpop.f32.mrb[87].mxu1  ;;  %v15318_v50 = vadd.f32 %v6626_v29, %v6298_v4 }
 0xb7e   :  { %v6656_v52 = vmax.f32 %v15244_v41, 0.0  ;;  %6317 = vperm.xlu0 %9266, %v6279_v63   ;;  %v15328_v19 = vadd.f32 %v6628_v57, %v6298_v4  ;;  %v10004_v4 = vld [vmem:[%s15897_s12 + $0x190] sm:$0xff]  }
 0xb80   :  { %v9603_v36 = vpack.i.bf16 %v6656_v52, %v6655_v58  ;;  %6307 = vperm.xlu1 %9267, %v6277_v31  }
 0xb82   :  { %v15259_v11 = vpop.f32.mrb[88].mxu1  ;;  %9604 = vrot.lane.b32.xlu0 %v9603_v36, %s10094_s23 }
 0xb83   :  { %v15262_v46 = vpop.f32.mrb[89].mxu1  ;;  %v15356_v17 = vadd.f32 %v15259_v11, %v6303_v32 }
 0xb84   :  { %v15264_v40 = vpop.f32.mrb[90].mxu1  ;;  %6312 = vperm.xlu1 %9267, %v6278_v38   ;;  %v15359_v7 = vadd.f32 %v15262_v46, %v6303_v32  ;;  %v10006_v32 = vld [vmem:[%s15897_s12 + $0x1d8] sm:$0xff]  }
 0xb85   :  { %v15266_v48 = vpop.f32.mrb[91].mxu1 }
 0xb8a   :  { %v15268_v49 = vpop.f32.mrb[92].mxu1 }
 0xb8b   :  { %v15270_v0 = vpop.f32.mrb[93].mxu1 }
 0xb8c   :  { %v15272_v3 = vpop.f32.mrb[94].mxu1 }
 0xb8d   :  { %v15274_v12 = vpop.f32.mrb[95].mxu1 }
 0xbec   :  { %v9595_v43 = vpop.permute.xlu0 %9594 }
 0xbed   :  { %v9597_v2 = vunpack.i.h.bf16 %v9595_v43  ;;  %v9596_v39 = vunpack.i.l.bf16 %v9595_v43  ;;  %v10012_v43 = vld [vmem:[%s15897_s12 + $0x1a0] sm:$0xff]  }
 0xbee   :  { %v9590_v37 = vpop.permute.xlu1 %9589 }
 0xbef   :  { %v6715_v45 = vsel %vm221_vm4, %v9596_v39, %v9597_v2  ;;  %v6747_v33 = vsel %vm221_vm4, %v9597_v2, %v9596_v39  ;;  %v9592_v30 = vunpack.i.h.bf16 %v9590_v37  ;;  %v9591_v13 = vunpack.i.l.bf16 %v9590_v37  ;;  %v10014_v2 = vld [vmem:[%s15897_s12 + $0x1e8] sm:$0xff]   ;;  %v10018_v37 = vld [vmem:[%s15897_s12 + $0x1f0] sm:$0xff]  }
 0xbf0   :  { %v15332_v47 = vmax.f32 %v6651_v61, %v6715_v45  ;;  %v15336_v44 = vmax.f32 %v6652_v21, %v6747_v33  ;;  %v6657_v61 = vmax.f32 %v15318_v50, 0.0  ;;  %v6658_v21 = vmax.f32 %v15328_v19, 0.0  ;;  %v10016_v39 = vld [vmem:[%s15897_s12 + $0x1a8] sm:$0xff]  }
 0xbf1   :  { %v6716_v56 = vsel %vm221_vm4, %v9591_v13, %v9592_v30  ;;  %v6748_v9 = vsel %vm221_vm4, %v9592_v30, %v9591_v13  ;;  %v9967_v50 = vld [vmem:[%s15897_s12 + $0x8] sm:$0xff]  }
 0xbf2   :  { %v15345_v20 = vmax.f32 %v6653_v42, %v6716_v56  ;;  %v15349_v16 = vmax.f32 %v6654_v24, %v6748_v9  ;;  %v9613_v26 = vpack.i.bf16 %v15336_v44, %v15332_v47  ;;  %v9608_v59 = vpack.i.bf16 %v6658_v21, %v6657_v61  ;;  %v10020_v56 = vld [vmem:[%s15897_s12 + $0x1b0] sm:$0xff]  }
 0xbf3   :  { %v6659_v42 = vmax.f32 %v15356_v17, 0.0  ;;  %v6660_v24 = vmax.f32 %v15359_v7, 0.0  ;;  %v9970_v17 = vld [vmem:[%s15897_s12 + $0x58] sm:$0xff]  }
 0xbf4   :  { %9614 = vrot.lane.b32.xlu0 %v9613_v26, %s10103_s19  ;;  %v9598_v22 = vpack.i.bf16 %v15349_v16, %v15345_v20 }
 0xbf5   :  { %v9618_v8 = vpack.i.bf16 %v6660_v24, %v6659_v42 }
 0xbf6   :  { %9599 = vrot.lane.b32.xlu1 %v9598_v22, %s10103_s19 }
 0xbfa   :  { %9609 = vrot.lane.b32.xlu1 %v9608_v59, %s10094_s23 }
 0xbfd   :  { %v6318_v18 = vpop.permute.xlu0 %6317 }
 0xbfe   :  { %9619 = vrot.lane.b32.xlu1 %v9618_v8, %s10094_s23  ;;  %v15386_v46 = vadd.f32 %v15272_v3, %v6318_v18  ;;  %v15389_v35 = vadd.f32 %v15274_v12, %v6318_v18 }
 0xbff   :  { %v6308_v63 = vpop.permute.xlu1 %6307 }
 0xc00   :  { %v15378_v29 = vadd.f32 %v15264_v40, %v6308_v63  ;;  %v15381_v57 = vadd.f32 %v15266_v48, %v6308_v63  ;;  %v6666_v23 = vmax.f32 %v15389_v35, 0.0  ;;  %v10022_v63 = vld [vmem:[%s15897_s12 + $0x1f8] sm:$0xff]  }
 0xc01   :  { %v9605_v31 = vpop.permute.xlu0 %9604 }
 0xc02   :  { %v6661_v36 = vmax.f32 %v15378_v29, 0.0  ;;  %v6662_v38 = vmax.f32 %v15381_v57, 0.0  ;;  %v9607_v11 = vunpack.i.h.bf16 %v9605_v31  ;;  %v9606_v27 = vunpack.i.l.bf16 %v9605_v31  ;;  %v9974_v57 = vld [vmem:[%s15897_s12 + $0x68] sm:$0xff]  }
 0xc03   :  { %v6313_v6 = vpop.permute.xlu1 %6312 }
 0xc04   :  { %v9623_v40 = vpack.i.bf16 %v6662_v38, %v6661_v36  ;;  %v15396_v48 = vadd.f32 %v15268_v49, %v6313_v6  ;;  %v15399_v5 = vadd.f32 %v15270_v0, %v6313_v6  ;;  %v6717_v25 = vsel %vm221_vm4, %v9606_v27, %v9607_v11 }
 0xc05   :  { %v6749_v3 = vsel %vm221_vm4, %v9607_v11, %v9606_v27  ;;  %v15405_v28 = vmax.f32 %v6655_v58, %v6717_v25  ;;  %v6665_v0 = vmax.f32 %v15386_v46, 0.0  ;;  %v10024_v27 = vld [vmem:[%s15897_s12 + $0x1b8] sm:$0xff]  }
 0xc06   :  { %v15409_v12 = vmax.f32 %v6656_v52, %v6749_v3  ;;  %v6663_v60 = vmax.f32 %v15396_v48, 0.0  ;;  %v6664_v49 = vmax.f32 %v15399_v5, 0.0  ;;  %9624 = vrot.lane.b32.xlu0 %v9623_v40, %s10094_s23  ;;  %v9996_v52 = vld [vmem:[%s15897_s12 + $0x1c0] sm:$0xff]   ;;  %v9966_v3 = vld [vmem:[%s15897_s12 + $0x48] sm:$0xff]   ;;  %v9978_v46 = vld [vmem:[%s15897_s12 + $0x78] sm:$0xff]  }
 0xc07   :  { %v9643_v58 = vpack.i.bf16 %v6666_v23, %v6665_v0  ;;  %8685 = vmatprep.subr.bf16.mxu1 %v9996_v52  ;;  %v9975_v48 = vld [vmem:[%s15897_s12 + $0x28] sm:$0xff]  }
 0xc08   :  { %v9628_v62 = vpack.i.bf16 %v6664_v49, %v6663_v60  ;;  %v9633_v41 = vpack.i.bf16 %v15409_v12, %v15405_v28  ;;  %8686 = vmatpush3.bf16.msra.mxu1 %v9997_v14 }
 0xc09   :  { %8687 = vmatprep.subr.bf16.mxu1 %v9998_v55 }
 0xc0a   :  { %9634 = vrot.lane.b32.xlu1 %v9633_v41, %s10103_s19  ;;  %9629 = vrot.lane.b32.xlu0 %v9628_v62, %s10094_s23 }
 0xc0c   :  { %8688 = vmatpush3.bf16.msra.mxu1 %v10000_v34 }
 0xc0d   :  { %8689 = vmatprep.subr.bf16.mxu1 %v10002_v15 }
 0xc0e   :  { %9644 = vrot.lane.b32.xlu0 %v9643_v58, %s10094_s23 }
 0xc10   :  { %8690 = vmatpush3.bf16.msra.mxu1 %v10004_v4 }
 0xc11   :  { %8691 = vmatprep.subr.bf16.mxu1 %v10006_v32 }
 0xc14   :  { %8692 = vmatpush3.bf16.msra.mxu1 %v10008_v10  ;;  %v9969_v10 = vld [vmem:[%s15897_s12 + $0x10] sm:$0xff]  }
 0xc15   :  { %8693 = vmatprep.subr.bf16.mxu1 %v10010_v53  ;;  %v9971_v53 = vld [vmem:[%s15897_s12 + $0x18] sm:$0xff]  }
 0xc18   :  { %8694 = vmatpush3.bf16.msra.mxu1 %v10012_v43 }
 0xc19   :  { %8695 = vmatprep.subr.bf16.mxu1 %v10014_v2 }
 0xc1c   :  { %8696 = vmatpush3.bf16.msra.mxu1 %v10016_v39  ;;  %v9972_v39 = vld [vmem:[%s15897_s12 + $0x60] sm:$0xff]  }
 0xc1d   :  { %8697 = vmatprep.subr.bf16.mxu1 %v10018_v37 }
 0xc20   :  { %8698 = vmatpush3.bf16.msra.mxu1 %v10020_v56 }
 0xc21   :  { %8699 = vmatprep.subr.bf16.mxu1 %v10022_v63 }
 0xc24   :  { %8700 = vmatpush3.bf16.msra.mxu1 %v10024_v27 }
 0xc66   :  { %v15468_v1 = vpop.permute.xlu0 %9614 }
 0xc67   :  { %v9617_v45 = vunpack.i.h.bf16 %v15468_v1  ;;  %v9616_v33 = vunpack.i.l.bf16 %v15468_v1 }
 0xc68   :  { %v9600_v30 = vpop.permute.xlu1 %9599 }
 0xc69   :  { %v9602_v13 = vunpack.i.h.bf16 %v9600_v30  ;;  %v9601_v54 = vunpack.i.l.bf16 %v9600_v30  ;;  %v6851_v51 = vsel %vm5398_vm15, %v9617_v45, %v9616_v33  ;;  %v6819_v35 = vsel %vm5398_vm15, %v9616_v33, %v9617_v45  ;;  %v9981_v45 = vld [vmem:[%s15897_s12 + $0x100] sm:$0xff]  }
 0xc6a   :  { %v6860_v18 = vmax.f32 %v15336_v44, %v6851_v51  ;;  %v10027_v44 = vld [vmem:[%s15897_s12 + $0x2c0] sm:$0xff]  }
 0xc6b   :  { %v6820_v9 = vsel %vm5398_vm15, %v9601_v54, %v9602_v13  ;;  %v6852_v26 = vsel %vm5398_vm15, %v9602_v13, %v9601_v54  ;;  %8729 = vmatprep.subr.bf16.mxu1 %v10027_v44  ;;  %v6859_v44 = vmax.f32 %v15332_v47, %v6819_v35  ;;  %v9983_v47 = vld [vmem:[%s15897_s12 + $0x108] sm:$0xff]  }
 0xc6c   :  { %v6861_v22 = vmax.f32 %v15345_v20, %v6820_v9  ;;  %v9610_v59 = vpop.permute.xlu1 %9609  ;;  %v6862_v8 = vmax.f32 %v15349_v16, %v6852_v26  ;;  %v9965_v20 = vld [vmem:[%s15897_s12] sm:$0xff]   ;;  %v6876_v52 = vpack.c.bf16 %v6860_v18, %v6860_v18 }
 0xc6d   :  { %v9612_v31 = vunpack.i.h.bf16 %v9610_v59  ;;  %v9611_v11 = vunpack.i.l.bf16 %v9610_v59  ;;  %v9973_v9 = vld [vmem:[%s15897_s12 + $0x20] sm:$0xff]   ;;  %v6875_v33 = vpack.c.bf16 %v6859_v44, %v6859_v44 }
 0xc6e   :  { %v6909_v6 = vpack.c.bf16 %v6861_v22, %v6861_v22  ;;  %v6910_v40 = vpack.c.bf16 %v6862_v8, %v6862_v8 }
 0xc6f   :  { %v6718_v16 = vsel %vm221_vm4, %v9611_v11, %v9612_v31  ;;  %v6750_v25 = vsel %vm221_vm4, %v9612_v31, %v9611_v11 }
 0xc70   :  { %v15504_v62 = vmax.f32 %v6657_v61, %v6718_v16  ;;  %v15508_v41 = vmax.f32 %v6658_v21, %v6750_v25  ;;  %v9620_v58 = vpop.permute.xlu1 %9619  ;;  %7071 = vmatprep.mubr.bf16.mxu0 %v6910_v40  ;;  %v9968_v21 = vld [vmem:[%s15897_s12 + $0x50] sm:$0xff]   ;;  %v9980_v16 = vld [vmem:[%s15897_s12 + $0x140] sm:$0xff]   ;;  %v9982_v25 = vld [vmem:[%s15897_s12 + $0x148] sm:$0xff]  }
 0xc71   :  { %v9622_v14 = vunpack.i.h.bf16 %v9620_v58  ;;  %v9621_v55 = vunpack.i.l.bf16 %v9620_v58  ;;  %7072 = vmatmul.mubr.bf16.vlgmr.msra.gmra.mrb[80].mxu0 %v6909_v6  ;;  %v9985_v58 = vld [vmem:[%s15897_s12 + $0x110] sm:$0xff]  }
 0xc72   :  { %8642 = vmatpush3.bf16.msra.mxu0 %v9965_v20  ;;  %7207 = vmatprep.mubr.bf16.mxu0 %v6876_v52  ;;  %v9638_v34 = vpack.i.bf16 %v15508_v41, %v15504_v62  ;;  %v9977_v20 = vld [vmem:[%s15897_s12 + $0x30] sm:$0xff]   ;;  %v9986_v52 = vld [vmem:[%s15897_s12 + $0x158] sm:$0xff]  }
 0xc73   :  { %v6719_v19 = vsel %vm221_vm4, %v9621_v55, %v9622_v14  ;;  %v6751_v61 = vsel %vm221_vm4, %v9622_v14, %v9621_v55  ;;  %8643 = vmatprep.subr.bf16.mxu0 %v9966_v3  ;;  %v9987_v14 = vld [vmem:[%s15897_s12 + $0x118] sm:$0xff]   ;;  %v9988_v55 = vld [vmem:[%s15897_s12 + $0x160] sm:$0xff]  }
 0xc74   :  { %v15522_v15 = vmax.f32 %v6659_v42, %v6719_v19  ;;  %v15526_v4 = vmax.f32 %v6660_v24, %v6751_v61  ;;  %9639 = vrot.lane.b32.xlu1 %v9638_v34, %s10103_s19  ;;  %v9989_v34 = vld [vmem:[%s15897_s12 + $0x120] sm:$0xff]   ;;  %v9991_v19 = vld [vmem:[%s15897_s12 + $0x128] sm:$0xff]   ;;  %v9992_v61 = vld [vmem:[%s15897_s12 + $0x170] sm:$0xff]  }
 0xc76   :  { %8644 = vmatpush3.bf16.msra.mxu0 %v9967_v50  ;;  %v9648_v32 = vpack.i.bf16 %v15526_v4, %v15522_v15  ;;  %v9990_v50 = vld [vmem:[%s15897_s12 + $0x168] sm:$0xff]  }
 0xc77   :  { %8645 = vmatprep.subr.bf16.mxu0 %v9968_v21  ;;  %v9993_v21 = vld [vmem:[%s15897_s12 + $0x130] sm:$0xff]  }
 0xc78   :  { %v9625_v42 = vpop.permute.xlu0 %9624  ;;  %9649 = vrot.lane.b32.xlu1 %v9648_v32, %s10103_s19  ;;  %v9994_v32 = vld [vmem:[%s15897_s12 + $0x178] sm:$0xff]  }
 0xc79   :  { %v9627_v7 = vunpack.i.h.bf16 %v9625_v42  ;;  %v9626_v24 = vunpack.i.l.bf16 %v9625_v42 }
 0xc7a   :  { %8646 = vmatpush3.bf16.msra.mxu0 %v9969_v10 }
 0xc7b   :  { %v6720_v43 = vsel %vm221_vm4, %v9626_v24, %v9627_v7  ;;  %v6752_v2 = vsel %vm221_vm4, %v9627_v7, %v9626_v24  ;;  %8647 = vmatprep.subr.bf16.mxu0 %v9970_v17  ;;  %v9995_v17 = vld [vmem:[%s15897_s12 + $0x138] sm:$0xff]   ;;  %v9999_v7 = vld [vmem:[%s15897_s12 + $0x240] sm:$0xff]  }
 0xc7c   :  { %v15548_v37 = vmax.f32 %v6661_v36, %v6720_v43  ;;  %v15552_v30 = vmax.f32 %v6662_v38, %v6752_v2  ;;  %v9630_v13 = vpop.permute.xlu0 %9629  ;;  %v9635_v18 = vpop.permute.xlu1 %9634  ;;  %v10001_v24 = vld [vmem:[%s15897_s12 + $0x200] sm:$0xff]   ;;  %v10003_v43 = vld [vmem:[%s15897_s12 + $0x248] sm:$0xff]   ;;  %v10007_v2 = vld [vmem:[%s15897_s12 + $0x250] sm:$0xff]  }
 0xc7d   :  { %v9632_v54 = vunpack.i.h.bf16 %v9630_v13  ;;  %v9631_v51 = vunpack.i.l.bf16 %v9630_v13  ;;  %v9637_v27 = vunpack.i.h.bf16 %v9635_v18  ;;  %v9636_v6 = vunpack.i.l.bf16 %v9635_v18  ;;  %v10011_v13 = vld [vmem:[%s15897_s12 + $0x258] sm:$0xff]  }
 0xc7e   :  { %8648 = vmatpush3.bf16.msra.mxu0 %v9971_v53  ;;  %v9653_v56 = vpack.i.bf16 %v15552_v30, %v15548_v37 }
 0xc7f   :  { %v6721_v26 = vsel %vm221_vm4, %v9631_v51, %v9632_v54  ;;  %v6753_v29 = vsel %vm221_vm4, %v9632_v54, %v9631_v51  ;;  %8649 = vmatprep.subr.bf16.mxu0 %v9972_v39  ;;  %v6821_v10 = vsel %vm5398_vm15, %v9636_v6, %v9637_v27  ;;  %v10009_v39 = vld [vmem:[%s15897_s12 + $0x210] sm:$0xff]   ;;  %v10013_v54 = vld [vmem:[%s15897_s12 + $0x218] sm:$0xff]   ;;  %v10015_v51 = vld [vmem:[%s15897_s12 + $0x260] sm:$0xff]  }
 0xc80   :  { %v15566_v36 = vmax.f32 %v6663_v60, %v6721_v26  ;;  %v15570_v38 = vmax.f32 %v6664_v49, %v6753_v29  ;;  %9654 = vrot.lane.b32.xlu0 %v9653_v56, %s10103_s19  ;;  %v9645_v22 = vpop.permute.xlu0 %9644  ;;  %v9976_v49 = vld [vmem:[%s15897_s12 + $0x70] sm:$0xff]   ;;  %v6863_v42 = vmax.f32 %v15405_v28, %v6821_v10  ;;  %v10005_v28 = vld [vmem:[%s15897_s12 + $0x208] sm:$0xff]   ;;  %v10017_v56 = vld [vmem:[%s15897_s12 + $0x220] sm:$0xff]  }
 0xc81   :  { %v9647_v59 = vunpack.i.h.bf16 %v9645_v22  ;;  %v9646_v8 = vunpack.i.l.bf16 %v9645_v22  ;;  %v10021_v26 = vld [vmem:[%s15897_s12 + $0x228] sm:$0xff]   ;;  %v10023_v29 = vld [vmem:[%s15897_s12 + $0x270] sm:$0xff]   ;;  %v10026_v22 = vld [vmem:[%s15897_s12 + $0x278] sm:$0xff]  }
 0xc82   :  { %8650 = vmatpush3.bf16.msra.mxu0 %v9973_v9  ;;  %v9658_v63 = vpack.i.bf16 %v15570_v38, %v15566_v36  ;;  %v7215_v53 = vpack.c.bf16 %v6863_v42, %v6863_v42  ;;  %v10019_v9 = vld [vmem:[%s15897_s12 + $0x268] sm:$0xff]   ;;  %v10040_v10 = vld [vmem:[%s15897_s12 + $0x298] sm:$0xff]  }
 0xc83   :  { %v6722_v60 = vsel %vm221_vm4, %v9646_v8, %v9647_v59  ;;  %v6754_v5 = vsel %vm221_vm4, %v9647_v59, %v9646_v8  ;;  %8651 = vmatprep.subr.bf16.mxu0 %v9974_v57  ;;  %v10025_v57 = vld [vmem:[%s15897_s12 + $0x230] sm:$0xff]   ;;  %v10028_v59 = vld [vmem:[%s15897_s12 + $0x238] sm:$0xff]   ;;  %v10031_v8 = vld [vmem:[%s15897_s12 + $0x340] sm:$0xff]  }
 0xc84   :  { %v15585_v31 = vmax.f32 %v6665_v0, %v6722_v60  ;;  %v15589_v11 = vmax.f32 %v6666_v23, %v6754_v5  ;;  %9659 = vrot.lane.b32.xlu1 %v9658_v63, %s10103_s19  ;;  %v6853_v0 = vsel %vm5398_vm15, %v9637_v27, %v9636_v6  ;;  %v9979_v23 = vld [vmem:[%s15897_s12 + $0x38] sm:$0xff]  }
 0xc85   :  { %v6864_v1 = vmax.f32 %v15409_v12, %v6853_v0  ;;  %v9984_v12 = vld [vmem:[%s15897_s12 + $0x150] sm:$0xff]   ;;  %v10029_v0 = vld [vmem:[%s15897_s12 + $0x280] sm:$0xff]  }
 0xc86   :  { %8652 = vmatpush3.bf16.msra.mxu0 %v9975_v48  ;;  %v9663_v40 = vpack.i.bf16 %v15589_v11, %v15585_v31 }
 0xc87   :  { %8653 = vmatprep.subr.bf16.mxu0 %v9976_v49  ;;  %v7216_v3 = vpack.c.bf16 %v6864_v1, %v6864_v1 }
 0xc88   :  { %9664 = vrot.lane.b32.xlu0 %v9663_v40, %s10103_s19 }
 0xc8a   :  { %8654 = vmatpush3.bf16.msra.mxu0 %v9977_v20 }
 0xc8b   :  { %8655 = vmatprep.subr.bf16.mxu0 %v9978_v46 }
 0xc8e   :  { %8656 = vmatpush3.bf16.msra.mxu0 %v9979_v23 }
 0xc8f   :  { %8663 = vmatprep.subr.bf16.mxu0 %v9980_v16  ;;  %v10030_v16 = vld [vmem:[%s15897_s12 + $0x2c8] sm:$0xff]  }
 0xc91   :  { %7208 = vmatmul.mubr.bf16.vlgmr.msra.gmra.mrb[84].mxu0 %v6875_v33  ;;  %v10032_v33 = vld [vmem:[%s15897_s12 + $0x288] sm:$0xff]  }
 0xc92   :  { %8664 = vmatpush3.bf16.msra.mxu0 %v9981_v45  ;;  %7377 = vmatprep.mubr.bf16.mxu0 %v7216_v3 }
 0xc93   :  { %8665 = vmatprep.subr.bf16.mxu0 %v9982_v25  ;;  %v10033_v25 = vld [vmem:[%s15897_s12 + $0x300] sm:$0xff]  }
 0xc96   :  { %8666 = vmatpush3.bf16.msra.mxu0 %v9983_v47 }
 0xc97   :  { %8667 = vmatprep.subr.bf16.mxu0 %v9984_v12 }
 0xc9a   :  { %8668 = vmatpush3.bf16.msra.mxu0 %v9985_v58  ;;  %v10036_v58 = vld [vmem:[%s15897_s12 + $0x290] sm:$0xff]  }
 0xc9b   :  { %8669 = vmatprep.subr.bf16.mxu0 %v9986_v52  ;;  %v10037_v52 = vld [vmem:[%s15897_s12 + $0x308] sm:$0xff]  }
 0xc9e   :  { %8670 = vmatpush3.bf16.msra.mxu0 %v9987_v14  ;;  %v10038_v14 = vld [vmem:[%s15897_s12 + $0x2d8] sm:$0xff]  }
 0xc9f   :  { %8671 = vmatprep.subr.bf16.mxu0 %v9988_v55 }
 0xca2   :  { %8672 = vmatpush3.bf16.msra.mxu0 %v9989_v34  ;;  %v10039_v34 = vld [vmem:[%s15897_s12 + $0x350] sm:$0xff]  }
 0xca3   :  { %8673 = vmatprep.subr.bf16.mxu0 %v9990_v50 }
 0xca6   :  { %8674 = vmatpush3.bf16.msra.mxu0 %v9991_v19 }
 0xca7   :  { %8675 = vmatprep.subr.bf16.mxu0 %v9992_v61 }
 0xcaa   :  { %8676 = vmatpush3.bf16.msra.mxu0 %v9993_v21 }
 0xcab   :  { %8677 = vmatprep.subr.bf16.mxu0 %v9994_v32 }
 0xcae   :  { %8678 = vmatpush3.bf16.msra.mxu0 %v9995_v17  ;;  %v10041_v17 = vld [vmem:[%s15897_s12 + $0x310] sm:$0xff]  }
 0xcaf   :  { %8707 = vmatprep.subr.bf16.mxu0 %v9999_v7  ;;  %v10043_v7 = vld [vmem:[%s15897_s12 + $0x358] sm:$0xff]  }
 0xcb1   :  { %7378 = vmatmul.mubr.bf16.vlgmr.msra.gmra.mrb[88].mxu0 %v7215_v53 }
 0xcb2   :  { %8708 = vmatpush3.bf16.msra.mxu0 %v10001_v24 }
 0xcb3   :  { %8709 = vmatprep.subr.bf16.mxu0 %v10003_v43  ;;  %v10044_v43 = vld [vmem:[%s15897_s12 + $0x2a0] sm:$0xff]  }
 0xcb6   :  { %8710 = vmatpush3.bf16.msra.mxu0 %v10005_v28  ;;  %v10045_v28 = vld [vmem:[%s15897_s12 + $0x318] sm:$0xff]  }
 0xcb7   :  { %8711 = vmatprep.subr.bf16.mxu0 %v10007_v2  ;;  %v10046_v2 = vld [vmem:[%s15897_s12 + $0x2e8] sm:$0xff]  }
 0xcba   :  { %8712 = vmatpush3.bf16.msra.mxu0 %v10009_v39  ;;  %v10048_v39 = vld [vmem:[%s15897_s12 + $0x2a8] sm:$0xff]  }
 0xcbb   :  { %8713 = vmatprep.subr.bf16.mxu0 %v10011_v13  ;;  %v10049_v13 = vld [vmem:[%s15897_s12 + $0x320] sm:$0xff]  }
 0xcbe   :  { %8714 = vmatpush3.bf16.msra.mxu0 %v10013_v54 }
 0xcbf   :  { %8715 = vmatprep.subr.bf16.mxu0 %v10015_v51  ;;  %v10050_v51 = vld [vmem:[%s15897_s12 + $0x2f0] sm:$0xff]  }
 0xcc2   :  { %8716 = vmatpush3.bf16.msra.mxu0 %v10017_v56  ;;  %v10051_v56 = vld [vmem:[%s15897_s12 + $0x368] sm:$0xff]  }
 0xcc3   :  { %8717 = vmatprep.subr.bf16.mxu0 %v10019_v9 }
 0xcc6   :  { %8718 = vmatpush3.bf16.msra.mxu0 %v10021_v26 }
 0xcc7   :  { %8719 = vmatprep.subr.bf16.mxu0 %v10023_v29  ;;  %v10052_v29 = vld [vmem:[%s15897_s12 + $0x2b0] sm:$0xff]  }
 0xcca   :  { %8720 = vmatpush3.bf16.msra.mxu0 %v10025_v57  ;;  %v10053_v57 = vld [vmem:[%s15897_s12 + $0x328] sm:$0xff]  }
 0xccb   :  { %8721 = vmatprep.subr.bf16.mxu0 %v10026_v22  ;;  %v10054_v22 = vld [vmem:[%s15897_s12 + $0x2f8] sm:$0xff]  }
 0xcce   :  { %8722 = vmatpush3.bf16.msra.mxu0 %v10028_v59  ;;  %v10055_v59 = vld [vmem:[%s15897_s12 + $0x370] sm:$0xff]  }
 0xccf   :  { %8751 = vmatprep.subr.bf16.mxu0 %v10031_v8 }
 0xce6   :  { %v9640_v18 = vpop.permute.xlu1 %9639 }
 0xce7   :  { %v9642_v63 = vunpack.i.h.bf16 %v9640_v18  ;;  %v9641_v48 = vunpack.i.l.bf16 %v9640_v18 }
 0xce9   :  { %v6822_v60 = vsel %vm5398_vm15, %v9641_v48, %v9642_v63  ;;  %v6854_v5 = vsel %vm5398_vm15, %v9642_v63, %v9641_v48  ;;  %v10056_v63 = vld [vmem:[%s15897_s12 + $0x2b8] sm:$0xff]   ;;  %v10057_v48 = vld [vmem:[%s15897_s12 + $0x330] sm:$0xff]  }
 0xcea   :  { %v6865_v49 = vmax.f32 %v15504_v62, %v6822_v60  ;;  %v9650_v27 = vpop.permute.xlu1 %9649  ;;  %v6866_v6 = vmax.f32 %v15508_v41, %v6854_v5  ;;  %v10058_v5 = vld [vmem:[%s15897_s12 + $0x378] sm:$0xff]  }
 0xceb   :  { %v9652_v40 = vunpack.i.h.bf16 %v9650_v27  ;;  %v9651_v20 = vunpack.i.l.bf16 %v9650_v27 }
 0xcec   :  { %v7386_v46 = vpack.c.bf16 %v6865_v49, %v6865_v49  ;;  %v7387_v35 = vpack.c.bf16 %v6866_v6, %v6866_v6  ;;  %v10059_v49 = vld [vmem:[%s15897_s12 + $0x3c0] sm:$0xff]  }
 0xced   :  { %v6823_v23 = vsel %vm5398_vm15, %v9651_v20, %v9652_v40  ;;  %v6855_v44 = vsel %vm5398_vm15, %v9652_v40, %v9651_v20  ;;  %v10061_v40 = vld [vmem:[%s15897_s12 + $0x380] sm:$0xff]  }
 0xcee   :  { %v6867_v62 = vmax.f32 %v15522_v15, %v6823_v23  ;;  %7548 = vmatprep.mubr.bf16.mxu1 %v7387_v35  ;;  %v6868_v41 = vmax.f32 %v15526_v4, %v6855_v44  ;;  %v10034_v15 = vld [vmem:[%s15897_s12 + $0x2d0] sm:$0xff]   ;;  %v10035_v4 = vld [vmem:[%s15897_s12 + $0x348] sm:$0xff]  }
 0xcef   :  { %7549 = vmatmul.mubr.bf16.vlgmr.msra.gmra.mrb[96].mxu1 %v7386_v46  ;;  %v10062_v35 = vld [vmem:[%s15897_s12 + $0x3c8] sm:$0xff]   ;;  %v10065_v44 = vld [vmem:[%s15897_s12 + $0x390] sm:$0xff]  }
 0xcf0   :  { %8730 = vmatpush3.bf16.msra.mxu1 %v10029_v0  ;;  %v7558_v1 = vpack.c.bf16 %v6868_v41, %v6868_v41  ;;  %v7557_v45 = vpack.c.bf16 %v6867_v62, %v6867_v62  ;;  %v10063_v0 = vld [vmem:[%s15897_s12 + $0x388] sm:$0xff]   ;;  %v10067_v62 = vld [vmem:[%s15897_s12 + $0x398] sm:$0xff]   ;;  %v10068_v41 = vld [vmem:[%s15897_s12 + $0x3e0] sm:$0xff]  }
 0xcf1   :  { %8731 = vmatprep.subr.bf16.mxu1 %v10030_v16  ;;  %v10066_v16 = vld [vmem:[%s15897_s12 + $0x3d8] sm:$0xff]  }
 0xcf2   :  { %v9655_v3 = vpop.permute.xlu0 %9654  ;;  %7719 = vmatprep.mubr.bf16.mxu0 %v7558_v1  ;;  %v10069_v1 = vld [vmem:[%s15897_s12 + $0x3a0] sm:$0xff]  }
 0xcf3   :  { %v9657_v47 = vunpack.i.h.bf16 %v9655_v3  ;;  %v9656_v12 = vunpack.i.l.bf16 %v9655_v3  ;;  %7720 = vmatmul.mubr.bf16.vlgmr.msra.gmra.mrb[92].mxu0 %v7557_v45  ;;  %v10070_v45 = vld [vmem:[%s15897_s12 + $0x3e8] sm:$0xff]  }
 0xcf4   :  { %8732 = vmatpush3.bf16.msra.mxu1 %v10032_v33  ;;  %8752 = vmatpush3.bf16.msra.mxu0 %v10033_v25  ;;  %v10071_v33 = vld [vmem:[%s15897_s12 + $0x3a8] sm:$0xff]   ;;  %v10072_v25 = vld [vmem:[%s15897_s12 + $0x3f0] sm:$0xff]  }
 0xcf5   :  { %8733 = vmatprep.subr.bf16.mxu1 %v10034_v15  ;;  %8753 = vmatprep.subr.bf16.mxu0 %v10035_v4  ;;  %v6856_v55 = vsel %vm5398_vm15, %v9657_v47, %v9656_v12  ;;  %v6824_v8 = vsel %vm5398_vm15, %v9656_v12, %v9657_v47  ;;  %v10073_v15 = vld [vmem:[%s15897_s12 + $0x3b0] sm:$0xff]   ;;  %v10074_v4 = vld [vmem:[%s15897_s12 + $0x3f8] sm:$0xff]  }
 0xcf6   :  { %v9660_v50 = vpop.permute.xlu1 %9659  ;;  %v6870_v19 = vmax.f32 %v15552_v30, %v6856_v55  ;;  %v10042_v30 = vld [vmem:[%s15897_s12 + $0x2e0] sm:$0xff]   ;;  %v6869_v60 = vmax.f32 %v15548_v37, %v6824_v8  ;;  %v10060_v37 = vld [vmem:[%s15897_s12 + $0x338] sm:$0xff]  }
 0xcf7   :  { %v9662_v61 = vunpack.i.h.bf16 %v9660_v50  ;;  %v9661_v21 = vunpack.i.l.bf16 %v9660_v50  ;;  %v10075_v47 = vld [vmem:[%s15897_s12 + $0x3b8] sm:$0xff]  }
 0xcf8   :  { %8734 = vmatpush3.bf16.msra.mxu1 %v10036_v58  ;;  %8754 = vmatpush3.bf16.msra.mxu0 %v10037_v52  ;;  %v7729_v32 = vpack.c.bf16 %v6870_v19, %v6870_v19  ;;  %v7728_v46 = vpack.c.bf16 %v6869_v60, %v6869_v60 }
 0xcf9   :  { %v6857_v42 = vsel %vm5398_vm15, %v9662_v61, %v9661_v21  ;;  %8735 = vmatprep.subr.bf16.mxu1 %v10038_v14  ;;  %8755 = vmatprep.subr.bf16.mxu0 %v10039_v34  ;;  %v6825_v27 = vsel %vm5398_vm15, %v9661_v21, %v9662_v61 }
 0xcfa   :  { %7890 = vmatprep.mubr.bf16.mxu1 %v7729_v32  ;;  %v6872_v24 = vmax.f32 %v15570_v38, %v6857_v42  ;;  %v10047_v38 = vld [vmem:[%s15897_s12 + $0x360] sm:$0xff]   ;;  %v15785_v54 = vpop.permute.xlu0 %9664  ;;  %v6871_v20 = vmax.f32 %v15566_v36, %v6825_v27  ;;  %v10064_v36 = vld [vmem:[%s15897_s12 + $0x3d0] sm:$0xff]  }
 0xcfb   :  { %v9667_v9 = vunpack.i.h.bf16 %v15785_v54  ;;  %v9666_v26 = vunpack.i.l.bf16 %v15785_v54 }
 0xcfc   :  { %8736 = vmatpush3.bf16.msra.mxu1 %v10040_v10  ;;  %8756 = vmatpush3.bf16.msra.mxu0 %v10041_v17  ;;  %v7900_v53 = vpack.c.bf16 %v6872_v24, %v6872_v24  ;;  %v7899_v23 = vpack.c.bf16 %v6871_v20, %v6871_v20 }
 0xcfd   :  { %8737 = vmatprep.subr.bf16.mxu1 %v10042_v30  ;;  %8757 = vmatprep.subr.bf16.mxu0 %v10043_v7  ;;  %v6858_v18 = vsel %vm5398_vm15, %v9667_v9, %v9666_v26  ;;  %v6826_v3 = vsel %vm5398_vm15, %v9666_v26, %v9667_v9 }
 0xcfe   :  { %8061 = vmatprep.mubr.bf16.mxu0 %v7900_v53  ;;  %v6874_v6 = vmax.f32 %v15589_v11, %v6858_v18  ;;  %v6873_v12 = vmax.f32 %v15585_v31, %v6826_v3 }
 0xd00   :  { %8738 = vmatpush3.bf16.msra.mxu1 %v10044_v43  ;;  %8758 = vmatpush3.bf16.msra.mxu0 %v10045_v28  ;;  %v8071_v11 = vpack.c.bf16 %v6874_v6, %v6874_v6  ;;  %v8070_v58 = vpack.c.bf16 %v6873_v12, %v6873_v12 }
 0xd01   :  { %8739 = vmatprep.subr.bf16.mxu1 %v10046_v2  ;;  %8759 = vmatprep.subr.bf16.mxu0 %v10047_v38 }
 0xd04   :  { %8740 = vmatpush3.bf16.msra.mxu1 %v10048_v39  ;;  %8760 = vmatpush3.bf16.msra.mxu0 %v10049_v13 }
 0xd05   :  { %8741 = vmatprep.subr.bf16.mxu1 %v10050_v51  ;;  %8761 = vmatprep.subr.bf16.mxu0 %v10051_v56 }
 0xd08   :  { %8742 = vmatpush3.bf16.msra.mxu1 %v10052_v29  ;;  %8762 = vmatpush3.bf16.msra.mxu0 %v10053_v57 }
 0xd09   :  { %8743 = vmatprep.subr.bf16.mxu1 %v10054_v22  ;;  %8763 = vmatprep.subr.bf16.mxu0 %v10055_v59 }
 0xd0c   :  { %8744 = vmatpush3.bf16.msra.mxu1 %v10056_v63  ;;  %8764 = vmatpush3.bf16.msra.mxu0 %v10057_v48 }
 0xd0d   :  { %8765 = vmatprep.subr.bf16.mxu0 %v10058_v5  ;;  %8773 = vmatprep.subr.bf16.mxu1 %v10059_v49 }
 0xd0f   :  { %7891 = vmatmul.mubr.bf16.vlgmr.msra.gmra.mrb[100].mxu1 %v7728_v46 }
 0xd10   :  { %8766 = vmatpush3.bf16.msra.mxu0 %v10060_v37  ;;  %8774 = vmatpush3.bf16.msra.mxu1 %v10061_v40 }
 0xd11   :  { %8232 = vmatprep.mubr.bf16.mxu1 %v8071_v11  ;;  %8775 = vmatprep.subr.bf16.mxu1 %v10062_v35  ;;  %v8618_v35 = vld [vmem:[%s15898_s13] ss:$0 sm:$0xff] }
 0xd13   :  { %8062 = vmatmul.mubr.bf16.vlgmr.msra.gmra.mrb[96].mxu0 %v7899_v23 }
 0xd14   :  { %8776 = vmatpush3.bf16.msra.mxu1 %v10063_v0 }
 0xd15   :  { %8777 = vmatprep.subr.bf16.mxu1 %v10064_v36 }
 0xd18   :  { %8778 = vmatpush3.bf16.msra.mxu1 %v10065_v44 }
 0xd19   :  { %8779 = vmatprep.subr.bf16.mxu1 %v10066_v16 }
 0xd1c   :  { %8780 = vmatpush3.bf16.msra.mxu1 %v10067_v62 }
 0xd1d   :  { %8781 = vmatprep.subr.bf16.mxu1 %v10068_v41 }
 0xd20   :  { %8782 = vmatpush3.bf16.msra.mxu1 %v10069_v1 }
 0xd21   :  { %8783 = vmatprep.subr.bf16.mxu1 %v10070_v45 }
 0xd24   :  { %8784 = vmatpush3.bf16.msra.mxu1 %v10071_v33 }
 0xd25   :  { %8785 = vmatprep.subr.bf16.mxu1 %v10072_v25 }
 0xd28   :  { %8786 = vmatpush3.bf16.msra.mxu1 %v10073_v15 }
 0xd29   :  { %8787 = vmatprep.subr.bf16.mxu1 %v10074_v4 }
 0xd2c   :  { %8788 = vmatpush3.bf16.msra.mxu1 %v10075_v47 }
 0xd2f   :  { %8233 = vmatmul.mubr.bf16.vlgmr.msra.gmra.mrb[104].mxu1 %v8070_v58 }
 0xd44   :  { %v8635_v52 = vpop.f32.mrb[80].mxu0 }
 0xd45   :  { %v8636_v14 = vpop.f32.mrb[81].mxu0 }
 0xd46   :  { %v8637_v55 = vadd.f32 %v8636_v14, %v8635_v52  ;;  %v8638_v34 = vpop.f32.mrb[82].mxu0 }
 0xd47   :  { %v8639_v50 = vpop.f32.mrb[83].mxu0 }
 0xd64   :  { %v8657_v19 = vpop.f32.mrb[84].mxu0 }
 0xd65   :  { %v8658_v61 = vpop.f32.mrb[85].mxu0 }
 0xd66   :  { %v8659_v21 = vadd.f32 %v8658_v61, %v8657_v19  ;;  %v8660_v32 = vpop.f32.mrb[86].mxu0 }
 0xd67   :  { %v8661_v10 = vpop.f32.mrb[87].mxu0 }
 0xd68   :  { %v7210_v17 = vadd.f32 %v8659_v21, %v8637_v55 }
 0xd84   :  { %v8679_v42 = vpop.f32.mrb[88].mxu0 }
 0xd85   :  { %v8680_v30 = vpop.f32.mrb[89].mxu0 }
 0xd86   :  { %v8681_v7 = vadd.f32 %v8680_v30, %v8679_v42  ;;  %v8682_v24 = vpop.f32.mrb[90].mxu0 }
 0xd87   :  { %v8683_v31 = vpop.f32.mrb[91].mxu0 }
 0xd88   :  { %v7385_v53 = vadd.f32 %v8681_v7, %v7210_v17 }
 0xdc2   :  { %v8701_v43 = vpop.f32.mrb[96].mxu1 }
 0xdc3   :  { %v8702_v28 = vpop.f32.mrb[97].mxu1 }
 0xdc4   :  { %v8703_v2 = vadd.f32 %v8702_v28, %v8701_v43  ;;  %v8704_v38 = vpop.f32.mrb[98].mxu1 }
 0xdc5   :  { %v8705_v39 = vpop.f32.mrb[99].mxu1 }
 0xdc6   :  { %v7556_v13 = vadd.f32 %v8703_v2, %v7385_v53  ;;  %v8723_v54 = vpop.f32.mrb[92].mxu0 }
 0xdc7   :  { %v8724_v51 = vpop.f32.mrb[93].mxu0 }
 0xdc8   :  { %v8725_v56 = vadd.f32 %v8724_v51, %v8723_v54  ;;  %v8726_v9 = vpop.f32.mrb[94].mxu0 }
 0xdc9   :  { %v8727_v26 = vpop.f32.mrb[95].mxu0 }
 0xdca   :  { %v7727_v29 = vadd.f32 %v8725_v56, %v7556_v13 }
 0xde2   :  { %v8745_v57 = vpop.f32.mrb[100].mxu1 }
 0xde3   :  { %v8746_v22 = vpop.f32.mrb[101].mxu1 }
 0xde4   :  { %v8747_v59 = vadd.f32 %v8746_v22, %v8745_v57  ;;  %v8748_v8 = vpop.f32.mrb[102].mxu1 }
 0xde5   :  { %v8749_v18 = vpop.f32.mrb[103].mxu1 }
 0xde6   :  { %v7898_v63 = vadd.f32 %v8747_v59, %v7727_v29  ;;  %v8767_v48 = vpop.f32.mrb[96].mxu0 }
 0xde7   :  { %v8768_v60 = vpop.f32.mrb[97].mxu0 }
 0xde8   :  { %v8769_v5 = vadd.f32 %v8768_v60, %v8767_v48  ;;  %v8770_v49 = vpop.f32.mrb[98].mxu0 }
 0xde9   :  { %v8771_v27 = vpop.f32.mrb[99].mxu0 }
 0xdea   :  { %v8069_v6 = vadd.f32 %v8769_v5, %v7898_v63 }
 0xe02   :  { %v8789_v37 = vpop.f32.mrb[104].mxu1 }
 0xe03   :  { %v8790_v40 = vpop.f32.mrb[105].mxu1 }
 0xe04   :  { %v8791_v20 = vadd.f32 %v8790_v40, %v8789_v37  ;;  %v8792_v46 = vpop.f32.mrb[106].mxu1 }
 0xe05   :  { %v8793_v11 = vpop.f32.mrb[107].mxu1 }
 0xe06   :  { %v8240_v0 = vadd.f32 %v8791_v20, %v8069_v6 }
 0xe08   :  { %v8248_v23 = vadd.f32 %v8618_v35, %v8240_v0 }
 0xe0a   :  { %8249 = vst [vmem:[%s15899_s14] sm:$0xff] %v8248_v23 }

</bundles_post_ra>
